<compile_context>
chip_gen: v5e
topology: v5e:2x2
jax: 0.10.0
libtpu: 0.0.40
codegen_flags: <defaults>
</compile_context>

<pallas_src>
import functools

import jax
import jax.numpy as jnp
from jax import lax
from jax.experimental import pallas as pl
from jax.experimental.pallas import tpu as pltpu

EPS = 1e-5
MXU_DTYPE = jnp.float32               # flip to jnp.bfloat16 on v6e/v7x for production
VMEM_LIMIT_BYTES = 32 * 1024 * 1024   # explicit scoped-VMEM limit for both kernels
VMEM_BUDGET_BYTES = 8 * 1024 * 1024   # per-step working-set budget (v5e-conservative)


# ---------------------------------------------------------------------------
# Kernels
# ---------------------------------------------------------------------------
def _conv_bn_kernel(*refs, NB, H, W, apply_bn_relu):
    """Fused per-block kernel: [optional bn1+relu on input] -> implicit-im2col staging
    in VMEM -> ONE MXU matmul with K = 9*Cin -> conv output + per-block BN stats."""
    if apply_bn_relu:
        (x_ref, w_ref, scale_ref, shift_ref,
         o_ref, psum_ref, psq_ref, xpad_ref, imcol_ref) = refs
    else:
        (x_ref, w_ref, o_ref, psum_ref, psq_ref, xpad_ref, imcol_ref) = refs
        scale_ref = shift_ref = None

    cin = x_ref.shape[-1]
    cout = o_ref.shape[-1]
    hw = H * W

    # Zero the 1-pixel halo EVERY grid step (2 rows + 2 columns -- cheap).  Zeroing
    # only at program_id(0)==0 is wrong under v7x megacore, where each TensorCore has
    # a private copy of the scratch and its first iteration may have program_id != 0.
    xpad_ref[0:1, :, :] = jnp.zeros((1, W + 2, cin), xpad_ref.dtype)
    xpad_ref[H + 1:H + 2, :, :] = jnp.zeros((1, W + 2, cin), xpad_ref.dtype)
    xpad_ref[:, 0:1, :] = jnp.zeros((H + 2, 1, cin), xpad_ref.dtype)
    xpad_ref[:, W + 1:W + 2, :] = jnp.zeros((H + 2, 1, cin), xpad_ref.dtype)

    # Stage NB images into the (NB*H*W, 9*Cin) implicit-im2col tile (VMEM only; no
    # materialized im2col in HBM).
    for nb in range(NB):
        x = x_ref[nb]                                            # (H, W, Cin), f32
        if apply_bn_relu:
            # bn1 + ReLU fused into conv2's input path.  Elementwise math stays in f32
            # (v5e has no bf16 VALU); only the value written into the MXU staging
            # scratch is cast to MXU_DTYPE.
            x = jnp.maximum(x * scale_ref[...] + shift_ref[...], 0.0)
        xpad_ref[1:H + 1, 1:W + 1, :] = x.astype(xpad_ref.dtype)

        for dh in range(3):
            for dw in range(3):
                t = dh * 3 + dw
                imcol_ref[nb * hw:(nb + 1) * hw, t * cin:(t + 1) * cin] = (
                    xpad_ref[dh:dh + H, dw:dw + W, :].reshape(hw, cin))

    # ONE MXU matmul with K = 9*Cin (vs. 9 tiny-K matmuls): feeds up to 9x more of the
    # systolic array's contraction rows and removes the per-tap accumulator
    # read-modify-write through VMEM.
    acc = jnp.dot(imcol_ref[...], w_ref[...], preferred_element_type=jnp.float32)

    o_ref[...] = acc.reshape(NB, H, W, cout).astype(o_ref.dtype)

    # BN statistics straight from the f32 accumulator (fused epilogue; the conv output
    # is never re-read from HBM just to compute stats).
    psum_ref[0] = jnp.sum(acc, axis=0, keepdims=True)
    psq_ref[0] = jnp.sum(acc * acc, axis=0, keepdims=True)


def _bn_add_relu_kernel(x_ref, r_ref, scale_ref, shift_ref, o_ref):
    """Lane-dense fused bn2 + residual add + ReLU on (rows, W*C) tiles."""
    o_ref[...] = jnp.maximum(
        x_ref[...] * scale_ref[...] + shift_ref[...] + r_ref[...], 0.0)


# ---------------------------------------------------------------------------
# Wrappers
# ---------------------------------------------------------------------------
def _pick_image_block(n, h, w, cin, cout, mxu_bytes):
    """Largest divisor of N whose per-grid-step VMEM footprint fits the byte budget
    (amortizes the ~0.35us/step pipeline overhead by moving several images per step)."""
    hw = h * w

    def step_bytes(nb):
        return (2 * nb * hw * cin * 4                       # input block (x2 buffers)
                + 2 * nb * hw * cout * 4                    # output block (x2 buffers)
                + nb * hw * 9 * cin * mxu_bytes             # im2col staging scratch
                + (h + 2) * (w + 2) * cin * mxu_bytes       # padded-input scratch
                + 9 * cin * cout * mxu_bytes)               # resident weights

    for nb in range(n, 0, -1):
        if n % nb == 0 and step_bytes(nb) <= VMEM_BUDGET_BYTES:
            return nb
    return 1


def _conv3x3_bn_stats(x_nhwc, w_mat, scale=None, shift=None, mxu_dtype=MXU_DTYPE):
    """x_nhwc: (N,H,W,Cin) f32; w_mat: (9*Cin, Cout).  Optionally applies
    y = relu(x*scale+shift) to the input before the conv (fused bn1+relu).
    Returns (conv out (N,H,W,Cout) f32, psum (blocks,1,Cout), psumsq (blocks,1,Cout))."""
    n, h, w, cin = x_nhwc.shape
    cout = w_mat.shape[-1]
    apply_bn = scale is not None
    mxu_bytes = jnp.dtype(mxu_dtype).itemsize

    nb = _pick_image_block(n, h, w, cin, cout, mxu_bytes)
    n_blocks = n // nb

    kernel = functools.partial(_conv_bn_kernel, NB=nb, H=h, W=w,
                               apply_bn_relu=apply_bn)

    in_specs = [
        pl.BlockSpec((nb, h, w, cin), lambda i: (i, 0, 0, 0)),   # NB images per step
        pl.BlockSpec((9 * cin, cout), lambda i: (0, 0)),         # resident weights
    ]
    args = [x_nhwc, w_mat.astype(mxu_dtype)]
    if apply_bn:
        vec = pl.BlockSpec((1, 1, cin), lambda i: (0, 0, 0))
        in_specs += [vec, vec]
        args += [scale.reshape(1, 1, cin).astype(jnp.float32),
                 shift.reshape(1, 1, cin).astype(jnp.float32)]

    out_shape = (
        jax.ShapeDtypeStruct((n, h, w, cout), jnp.float32),
        jax.ShapeDtypeStruct((n_blocks, 1, cout), jnp.float32),
        jax.ShapeDtypeStruct((n_blocks, 1, cout), jnp.float32),
    )
    out_specs = (
        pl.BlockSpec((nb, h, w, cout), lambda i: (i, 0, 0, 0)),
        pl.BlockSpec((1, 1, cout), lambda i: (i, 0, 0)),
        pl.BlockSpec((1, 1, cout), lambda i: (i, 0, 0)),
    )

    return pl.pallas_call(
        kernel,
        grid=(n_blocks,),
        in_specs=in_specs,
        out_specs=out_specs,
        out_shape=out_shape,
        scratch_shapes=[
            pltpu.VMEM((h + 2, w + 2, cin), mxu_dtype),       # zero-padded input
            pltpu.VMEM((nb * h * w, 9 * cin), mxu_dtype),     # implicit-im2col tile
        ],
        compiler_params=pltpu.CompilerParams(
            dimension_semantics=("parallel",),
            vmem_limit_bytes=VMEM_LIMIT_BYTES),
    )(*args)


def _row_tile(rows, lanes):
    """Row tile for the elementwise epilogue: capped by a VMEM byte budget (3 operands,
    double-buffered) and constrained to divide `rows` exactly (no padded blocks)."""
    bytes_per_row = 3 * 2 * lanes * 4
    cap = max(8, VMEM_BUDGET_BYTES // bytes_per_row)
    if rows <= cap:
        return rows
    best = 0
    for t in range(8, min(cap, rows) + 1, 8):
        if rows % t == 0:
            best = t
    if best:
        return best
    # TODO(synk): awkward row counts (no 8-aligned divisor under the budget) fall back
    # to a single full block, which may exceed the byte budget.
    return rows


def _bn_add_relu(o2_nhwc, res_nhwc, scale, shift):
    """Fused y = relu(o2*scale + shift + residual), lane-dense on (N*H, W*C) views
    (free reshapes of contiguous NHWC arrays; the last dim is a large multiple of 128
    for realistic shapes -> unmasked stores)."""
    n, h, w, c = o2_nhwc.shape
    rows, lanes = n * h, w * c
    x2d = o2_nhwc.reshape(rows, lanes)
    r2d = res_nhwc.reshape(rows, lanes)
    scale_t = jnp.tile(scale.reshape(1, c).astype(jnp.float32), (1, w))  # lane = w*C+c
    shift_t = jnp.tile(shift.reshape(1, c).astype(jnp.float32), (1, w))

    tile_r = _row_tile(rows, lanes)
    row_spec = pl.BlockSpec((tile_r, lanes), lambda i: (i, 0))
    vec_spec = pl.BlockSpec((1, lanes), lambda i: (0, 0))

    y = pl.pallas_call(
        _bn_add_relu_kernel,
        grid=(rows // tile_r,),
        in_specs=[row_spec, row_spec, vec_spec, vec_spec],
        out_specs=row_spec,
        out_shape=jax.ShapeDtypeStruct((rows, lanes), jnp.float32),
        compiler_params=pltpu.CompilerParams(
            dimension_semantics=("parallel",),
            vmem_limit_bytes=VMEM_LIMIT_BYTES),
    )(x2d, r2d, scale_t, shift_t)
    return y.reshape(n, h, w, c)


def _prep_weight(w_oihw, mtl, mxu_dtype):
    """Conv2dMtl effective weight (O,I,3,3)*(O,I,1,1) -> (9*Cin, Cout) GEMM form,
    K ordered as (tap=(dh,dw), cin) to match the implicit-im2col column layout."""
    o, i = w_oihw.shape[0], w_oihw.shape[1]
    w_eff = (w_oihw * mtl).astype(jnp.float32)
    return jnp.transpose(w_eff, (2, 3, 1, 0)).reshape(9 * i, o).astype(mxu_dtype)


def _bn_scale_shift(psum, psq, m, gamma, beta):
    """Training-mode BN affine folded into scale/shift, from f32 partial stats."""
    s = jnp.sum(psum, axis=0)                      # (1, C)
    sq = jnp.sum(psq, axis=0)                      # (1, C)
    mean = s / m
    var = jnp.maximum(sq / m - mean * mean, 0.0)   # clamp: avoid tiny negative var
    inv = lax.rsqrt(var + EPS)
    scale = gamma.reshape(1, -1) * inv
    shift = beta.reshape(1, -1) - mean * scale
    return scale, shift


# ---------------------------------------------------------------------------
# Module forward
# ---------------------------------------------------------------------------
def basic_block_mtl_forward(x_nchw, p, mxu_dtype=MXU_DTYPE):
    """BasicBlockMtl.forward (stride=1, downsample=None)."""
    # NCHW <-> NHWC boundary transposes are required by the PyTorch interface; in an
    # end-to-end NHWC model they would disappear.
    x = jnp.transpose(x_nchw, (0, 2, 3, 1)).astype(jnp.float32)   # (N,H,W,Cin)
    n, h, w, cin = x.shape
    m = n * h * w

    w1 = _prep_weight(p["w1"], p["mw1"], mxu_dtype)
    w2 = _prep_weight(p["w2"], p["mw2"], mxu_dtype)

    # conv1 with fused BN1 partial-stat epilogue.
    o1, s1, q1 = _conv3x3_bn_stats(x, w1, mxu_dtype=mxu_dtype)
    sc1, sh1 = _bn_scale_shift(s1, q1, m, p["g1"], p["b1"])

    # bn1+relu fused into conv2's prologue; conv2 with fused BN2 partial-stat epilogue.
    o2, s2, q2 = _conv3x3_bn_stats(o1, w2, scale=sc1, shift=sh1, mxu_dtype=mxu_dtype)
    sc2, sh2 = _bn_scale_shift(s2, q2, m, p["g2"], p["b2"])

    # bn2 + residual + relu, lane-dense.
    y = _bn_add_relu(o2, x, sc2, sh2)
    return jnp.transpose(y, (0, 3, 1, 2))                          # back to NCHW


# ---------------------------------------------------------------------------
# Pure-JAX reference (correctness check)
# ---------------------------------------------------------------------------
def reference_forward(x, p):
    def conv(x_, w_, mw_):
        return lax.conv_general_dilated(
            x_, w_ * mw_, (1, 1), ((1, 1), (1, 1)),
            dimension_numbers=("NCHW", "OIHW", "NCHW"))

    def bn(x_, g_, b_):
        mean = jnp.mean(x_, axis=(0, 2, 3), keepdims=True)
        var = jnp.var(x_, axis=(0, 2, 3), keepdims=True)
        return (x_ - mean) * lax.rsqrt(var + EPS) * g_.reshape(1, -1, 1, 1) \
            + b_.reshape(1, -1, 1, 1)

    out = jnp.maximum(bn(conv(x, p["w1"], p["mw1"]), p["g1"], p["b1"]), 0.0)
    out = bn(conv(out, p["w2"], p["mw2"]), p["g2"], p["b2"])
    return jnp.maximum(out + x, 0.0)


# ---------------------------------------------------------------------------
if __name__ == "__main__":
    inplanes = planes = 8          # downsample=None => inplanes == planes, stride == 1
    N, H, W = 2, 16, 16

    key = jax.random.PRNGKey(0)
    ks = jax.random.split(key, 9)
    params = {
        "w1": 0.1 * jax.random.normal(ks[0], (planes, inplanes, 3, 3), jnp.float32),
        "mw1": 1.0 + 0.05 * jax.random.normal(ks[1], (planes, inplanes, 1, 1), jnp.float32),
        "g1": 1.0 + 0.1 * jax.random.normal(ks[2], (planes,), jnp.float32),
        "b1": 0.1 * jax.random.normal(ks[3], (planes,), jnp.float32),
        "w2": 0.1 * jax.random.normal(ks[4], (planes, planes, 3, 3), jnp.float32),
        "mw2": 1.0 + 0.05 * jax.random.normal(ks[5], (planes, planes, 1, 1), jnp.float32),
        "g2": 1.0 + 0.1 * jax.random.normal(ks[6], (planes,), jnp.float32),
        "b2": 0.1 * jax.random.normal(ks[7], (planes,), jnp.float32),
    }
    x = jax.random.normal(ks[8], (N, inplanes, H, W), jnp.float32)

    fwd = jax.jit(basic_block_mtl_forward)
    out = jax.block_until_ready(fwd(x, params))
    ref = jax.block_until_ready(reference_forward(x, params))

    assert out.shape == (N, planes, H, W), out.shape
    if not jnp.allclose(out, ref, atol=1e-2, rtol=1e-2):
        raise AssertionError(
            f"mismatch: max abs err {float(jnp.max(jnp.abs(out - ref)))}")
    print("KERNEL_OK")
</pallas_src>

<mosaic_0001>
module attributes {stable_mosaic.version = 11 : i64} {
  func.func @_conv_bn_kernel(%arg0: i32, %arg1: memref<2x16x16x8xf32, #tpu.memory_space<vmem>>, %arg2: memref<72x8xf32, #tpu.memory_space<vmem>>, %arg3: memref<2x16x16x8xf32, #tpu.memory_space<vmem>>, %arg4: memref<1x1x8xf32, #tpu.memory_space<vmem>>, %arg5: memref<1x1x8xf32, #tpu.memory_space<vmem>>, %arg6: memref<18x18x8xf32, #tpu.memory_space<vmem>>, %arg7: memref<512x72xf32, #tpu.memory_space<vmem>>) attributes {dimension_semantics = [#tpu.dimension_semantics<parallel>], iteration_bounds = array<i64: 1>, scalar_prefetch = 0 : i64, scratch_operands = 2 : i64, tpu.core_type = #tpu.core_type<tc>, window_params = [{transform_indices = @transform_0, window_bounds = array<i64: 2, 16, 16, 8>}, {pipeline_mode = #tpu.pipeline_mode<synchronous>, transform_indices = @transform_1, window_bounds = array<i64: 72, 8>}, {transform_indices = @transform_2, window_bounds = array<i64: 2, 16, 16, 8>}, {transform_indices = @transform_3, window_bounds = array<i64: 1, 1, 8>}, {transform_indices = @transform_4, window_bounds = array<i64: 1, 1, 8>}]} {
    %cst = arith.constant 0.000000e+00 : f32
    %0 = vector.broadcast %cst : f32 to vector<1x18x8xf32>
    %c0 = arith.constant 0 : index
    %c0_0 = arith.constant 0 : index
    %c0_1 = arith.constant 0 : index
    %1 = vector.load %arg6[%c0, %c0_0, %c0_1] : memref<18x18x8xf32, #tpu.memory_space<vmem>>, vector<1x18x8xf32>
    tpu.vector_store %arg6[%c0, %c0_0, %c0_1], %0 {strides = array<i32>} : memref<18x18x8xf32, #tpu.memory_space<vmem>>, vector<1x18x8xf32>,
    %cst_2 = arith.constant 0.000000e+00 : f32
    %2 = vector.broadcast %cst_2 : f32 to vector<1x18x8xf32>
    %c17 = arith.constant 17 : index
    %c0_3 = arith.constant 0 : index
    %c0_4 = arith.constant 0 : index
    %3 = vector.load %arg6[%c17, %c0_3, %c0_4] : memref<18x18x8xf32, #tpu.memory_space<vmem>>, vector<1x18x8xf32>
    tpu.vector_store %arg6[%c17, %c0_3, %c0_4], %2 {strides = array<i32>} : memref<18x18x8xf32, #tpu.memory_space<vmem>>, vector<1x18x8xf32>,
    %cst_5 = arith.constant 0.000000e+00 : f32
    %4 = vector.broadcast %cst_5 : f32 to vector<18x1x8xf32>
    %c0_6 = arith.constant 0 : index
    %c0_7 = arith.constant 0 : index
    %c0_8 = arith.constant 0 : index
    %5 = vector.load %arg6[%c0_6, %c0_7, %c0_8] : memref<18x18x8xf32, #tpu.memory_space<vmem>>, vector<18x1x8xf32>
    tpu.vector_store %arg6[%c0_6, %c0_7, %c0_8], %4 {strides = array<i32>} : memref<18x18x8xf32, #tpu.memory_space<vmem>>, vector<18x1x8xf32>,
    %cst_9 = arith.constant 0.000000e+00 : f32
    %6 = vector.broadcast %cst_9 : f32 to vector<18x1x8xf32>
    %c0_10 = arith.constant 0 : index
    %c17_11 = arith.constant 17 : index
    %c0_12 = arith.constant 0 : index
    %7 = vector.load %arg6[%c0_10, %c17_11, %c0_12] : memref<18x18x8xf32, #tpu.memory_space<vmem>>, vector<18x1x8xf32>
    tpu.vector_store %arg6[%c0_10, %c17_11, %c0_12], %6 {strides = array<i32>} : memref<18x18x8xf32, #tpu.memory_space<vmem>>, vector<18x1x8xf32>,
    %c0_13 = arith.constant 0 : index
    %c0_14 = arith.constant 0 : index
    %c0_15 = arith.constant 0 : index
    %c0_16 = arith.constant 0 : index
    %8 = vector.load %arg1[%c0_13, %c0_14, %c0_15, %c0_16] : memref<2x16x16x8xf32, #tpu.memory_space<vmem>>, vector<1x16x16x8xf32>
    %9 = vector.shape_cast %8 : vector<1x16x16x8xf32> to vector<16x16x8xf32>
    %c1 = arith.constant 1 : index
    %c1_17 = arith.constant 1 : index
    %c0_18 = arith.constant 0 : index
    %10 = vector.load %arg6[%c1, %c1_17, %c0_18] : memref<18x18x8xf32, #tpu.memory_space<vmem>>, vector<16x16x8xf32>
    tpu.vector_store %arg6[%c1, %c1_17, %c0_18], %9 {strides = array<i32>} : memref<18x18x8xf32, #tpu.memory_space<vmem>>, vector<16x16x8xf32>,
    %c0_19 = arith.constant 0 : index
    %c0_20 = arith.constant 0 : index
    %c0_21 = arith.constant 0 : index
    %11 = vector.load %arg6[%c0_19, %c0_20, %c0_21] : memref<18x18x8xf32, #tpu.memory_space<vmem>>, vector<16x16x8xf32>
    %12 = vector.shape_cast %11 : vector<16x16x8xf32> to vector<256x8xf32>
    %c0_22 = arith.constant 0 : index
    %c0_23 = arith.constant 0 : index
    %13 = vector.load %arg7[%c0_22, %c0_23] : memref<512x72xf32, #tpu.memory_space<vmem>>, vector<256x8xf32>
    tpu.vector_store %arg7[%c0_22, %c0_23], %12 {strides = array<i32>} : memref<512x72xf32, #tpu.memory_space<vmem>>, vector<256x8xf32>,
    %c0_24 = arith.constant 0 : index
    %c1_25 = arith.constant 1 : index
    %c0_26 = arith.constant 0 : index
    %14 = vector.load %arg6[%c0_24, %c1_25, %c0_26] : memref<18x18x8xf32, #tpu.memory_space<vmem>>, vector<16x16x8xf32>
    %15 = vector.shape_cast %14 : vector<16x16x8xf32> to vector<256x8xf32>
    %c0_27 = arith.constant 0 : index
    %c8 = arith.constant 8 : index
    %16 = vector.load %arg7[%c0_27, %c8] : memref<512x72xf32, #tpu.memory_space<vmem>>, vector<256x8xf32>
    tpu.vector_store %arg7[%c0_27, %c8], %15 {strides = array<i32>} : memref<512x72xf32, #tpu.memory_space<vmem>>, vector<256x8xf32>,
    %c0_28 = arith.constant 0 : index
    %c2 = arith.constant 2 : index
    %c0_29 = arith.constant 0 : index
    %17 = vector.load %arg6[%c0_28, %c2, %c0_29] : memref<18x18x8xf32, #tpu.memory_space<vmem>>, vector<16x16x8xf32>
    %18 = vector.shape_cast %17 : vector<16x16x8xf32> to vector<256x8xf32>
    %c0_30 = arith.constant 0 : index
    %c16 = arith.constant 16 : index
    %19 = vector.load %arg7[%c0_30, %c16] : memref<512x72xf32, #tpu.memory_space<vmem>>, vector<256x8xf32>
    tpu.vector_store %arg7[%c0_30, %c16], %18 {strides = array<i32>} : memref<512x72xf32, #tpu.memory_space<vmem>>, vector<256x8xf32>,
    %c1_31 = arith.constant 1 : index
    %c0_32 = arith.constant 0 : index
    %c0_33 = arith.constant 0 : index
    %20 = vector.load %arg6[%c1_31, %c0_32, %c0_33] : memref<18x18x8xf32, #tpu.memory_space<vmem>>, vector<16x16x8xf32>
    %21 = vector.shape_cast %20 : vector<16x16x8xf32> to vector<256x8xf32>
    %c0_34 = arith.constant 0 : index
    %c24 = arith.constant 24 : index
    %22 = vector.load %arg7[%c0_34, %c24] : memref<512x72xf32, #tpu.memory_space<vmem>>, vector<256x8xf32>
    tpu.vector_store %arg7[%c0_34, %c24], %21 {strides = array<i32>} : memref<512x72xf32, #tpu.memory_space<vmem>>, vector<256x8xf32>,
    %c1_35 = arith.constant 1 : index
    %c1_36 = arith.constant 1 : index
    %c0_37 = arith.constant 0 : index
    %23 = vector.load %arg6[%c1_35, %c1_36, %c0_37] : memref<18x18x8xf32, #tpu.memory_space<vmem>>, vector<16x16x8xf32>
    %24 = vector.shape_cast %23 : vector<16x16x8xf32> to vector<256x8xf32>
    %c0_38 = arith.constant 0 : index
    %c32 = arith.constant 32 : index
    %25 = vector.load %arg7[%c0_38, %c32] : memref<512x72xf32, #tpu.memory_space<vmem>>, vector<256x8xf32>
    tpu.vector_store %arg7[%c0_38, %c32], %24 {strides = array<i32>} : memref<512x72xf32, #tpu.memory_space<vmem>>, vector<256x8xf32>,
    %c1_39 = arith.constant 1 : index
    %c2_40 = arith.constant 2 : index
    %c0_41 = arith.constant 0 : index
    %26 = vector.load %arg6[%c1_39, %c2_40, %c0_41] : memref<18x18x8xf32, #tpu.memory_space<vmem>>, vector<16x16x8xf32>
    %27 = vector.shape_cast %26 : vector<16x16x8xf32> to vector<256x8xf32>
    %c0_42 = arith.constant 0 : index
    %c40 = arith.constant 40 : index
    %28 = vector.load %arg7[%c0_42, %c40] : memref<512x72xf32, #tpu.memory_space<vmem>>, vector<256x8xf32>
    tpu.vector_store %arg7[%c0_42, %c40], %27 {strides = array<i32>} : memref<512x72xf32, #tpu.memory_space<vmem>>, vector<256x8xf32>,
    %c2_43 = arith.constant 2 : index
    %c0_44 = arith.constant 0 : index
    %c0_45 = arith.constant 0 : index
    %29 = vector.load %arg6[%c2_43, %c0_44, %c0_45] : memref<18x18x8xf32, #tpu.memory_space<vmem>>, vector<16x16x8xf32>
    %30 = vector.shape_cast %29 : vector<16x16x8xf32> to vector<256x8xf32>
    %c0_46 = arith.constant 0 : index
    %c48 = arith.constant 48 : index
    %31 = vector.load %arg7[%c0_46, %c48] : memref<512x72xf32, #tpu.memory_space<vmem>>, vector<256x8xf32>
    tpu.vector_store %arg7[%c0_46, %c48], %30 {strides = array<i32>} : memref<512x72xf32, #tpu.memory_space<vmem>>, vector<256x8xf32>,
    %c2_47 = arith.constant 2 : index
    %c1_48 = arith.constant 1 : index
    %c0_49 = arith.constant 0 : index
    %32 = vector.load %arg6[%c2_47, %c1_48, %c0_49] : memref<18x18x8xf32, #tpu.memory_space<vmem>>, vector<16x16x8xf32>
    %33 = vector.shape_cast %32 : vector<16x16x8xf32> to vector<256x8xf32>
    %c0_50 = arith.constant 0 : index
    %c56 = arith.constant 56 : index
    %34 = vector.load %arg7[%c0_50, %c56] : memref<512x72xf32, #tpu.memory_space<vmem>>, vector<256x8xf32>
    tpu.vector_store %arg7[%c0_50, %c56], %33 {strides = array<i32>} : memref<512x72xf32, #tpu.memory_space<vmem>>, vector<256x8xf32>,
    %c2_51 = arith.constant 2 : index
    %c2_52 = arith.constant 2 : index
    %c0_53 = arith.constant 0 : index
    %35 = vector.load %arg6[%c2_51, %c2_52, %c0_53] : memref<18x18x8xf32, #tpu.memory_space<vmem>>, vector<16x16x8xf32>
    %36 = vector.shape_cast %35 : vector<16x16x8xf32> to vector<256x8xf32>
    %c0_54 = arith.constant 0 : index
    %c64 = arith.constant 64 : index
    %37 = vector.load %arg7[%c0_54, %c64] : memref<512x72xf32, #tpu.memory_space<vmem>>, vector<256x8xf32>
    tpu.vector_store %arg7[%c0_54, %c64], %36 {strides = array<i32>} : memref<512x72xf32, #tpu.memory_space<vmem>>, vector<256x8xf32>,
    %c1_55 = arith.constant 1 : index
    %c0_56 = arith.constant 0 : index
    %c0_57 = arith.constant 0 : index
    %c0_58 = arith.constant 0 : index
    %38 = vector.load %arg1[%c1_55, %c0_56, %c0_57, %c0_58] : memref<2x16x16x8xf32, #tpu.memory_space<vmem>>, vector<1x16x16x8xf32>
    %39 = vector.shape_cast %38 : vector<1x16x16x8xf32> to vector<16x16x8xf32>
    %c1_59 = arith.constant 1 : index
    %c1_60 = arith.constant 1 : index
    %c0_61 = arith.constant 0 : index
    %40 = vector.load %arg6[%c1_59, %c1_60, %c0_61] : memref<18x18x8xf32, #tpu.memory_space<vmem>>, vector<16x16x8xf32>
    tpu.vector_store %arg6[%c1_59, %c1_60, %c0_61], %39 {strides = array<i32>} : memref<18x18x8xf32, #tpu.memory_space<vmem>>, vector<16x16x8xf32>,
    %c0_62 = arith.constant 0 : index
    %c0_63 = arith.constant 0 : index
    %c0_64 = arith.constant 0 : index
    %41 = vector.load %arg6[%c0_62, %c0_63, %c0_64] : memref<18x18x8xf32, #tpu.memory_space<vmem>>, vector<16x16x8xf32>
    %42 = vector.shape_cast %41 : vector<16x16x8xf32> to vector<256x8xf32>
    %c256 = arith.constant 256 : index
    %c0_65 = arith.constant 0 : index
    %43 = vector.load %arg7[%c256, %c0_65] : memref<512x72xf32, #tpu.memory_space<vmem>>, vector<256x8xf32>
    tpu.vector_store %arg7[%c256, %c0_65], %42 {strides = array<i32>} : memref<512x72xf32, #tpu.memory_space<vmem>>, vector<256x8xf32>,
    %c0_66 = arith.constant 0 : index
    %c1_67 = arith.constant 1 : index
    %c0_68 = arith.constant 0 : index
    %44 = vector.load %arg6[%c0_66, %c1_67, %c0_68] : memref<18x18x8xf32, #tpu.memory_space<vmem>>, vector<16x16x8xf32>
    %45 = vector.shape_cast %44 : vector<16x16x8xf32> to vector<256x8xf32>
    %c256_69 = arith.constant 256 : index
    %c8_70 = arith.constant 8 : index
    %46 = vector.load %arg7[%c256_69, %c8_70] : memref<512x72xf32, #tpu.memory_space<vmem>>, vector<256x8xf32>
    tpu.vector_store %arg7[%c256_69, %c8_70], %45 {strides = array<i32>} : memref<512x72xf32, #tpu.memory_space<vmem>>, vector<256x8xf32>,
    %c0_71 = arith.constant 0 : index
    %c2_72 = arith.constant 2 : index
    %c0_73 = arith.constant 0 : index
    %47 = vector.load %arg6[%c0_71, %c2_72, %c0_73] : memref<18x18x8xf32, #tpu.memory_space<vmem>>, vector<16x16x8xf32>
    %48 = vector.shape_cast %47 : vector<16x16x8xf32> to vector<256x8xf32>
    %c256_74 = arith.constant 256 : index
    %c16_75 = arith.constant 16 : index
    %49 = vector.load %arg7[%c256_74, %c16_75] : memref<512x72xf32, #tpu.memory_space<vmem>>, vector<256x8xf32>
    tpu.vector_store %arg7[%c256_74, %c16_75], %48 {strides = array<i32>} : memref<512x72xf32, #tpu.memory_space<vmem>>, vector<256x8xf32>,
    %c1_76 = arith.constant 1 : index
    %c0_77 = arith.constant 0 : index
    %c0_78 = arith.constant 0 : index
    %50 = vector.load %arg6[%c1_76, %c0_77, %c0_78] : memref<18x18x8xf32, #tpu.memory_space<vmem>>, vector<16x16x8xf32>
    %51 = vector.shape_cast %50 : vector<16x16x8xf32> to vector<256x8xf32>
    %c256_79 = arith.constant 256 : index
    %c24_80 = arith.constant 24 : index
    %52 = vector.load %arg7[%c256_79, %c24_80] : memref<512x72xf32, #tpu.memory_space<vmem>>, vector<256x8xf32>
    tpu.vector_store %arg7[%c256_79, %c24_80], %51 {strides = array<i32>} : memref<512x72xf32, #tpu.memory_space<vmem>>, vector<256x8xf32>,
    %c1_81 = arith.constant 1 : index
    %c1_82 = arith.constant 1 : index
    %c0_83 = arith.constant 0 : index
    %53 = vector.load %arg6[%c1_81, %c1_82, %c0_83] : memref<18x18x8xf32, #tpu.memory_space<vmem>>, vector<16x16x8xf32>
    %54 = vector.shape_cast %53 : vector<16x16x8xf32> to vector<256x8xf32>
    %c256_84 = arith.constant 256 : index
    %c32_85 = arith.constant 32 : index
    %55 = vector.load %arg7[%c256_84, %c32_85] : memref<512x72xf32, #tpu.memory_space<vmem>>, vector<256x8xf32>
    tpu.vector_store %arg7[%c256_84, %c32_85], %54 {strides = array<i32>} : memref<512x72xf32, #tpu.memory_space<vmem>>, vector<256x8xf32>,
    %c1_86 = arith.constant 1 : index
    %c2_87 = arith.constant 2 : index
    %c0_88 = arith.constant 0 : index
    %56 = vector.load %arg6[%c1_86, %c2_87, %c0_88] : memref<18x18x8xf32, #tpu.memory_space<vmem>>, vector<16x16x8xf32>
    %57 = vector.shape_cast %56 : vector<16x16x8xf32> to vector<256x8xf32>
    %c256_89 = arith.constant 256 : index
    %c40_90 = arith.constant 40 : index
    %58 = vector.load %arg7[%c256_89, %c40_90] : memref<512x72xf32, #tpu.memory_space<vmem>>, vector<256x8xf32>
    tpu.vector_store %arg7[%c256_89, %c40_90], %57 {strides = array<i32>} : memref<512x72xf32, #tpu.memory_space<vmem>>, vector<256x8xf32>,
    %c2_91 = arith.constant 2 : index
    %c0_92 = arith.constant 0 : index
    %c0_93 = arith.constant 0 : index
    %59 = vector.load %arg6[%c2_91, %c0_92, %c0_93] : memref<18x18x8xf32, #tpu.memory_space<vmem>>, vector<16x16x8xf32>
    %60 = vector.shape_cast %59 : vector<16x16x8xf32> to vector<256x8xf32>
    %c256_94 = arith.constant 256 : index
    %c48_95 = arith.constant 48 : index
    %61 = vector.load %arg7[%c256_94, %c48_95] : memref<512x72xf32, #tpu.memory_space<vmem>>, vector<256x8xf32>
    tpu.vector_store %arg7[%c256_94, %c48_95], %60 {strides = array<i32>} : memref<512x72xf32, #tpu.memory_space<vmem>>, vector<256x8xf32>,
    %c2_96 = arith.constant 2 : index
    %c1_97 = arith.constant 1 : index
    %c0_98 = arith.constant 0 : index
    %62 = vector.load %arg6[%c2_96, %c1_97, %c0_98] : memref<18x18x8xf32, #tpu.memory_space<vmem>>, vector<16x16x8xf32>
    %63 = vector.shape_cast %62 : vector<16x16x8xf32> to vector<256x8xf32>
    %c256_99 = arith.constant 256 : index
    %c56_100 = arith.constant 56 : index
    %64 = vector.load %arg7[%c256_99, %c56_100] : memref<512x72xf32, #tpu.memory_space<vmem>>, vector<256x8xf32>
    tpu.vector_store %arg7[%c256_99, %c56_100], %63 {strides = array<i32>} : memref<512x72xf32, #tpu.memory_space<vmem>>, vector<256x8xf32>,
    %c2_101 = arith.constant 2 : index
    %c2_102 = arith.constant 2 : index
    %c0_103 = arith.constant 0 : index
    %65 = vector.load %arg6[%c2_101, %c2_102, %c0_103] : memref<18x18x8xf32, #tpu.memory_space<vmem>>, vector<16x16x8xf32>
    %66 = vector.shape_cast %65 : vector<16x16x8xf32> to vector<256x8xf32>
    %c256_104 = arith.constant 256 : index
    %c64_105 = arith.constant 64 : index
    %67 = vector.load %arg7[%c256_104, %c64_105] : memref<512x72xf32, #tpu.memory_space<vmem>>, vector<256x8xf32>
    tpu.vector_store %arg7[%c256_104, %c64_105], %66 {strides = array<i32>} : memref<512x72xf32, #tpu.memory_space<vmem>>, vector<256x8xf32>,
    %c0_106 = arith.constant 0 : index
    %c0_107 = arith.constant 0 : index
    %68 = vector.load %arg7[%c0_106, %c0_107] : memref<512x72xf32, #tpu.memory_space<vmem>>, vector<512x72xf32>
    %c0_108 = arith.constant 0 : index
    %c0_109 = arith.constant 0 : index
    %69 = vector.load %arg2[%c0_108, %c0_109] : memref<72x8xf32, #tpu.memory_space<vmem>>, vector<72x8xf32>
    %cst_110 = arith.constant dense<0.000000e+00> : vector<512x8xf32>
    %70 = tpu.matmul %68, %69, %cst_110 {dimension_numbers = #tpu.dot_dimension_numbers<[1], [0], [0], [1], [0, 0, 1, 1], [], []>} : vector<512x72xf32>, vector<72x8xf32>, vector<512x8xf32> -> vector<512x8xf32>
    %71 = vector.shape_cast %70 : vector<512x8xf32> to vector<2x16x16x8xf32>
    %c0_111 = arith.constant 0 : index
    %c0_112 = arith.constant 0 : index
    %c0_113 = arith.constant 0 : index
    %c0_114 = arith.constant 0 : index
    %72 = vector.load %arg3[%c0_111, %c0_112, %c0_113, %c0_114] : memref<2x16x16x8xf32, #tpu.memory_space<vmem>>, vector<2x16x16x8xf32>
    tpu.vector_store %arg3[%c0_111, %c0_112, %c0_113, %c0_114], %71 {strides = array<i32>} : memref<2x16x16x8xf32, #tpu.memory_space<vmem>>, vector<2x16x16x8xf32>,
    %cst_115 = arith.constant dense<0.000000e+00> : vector<8xf32>
    %73 = vector.multi_reduction <add>, %70, %cst_115 [0] : vector<512x8xf32> to vector<8xf32>
    %74 = vector.shape_cast %73 : vector<8xf32> to vector<1x8xf32>
    %c0_116 = arith.constant 0 : index
    %c0_117 = arith.constant 0 : index
    %c0_118 = arith.constant 0 : index
    %75 = vector.load %arg4[%c0_116, %c0_117, %c0_118] : memref<1x1x8xf32, #tpu.memory_space<vmem>>, vector<1x1x8xf32>
    %76 = vector.shape_cast %75 : vector<1x1x8xf32> to vector<1x8xf32>
    %77 = vector.shape_cast %74 : vector<1x8xf32> to vector<1x1x8xf32>
    tpu.vector_store %arg4[%c0_116, %c0_117, %c0_118], %77 {strides = array<i32>} : memref<1x1x8xf32, #tpu.memory_space<vmem>>, vector<1x1x8xf32>,
    %78 = arith.mulf %70, %70 : vector<512x8xf32>
    %cst_119 = arith.constant dense<0.000000e+00> : vector<8xf32>
    %79 = vector.multi_reduction <add>, %78, %cst_119 [0] : vector<512x8xf32> to vector<8xf32>
    %80 = vector.shape_cast %79 : vector<8xf32> to vector<1x8xf32>
    %c0_120 = arith.constant 0 : index
    %c0_121 = arith.constant 0 : index
    %c0_122 = arith.constant 0 : index
    %81 = vector.load %arg5[%c0_120, %c0_121, %c0_122] : memref<1x1x8xf32, #tpu.memory_space<vmem>>, vector<1x1x8xf32>
    %82 = vector.shape_cast %81 : vector<1x1x8xf32> to vector<1x8xf32>
    %83 = vector.shape_cast %80 : vector<1x8xf32> to vector<1x1x8xf32>
    tpu.vector_store %arg5[%c0_120, %c0_121, %c0_122], %83 {strides = array<i32>} : memref<1x1x8xf32, #tpu.memory_space<vmem>>, vector<1x1x8xf32>,
    return
  }
  func.func @transform_0(%arg0: i32) -> (i32, i32, i32, i32) {
    %c0_i32 = arith.constant 0 : i32
    %c0_i32_0 = arith.constant 0 : i32
    %c0_i32_1 = arith.constant 0 : i32
    %c0_i32_2 = arith.constant 0 : i32
    return %arg0, %c0_i32, %c0_i32_0, %c0_i32_1 : i32, i32, i32, i32
  }
  func.func @transform_1(%arg0: i32) -> (i32, i32) {
    %c0_i32 = arith.constant 0 : i32
    %c0_i32_0 = arith.constant 0 : i32
    %c0_i32_1 = arith.constant 0 : i32
    return %c0_i32, %c0_i32_0 : i32, i32
  }
  func.func @transform_2(%arg0: i32) -> (i32, i32, i32, i32) {
    %c0_i32 = arith.constant 0 : i32
    %c0_i32_0 = arith.constant 0 : i32
    %c0_i32_1 = arith.constant 0 : i32
    %c0_i32_2 = arith.constant 0 : i32
    return %arg0, %c0_i32, %c0_i32_0, %c0_i32_1 : i32, i32, i32, i32
  }
  func.func @transform_3(%arg0: i32) -> (i32, i32, i32) {
    %c0_i32 = arith.constant 0 : i32
    %c0_i32_0 = arith.constant 0 : i32
    %c0_i32_1 = arith.constant 0 : i32
    return %arg0, %c0_i32, %c0_i32_0 : i32, i32, i32
  }
  func.func @transform_4(%arg0: i32) -> (i32, i32, i32) {
    %c0_i32 = arith.constant 0 : i32
    %c0_i32_0 = arith.constant 0 : i32
    %c0_i32_1 = arith.constant 0 : i32
    return %arg0, %c0_i32, %c0_i32_0 : i32, i32, i32
  }
}

module attributes {stable_mosaic.version = 11 : i64} {
  func.func @_conv_bn_kernel(%arg0: i32, %arg1: memref<2x16x16x8xf32, #tpu.memory_space<vmem>>, %arg2: memref<72x8xf32, #tpu.memory_space<vmem>>, %arg3: memref<1x1x8xf32, #tpu.memory_space<vmem>>, %arg4: memref<1x1x8xf32, #tpu.memory_space<vmem>>, %arg5: memref<2x16x16x8xf32, #tpu.memory_space<vmem>>, %arg6: memref<1x1x8xf32, #tpu.memory_space<vmem>>, %arg7: memref<1x1x8xf32, #tpu.memory_space<vmem>>, %arg8: memref<18x18x8xf32, #tpu.memory_space<vmem>>, %arg9: memref<512x72xf32, #tpu.memory_space<vmem>>) attributes {dimension_semantics = [#tpu.dimension_semantics<parallel>], iteration_bounds = array<i64: 1>, scalar_prefetch = 0 : i64, scratch_operands = 2 : i64, tpu.core_type = #tpu.core_type<tc>, window_params = [{transform_indices = @transform_0, window_bounds = array<i64: 2, 16, 16, 8>}, {pipeline_mode = #tpu.pipeline_mode<synchronous>, transform_indices = @transform_1, window_bounds = array<i64: 72, 8>}, {pipeline_mode = #tpu.pipeline_mode<synchronous>, transform_indices = @transform_2, window_bounds = array<i64: 1, 1, 8>}, {pipeline_mode = #tpu.pipeline_mode<synchronous>, transform_indices = @transform_3, window_bounds = array<i64: 1, 1, 8>}, {transform_indices = @transform_4, window_bounds = array<i64: 2, 16, 16, 8>}, {transform_indices = @transform_5, window_bounds = array<i64: 1, 1, 8>}, {transform_indices = @transform_6, window_bounds = array<i64: 1, 1, 8>}]} {
    %cst = arith.constant 0.000000e+00 : f32
    %0 = vector.broadcast %cst : f32 to vector<1x18x8xf32>
    %c0 = arith.constant 0 : index
    %c0_0 = arith.constant 0 : index
    %c0_1 = arith.constant 0 : index
    %1 = vector.load %arg8[%c0, %c0_0, %c0_1] : memref<18x18x8xf32, #tpu.memory_space<vmem>>, vector<1x18x8xf32>
    tpu.vector_store %arg8[%c0, %c0_0, %c0_1], %0 {strides = array<i32>} : memref<18x18x8xf32, #tpu.memory_space<vmem>>, vector<1x18x8xf32>,
    %cst_2 = arith.constant 0.000000e+00 : f32
    %2 = vector.broadcast %cst_2 : f32 to vector<1x18x8xf32>
    %c17 = arith.constant 17 : index
    %c0_3 = arith.constant 0 : index
    %c0_4 = arith.constant 0 : index
    %3 = vector.load %arg8[%c17, %c0_3, %c0_4] : memref<18x18x8xf32, #tpu.memory_space<vmem>>, vector<1x18x8xf32>
    tpu.vector_store %arg8[%c17, %c0_3, %c0_4], %2 {strides = array<i32>} : memref<18x18x8xf32, #tpu.memory_space<vmem>>, vector<1x18x8xf32>,
    %cst_5 = arith.constant 0.000000e+00 : f32
    %4 = vector.broadcast %cst_5 : f32 to vector<18x1x8xf32>
    %c0_6 = arith.constant 0 : index
    %c0_7 = arith.constant 0 : index
    %c0_8 = arith.constant 0 : index
    %5 = vector.load %arg8[%c0_6, %c0_7, %c0_8] : memref<18x18x8xf32, #tpu.memory_space<vmem>>, vector<18x1x8xf32>
    tpu.vector_store %arg8[%c0_6, %c0_7, %c0_8], %4 {strides = array<i32>} : memref<18x18x8xf32, #tpu.memory_space<vmem>>, vector<18x1x8xf32>,
    %cst_9 = arith.constant 0.000000e+00 : f32
    %6 = vector.broadcast %cst_9 : f32 to vector<18x1x8xf32>
    %c0_10 = arith.constant 0 : index
    %c17_11 = arith.constant 17 : index
    %c0_12 = arith.constant 0 : index
    %7 = vector.load %arg8[%c0_10, %c17_11, %c0_12] : memref<18x18x8xf32, #tpu.memory_space<vmem>>, vector<18x1x8xf32>
    tpu.vector_store %arg8[%c0_10, %c17_11, %c0_12], %6 {strides = array<i32>} : memref<18x18x8xf32, #tpu.memory_space<vmem>>, vector<18x1x8xf32>,
    %c0_13 = arith.constant 0 : index
    %c0_14 = arith.constant 0 : index
    %c0_15 = arith.constant 0 : index
    %c0_16 = arith.constant 0 : index
    %8 = vector.load %arg1[%c0_13, %c0_14, %c0_15, %c0_16] : memref<2x16x16x8xf32, #tpu.memory_space<vmem>>, vector<1x16x16x8xf32>
    %9 = vector.shape_cast %8 : vector<1x16x16x8xf32> to vector<16x16x8xf32>
    %c0_17 = arith.constant 0 : index
    %c0_18 = arith.constant 0 : index
    %c0_19 = arith.constant 0 : index
    %10 = vector.load %arg3[%c0_17, %c0_18, %c0_19] : memref<1x1x8xf32, #tpu.memory_space<vmem>>, vector<1x1x8xf32>
    %11 = vector.broadcast %10 : vector<1x1x8xf32> to vector<16x16x8xf32>
    %12 = arith.mulf %9, %11 : vector<16x16x8xf32>
    %c0_20 = arith.constant 0 : index
    %c0_21 = arith.constant 0 : index
    %c0_22 = arith.constant 0 : index
    %13 = vector.load %arg4[%c0_20, %c0_21, %c0_22] : memref<1x1x8xf32, #tpu.memory_space<vmem>>, vector<1x1x8xf32>
    %14 = vector.broadcast %13 : vector<1x1x8xf32> to vector<16x16x8xf32>
    %15 = arith.addf %12, %14 : vector<16x16x8xf32>
    %cst_23 = arith.constant 0.000000e+00 : f32
    %16 = vector.broadcast %cst_23 : f32 to vector<16x16x8xf32>
    %17 = arith.maximumf %15, %16 : vector<16x16x8xf32>
    %c1 = arith.constant 1 : index
    %c1_24 = arith.constant 1 : index
    %c0_25 = arith.constant 0 : index
    %18 = vector.load %arg8[%c1, %c1_24, %c0_25] : memref<18x18x8xf32, #tpu.memory_space<vmem>>, vector<16x16x8xf32>
    tpu.vector_store %arg8[%c1, %c1_24, %c0_25], %17 {strides = array<i32>} : memref<18x18x8xf32, #tpu.memory_space<vmem>>, vector<16x16x8xf32>,
    %c0_26 = arith.constant 0 : index
    %c0_27 = arith.constant 0 : index
    %c0_28 = arith.constant 0 : index
    %19 = vector.load %arg8[%c0_26, %c0_27, %c0_28] : memref<18x18x8xf32, #tpu.memory_space<vmem>>, vector<16x16x8xf32>
    %20 = vector.shape_cast %19 : vector<16x16x8xf32> to vector<256x8xf32>
    %c0_29 = arith.constant 0 : index
    %c0_30 = arith.constant 0 : index
    %21 = vector.load %arg9[%c0_29, %c0_30] : memref<512x72xf32, #tpu.memory_space<vmem>>, vector<256x8xf32>
    tpu.vector_store %arg9[%c0_29, %c0_30], %20 {strides = array<i32>} : memref<512x72xf32, #tpu.memory_space<vmem>>, vector<256x8xf32>,
    %c0_31 = arith.constant 0 : index
    %c1_32 = arith.constant 1 : index
    %c0_33 = arith.constant 0 : index
    %22 = vector.load %arg8[%c0_31, %c1_32, %c0_33] : memref<18x18x8xf32, #tpu.memory_space<vmem>>, vector<16x16x8xf32>
    %23 = vector.shape_cast %22 : vector<16x16x8xf32> to vector<256x8xf32>
    %c0_34 = arith.constant 0 : index
    %c8 = arith.constant 8 : index
    %24 = vector.load %arg9[%c0_34, %c8] : memref<512x72xf32, #tpu.memory_space<vmem>>, vector<256x8xf32>
    tpu.vector_store %arg9[%c0_34, %c8], %23 {strides = array<i32>} : memref<512x72xf32, #tpu.memory_space<vmem>>, vector<256x8xf32>,
    %c0_35 = arith.constant 0 : index
    %c2 = arith.constant 2 : index
    %c0_36 = arith.constant 0 : index
    %25 = vector.load %arg8[%c0_35, %c2, %c0_36] : memref<18x18x8xf32, #tpu.memory_space<vmem>>, vector<16x16x8xf32>
    %26 = vector.shape_cast %25 : vector<16x16x8xf32> to vector<256x8xf32>
    %c0_37 = arith.constant 0 : index
    %c16 = arith.constant 16 : index
    %27 = vector.load %arg9[%c0_37, %c16] : memref<512x72xf32, #tpu.memory_space<vmem>>, vector<256x8xf32>
    tpu.vector_store %arg9[%c0_37, %c16], %26 {strides = array<i32>} : memref<512x72xf32, #tpu.memory_space<vmem>>, vector<256x8xf32>,
    %c1_38 = arith.constant 1 : index
    %c0_39 = arith.constant 0 : index
    %c0_40 = arith.constant 0 : index
    %28 = vector.load %arg8[%c1_38, %c0_39, %c0_40] : memref<18x18x8xf32, #tpu.memory_space<vmem>>, vector<16x16x8xf32>
    %29 = vector.shape_cast %28 : vector<16x16x8xf32> to vector<256x8xf32>
    %c0_41 = arith.constant 0 : index
    %c24 = arith.constant 24 : index
    %30 = vector.load %arg9[%c0_41, %c24] : memref<512x72xf32, #tpu.memory_space<vmem>>, vector<256x8xf32>
    tpu.vector_store %arg9[%c0_41, %c24], %29 {strides = array<i32>} : memref<512x72xf32, #tpu.memory_space<vmem>>, vector<256x8xf32>,
    %c1_42 = arith.constant 1 : index
    %c1_43 = arith.constant 1 : index
    %c0_44 = arith.constant 0 : index
    %31 = vector.load %arg8[%c1_42, %c1_43, %c0_44] : memref<18x18x8xf32, #tpu.memory_space<vmem>>, vector<16x16x8xf32>
    %32 = vector.shape_cast %31 : vector<16x16x8xf32> to vector<256x8xf32>
    %c0_45 = arith.constant 0 : index
    %c32 = arith.constant 32 : index
    %33 = vector.load %arg9[%c0_45, %c32] : memref<512x72xf32, #tpu.memory_space<vmem>>, vector<256x8xf32>
    tpu.vector_store %arg9[%c0_45, %c32], %32 {strides = array<i32>} : memref<512x72xf32, #tpu.memory_space<vmem>>, vector<256x8xf32>,
    %c1_46 = arith.constant 1 : index
    %c2_47 = arith.constant 2 : index
    %c0_48 = arith.constant 0 : index
    %34 = vector.load %arg8[%c1_46, %c2_47, %c0_48] : memref<18x18x8xf32, #tpu.memory_space<vmem>>, vector<16x16x8xf32>
    %35 = vector.shape_cast %34 : vector<16x16x8xf32> to vector<256x8xf32>
    %c0_49 = arith.constant 0 : index
    %c40 = arith.constant 40 : index
    %36 = vector.load %arg9[%c0_49, %c40] : memref<512x72xf32, #tpu.memory_space<vmem>>, vector<256x8xf32>
    tpu.vector_store %arg9[%c0_49, %c40], %35 {strides = array<i32>} : memref<512x72xf32, #tpu.memory_space<vmem>>, vector<256x8xf32>,
    %c2_50 = arith.constant 2 : index
    %c0_51 = arith.constant 0 : index
    %c0_52 = arith.constant 0 : index
    %37 = vector.load %arg8[%c2_50, %c0_51, %c0_52] : memref<18x18x8xf32, #tpu.memory_space<vmem>>, vector<16x16x8xf32>
    %38 = vector.shape_cast %37 : vector<16x16x8xf32> to vector<256x8xf32>
    %c0_53 = arith.constant 0 : index
    %c48 = arith.constant 48 : index
    %39 = vector.load %arg9[%c0_53, %c48] : memref<512x72xf32, #tpu.memory_space<vmem>>, vector<256x8xf32>
    tpu.vector_store %arg9[%c0_53, %c48], %38 {strides = array<i32>} : memref<512x72xf32, #tpu.memory_space<vmem>>, vector<256x8xf32>,
    %c2_54 = arith.constant 2 : index
    %c1_55 = arith.constant 1 : index
    %c0_56 = arith.constant 0 : index
    %40 = vector.load %arg8[%c2_54, %c1_55, %c0_56] : memref<18x18x8xf32, #tpu.memory_space<vmem>>, vector<16x16x8xf32>
    %41 = vector.shape_cast %40 : vector<16x16x8xf32> to vector<256x8xf32>
    %c0_57 = arith.constant 0 : index
    %c56 = arith.constant 56 : index
    %42 = vector.load %arg9[%c0_57, %c56] : memref<512x72xf32, #tpu.memory_space<vmem>>, vector<256x8xf32>
    tpu.vector_store %arg9[%c0_57, %c56], %41 {strides = array<i32>} : memref<512x72xf32, #tpu.memory_space<vmem>>, vector<256x8xf32>,
    %c2_58 = arith.constant 2 : index
    %c2_59 = arith.constant 2 : index
    %c0_60 = arith.constant 0 : index
    %43 = vector.load %arg8[%c2_58, %c2_59, %c0_60] : memref<18x18x8xf32, #tpu.memory_space<vmem>>, vector<16x16x8xf32>
    %44 = vector.shape_cast %43 : vector<16x16x8xf32> to vector<256x8xf32>
    %c0_61 = arith.constant 0 : index
    %c64 = arith.constant 64 : index
    %45 = vector.load %arg9[%c0_61, %c64] : memref<512x72xf32, #tpu.memory_space<vmem>>, vector<256x8xf32>
    tpu.vector_store %arg9[%c0_61, %c64], %44 {strides = array<i32>} : memref<512x72xf32, #tpu.memory_space<vmem>>, vector<256x8xf32>,
    %c1_62 = arith.constant 1 : index
    %c0_63 = arith.constant 0 : index
    %c0_64 = arith.constant 0 : index
    %c0_65 = arith.constant 0 : index
    %46 = vector.load %arg1[%c1_62, %c0_63, %c0_64, %c0_65] : memref<2x16x16x8xf32, #tpu.memory_space<vmem>>, vector<1x16x16x8xf32>
    %47 = vector.shape_cast %46 : vector<1x16x16x8xf32> to vector<16x16x8xf32>
    %c0_66 = arith.constant 0 : index
    %c0_67 = arith.constant 0 : index
    %c0_68 = arith.constant 0 : index
    %48 = vector.load %arg3[%c0_66, %c0_67, %c0_68] : memref<1x1x8xf32, #tpu.memory_space<vmem>>, vector<1x1x8xf32>
    %49 = vector.broadcast %48 : vector<1x1x8xf32> to vector<16x16x8xf32>
    %50 = arith.mulf %47, %49 : vector<16x16x8xf32>
    %c0_69 = arith.constant 0 : index
    %c0_70 = arith.constant 0 : index
    %c0_71 = arith.constant 0 : index
    %51 = vector.load %arg4[%c0_69, %c0_70, %c0_71] : memref<1x1x8xf32, #tpu.memory_space<vmem>>, vector<1x1x8xf32>
    %52 = vector.broadcast %51 : vector<1x1x8xf32> to vector<16x16x8xf32>
    %53 = arith.addf %50, %52 : vector<16x16x8xf32>
    %cst_72 = arith.constant 0.000000e+00 : f32
    %54 = vector.broadcast %cst_72 : f32 to vector<16x16x8xf32>
    %55 = arith.maximumf %53, %54 : vector<16x16x8xf32>
    %c1_73 = arith.constant 1 : index
    %c1_74 = arith.constant 1 : index
    %c0_75 = arith.constant 0 : index
    %56 = vector.load %arg8[%c1_73, %c1_74, %c0_75] : memref<18x18x8xf32, #tpu.memory_space<vmem>>, vector<16x16x8xf32>
    tpu.vector_store %arg8[%c1_73, %c1_74, %c0_75], %55 {strides = array<i32>} : memref<18x18x8xf32, #tpu.memory_space<vmem>>, vector<16x16x8xf32>,
    %c0_76 = arith.constant 0 : index
    %c0_77 = arith.constant 0 : index
    %c0_78 = arith.constant 0 : index
    %57 = vector.load %arg8[%c0_76, %c0_77, %c0_78] : memref<18x18x8xf32, #tpu.memory_space<vmem>>, vector<16x16x8xf32>
    %58 = vector.shape_cast %57 : vector<16x16x8xf32> to vector<256x8xf32>
    %c256 = arith.constant 256 : index
    %c0_79 = arith.constant 0 : index
    %59 = vector.load %arg9[%c256, %c0_79] : memref<512x72xf32, #tpu.memory_space<vmem>>, vector<256x8xf32>
    tpu.vector_store %arg9[%c256, %c0_79], %58 {strides = array<i32>} : memref<512x72xf32, #tpu.memory_space<vmem>>, vector<256x8xf32>,
    %c0_80 = arith.constant 0 : index
    %c1_81 = arith.constant 1 : index
    %c0_82 = arith.constant 0 : index
    %60 = vector.load %arg8[%c0_80, %c1_81, %c0_82] : memref<18x18x8xf32, #tpu.memory_space<vmem>>, vector<16x16x8xf32>
    %61 = vector.shape_cast %60 : vector<16x16x8xf32> to vector<256x8xf32>
    %c256_83 = arith.constant 256 : index
    %c8_84 = arith.constant 8 : index
    %62 = vector.load %arg9[%c256_83, %c8_84] : memref<512x72xf32, #tpu.memory_space<vmem>>, vector<256x8xf32>
    tpu.vector_store %arg9[%c256_83, %c8_84], %61 {strides = array<i32>} : memref<512x72xf32, #tpu.memory_space<vmem>>, vector<256x8xf32>,
    %c0_85 = arith.constant 0 : index
    %c2_86 = arith.constant 2 : index
    %c0_87 = arith.constant 0 : index
    %63 = vector.load %arg8[%c0_85, %c2_86, %c0_87] : memref<18x18x8xf32, #tpu.memory_space<vmem>>, vector<16x16x8xf32>
    %64 = vector.shape_cast %63 : vector<16x16x8xf32> to vector<256x8xf32>
    %c256_88 = arith.constant 256 : index
    %c16_89 = arith.constant 16 : index
    %65 = vector.load %arg9[%c256_88, %c16_89] : memref<512x72xf32, #tpu.memory_space<vmem>>, vector<256x8xf32>
    tpu.vector_store %arg9[%c256_88, %c16_89], %64 {strides = array<i32>} : memref<512x72xf32, #tpu.memory_space<vmem>>, vector<256x8xf32>,
    %c1_90 = arith.constant 1 : index
    %c0_91 = arith.constant 0 : index
    %c0_92 = arith.constant 0 : index
    %66 = vector.load %arg8[%c1_90, %c0_91, %c0_92] : memref<18x18x8xf32, #tpu.memory_space<vmem>>, vector<16x16x8xf32>
    %67 = vector.shape_cast %66 : vector<16x16x8xf32> to vector<256x8xf32>
    %c256_93 = arith.constant 256 : index
    %c24_94 = arith.constant 24 : index
    %68 = vector.load %arg9[%c256_93, %c24_94] : memref<512x72xf32, #tpu.memory_space<vmem>>, vector<256x8xf32>
    tpu.vector_store %arg9[%c256_93, %c24_94], %67 {strides = array<i32>} : memref<512x72xf32, #tpu.memory_space<vmem>>, vector<256x8xf32>,
    %c1_95 = arith.constant 1 : index
    %c1_96 = arith.constant 1 : index
    %c0_97 = arith.constant 0 : index
    %69 = vector.load %arg8[%c1_95, %c1_96, %c0_97] : memref<18x18x8xf32, #tpu.memory_space<vmem>>, vector<16x16x8xf32>
    %70 = vector.shape_cast %69 : vector<16x16x8xf32> to vector<256x8xf32>
    %c256_98 = arith.constant 256 : index
    %c32_99 = arith.constant 32 : index
    %71 = vector.load %arg9[%c256_98, %c32_99] : memref<512x72xf32, #tpu.memory_space<vmem>>, vector<256x8xf32>
    tpu.vector_store %arg9[%c256_98, %c32_99], %70 {strides = array<i32>} : memref<512x72xf32, #tpu.memory_space<vmem>>, vector<256x8xf32>,
    %c1_100 = arith.constant 1 : index
    %c2_101 = arith.constant 2 : index
    %c0_102 = arith.constant 0 : index
    %72 = vector.load %arg8[%c1_100, %c2_101, %c0_102] : memref<18x18x8xf32, #tpu.memory_space<vmem>>, vector<16x16x8xf32>
    %73 = vector.shape_cast %72 : vector<16x16x8xf32> to vector<256x8xf32>
    %c256_103 = arith.constant 256 : index
    %c40_104 = arith.constant 40 : index
    %74 = vector.load %arg9[%c256_103, %c40_104] : memref<512x72xf32, #tpu.memory_space<vmem>>, vector<256x8xf32>
    tpu.vector_store %arg9[%c256_103, %c40_104], %73 {strides = array<i32>} : memref<512x72xf32, #tpu.memory_space<vmem>>, vector<256x8xf32>,
    %c2_105 = arith.constant 2 : index
    %c0_106 = arith.constant 0 : index
    %c0_107 = arith.constant 0 : index
    %75 = vector.load %arg8[%c2_105, %c0_106, %c0_107] : memref<18x18x8xf32, #tpu.memory_space<vmem>>, vector<16x16x8xf32>
    %76 = vector.shape_cast %75 : vector<16x16x8xf32> to vector<256x8xf32>
    %c256_108 = arith.constant 256 : index
    %c48_109 = arith.constant 48 : index
    %77 = vector.load %arg9[%c256_108, %c48_109] : memref<512x72xf32, #tpu.memory_space<vmem>>, vector<256x8xf32>
    tpu.vector_store %arg9[%c256_108, %c48_109], %76 {strides = array<i32>} : memref<512x72xf32, #tpu.memory_space<vmem>>, vector<256x8xf32>,
    %c2_110 = arith.constant 2 : index
    %c1_111 = arith.constant 1 : index
    %c0_112 = arith.constant 0 : index
    %78 = vector.load %arg8[%c2_110, %c1_111, %c0_112] : memref<18x18x8xf32, #tpu.memory_space<vmem>>, vector<16x16x8xf32>
    %79 = vector.shape_cast %78 : vector<16x16x8xf32> to vector<256x8xf32>
    %c256_113 = arith.constant 256 : index
    %c56_114 = arith.constant 56 : index
    %80 = vector.load %arg9[%c256_113, %c56_114] : memref<512x72xf32, #tpu.memory_space<vmem>>, vector<256x8xf32>
    tpu.vector_store %arg9[%c256_113, %c56_114], %79 {strides = array<i32>} : memref<512x72xf32, #tpu.memory_space<vmem>>, vector<256x8xf32>,
    %c2_115 = arith.constant 2 : index
    %c2_116 = arith.constant 2 : index
    %c0_117 = arith.constant 0 : index
    %81 = vector.load %arg8[%c2_115, %c2_116, %c0_117] : memref<18x18x8xf32, #tpu.memory_space<vmem>>, vector<16x16x8xf32>
    %82 = vector.shape_cast %81 : vector<16x16x8xf32> to vector<256x8xf32>
    %c256_118 = arith.constant 256 : index
    %c64_119 = arith.constant 64 : index
    %83 = vector.load %arg9[%c256_118, %c64_119] : memref<512x72xf32, #tpu.memory_space<vmem>>, vector<256x8xf32>
    tpu.vector_store %arg9[%c256_118, %c64_119], %82 {strides = array<i32>} : memref<512x72xf32, #tpu.memory_space<vmem>>, vector<256x8xf32>,
    %c0_120 = arith.constant 0 : index
    %c0_121 = arith.constant 0 : index
    %84 = vector.load %arg9[%c0_120, %c0_121] : memref<512x72xf32, #tpu.memory_space<vmem>>, vector<512x72xf32>
    %c0_122 = arith.constant 0 : index
    %c0_123 = arith.constant 0 : index
    %85 = vector.load %arg2[%c0_122, %c0_123] : memref<72x8xf32, #tpu.memory_space<vmem>>, vector<72x8xf32>
    %cst_124 = arith.constant dense<0.000000e+00> : vector<512x8xf32>
    %86 = tpu.matmul %84, %85, %cst_124 {dimension_numbers = #tpu.dot_dimension_numbers<[1], [0], [0], [1], [0, 0, 1, 1], [], []>} : vector<512x72xf32>, vector<72x8xf32>, vector<512x8xf32> -> vector<512x8xf32>
    %87 = vector.shape_cast %86 : vector<512x8xf32> to vector<2x16x16x8xf32>
    %c0_125 = arith.constant 0 : index
    %c0_126 = arith.constant 0 : index
    %c0_127 = arith.constant 0 : index
    %c0_128 = arith.constant 0 : index
    %88 = vector.load %arg5[%c0_125, %c0_126, %c0_127, %c0_128] : memref<2x16x16x8xf32, #tpu.memory_space<vmem>>, vector<2x16x16x8xf32>
    tpu.vector_store %arg5[%c0_125, %c0_126, %c0_127, %c0_128], %87 {strides = array<i32>} : memref<2x16x16x8xf32, #tpu.memory_space<vmem>>, vector<2x16x16x8xf32>,
    %cst_129 = arith.constant dense<0.000000e+00> : vector<8xf32>
    %89 = vector.multi_reduction <add>, %86, %cst_129 [0] : vector<512x8xf32> to vector<8xf32>
    %90 = vector.shape_cast %89 : vector<8xf32> to vector<1x8xf32>
    %c0_130 = arith.constant 0 : index
    %c0_131 = arith.constant 0 : index
    %c0_132 = arith.constant 0 : index
    %91 = vector.load %arg6[%c0_130, %c0_131, %c0_132] : memref<1x1x8xf32, #tpu.memory_space<vmem>>, vector<1x1x8xf32>
    %92 = vector.shape_cast %91 : vector<1x1x8xf32> to vector<1x8xf32>
    %93 = vector.shape_cast %90 : vector<1x8xf32> to vector<1x1x8xf32>
    tpu.vector_store %arg6[%c0_130, %c0_131, %c0_132], %93 {strides = array<i32>} : memref<1x1x8xf32, #tpu.memory_space<vmem>>, vector<1x1x8xf32>,
    %94 = arith.mulf %86, %86 : vector<512x8xf32>
    %cst_133 = arith.constant dense<0.000000e+00> : vector<8xf32>
    %95 = vector.multi_reduction <add>, %94, %cst_133 [0] : vector<512x8xf32> to vector<8xf32>
    %96 = vector.shape_cast %95 : vector<8xf32> to vector<1x8xf32>
    %c0_134 = arith.constant 0 : index
    %c0_135 = arith.constant 0 : index
    %c0_136 = arith.constant 0 : index
    %97 = vector.load %arg7[%c0_134, %c0_135, %c0_136] : memref<1x1x8xf32, #tpu.memory_space<vmem>>, vector<1x1x8xf32>
    %98 = vector.shape_cast %97 : vector<1x1x8xf32> to vector<1x8xf32>
    %99 = vector.shape_cast %96 : vector<1x8xf32> to vector<1x1x8xf32>
    tpu.vector_store %arg7[%c0_134, %c0_135, %c0_136], %99 {strides = array<i32>} : memref<1x1x8xf32, #tpu.memory_space<vmem>>, vector<1x1x8xf32>,
    return
  }
  func.func @transform_0(%arg0: i32) -> (i32, i32, i32, i32) {
    %c0_i32 = arith.constant 0 : i32
    %c0_i32_0 = arith.constant 0 : i32
    %c0_i32_1 = arith.constant 0 : i32
    %c0_i32_2 = arith.constant 0 : i32
    return %arg0, %c0_i32, %c0_i32_0, %c0_i32_1 : i32, i32, i32, i32
  }
  func.func @transform_1(%arg0: i32) -> (i32, i32) {
    %c0_i32 = arith.constant 0 : i32
    %c0_i32_0 = arith.constant 0 : i32
    %c0_i32_1 = arith.constant 0 : i32
    return %c0_i32, %c0_i32_0 : i32, i32
  }
  func.func @transform_2(%arg0: i32) -> (i32, i32, i32) {
    %c0_i32 = arith.constant 0 : i32
    %c0_i32_0 = arith.constant 0 : i32
    %c0_i32_1 = arith.constant 0 : i32
    %c0_i32_2 = arith.constant 0 : i32
    return %c0_i32, %c0_i32_0, %c0_i32_1 : i32, i32, i32
  }
  func.func @transform_3(%arg0: i32) -> (i32, i32, i32) {
    %c0_i32 = arith.constant 0 : i32
    %c0_i32_0 = arith.constant 0 : i32
    %c0_i32_1 = arith.constant 0 : i32
    %c0_i32_2 = arith.constant 0 : i32
    return %c0_i32, %c0_i32_0, %c0_i32_1 : i32, i32, i32
  }
  func.func @transform_4(%arg0: i32) -> (i32, i32, i32, i32) {
    %c0_i32 = arith.constant 0 : i32
    %c0_i32_0 = arith.constant 0 : i32
    %c0_i32_1 = arith.constant 0 : i32
    %c0_i32_2 = arith.constant 0 : i32
    return %arg0, %c0_i32, %c0_i32_0, %c0_i32_1 : i32, i32, i32, i32
  }
  func.func @transform_5(%arg0: i32) -> (i32, i32, i32) {
    %c0_i32 = arith.constant 0 : i32
    %c0_i32_0 = arith.constant 0 : i32
    %c0_i32_1 = arith.constant 0 : i32
    return %arg0, %c0_i32, %c0_i32_0 : i32, i32, i32
  }
  func.func @transform_6(%arg0: i32) -> (i32, i32, i32) {
    %c0_i32 = arith.constant 0 : i32
    %c0_i32_0 = arith.constant 0 : i32
    %c0_i32_1 = arith.constant 0 : i32
    return %arg0, %c0_i32, %c0_i32_0 : i32, i32, i32
  }
}

module attributes {stable_mosaic.version = 11 : i64} {
  func.func @_bn_add_relu_kernel(%arg0: i32, %arg1: memref<32x128xf32, #tpu.memory_space<vmem>>, %arg2: memref<32x128xf32, #tpu.memory_space<vmem>>, %arg3: memref<1x128xf32, #tpu.memory_space<vmem>>, %arg4: memref<1x128xf32, #tpu.memory_space<vmem>>, %arg5: memref<32x128xf32, #tpu.memory_space<vmem>>) attributes {dimension_semantics = [#tpu.dimension_semantics<parallel>], iteration_bounds = array<i64: 1>, scalar_prefetch = 0 : i64, scratch_operands = 0 : i64, tpu.core_type = #tpu.core_type<tc>, window_params = [{transform_indices = @transform_0, window_bounds = array<i64: 32, 128>}, {transform_indices = @transform_1, window_bounds = array<i64: 32, 128>}, {pipeline_mode = #tpu.pipeline_mode<synchronous>, transform_indices = @transform_2, window_bounds = array<i64: 1, 128>}, {pipeline_mode = #tpu.pipeline_mode<synchronous>, transform_indices = @transform_3, window_bounds = array<i64: 1, 128>}, {transform_indices = @transform_4, window_bounds = array<i64: 32, 128>}]} {
    %c0 = arith.constant 0 : index
    %c0_0 = arith.constant 0 : index
    %0 = vector.load %arg1[%c0, %c0_0] : memref<32x128xf32, #tpu.memory_space<vmem>>, vector<32x128xf32>
    %c0_1 = arith.constant 0 : index
    %c0_2 = arith.constant 0 : index
    %1 = vector.load %arg3[%c0_1, %c0_2] : memref<1x128xf32, #tpu.memory_space<vmem>>, vector<1x128xf32>
    %2 = vector.broadcast %1 : vector<1x128xf32> to vector<32x128xf32>
    %3 = arith.mulf %0, %2 : vector<32x128xf32>
    %c0_3 = arith.constant 0 : index
    %c0_4 = arith.constant 0 : index
    %4 = vector.load %arg4[%c0_3, %c0_4] : memref<1x128xf32, #tpu.memory_space<vmem>>, vector<1x128xf32>
    %5 = vector.broadcast %4 : vector<1x128xf32> to vector<32x128xf32>
    %6 = arith.addf %3, %5 : vector<32x128xf32>
    %c0_5 = arith.constant 0 : index
    %c0_6 = arith.constant 0 : index
    %7 = vector.load %arg2[%c0_5, %c0_6] : memref<32x128xf32, #tpu.memory_space<vmem>>, vector<32x128xf32>
    %8 = arith.addf %6, %7 : vector<32x128xf32>
    %cst = arith.constant 0.000000e+00 : f32
    %9 = vector.broadcast %cst : f32 to vector<32x128xf32>
    %10 = arith.maximumf %8, %9 : vector<32x128xf32>
    %c0_7 = arith.constant 0 : index
    %c0_8 = arith.constant 0 : index
    %11 = vector.load %arg5[%c0_7, %c0_8] : memref<32x128xf32, #tpu.memory_space<vmem>>, vector<32x128xf32>
    tpu.vector_store %arg5[%c0_7, %c0_8], %10 {strides = array<i32>} : memref<32x128xf32, #tpu.memory_space<vmem>>, vector<32x128xf32>,
    return
  }
  func.func @transform_0(%arg0: i32) -> (i32, i32) {
    %c0_i32 = arith.constant 0 : i32
    %c0_i32_0 = arith.constant 0 : i32
    return %arg0, %c0_i32 : i32, i32
  }
  func.func @transform_1(%arg0: i32) -> (i32, i32) {
    %c0_i32 = arith.constant 0 : i32
    %c0_i32_0 = arith.constant 0 : i32
    return %arg0, %c0_i32 : i32, i32
  }
  func.func @transform_2(%arg0: i32) -> (i32, i32) {
    %c0_i32 = arith.constant 0 : i32
    %c0_i32_0 = arith.constant 0 : i32
    %c0_i32_1 = arith.constant 0 : i32
    return %c0_i32, %c0_i32_0 : i32, i32
  }
  func.func @transform_3(%arg0: i32) -> (i32, i32) {
    %c0_i32 = arith.constant 0 : i32
    %c0_i32_0 = arith.constant 0 : i32
    %c0_i32_1 = arith.constant 0 : i32
    return %c0_i32, %c0_i32_0 : i32, i32
  }
  func.func @transform_4(%arg0: i32) -> (i32, i32) {
    %c0_i32 = arith.constant 0 : i32
    %c0_i32_0 = arith.constant 0 : i32
    return %arg0, %c0_i32 : i32, i32
  }
}

</mosaic_0001>

<bundles_post_ra>
// kernel: basic_block_mtl_forward.5
= control target key start
LH: loop header
LB: loop body
LE: loop exit
PB: predicated region body
PF: predicated region fallthrough
CT: control target
= control target key end

     0   :  { %s126_s0 = inlined_call_operand.vmem [shape: f32[32,128], index: 0, kind: input, shape index: {}]   ;;  %s127_s2 = inlined_call_operand.vmem [shape: f32[1,128], index: 2, kind: input, shape index: {}]   ;;  %s128_s3 = inlined_call_operand.vmem [shape: f32[1,128], index: 3, kind: input, shape index: {}]   ;;  %s129_s1 = inlined_call_operand.vmem [shape: f32[32,128], index: 1, kind: input, shape index: {}]   ;;  %s130_s4 = inlined_call_operand.vmem [shape: f32[32,128], index: 4, kind: output, shape index: {}]  }
   0x1   :  { %v17_v0 = vld [vmem:[%s126_s0] sm:$0xff]  ;;  %v18_v4 = vld [vmem:[%s126_s0 + $0x8] sm:$0xff]  ;;  %v19_v5 = vld [vmem:[%s126_s0 + $0x10] sm:$0xff] }
   0x2   :  { %v57_v1 = vld [vmem:[%s127_s2] ss:$0 sm:$0xff]  ;;  %v20_v9 = vld [vmem:[%s126_s0 + $0x18] sm:$0xff]  ;;  %v38_v11 = vld [vmem:[%s129_s1 + $0x8] sm:$0xff] }
   0x3   :  { %v58_v2 = vld [vmem:[%s128_s3] ss:$0 sm:$0xff]  ;;  %v25_v3 = vmul.f32 %v57_v1, %v17_v0  ;;  %v26_v7 = vmul.f32 %v57_v1, %v18_v4  ;;  %v27_v8 = vmul.f32 %v57_v1, %v19_v5  ;;  %v39_v12 = vld [vmem:[%s129_s1 + $0x10] sm:$0xff]  ;;  %v28_v13 = vmul.f32 %v57_v1, %v20_v9  ;;  %v40_v16 = vld [vmem:[%s129_s1 + $0x18] sm:$0xff] }
   0x4   :  { %v37_v6 = vld [vmem:[%s129_s1] sm:$0xff] }
   0x5   :  { %v33_v10 = vadd.f32 %v58_v2, %v25_v3  ;;  %v34_v14 = vadd.f32 %v58_v2, %v26_v7  ;;  %v35_v15 = vadd.f32 %v58_v2, %v27_v8  ;;  %v36_v18 = vadd.f32 %v58_v2, %v28_v13 }
   0x7   :  { %v41_v17 = vadd.f32 %v37_v6, %v33_v10  ;;  %v42_v19 = vadd.f32 %v38_v11, %v34_v14  ;;  %v43_v20 = vadd.f32 %v39_v12, %v35_v15  ;;  %v44_v22 = vadd.f32 %v40_v16, %v36_v18 }
   0x9   :  { %v45_v21 = vmax.f32 %v41_v17, 0.0  ;;  %v46_v23 = vmax.f32 %v42_v19, 0.0  ;;  %v47_v24 = vmax.f32 %v43_v20, 0.0  ;;  %v48_v25 = vmax.f32 %v44_v22, 0.0 }
   0xb   :  { %49 = vst [vmem:[%s130_s4] sm:$0xff] %v45_v21 }
   0xc   :  { %50 = vst [vmem:[%s130_s4 + $0x8] sm:$0xff] %v46_v23 }
   0xd   :  { %51 = vst [vmem:[%s130_s4 + $0x10] sm:$0xff] %v47_v24 }
   0xe   :  { %52 = vst [vmem:[%s130_s4 + $0x18] sm:$0xff] %v48_v25 }

// kernel: basic_block_mtl_forward.3
= control target key start
LH: loop header
LB: loop body
LE: loop exit
PB: predicated region body
PF: predicated region fallthrough
CT: control target
= control target key end

     0   :  { %vm14_vm0 = vcmask 64512   ;;  %v4414_v0 = vmov 0.0   ;;  %vm17_vm1 = vcmask 58368   ;;  %s4415_s27 = smov 8   ;;  %vm23_vm2 = vcmask 57344   ;;  %s4416_s25 = smov 16   ;;  %s7192_s0 = inlined_call_operand.vmem [shape: f32[2,16,16,8], index: 0, kind: input, shape index: {}]   ;;  %s7193_s1 = inlined_call_operand.vmem [shape: f32[72,8], index: 1, kind: input, shape index: {}]   ;;  %s7194_s2 = inlined_call_operand.vmem [shape: f32[2,16,16,8], index: 2, kind: output, shape index: {0}]   ;;  %s7195_s3 = inlined_call_operand.vmem [shape: f32[1,1,8], index: 3, kind: output, shape index: {1}]   ;;  %s7196_s4 = inlined_call_operand.vmem [shape: f32[1,1,8], index: 4, kind: output, shape index: {2}]  }
   0x1   :  { %15 = vst.msk [vmem:[#allocation2] sm:$0xff] %vm14_vm0, %v4414_v0  ;;  %v60_v1 = vld [vmem:[%s7192_s0] sm:$0xff]  ;;  %v61_v2 = vld [vmem:[%s7192_s0 + $0x8] sm:$0xff]  ;;  %v67_v5 = vld [vmem:[%s7192_s0 + $0x38] sm:$0xff]  ;;  %vm349_vm3 = vcmask 130112   ;;  %s4417_s26 = smov 24  }
   0x2   :  { %16 = vst.msk [vmem:[#allocation2 + $0x8] sm:$0xff] %vm14_vm0, %v4414_v0  ;;  %v64_v3 = vld [vmem:[%s7192_s0 + $0x20] sm:$0xff]  ;;  %v65_v4 = vld [vmem:[%s7192_s0 + $0x28] sm:$0xff]  ;;  %v62_v7 = vld [vmem:[%s7192_s0 + $0x10] sm:$0xff]  ;;  %vm542_vm4 = vcmask 195712   ;;  %s4418_s6 = smov 32  }
   0x3   :  { %20 = vst.msk [vmem:[#allocation2 + $0x198] sm:$0xff] %vm14_vm0, %v4414_v0  ;;  %v68_v8 = vld [vmem:[%s7192_s0 + $0x40] sm:$0xff]  ;;  %v70_v9 = vld [vmem:[%s7192_s0 + $0x50] sm:$0xff]  ;;  %v63_v11 = vld [vmem:[%s7192_s0 + $0x18] sm:$0xff]  ;;  %vm735_vm5 = vcmask 261312   ;;  %s4419_s11 = smov 40  }
   0x4   :  { %21 = vst.msk [vmem:[#allocation2 + $0x1a0] sm:$0xff] %vm14_vm0, %v4414_v0  ;;  %v71_v12 = vld [vmem:[%s7192_s0 + $0x58] sm:$0xff]  ;;  %v73_v13 = vld [vmem:[%s7192_s0 + $0x68] sm:$0xff]  ;;  %v66_v15 = vld [vmem:[%s7192_s0 + $0x30] sm:$0xff]  ;;  %vm928_vm6 = vcmask 326912   ;;  %s4420_s12 = smov 48  }
   0x5   :  { %93 = vst.msk [vmem:[#allocation2 + $0x19] sm:$0xff] %vm14_vm0, %v60_v1  ;;  %v74_v16 = vld [vmem:[%s7192_s0 + $0x70] sm:$0xff]  ;;  %v76_v19 = vld [vmem:[%s7192_s0 + $0x80] sm:$0xff]  ;;  %v69_v20 = vld [vmem:[%s7192_s0 + $0x48] sm:$0xff]  ;;  %vm1121_vm7 = vcmask 392512   ;;  %s4421_s13 = smov 56  }
   0x6   :  { %18 = vst.msk [vmem:[#allocation2 + $0x10] sm:$0x3] %vm17_vm1, %v4414_v0  ;;  %v77_v21 = vld [vmem:[%s7192_s0 + $0x88] sm:$0xff]  ;;  %v79_v25 = vld [vmem:[%s7192_s0 + $0x98] sm:$0xff]  ;;  %v72_v26 = vld [vmem:[%s7192_s0 + $0x60] sm:$0xff]  ;;  %vm1315_vm8 = vcmask 458112  }
   0x7   :  { %22 = vst.msk [vmem:[#allocation2 + $0x1a8] sm:$0x3] %vm17_vm1, %v4414_v0  ;;  %v80_v27 = vld [vmem:[%s7192_s0 + $0xa0] sm:$0xff]  ;;  %v82_v31 = vld [vmem:[%s7192_s0 + $0xb0] sm:$0xff]  ;;  %v75_v32 = vld [vmem:[%s7192_s0 + $0x78] sm:$0xff]  ;;  %s4422_s14 = smov 64  }
   0x8   :  { %94 = vst.msk [vmem:[#allocation2 + $0x21] sm:$0xff] %vm14_vm0, %v61_v2  ;;  %v83_v33 = vld [vmem:[%s7192_s0 + $0xb8] sm:$0xff]  ;;  %v85_v37 = vld [vmem:[%s7192_s0 + $0xc8] sm:$0xff]  ;;  %v78_v38 = vld [vmem:[%s7192_s0 + $0x90] sm:$0xff]  ;;  %vm1508_vm9 = vcmask 523712   ;;  %vm1701_vm10 = vcmask 589312  }
   0x9   :  { %v189_v6 = vld [vmem:[#allocation2 + $0x1] sm:$0xff]  ;;  %97 = vst.msk [vmem:[#allocation2 + $0x49] sm:$0xff] %vm14_vm0, %v64_v3  ;;  %v86_v39 = vld [vmem:[%s7192_s0 + $0xd0] sm:$0xff]  ;;  %v87_v60 = vld [vmem:[%s7192_s0 + $0xd8] sm:$0xff]  ;;  %vm3472_vm11 = vcmask 588800  }
   0xa   :  { %253 = vrot.lane.b32.xlu0 %v189_v6, %s4415_s27  ;;  %98 = vst.msk [vmem:[#allocation2 + $0x51] sm:$0xff] %vm14_vm0, %v65_v4  ;;  %v88_v43 = vld [vmem:[%s7192_s0 + $0xe0] sm:$0xff]  ;;  %v81_v44 = vld [vmem:[%s7192_s0 + $0xa8] sm:$0xff] }
   0xb   :  { %100 = vst.msk [vmem:[#allocation2 + $0x69] sm:$0xff] %vm14_vm0, %v67_v5  ;;  %v89_v45 = vld [vmem:[%s7192_s0 + $0xe8] sm:$0xff]  ;;  %v84_v59 = vld [vmem:[%s7192_s0 + $0xc0] sm:$0xff] }
   0xc   :  { %v4488_v10 = vld [vmem:[#allocation2 + $0x19] sm:$0xff]  ;;  %95 = vst.msk [vmem:[#allocation2 + $0x31] sm:$0xff] %vm14_vm0, %v62_v7  ;;  %v126_v4 = vld [vmem:[#allocation2 + $0x8] sm:$0xff] }
   0xd   :  { %257 = vrot.lane.b32.xlu1 %v4488_v10, %s4415_s27  ;;  %101 = vst.msk [vmem:[#allocation2 + $0x79] sm:$0xff] %vm14_vm0, %v68_v8  ;;  %v190_v14 = vld [vmem:[#allocation2 + $0x9] sm:$0xff] }
   0xe   :  { %103 = vst.msk [vmem:[#allocation2 + $0x91] sm:$0xff] %vm14_vm0, %v70_v9 }
   0xf   :  { %96 = vst.msk [vmem:[#allocation2 + $0x39] sm:$0xff] %vm14_vm0, %v63_v11  ;;  %v4514_v17 = vld [vmem:[#allocation2 + $0x21] sm:$0xff] }
  0x10   :  { %104 = vst.msk [vmem:[#allocation2 + $0x99] sm:$0xff] %vm14_vm0, %v71_v12  ;;  %v4536_v22 = vld [vmem:[#allocation2 + $0x49] sm:$0xff]  ;;  %v4769_v2 = vld [vmem:[#allocation2 + $0x1a] sm:$0xff] }
  0x11   :  { %106 = vst.msk [vmem:[#allocation2 + $0xb1] sm:$0xff] %vm14_vm0, %v73_v13  ;;  %v4542_v24 = vld [vmem:[#allocation2 + $0x51] sm:$0xff]  ;;  %v4787_v6 = vld [vmem:[#allocation2 + $0x20] sm:$0xff] }
  0x12   :  { %255 = vrot.lane.b32.xlu0 %v190_v14, %s4415_s27  ;;  %99 = vst.msk [vmem:[#allocation2 + $0x61] sm:$0xff] %vm14_vm0, %v66_v15  ;;  %v4560_v28 = vld [vmem:[#allocation2 + $0x69] sm:$0xff] }
  0x13   :  { %v4517_v18 = vld [vmem:[#allocation2 + $0x31] sm:$0xff]  ;;  %107 = vst.msk [vmem:[#allocation2 + $0xc1] sm:$0xff] %vm14_vm0, %v74_v16  ;;  %v382_v16 = vld [vmem:[#allocation2 + $0x2] sm:$0xff] }
  0x14   :  { %261 = vrot.lane.b32.xlu2 %v4517_v18, %s4415_s27  ;;  %109 = vst.msk [vmem:[#allocation2 + $0xd9] sm:$0xff] %vm14_vm0, %v76_v19  ;;  %v4566_v30 = vld [vmem:[#allocation2 + $0x79] sm:$0xff]  ;;  %v4812_v14 = vld [vmem:[#allocation2 + $0x50] sm:$0xff] }
  0x15   :  { %259 = vrot.lane.b32.xlu1 %v4514_v17, %s4415_s27  ;;  %102 = vst.msk [vmem:[#allocation2 + $0x81] sm:$0xff] %vm14_vm0, %v69_v20  ;;  %v4584_v34 = vld [vmem:[#allocation2 + $0x91] sm:$0xff] }
  0x16   :  { %110 = vst.msk [vmem:[#allocation2 + $0xe1] sm:$0xff] %vm14_vm0, %v77_v21  ;;  %v4538_v23 = vld [vmem:[#allocation2 + $0x39] sm:$0xff] }
  0x17   :  { %112 = vst.msk [vmem:[#allocation2 + $0xf9] sm:$0xff] %vm14_vm0, %v79_v25  ;;  %v4590_v36 = vld [vmem:[#allocation2 + $0x99] sm:$0xff] }
  0x18   :  { %105 = vst.msk [vmem:[#allocation2 + $0xa9] sm:$0xff] %vm14_vm0, %v72_v26  ;;  %v4608_v40 = vld [vmem:[#allocation2 + $0xb1] sm:$0xff] }
  0x19   :  { %113 = vst.msk [vmem:[#allocation2 + $0x109] sm:$0xff] %vm14_vm0, %v80_v27  ;;  %v4562_v29 = vld [vmem:[#allocation2 + $0x61] sm:$0xff]  ;;  %v4780_v3 = vld [vmem:[#allocation2 + $0x32] sm:$0xff] }
  0x1a   :  { %265 = vrot.lane.b32.xlu0 %v4536_v22, %s4415_s27  ;;  %115 = vst.msk [vmem:[#allocation2 + $0x121] sm:$0xff] %vm14_vm0, %v82_v31  ;;  %v4614_v42 = vld [vmem:[#allocation2 + $0xc1] sm:$0xff]  ;;  %v4785_v5 = vld [vmem:[#allocation2 + $0x38] sm:$0xff] }
  0x1b   :  { %108 = vst.msk [vmem:[#allocation2 + $0xc9] sm:$0xff] %vm14_vm0, %v75_v32  ;;  %v4632_v46 = vld [vmem:[#allocation2 + $0xd9] sm:$0xff]  ;;  %v4816_v15 = vld [vmem:[#allocation2 + $0x62] sm:$0xff] }
  0x1c   :  { %263 = vrot.lane.b32.xlu2 %v4538_v23, %s4415_s27  ;;  %116 = vst.msk [vmem:[#allocation2 + $0x129] sm:$0xff] %vm14_vm0, %v83_v33  ;;  %v4586_v35 = vld [vmem:[#allocation2 + $0x81] sm:$0xff] }
  0x1d   :  { %267 = vrot.lane.b32.xlu1 %v4542_v24, %s4415_s27  ;;  %118 = vst.msk [vmem:[#allocation2 + $0x141] sm:$0xff] %vm14_vm0, %v85_v37  ;;  %v4638_v48 = vld [vmem:[#allocation2 + $0xe1] sm:$0xff] }
  0x1e   :  { %111 = vst.msk [vmem:[#allocation2 + $0xf1] sm:$0xff] %vm14_vm0, %v78_v38  ;;  %v4650_v49 = vld [vmem:[#allocation2 + $0xf9] sm:$0xff]  ;;  %v4828_v21 = vld [vmem:[#allocation2 + $0x68] sm:$0xff] }
  0x1f   :  { %119 = vst.msk [vmem:[#allocation2 + $0x151] sm:$0xff] %vm14_vm0, %v86_v39  ;;  %v4610_v41 = vld [vmem:[#allocation2 + $0xa9] sm:$0xff]  ;;  %v4824_v20 = vld [vmem:[#allocation2 + $0x7a] sm:$0xff] }
  0x20   :  { %121 = vst.msk [vmem:[#allocation2 + $0x169] sm:$0xff] %vm14_vm0, %v88_v43  ;;  %v4662_v51 = vld [vmem:[#allocation2 + $0x109] sm:$0xff]  ;;  %v4830_v25 = vld [vmem:[#allocation2 + $0x80] sm:$0xff] }
  0x21   :  { %114 = vst.msk [vmem:[#allocation2 + $0x111] sm:$0xff] %vm14_vm0, %v81_v44  ;;  %v4678_v52 = vld [vmem:[#allocation2 + $0x121] sm:$0xff]  ;;  %v4861_v44 = vld [vmem:[#allocation2 + $0x98] sm:$0xff] }
  0x22   :  { %271 = vrot.lane.b32.xlu0 %v4560_v28, %s4415_s27  ;;  %122 = vst.msk [vmem:[#allocation2 + $0x171] sm:$0xff] %vm14_vm0, %v89_v45  ;;  %v4634_v47 = vld [vmem:[#allocation2 + $0xc9] sm:$0xff] }
  0x23   :  { %42 = vst.msk [vmem:[#allocation2 + $0x11] sm:$0x1] %vm23_vm2, %v4414_v0  ;;  %v4690_v54 = vld [vmem:[#allocation2 + $0x129] sm:$0xff] }
  0x24   :  { %269 = vrot.lane.b32.xlu2 %v4562_v29, %s4415_s27  ;;  %24 = vst.msk [vmem:[#allocation2] sm:$0x1] %vm23_vm2, %v4414_v0  ;;  %v4706_v55 = vld [vmem:[#allocation2 + $0x141] sm:$0xff]  ;;  %v4865_v45 = vld [vmem:[#allocation2 + $0xaa] sm:$0xff] }
  0x25   :  { %273 = vrot.lane.b32.xlu1 %v4566_v30, %s4415_s27  ;;  %25 = vst.msk [vmem:[#allocation2 + $0x18] sm:$0x1] %vm23_vm2, %v4414_v0  ;;  %v4656_v50 = vld [vmem:[#allocation2 + $0xf1] sm:$0xff] }
  0x26   :  { %26 = vst.msk [vmem:[#allocation2 + $0x30] sm:$0x1] %vm23_vm2, %v4414_v0  ;;  %v4716_v56 = vld [vmem:[#allocation2 + $0x151] sm:$0xff] }
  0x27   :  { %27 = vst.msk [vmem:[#allocation2 + $0x48] sm:$0x1] %vm23_vm2, %v4414_v0  ;;  %v4730_v57 = vld [vmem:[#allocation2 + $0x169] sm:$0xff] }
  0x28   :  { %28 = vst.msk [vmem:[#allocation2 + $0x60] sm:$0x1] %vm23_vm2, %v4414_v0  ;;  %v4684_v53 = vld [vmem:[#allocation2 + $0x111] sm:$0xff] }
  0x29   :  { %29 = vst.msk [vmem:[#allocation2 + $0x78] sm:$0x1] %vm23_vm2, %v4414_v0  ;;  %v4740_v58 = vld [vmem:[#allocation2 + $0x171] sm:$0xff] }
  0x2a   :  { %277 = vrot.lane.b32.xlu0 %v4584_v34, %s4415_s27  ;;  %30 = vst.msk [vmem:[#allocation2 + $0x90] sm:$0x1] %vm23_vm2, %v4414_v0  ;;  %v383_v61 = vld [vmem:[#allocation2 + $0xa] sm:$0xff] }
  0x2b   :  { %31 = vst.msk [vmem:[#allocation2 + $0xa8] sm:$0x1] %vm23_vm2, %v4414_v0  ;;  %v125_v62 = vld [vmem:[#allocation2] sm:$0xff] }
  0x2c   :  { %275 = vrot.lane.b32.xlu2 %v4586_v35, %s4415_s27  ;;  %32 = vst.msk [vmem:[#allocation2 + $0xc0] sm:$0x1] %vm23_vm2, %v4414_v0  ;;  %v4766_v1 = vld [vmem:[#allocation2 + $0x18] sm:$0xff] }
  0x2d   :  { %279 = vrot.lane.b32.xlu1 %v4590_v36, %s4415_s27  ;;  %33 = vst.msk [vmem:[#allocation2 + $0xd8] sm:$0x1] %vm23_vm2, %v4414_v0  ;;  %v4763_v63 = vld [vmem:[#allocation2 + $0x30] sm:$0xff] }
  0x2e   :  { %34 = vst.msk [vmem:[#allocation2 + $0xf0] sm:$0x1] %vm23_vm2, %v4414_v0  ;;  %v4806_v12 = vld [vmem:[#allocation2 + $0x48] sm:$0xff] }
  0x2f   :  { %35 = vst.msk [vmem:[#allocation2 + $0x108] sm:$0x1] %vm23_vm2, %v4414_v0  ;;  %v4808_v13 = vld [vmem:[#allocation2 + $0x60] sm:$0xff] }
  0x30   :  { %36 = vst.msk [vmem:[#allocation2 + $0x120] sm:$0x1] %vm23_vm2, %v4414_v0  ;;  %v4834_v26 = vld [vmem:[#allocation2 + $0x78] sm:$0xff] }
  0x31   :  { %37 = vst.msk [vmem:[#allocation2 + $0x138] sm:$0x1] %vm23_vm2, %v4414_v0  ;;  %v4855_v39 = vld [vmem:[#allocation2 + $0x90] sm:$0xff] }
  0x32   :  { %283 = vrot.lane.b32.xlu0 %v4608_v40, %s4415_s27  ;;  %38 = vst.msk [vmem:[#allocation2 + $0x150] sm:$0x1] %vm23_vm2, %v4414_v0  ;;  %v4857_v43 = vld [vmem:[#allocation2 + $0xa8] sm:$0xff] }
  0x33   :  { %39 = vst.msk [vmem:[#allocation2 + $0x168] sm:$0x1] %vm23_vm2, %v4414_v0 }
  0x34   :  { %281 = vrot.lane.b32.xlu2 %v4610_v41, %s4415_s27  ;;  %40 = vst.msk [vmem:[#allocation2 + $0x180] sm:$0x1] %vm23_vm2, %v4414_v0 }
  0x35   :  { %285 = vrot.lane.b32.xlu1 %v4614_v42, %s4415_s27  ;;  %41 = vst.msk [vmem:[#allocation2 + $0x198] sm:$0x1] %vm23_vm2, %v4414_v0 }
  0x36   :  { %43 = vst.msk [vmem:[#allocation2 + $0x29] sm:$0x1] %vm23_vm2, %v4414_v0 }
  0x37   :  { %44 = vst.msk [vmem:[#allocation2 + $0x41] sm:$0x1] %vm23_vm2, %v4414_v0 }
  0x38   :  { %45 = vst.msk [vmem:[#allocation2 + $0x59] sm:$0x1] %vm23_vm2, %v4414_v0 }
  0x39   :  { %7225 = vst [vmem:[#allocation4_spill] sm:$0xff] %v4716_v56 }
  0x3a   :  { %289 = vrot.lane.b32.xlu0 %v4632_v46, %s4415_s27  ;;  %46 = vst.msk [vmem:[#allocation2 + $0x71] sm:$0x1] %vm23_vm2, %v4414_v0 }
  0x3b   :  { %47 = vst.msk [vmem:[#allocation2 + $0x89] sm:$0x1] %vm23_vm2, %v4414_v0 }
  0x3c   :  { %287 = vrot.lane.b32.xlu2 %v4634_v47, %s4415_s27  ;;  %48 = vst.msk [vmem:[#allocation2 + $0xa1] sm:$0x1] %vm23_vm2, %v4414_v0 }
  0x3d   :  { %291 = vrot.lane.b32.xlu1 %v4638_v48, %s4415_s27  ;;  %49 = vst.msk [vmem:[#allocation2 + $0xb9] sm:$0x1] %vm23_vm2, %v4414_v0  ;;  %v4844_v32 = vld [vmem:[#allocation2 + $0x22] sm:$0xff] }
  0x3e   :  { %50 = vst.msk [vmem:[#allocation2 + $0xd1] sm:$0x1] %vm23_vm2, %v4414_v0  ;;  %v4791_v7 = vld [vmem:[#allocation2 + $0x3a] sm:$0xff] }
  0x3f   :  { %51 = vst.msk [vmem:[#allocation2 + $0xe9] sm:$0x1] %vm23_vm2, %v4414_v0  ;;  %v4801_v11 = vld [vmem:[#allocation2 + $0x52] sm:$0xff] }
  0x40   :  { %52 = vst.msk [vmem:[#allocation2 + $0x101] sm:$0x1] %vm23_vm2, %v4414_v0 }
  0x41   :  { %53 = vst.msk [vmem:[#allocation2 + $0x119] sm:$0x1] %vm23_vm2, %v4414_v0 }
  0x42   :  { %295 = vrot.lane.b32.xlu0 %v4650_v49, %s4415_s27  ;;  %7226 = vst [vmem:[#allocation5_spill] sm:$0xff] %v4740_v58  ;;  %v4838_v27 = vld [vmem:[#allocation2 + $0x82] sm:$0xff] }
  0x43   :  { %54 = vst.msk [vmem:[#allocation2 + $0x131] sm:$0x1] %vm23_vm2, %v4414_v0  ;;  %v4849_v38 = vld [vmem:[#allocation2 + $0x9a] sm:$0xff] }
  0x44   :  { %293 = vrot.lane.b32.xlu2 %v4656_v50, %s4415_s27  ;;  %55 = vst.msk [vmem:[#allocation2 + $0x149] sm:$0x1] %vm23_vm2, %v4414_v0 }
  0x45   :  { %297 = vrot.lane.b32.xlu1 %v4662_v51, %s4415_s27  ;;  %56 = vst.msk [vmem:[#allocation2 + $0x161] sm:$0x1] %vm23_vm2, %v4414_v0 }
  0x46   :  { %57 = vst.msk [vmem:[#allocation2 + $0x179] sm:$0x1] %vm23_vm2, %v4414_v0 }
  0x47   :  { %58 = vst.msk [vmem:[#allocation2 + $0x191] sm:$0x1] %vm23_vm2, %v4414_v0 }
  0x48   :  { %59 = vst.msk [vmem:[#allocation2 + $0x1a9] sm:$0x1] %vm23_vm2, %v4414_v0 }
  0x49   :  { %117 = vst.msk [vmem:[#allocation2 + $0x139] sm:$0xff] %vm14_vm0, %v84_v59 }
  0x4a   :  { %301 = vrot.lane.b32.xlu0 %v4678_v52, %s4415_s27  ;;  %120 = vst.msk [vmem:[#allocation2 + $0x159] sm:$0xff] %vm14_vm0, %v87_v60  ;;  %v4871_v60 = vld [vmem:[#allocation2 + $0x4a] sm:$0xff] }
  0x4b   :  { %7227 = vst [vmem:[#allocation6_spill] sm:$0xff] %v4769_v2 }
  0x4c   :  { %299 = vrot.lane.b32.xlu2 %v4684_v53, %s4415_s27  ;;  %157 = vst.msk [vmem:[#allocation3] sm:$0xff] %vm14_vm0, %v125_v62 }
  0x4d   :  { %303 = vrot.lane.b32.xlu1 %v4690_v54, %s4415_s27  ;;  %161 = vst.msk [vmem:[#allocation3 + $0x20] sm:$0xff] %vm14_vm0, %v4763_v63 }
  0x4e   :  { %159 = vst.msk [vmem:[#allocation3 + $0x10] sm:$0xff] %vm14_vm0, %v4766_v1 }
  0x4f   :  { %7228 = vst [vmem:[#allocation7_spill] sm:$0xff] %v4780_v3 }
  0x50   :  { %v4778_v0 = vld [vmem:[#allocation2 + $0x139] sm:$0xff]  ;;  %158 = vst.msk [vmem:[#allocation3 + $0x8] sm:$0xff] %vm14_vm0, %v126_v4  ;;  %v4876_v4 = vld [vmem:[#allocation2 + $0xc2] sm:$0xff] }
  0x51   :  { %7229 = vst [vmem:[#allocation8_spill] sm:$0xff] %v4791_v7  ;;  %v4797_v8 = vld [vmem:[#allocation2 + $0x159] sm:$0xff] }
  0x52   :  { %307 = vrot.lane.b32.xlu0 %v4706_v55, %s4415_s27  ;;  %162 = vst.msk [vmem:[#allocation3 + $0x28] sm:$0xff] %vm14_vm0, %v4785_v5 }
  0x53   :  { %160 = vst.msk [vmem:[#allocation3 + $0x18] sm:$0xff] %vm14_vm0, %v4787_v6 }
  0x54   :  { %305 = vrot.lane.b32.xlu2 %v4778_v0, %s4415_s27  ;;  %7230 = vst [vmem:[#allocation9_spill] sm:$0xff] %v4801_v11 }
  0x55   :  { %309 = vrot.lane.b32.xlu1 %v4716_v56, %s4415_s27  ;;  %163 = vst.msk [vmem:[#allocation3 + $0x30] sm:$0xff] %vm14_vm0, %v4806_v12  ;;  %v5016_v56 = vld [vmem:[#allocation2 + $0x168] sm:$0xff] }
  0x56   :  { %7231 = vst [vmem:[#allocation10_spill] sm:$0xff] %v4816_v15 }
  0x57   :  { %165 = vst.msk [vmem:[#allocation3 + $0x40] sm:$0xff] %vm14_vm0, %v4808_v13 }
  0x58   :  { %164 = vst.msk [vmem:[#allocation3 + $0x38] sm:$0xff] %vm14_vm0, %v4812_v14 }
  0x59   :  { %7232 = vst [vmem:[#allocation11_spill] sm:$0xff] %v4824_v20 }
  0x5a   :  { %313 = vrot.lane.b32.xlu0 %v4730_v57, %s4415_s27  ;;  %166 = vst.msk [vmem:[#allocation3 + $0x48] sm:$0xff] %vm14_vm0, %v4828_v21 }
  0x5b   :  { %7233 = vst [vmem:[#allocation12_spill] sm:$0xff] %v4838_v27 }
  0x5c   :  { %311 = vrot.lane.b32.xlu2 %v4797_v8, %s4415_s27  ;;  %168 = vst.msk [vmem:[#allocation3 + $0x58] sm:$0xff] %vm14_vm0, %v4830_v25 }
  0x5d   :  { %315 = vrot.lane.b32.xlu1 %v4740_v58, %s4415_s27  ;;  %167 = vst.msk [vmem:[#allocation3 + $0x50] sm:$0xff] %vm14_vm0, %v4834_v26  ;;  %v4984_v58 = vld [vmem:[#allocation2 + $0x152] sm:$0xff] }
  0x5e   :  { %7234 = vst [vmem:[#allocation13_spill] sm:$0xff] %v4849_v38 }
  0x5f   :  { %169 = vst.msk [vmem:[#allocation3 + $0x60] sm:$0xff] %vm14_vm0, %v4855_v39 }
  0x60   :  { %7235 = vst [vmem:[#allocation14_spill] sm:$0xff] %v4865_v45 }
  0x61   :  { %171 = vst.msk [vmem:[#allocation3 + $0x70] sm:$0xff] %vm14_vm0, %v4857_v43 }
  0x62   :  { %448 = vrot.lane.b32.xlu0 %v383_v61, %s4416_s25  ;;  %170 = vst.msk [vmem:[#allocation3 + $0x68] sm:$0xff] %vm14_vm0, %v4861_v44 }
  0x63   :  { %7236 = vst [vmem:[#allocation15_spill] sm:$0xff] %v4871_v60 }
  0x64   :  { %446 = vrot.lane.b32.xlu2 %v382_v16, %s4416_s25  ;;  %7237 = vst [vmem:[#allocation16_spill] sm:$0xff] %v4876_v4  ;;  %v4884_v16 = vld [vmem:[#allocation2 + $0xc8] sm:$0xff] }
  0x65   :  { %450 = vrot.lane.b32.xlu1 %v4769_v2, %s4416_s25  ;;  %174 = vst.msk [vmem:[#allocation3 + $0x88] sm:$0xff] %vm14_vm0, %v4884_v16  ;;  %v4940_v2 = vld [vmem:[#allocation2 + $0x108] sm:$0xff] }
  0x66   :  { %179 = vst.msk [vmem:[#allocation3 + $0xb0] sm:$0xff] %vm14_vm0, %v4940_v2 }
  0x67   :  { %7249 = vst [vmem:[#allocation28_spill] sm:$0xff] %v4984_v58 }
  0x68   :  { %187 = vst.msk [vmem:[#allocation3 + $0xf0] sm:$0xff] %vm14_vm0, %v5016_v56 }
  0x6a   :  { %454 = vrot.lane.b32.xlu0 %v4780_v3, %s4416_s25  ;;  %v5022_v3 = vld [vmem:[#allocation2 + $0x170] sm:$0xff] }
  0x6b   :  { %188 = vst.msk [vmem:[#allocation3 + $0xf8] sm:$0xff] %vm14_vm0, %v5022_v3 }
  0x6c   :  { %452 = vrot.lane.b32.xlu2 %v4844_v32, %s4416_s25 }
  0x6d   :  { %456 = vrot.lane.b32.xlu1 %v4791_v7, %s4416_s25  ;;  %v4930_v7 = vld [vmem:[#allocation2 + $0x10a] sm:$0xff] }
  0x6e   :  { %v262_v9 = vpop.permute.xlu2 %261  ;;  %7243 = vst [vmem:[#allocation22_spill] sm:$0xff] %v4930_v7 }
  0x6f   :  { %354 = vst.msk [vmem:[#allocation3 + $0x20] sm:$0xff] %vm349_vm3, %v262_v9  ;;  %v4882_v9 = vld [vmem:[#allocation2 + $0xb0] sm:$0xff] }
  0x70   :  { %172 = vst.msk [vmem:[#allocation3 + $0x78] sm:$0xff] %vm14_vm0, %v4882_v9 }
  0x72   :  { %460 = vrot.lane.b32.xlu0 %v4801_v11, %s4416_s25  ;;  %v4990_v11 = vld [vmem:[#allocation2 + $0x140] sm:$0xff] }
  0x73   :  { %184 = vst.msk [vmem:[#allocation3 + $0xd8] sm:$0xff] %vm14_vm0, %v4990_v11 }
  0x74   :  { %458 = vrot.lane.b32.xlu2 %v4871_v60, %s4416_s25  ;;  %v4992_v60 = vld [vmem:[#allocation2 + $0x158] sm:$0xff] }
  0x75   :  { %462 = vrot.lane.b32.xlu1 %v4816_v15, %s4416_s25  ;;  %186 = vst.msk [vmem:[#allocation3 + $0xe8] sm:$0xff] %vm14_vm0, %v4992_v60 }
  0x76   :  { %v264_v19 = vpop.permute.xlu2 %263 }
  0x77   :  { %355 = vst.msk [vmem:[#allocation3 + $0x28] sm:$0xff] %vm349_vm3, %v264_v19  ;;  %v4888_v19 = vld [vmem:[#allocation2 + $0xc0] sm:$0xff] }
  0x78   :  { %173 = vst.msk [vmem:[#allocation3 + $0x80] sm:$0xff] %vm14_vm0, %v4888_v19 }
  0x7a   :  { %466 = vrot.lane.b32.xlu0 %v4824_v20, %s4416_s25  ;;  %v4957_v20 = vld [vmem:[#allocation2 + $0x12a] sm:$0xff] }
  0x7b   :  { %7246 = vst [vmem:[#allocation25_spill] sm:$0xff] %v4957_v20 }
  0x7c   :  { %v254_v31 = vpop.permute.xlu0 %253 }
  0x7d   :  { %468 = vrot.lane.b32.xlu1 %v4838_v27, %s4416_s25  ;;  %350 = vst.msk [vmem:[#allocation3] sm:$0xff] %vm349_vm3, %v254_v31  ;;  %v4892_v31 = vld [vmem:[#allocation2 + $0xca] sm:$0xff] }
  0x7e   :  { %v270_v33 = vpop.permute.xlu2 %269  ;;  %7238 = vst [vmem:[#allocation17_spill] sm:$0xff] %v4892_v31  ;;  %v4911_v27 = vld [vmem:[#allocation2 + $0xf0] sm:$0xff] }
  0x7f   :  { %v258_v37 = vpop.permute.xlu1 %257  ;;  %358 = vst.msk [vmem:[#allocation3 + $0x40] sm:$0xff] %vm349_vm3, %v270_v33 }
  0x80   :  { %352 = vst.msk [vmem:[#allocation3 + $0x10] sm:$0xff] %vm349_vm3, %v258_v37  ;;  %v4898_v37 = vld [vmem:[#allocation2 + $0x6a] sm:$0xff] }
  0x81   :  { %7239 = vst [vmem:[#allocation18_spill] sm:$0xff] %v4898_v37  ;;  %464 = vrot.lane.b32.xlu2 %v4898_v37, %s4416_s25  ;;  %v4965_v37 = vld [vmem:[#allocation2 + $0x138] sm:$0xff] }
  0x82   :  { %472 = vrot.lane.b32.xlu0 %v4849_v38, %s4416_s25  ;;  %177 = vst.msk [vmem:[#allocation3 + $0xa0] sm:$0xff] %vm14_vm0, %v4911_v27  ;;  %v4938_v38 = vld [vmem:[#allocation2 + $0x110] sm:$0xff] }
  0x83   :  { %180 = vst.msk [vmem:[#allocation3 + $0xb8] sm:$0xff] %vm14_vm0, %v4938_v38 }
  0x84   :  { %v256_v59 = vpop.permute.xlu0 %255  ;;  %183 = vst.msk [vmem:[#allocation3 + $0xd0] sm:$0xff] %vm14_vm0, %v4965_v37 }
  0x85   :  { %474 = vrot.lane.b32.xlu1 %v4865_v45, %s4416_s25  ;;  %351 = vst.msk [vmem:[#allocation3 + $0x8] sm:$0xff] %vm349_vm3, %v256_v59  ;;  %v4909_v45 = vld [vmem:[#allocation2 + $0xd8] sm:$0xff] }
  0x86   :  { %v276_v61 = vpop.permute.xlu2 %275  ;;  %175 = vst.msk [vmem:[#allocation3 + $0x90] sm:$0xff] %vm14_vm0, %v4909_v45 }
  0x87   :  { %v260_v62 = vpop.permute.xlu1 %259  ;;  %361 = vst.msk [vmem:[#allocation3 + $0x58] sm:$0xff] %vm349_vm3, %v276_v61 }
  0x88   :  { %353 = vst.msk [vmem:[#allocation3 + $0x18] sm:$0xff] %vm349_vm3, %v260_v62  ;;  %v4903_v62 = vld [vmem:[#allocation2 + $0xe2] sm:$0xff] }
  0x89   :  { %7240 = vst [vmem:[#allocation19_spill] sm:$0xff] %v4903_v62 }
  0x8a   :  { %478 = vrot.lane.b32.xlu0 %v4876_v4, %s4416_s25 }
  0x8c   :  { %v266_v33 = vpop.permute.xlu0 %265 }
  0x8d   :  { %480 = vrot.lane.b32.xlu1 %v4892_v31, %s4416_s25  ;;  %356 = vst.msk [vmem:[#allocation3 + $0x30] sm:$0xff] %vm349_vm3, %v266_v33  ;;  %v4915_v31 = vld [vmem:[#allocation2 + $0xe0] sm:$0xff]  ;;  %v4919_v33 = vld [vmem:[#allocation2 + $0xf2] sm:$0xff] }
  0x8e   :  { %v282_v59 = vpop.permute.xlu2 %281  ;;  %7241 = vst [vmem:[#allocation20_spill] sm:$0xff] %v4919_v33 }
  0x8f   :  { %v268_v61 = vpop.permute.xlu1 %267  ;;  %364 = vst.msk [vmem:[#allocation3 + $0x70] sm:$0xff] %vm349_vm3, %v282_v59 }
  0x90   :  { %357 = vst.msk [vmem:[#allocation3 + $0x38] sm:$0xff] %vm349_vm3, %v268_v61  ;;  %v4925_v61 = vld [vmem:[#allocation2 + $0x92] sm:$0xff] }
  0x91   :  { %176 = vst.msk [vmem:[#allocation3 + $0x98] sm:$0xff] %vm14_vm0, %v4915_v31  ;;  %470 = vrot.lane.b32.xlu2 %v4925_v61, %s4416_s25 }
  0x92   :  { %484 = vrot.lane.b32.xlu0 %v4903_v62, %s4416_s25  ;;  %7242 = vst [vmem:[#allocation21_spill] sm:$0xff] %v4925_v61  ;;  %v4936_v62 = vld [vmem:[#allocation2 + $0xf8] sm:$0xff] }
  0x93   :  { %178 = vst.msk [vmem:[#allocation3 + $0xa8] sm:$0xff] %vm14_vm0, %v4936_v62 }
  0x94   :  { %v272_v59 = vpop.permute.xlu0 %271 }
  0x95   :  { %486 = vrot.lane.b32.xlu1 %v4919_v33, %s4416_s25  ;;  %359 = vst.msk [vmem:[#allocation3 + $0x48] sm:$0xff] %vm349_vm3, %v272_v59  ;;  %v4946_v59 = vld [vmem:[#allocation2 + $0x112] sm:$0xff] }
  0x96   :  { %v288_v15 = vpop.permute.xlu2 %287  ;;  %7244 = vst [vmem:[#allocation23_spill] sm:$0xff] %v4946_v59 }
  0x97   :  { %v274_v4 = vpop.permute.xlu1 %273  ;;  %367 = vst.msk [vmem:[#allocation3 + $0x88] sm:$0xff] %vm349_vm3, %v288_v15 }
  0x98   :  { %360 = vst.msk [vmem:[#allocation3 + $0x50] sm:$0xff] %vm349_vm3, %v274_v4  ;;  %v4952_v4 = vld [vmem:[#allocation2 + $0xb2] sm:$0xff] }
  0x99   :  { %7245 = vst [vmem:[#allocation24_spill] sm:$0xff] %v4952_v4  ;;  %476 = vrot.lane.b32.xlu2 %v4952_v4, %s4416_s25 }
  0x9a   :  { %490 = vrot.lane.b32.xlu0 %v4930_v7, %s4416_s25  ;;  %v4963_v7 = vld [vmem:[#allocation2 + $0x120] sm:$0xff] }
  0x9b   :  { %181 = vst.msk [vmem:[#allocation3 + $0xc0] sm:$0xff] %vm14_vm0, %v4963_v7 }
  0x9c   :  { %v278_v15 = vpop.permute.xlu0 %277 }
  0x9d   :  { %492 = vrot.lane.b32.xlu1 %v4946_v59, %s4416_s25  ;;  %362 = vst.msk [vmem:[#allocation3 + $0x60] sm:$0xff] %vm349_vm3, %v278_v15  ;;  %v4971_v15 = vld [vmem:[#allocation2 + $0x13a] sm:$0xff] }
  0x9e   :  { %v294_v33 = vpop.permute.xlu2 %293  ;;  %7247 = vst [vmem:[#allocation26_spill] sm:$0xff] %v4971_v15  ;;  %v4979_v59 = vld [vmem:[#allocation2 + $0xda] sm:$0xff] }
  0x9f   :  { %v280_v61 = vpop.permute.xlu1 %279  ;;  %370 = vst.msk [vmem:[#allocation3 + $0xa0] sm:$0xff] %vm349_vm3, %v294_v33  ;;  %v4975_v33 = vld [vmem:[#allocation2 + $0x128] sm:$0xff] }
  0xa0   :  { %363 = vst.msk [vmem:[#allocation3 + $0x68] sm:$0xff] %vm349_vm3, %v280_v61 }
  0xa1   :  { %182 = vst.msk [vmem:[#allocation3 + $0xc8] sm:$0xff] %vm14_vm0, %v4975_v33  ;;  %482 = vrot.lane.b32.xlu2 %v4979_v59, %s4416_s25 }
  0xa2   :  { %496 = vrot.lane.b32.xlu0 %v4957_v20, %s4416_s25  ;;  %7248 = vst [vmem:[#allocation27_spill] sm:$0xff] %v4979_v59 }
  0xa4   :  { %v284_v61 = vpop.permute.xlu0 %283 }
  0xa5   :  { %498 = vrot.lane.b32.xlu1 %v4971_v15, %s4416_s25  ;;  %365 = vst.msk [vmem:[#allocation3 + $0x78] sm:$0xff] %vm349_vm3, %v284_v61  ;;  %v4998_v61 = vld [vmem:[#allocation2 + $0x15a] sm:$0xff] }
  0xa6   :  { %v300_v4 = vpop.permute.xlu2 %299  ;;  %7250 = vst [vmem:[#allocation29_spill] sm:$0xff] %v4998_v61  ;;  %v5006_v15 = vld [vmem:[#allocation2 + $0xfa] sm:$0xff] }
  0xa7   :  { %v286_v20 = vpop.permute.xlu1 %285  ;;  %373 = vst.msk [vmem:[#allocation3 + $0xb8] sm:$0xff] %vm349_vm3, %v300_v4  ;;  %v5002_v4 = vld [vmem:[#allocation2 + $0x150] sm:$0xff] }
  0xa8   :  { %366 = vst.msk [vmem:[#allocation3 + $0x80] sm:$0xff] %vm349_vm3, %v286_v20 }
  0xa9   :  { %185 = vst.msk [vmem:[#allocation3 + $0xe0] sm:$0xff] %vm14_vm0, %v5002_v4  ;;  %488 = vrot.lane.b32.xlu2 %v5006_v15, %s4416_s25 }
  0xaa   :  { %502 = vrot.lane.b32.xlu0 %v4984_v58, %s4416_s25  ;;  %7251 = vst [vmem:[#allocation30_spill] sm:$0xff] %v5006_v15  ;;  %v5011_v58 = vld [vmem:[#allocation2 + $0x172] sm:$0xff]  ;;  %v5036_v15 = vld [vmem:[#allocation2 + $0x142] sm:$0xff] }
  0xab   :  { %7252 = vst [vmem:[#allocation31_spill] sm:$0xff] %v5011_v58 }
  0xac   :  { %v290_v20 = vpop.permute.xlu0 %289 }
  0xad   :  { %504 = vrot.lane.b32.xlu1 %v4998_v61, %s4416_s25  ;;  %368 = vst.msk [vmem:[#allocation3 + $0x90] sm:$0xff] %vm349_vm3, %v290_v20  ;;  %v5026_v61 = vld [vmem:[#allocation2 + $0x122] sm:$0xff] }
  0xaf   :  { %v292_v59 = vpop.permute.xlu1 %291 }
  0xb0   :  { %369 = vst.msk [vmem:[#allocation3 + $0x98] sm:$0xff] %vm349_vm3, %v292_v59 }
  0xb1   :  { %494 = vrot.lane.b32.xlu2 %v5026_v61, %s4416_s25 }
  0xb2   :  { %508 = vrot.lane.b32.xlu0 %v5011_v58, %s4416_s25 }
  0xb4   :  { %v296_v20 = vpop.permute.xlu0 %295 }
  0xb5   :  { %639 = vrot.lane.b32.xlu1 %v4766_v1, %s4417_s26  ;;  %371 = vst.msk [vmem:[#allocation3 + $0xa8] sm:$0xff] %vm349_vm3, %v296_v20  ;;  %v306_v20 = vpop.permute.xlu2 %305 }
  0xb6   :  { %376 = vst.msk [vmem:[#allocation3 + $0xd0] sm:$0xff] %vm349_vm3, %v306_v20 }
  0xb7   :  { %v298_v59 = vpop.permute.xlu1 %297 }
  0xb8   :  { %372 = vst.msk [vmem:[#allocation3 + $0xb0] sm:$0xff] %vm349_vm3, %v298_v59  ;;  %v5047_v59 = vld [vmem:[#allocation2 + $0x16a] sm:$0xff] }
  0xb9   :  { %500 = vrot.lane.b32.xlu2 %v5036_v15, %s4416_s25 }
  0xba   :  { %643 = vrot.lane.b32.xlu0 %v4763_v63, %s4417_s26 }
  0xbc   :  { %v302_v58 = vpop.permute.xlu0 %301 }
  0xbd   :  { %645 = vrot.lane.b32.xlu1 %v4785_v5, %s4417_s26  ;;  %374 = vst.msk [vmem:[#allocation3 + $0xc0] sm:$0xff] %vm349_vm3, %v302_v58  ;;  %v312_v5 = vpop.permute.xlu2 %311 }
  0xbe   :  { %379 = vst.msk [vmem:[#allocation3 + $0xe8] sm:$0xff] %vm349_vm3, %v312_v5 }
  0xbf   :  { %v304_v1 = vpop.permute.xlu1 %303 }
  0xc0   :  { %375 = vst.msk [vmem:[#allocation3 + $0xc8] sm:$0xff] %vm349_vm3, %v304_v1 }
  0xc1   :  { %506 = vrot.lane.b32.xlu2 %v5047_v59, %s4416_s25 }
  0xc2   :  { %649 = vrot.lane.b32.xlu0 %v4812_v14, %s4417_s26 }
  0xc4   :  { %v308_v63 = vpop.permute.xlu0 %307 }
  0xc5   :  { %651 = vrot.lane.b32.xlu1 %v4808_v13, %s4417_s26  ;;  %377 = vst.msk [vmem:[#allocation3 + $0xd8] sm:$0xff] %vm349_vm3, %v308_v63  ;;  %v447_v1 = vpop.permute.xlu2 %446 }
  0xc6   :  { %543 = vst.msk [vmem:[#allocation3] sm:$0xff] %vm542_vm4, %v447_v1 }
  0xc7   :  { %v310_v58 = vpop.permute.xlu1 %309 }
  0xc8   :  { %378 = vst.msk [vmem:[#allocation3 + $0xe0] sm:$0xff] %vm349_vm3, %v310_v58 }
  0xc9   :  { %641 = vrot.lane.b32.xlu2 %v4787_v6, %s4417_s26 }
  0xca   :  { %655 = vrot.lane.b32.xlu0 %v4834_v26, %s4417_s26 }
  0xcc   :  { %v314_v14 = vpop.permute.xlu0 %313 }
  0xcd   :  { %657 = vrot.lane.b32.xlu1 %v4830_v25, %s4417_s26  ;;  %380 = vst.msk [vmem:[#allocation3 + $0xf0] sm:$0xff] %vm349_vm3, %v314_v14  ;;  %v453_v6 = vpop.permute.xlu2 %452 }
  0xce   :  { %546 = vst.msk [vmem:[#allocation3 + $0x18] sm:$0xff] %vm542_vm4, %v453_v6 }
  0xcf   :  { %v316_v13 = vpop.permute.xlu1 %315 }
  0xd0   :  { %381 = vst.msk [vmem:[#allocation3 + $0xf8] sm:$0xff] %vm349_vm3, %v316_v13 }
  0xd1   :  { %647 = vrot.lane.b32.xlu2 %v4806_v12, %s4417_s26  ;;  %v90_v12 = vld [vmem:[%s7192_s0 + $0xf0] sm:$0xff] }
  0xd2   :  { %661 = vrot.lane.b32.xlu0 %v4861_v44, %s4417_s26  ;;  %123 = vst.msk [vmem:[#allocation2 + $0x181] sm:$0xff] %vm14_vm0, %v90_v12 }
  0xd4   :  { %v449_v20 = vpop.permute.xlu0 %448 }
  0xd5   :  { %663 = vrot.lane.b32.xlu1 %v4857_v43, %s4417_s26  ;;  %544 = vst.msk [vmem:[#allocation3 + $0x8] sm:$0xff] %vm542_vm4, %v449_v20  ;;  %v459_v58 = vpop.permute.xlu2 %458 }
  0xd6   :  { %549 = vst.msk [vmem:[#allocation3 + $0x30] sm:$0xff] %vm542_vm4, %v459_v58 }
  0xd7   :  { %v451_v25 = vpop.permute.xlu1 %450 }
  0xd8   :  { %545 = vst.msk [vmem:[#allocation3 + $0x10] sm:$0xff] %vm542_vm4, %v451_v25  ;;  %v91_v25 = vld [vmem:[%s7192_s0 + $0xf8] sm:$0xff] }
  0xd9   :  { %653 = vrot.lane.b32.xlu2 %v4828_v21, %s4417_s26  ;;  %124 = vst.msk [vmem:[#allocation2 + $0x189] sm:$0xff] %vm14_vm0, %v91_v25  ;;  %v5128_v12 = vld [vmem:[#allocation2 + $0x180] sm:$0xff] }
  0xda   :  { %667 = vrot.lane.b32.xlu0 %v4888_v19, %s4417_s26 }
  0xdc   :  { %v455_v63 = vpop.permute.xlu0 %454 }
  0xdd   :  { %669 = vrot.lane.b32.xlu1 %v4884_v16, %s4417_s26  ;;  %547 = vst.msk [vmem:[#allocation3 + $0x20] sm:$0xff] %vm542_vm4, %v455_v63  ;;  %v465_v14 = vpop.permute.xlu2 %464 }
  0xde   :  { %552 = vst.msk [vmem:[#allocation3 + $0x48] sm:$0xff] %vm542_vm4, %v465_v14 }
  0xdf   :  { %v457_v43 = vpop.permute.xlu1 %456 }
  0xe0   :  { %548 = vst.msk [vmem:[#allocation3 + $0x28] sm:$0xff] %vm542_vm4, %v457_v43 }
  0xe1   :  { %659 = vrot.lane.b32.xlu2 %v4855_v39, %s4417_s26 }
  0xe2   :  { %673 = vrot.lane.b32.xlu0 %v4915_v31, %s4417_s26 }
  0xe4   :  { %v461_v16 = vpop.permute.xlu0 %460 }
  0xe5   :  { %675 = vrot.lane.b32.xlu1 %v4911_v27, %s4417_s26  ;;  %550 = vst.msk [vmem:[#allocation3 + $0x38] sm:$0xff] %vm542_vm4, %v461_v16 }
  0xe7   :  { %v463_v5 = vpop.permute.xlu1 %462 }
  0xe8   :  { %551 = vst.msk [vmem:[#allocation3 + $0x40] sm:$0xff] %vm542_vm4, %v463_v5 }
  0xe9   :  { %665 = vrot.lane.b32.xlu2 %v4882_v9, %s4417_s26 }
  0xea   :  { %679 = vrot.lane.b32.xlu0 %v4940_v2, %s4417_s26 }
  0xeb   :  { %v471_v1 = vpop.permute.xlu2 %470 }
  0xec   :  { %v467_v13 = vpop.permute.xlu0 %466  ;;  %555 = vst.msk [vmem:[#allocation3 + $0x60] sm:$0xff] %vm542_vm4, %v471_v1 }
  0xed   :  { %681 = vrot.lane.b32.xlu1 %v4938_v38, %s4417_s26  ;;  %553 = vst.msk [vmem:[#allocation3 + $0x50] sm:$0xff] %vm542_vm4, %v467_v13 }
  0xef   :  { %v469_v27 = vpop.permute.xlu1 %468 }
  0xf0   :  { %554 = vst.msk [vmem:[#allocation3 + $0x58] sm:$0xff] %vm542_vm4, %v469_v27 }
  0xf1   :  { %671 = vrot.lane.b32.xlu2 %v4909_v45, %s4417_s26 }
  0xf2   :  { %685 = vrot.lane.b32.xlu0 %v4975_v33, %s4417_s26 }
  0xf3   :  { %v477_v6 = vpop.permute.xlu2 %476 }
  0xf4   :  { %v473_v20 = vpop.permute.xlu0 %472  ;;  %558 = vst.msk [vmem:[#allocation3 + $0x78] sm:$0xff] %vm542_vm4, %v477_v6 }
  0xf5   :  { %687 = vrot.lane.b32.xlu1 %v4965_v37, %s4417_s26  ;;  %556 = vst.msk [vmem:[#allocation3 + $0x68] sm:$0xff] %vm542_vm4, %v473_v20  ;;  %v5158_v20 = vld [vmem:[#allocation2 + $0x188] sm:$0xff] }
  0xf7   :  { %v475_v38 = vpop.permute.xlu1 %474 }
  0xf8   :  { %557 = vst.msk [vmem:[#allocation3 + $0x70] sm:$0xff] %vm542_vm4, %v475_v38 }
  0xf9   :  { %677 = vrot.lane.b32.xlu2 %v4936_v62, %s4417_s26 }
  0xfa   :  { %691 = vrot.lane.b32.xlu0 %v5002_v4, %s4417_s26 }
  0xfb   :  { %v483_v43 = vpop.permute.xlu2 %482 }
  0xfc   :  { %v479_v37 = vpop.permute.xlu0 %478  ;;  %561 = vst.msk [vmem:[#allocation3 + $0x90] sm:$0xff] %vm542_vm4, %v483_v43 }
  0xfd   :  { %693 = vrot.lane.b32.xlu1 %v4992_v60, %s4417_s26  ;;  %559 = vst.msk [vmem:[#allocation3 + $0x80] sm:$0xff] %vm542_vm4, %v479_v37 }
  0xff   :  { %v481_v63 = vpop.permute.xlu1 %480 }
 0x100   :  { %560 = vst.msk [vmem:[#allocation3 + $0x88] sm:$0xff] %vm542_vm4, %v481_v63  ;;  %v5241_v63 = vld [vmem:[#allocation2 + $0x189] sm:$0xff] }
 0x101   :  { %683 = vrot.lane.b32.xlu2 %v4963_v7, %s4417_s26 }
 0x102   :  { %697 = vrot.lane.b32.xlu0 %v5022_v3, %s4417_s26 }
 0x103   :  { %v489_v5 = vpop.permute.xlu2 %488 }
 0x104   :  { %v485_v58 = vpop.permute.xlu0 %484  ;;  %564 = vst.msk [vmem:[#allocation3 + $0xa8] sm:$0xff] %vm542_vm4, %v489_v5 }
 0x105   :  { %699 = vrot.lane.b32.xlu1 %v5128_v12, %s4417_s26  ;;  %562 = vst.msk [vmem:[#allocation3 + $0x98] sm:$0xff] %vm542_vm4, %v485_v58 }
 0x107   :  { %v487_v16 = vpop.permute.xlu1 %486 }
 0x108   :  { %563 = vst.msk [vmem:[#allocation3 + $0xa0] sm:$0xff] %vm542_vm4, %v487_v16  ;;  %v7253_v16 = vld [vmem:[#allocation7_spill] sm:$0xff] }
 0x109   :  { %689 = vrot.lane.b32.xlu2 %v4990_v11, %s4417_s26 }
 0x10a   :  { %832 = vrot.lane.b32.xlu0 %v4488_v10, %s4418_s6 }
 0x10b   :  { %v495_v27 = vpop.permute.xlu2 %494 }
 0x10c   :  { %v491_v14 = vpop.permute.xlu0 %490  ;;  %567 = vst.msk [vmem:[#allocation3 + $0xc0] sm:$0xff] %vm542_vm4, %v495_v27  ;;  %v7256_v27 = vld [vmem:[#allocation9_spill] sm:$0xff] }
 0x10d   :  { %834 = vrot.lane.b32.xlu1 %v4514_v17, %s4418_s6  ;;  %565 = vst.msk [vmem:[#allocation3 + $0xb0] sm:$0xff] %vm542_vm4, %v491_v14  ;;  %v7254_v14 = vld [vmem:[#allocation4_spill] sm:$0xff] }
 0x10f   :  { %v493_v13 = vpop.permute.xlu1 %492 }
 0x110   :  { %566 = vst.msk [vmem:[#allocation3 + $0xb8] sm:$0xff] %vm542_vm4, %v493_v13  ;;  %v7255_v13 = vld [vmem:[#allocation15_spill] sm:$0xff] }
 0x111   :  { %695 = vrot.lane.b32.xlu2 %v5016_v56, %s4417_s26 }
 0x112   :  { %838 = vrot.lane.b32.xlu0 %v4538_v23, %s4418_s6 }
 0x113   :  { %v501_v1 = vpop.permute.xlu2 %500 }
 0x114   :  { %v497_v10 = vpop.permute.xlu0 %496  ;;  %570 = vst.msk [vmem:[#allocation3 + $0xd8] sm:$0xff] %vm542_vm4, %v501_v1 }
 0x115   :  { %840 = vrot.lane.b32.xlu1 %v4536_v22, %s4418_s6  ;;  %568 = vst.msk [vmem:[#allocation3 + $0xc8] sm:$0xff] %vm542_vm4, %v497_v10 }
 0x117   :  { %v499_v17 = vpop.permute.xlu1 %498 }
 0x118   :  { %569 = vst.msk [vmem:[#allocation3 + $0xd0] sm:$0xff] %vm542_vm4, %v499_v17  ;;  %v7257_v17 = vld [vmem:[#allocation5_spill] sm:$0xff] }
 0x119   :  { %701 = vrot.lane.b32.xlu2 %v5158_v20, %s4417_s26 }
 0x11a   :  { %844 = vrot.lane.b32.xlu0 %v4562_v29, %s4418_s6 }
 0x11b   :  { %v507_v38 = vpop.permute.xlu2 %506 }
 0x11c   :  { %v503_v23 = vpop.permute.xlu0 %502  ;;  %573 = vst.msk [vmem:[#allocation3 + $0xf0] sm:$0xff] %vm542_vm4, %v507_v38  ;;  %v7259_v38 = vld [vmem:[#allocation11_spill] sm:$0xff] }
 0x11d   :  { %846 = vrot.lane.b32.xlu1 %v4560_v28, %s4418_s6  ;;  %571 = vst.msk [vmem:[#allocation3 + $0xe0] sm:$0xff] %vm542_vm4, %v503_v23  ;;  %v7258_v23 = vld [vmem:[#allocation18_spill] sm:$0xff] }
 0x11f   :  { %v505_v22 = vpop.permute.xlu1 %504 }
 0x120   :  { %572 = vst.msk [vmem:[#allocation3 + $0xe8] sm:$0xff] %vm542_vm4, %v505_v22 }
 0x121   :  { %836 = vrot.lane.b32.xlu2 %v4517_v18, %s4418_s6 }
 0x122   :  { %850 = vrot.lane.b32.xlu0 %v4586_v35, %s4418_s6 }
 0x123   :  { %v642_v25 = vpop.permute.xlu2 %641 }
 0x124   :  { %v509_v29 = vpop.permute.xlu0 %508  ;;  %737 = vst.msk [vmem:[#allocation3 + $0x8] sm:$0xff] %vm735_vm5, %v642_v25 }
 0x125   :  { %852 = vrot.lane.b32.xlu1 %v4584_v34, %s4418_s6  ;;  %574 = vst.msk [vmem:[#allocation3 + $0xf8] sm:$0xff] %vm542_vm4, %v509_v29 }
 0x127   :  { %v640_v28 = vpop.permute.xlu1 %639 }
 0x128   :  { %736 = vst.msk [vmem:[#allocation3] sm:$0xff] %vm735_vm5, %v640_v28  ;;  %v7260_v28 = vld [vmem:[#allocation6_spill] sm:$0xff] }
 0x129   :  { %842 = vrot.lane.b32.xlu2 %v4542_v24, %s4418_s6 }
 0x12a   :  { %856 = vrot.lane.b32.xlu0 %v4610_v41, %s4418_s6 }
 0x12b   :  { %v648_v18 = vpop.permute.xlu2 %647 }
 0x12c   :  { %v644_v35 = vpop.permute.xlu0 %643  ;;  %740 = vst.msk [vmem:[#allocation3 + $0x20] sm:$0xff] %vm735_vm5, %v648_v18  ;;  %v7262_v18 = vld [vmem:[#allocation13_spill] sm:$0xff] }
 0x12d   :  { %858 = vrot.lane.b32.xlu1 %v4608_v40, %s4418_s6  ;;  %738 = vst.msk [vmem:[#allocation3 + $0x10] sm:$0xff] %vm735_vm5, %v644_v35  ;;  %v7261_v35 = vld [vmem:[#allocation21_spill] sm:$0xff] }
 0x12f   :  { %v646_v34 = vpop.permute.xlu1 %645 }
 0x130   :  { %739 = vst.msk [vmem:[#allocation3 + $0x18] sm:$0xff] %vm735_vm5, %v646_v34 }
 0x131   :  { %848 = vrot.lane.b32.xlu2 %v4566_v30, %s4418_s6 }
 0x132   :  { %862 = vrot.lane.b32.xlu0 %v4634_v47, %s4418_s6 }
 0x133   :  { %v654_v24 = vpop.permute.xlu2 %653 }
 0x134   :  { %v650_v41 = vpop.permute.xlu0 %649  ;;  %743 = vst.msk [vmem:[#allocation3 + $0x38] sm:$0xff] %vm735_vm5, %v654_v24 }
 0x135   :  { %864 = vrot.lane.b32.xlu1 %v4632_v46, %s4418_s6  ;;  %741 = vst.msk [vmem:[#allocation3 + $0x28] sm:$0xff] %vm735_vm5, %v650_v41 }
 0x137   :  { %v652_v40 = vpop.permute.xlu1 %651 }
 0x138   :  { %742 = vst.msk [vmem:[#allocation3 + $0x30] sm:$0xff] %vm735_vm5, %v652_v40  ;;  %v7263_v40 = vld [vmem:[#allocation8_spill] sm:$0xff] }
 0x139   :  { %854 = vrot.lane.b32.xlu2 %v4590_v36, %s4418_s6 }
 0x13a   :  { %868 = vrot.lane.b32.xlu0 %v4656_v50, %s4418_s6 }
 0x13b   :  { %v660_v30 = vpop.permute.xlu2 %659 }
 0x13c   :  { %v656_v47 = vpop.permute.xlu0 %655  ;;  %746 = vst.msk [vmem:[#allocation3 + $0x50] sm:$0xff] %vm735_vm5, %v660_v30  ;;  %v7265_v30 = vld [vmem:[#allocation16_spill] sm:$0xff] }
 0x13d   :  { %870 = vrot.lane.b32.xlu1 %v4650_v49, %s4418_s6  ;;  %744 = vst.msk [vmem:[#allocation3 + $0x40] sm:$0xff] %vm735_vm5, %v656_v47  ;;  %v7264_v47 = vld [vmem:[#allocation24_spill] sm:$0xff] }
 0x13f   :  { %v658_v46 = vpop.permute.xlu1 %657 }
 0x140   :  { %745 = vst.msk [vmem:[#allocation3 + $0x48] sm:$0xff] %vm735_vm5, %v658_v46 }
 0x141   :  { %860 = vrot.lane.b32.xlu2 %v4614_v42, %s4418_s6 }
 0x142   :  { %874 = vrot.lane.b32.xlu0 %v4684_v53, %s4418_s6 }
 0x143   :  { %v666_v36 = vpop.permute.xlu2 %665 }
 0x144   :  { %v662_v50 = vpop.permute.xlu0 %661  ;;  %749 = vst.msk [vmem:[#allocation3 + $0x68] sm:$0xff] %vm735_vm5, %v666_v36 }
 0x145   :  { %876 = vrot.lane.b32.xlu1 %v4678_v52, %s4418_s6  ;;  %747 = vst.msk [vmem:[#allocation3 + $0x58] sm:$0xff] %vm735_vm5, %v662_v50 }
 0x147   :  { %v664_v49 = vpop.permute.xlu1 %663 }
 0x148   :  { %748 = vst.msk [vmem:[#allocation3 + $0x60] sm:$0xff] %vm735_vm5, %v664_v49  ;;  %v7266_v49 = vld [vmem:[#allocation10_spill] sm:$0xff] }
 0x149   :  { %866 = vrot.lane.b32.xlu2 %v4638_v48, %s4418_s6 }
 0x14a   :  { %880 = vrot.lane.b32.xlu0 %v4778_v0, %s4418_s6  ;;  %v4282_v0 = vld [vmem:[%s7192_s0 + $0x100] sm:$0xff] }
 0x14b   :  { %v672_v42 = vpop.permute.xlu2 %671  ;;  %1767 = vst.msk [vmem:[#allocation2 + $0x19] sm:$0xff] %vm14_vm0, %v4282_v0 }
 0x14c   :  { %v668_v53 = vpop.permute.xlu0 %667  ;;  %752 = vst.msk [vmem:[#allocation3 + $0x80] sm:$0xff] %vm735_vm5, %v672_v42  ;;  %v7268_v42 = vld [vmem:[#allocation19_spill] sm:$0xff] }
 0x14d   :  { %882 = vrot.lane.b32.xlu1 %v4706_v55, %s4418_s6  ;;  %750 = vst.msk [vmem:[#allocation3 + $0x70] sm:$0xff] %vm735_vm5, %v668_v53  ;;  %v4283_v55 = vld [vmem:[%s7192_s0 + $0x108] sm:$0xff] }
 0x14e   :  { %1768 = vst.msk [vmem:[#allocation2 + $0x21] sm:$0xff] %vm14_vm0, %v4283_v55  ;;  %v7267_v53 = vld [vmem:[#allocation27_spill] sm:$0xff]  ;;  %v7269_v55 = vld [vmem:[#allocation12_spill] sm:$0xff] }
 0x14f   :  { %v670_v52 = vpop.permute.xlu1 %669 }
 0x150   :  { %751 = vst.msk [vmem:[#allocation3 + $0x78] sm:$0xff] %vm735_vm5, %v670_v52 }
 0x151   :  { %872 = vrot.lane.b32.xlu2 %v4662_v51, %s4418_s6 }
 0x152   :  { %886 = vrot.lane.b32.xlu0 %v4797_v8, %s4418_s6  ;;  %v5234_v8 = vld [vmem:[#allocation2 + $0x181] sm:$0xff] }
 0x153   :  { %v678_v37 = vpop.permute.xlu2 %677 }
 0x154   :  { %v674_v6 = vpop.permute.xlu0 %673  ;;  %755 = vst.msk [vmem:[#allocation3 + $0x98] sm:$0xff] %vm735_vm5, %v678_v37 }
 0x155   :  { %888 = vrot.lane.b32.xlu1 %v4730_v57, %s4418_s6  ;;  %753 = vst.msk [vmem:[#allocation3 + $0x88] sm:$0xff] %vm735_vm5, %v674_v6 }
 0x157   :  { %v676_v48 = vpop.permute.xlu1 %675 }
 0x158   :  { %754 = vst.msk [vmem:[#allocation3 + $0x90] sm:$0xff] %vm735_vm5, %v676_v48  ;;  %v7270_v48 = vld [vmem:[#allocation30_spill] sm:$0xff] }
 0x159   :  { %878 = vrot.lane.b32.xlu2 %v4690_v54, %s4418_s6 }
 0x15a   :  { %892 = vrot.lane.b32.xlu0 %v5234_v8, %s4418_s6 }
 0x15b   :  { %v684_v51 = vpop.permute.xlu2 %683 }
 0x15c   :  { %v680_v57 = vpop.permute.xlu0 %679  ;;  %758 = vst.msk [vmem:[#allocation3 + $0xb0] sm:$0xff] %vm735_vm5, %v684_v51  ;;  %v7272_v51 = vld [vmem:[#allocation14_spill] sm:$0xff] }
 0x15d   :  { %894 = vrot.lane.b32.xlu1 %v5241_v63, %s4418_s6  ;;  %756 = vst.msk [vmem:[#allocation3 + $0xa0] sm:$0xff] %vm735_vm5, %v680_v57  ;;  %v7271_v57 = vld [vmem:[#allocation22_spill] sm:$0xff] }
 0x15f   :  { %v682_v43 = vpop.permute.xlu1 %681 }
 0x160   :  { %757 = vst.msk [vmem:[#allocation3 + $0xa8] sm:$0xff] %vm735_vm5, %v682_v43 }
 0x161   :  { %884 = vrot.lane.b32.xlu2 %v7254_v14, %s4418_s6 }
 0x162   :  { %1027 = vrot.lane.b32.xlu0 %v4844_v32, %s4419_s11 }
 0x163   :  { %v690_v54 = vpop.permute.xlu2 %689 }
 0x164   :  { %v686_v58 = vpop.permute.xlu0 %685  ;;  %761 = vst.msk [vmem:[#allocation3 + $0xc8] sm:$0xff] %vm735_vm5, %v690_v54  ;;  %v7274_v54 = vld [vmem:[#allocation17_spill] sm:$0xff] }
 0x165   :  { %1029 = vrot.lane.b32.xlu1 %v7253_v16, %s4419_s11  ;;  %759 = vst.msk [vmem:[#allocation3 + $0xb8] sm:$0xff] %vm735_vm5, %v686_v58 }
 0x167   :  { %v688_v5 = vpop.permute.xlu1 %687 }
 0x168   :  { %760 = vst.msk [vmem:[#allocation3 + $0xc0] sm:$0xff] %vm735_vm5, %v688_v5  ;;  %v7273_v5 = vld [vmem:[#allocation25_spill] sm:$0xff] }
 0x169   :  { %890 = vrot.lane.b32.xlu2 %v7257_v17, %s4418_s6 }
 0x16a   :  { %1033 = vrot.lane.b32.xlu0 %v7255_v13, %s4419_s11 }
 0x16b   :  { %v696_v1 = vpop.permute.xlu2 %695 }
 0x16c   :  { %v692_v32 = vpop.permute.xlu0 %691  ;;  %764 = vst.msk [vmem:[#allocation3 + $0xe0] sm:$0xff] %vm735_vm5, %v696_v1  ;;  %v7277_v1 = vld [vmem:[#allocation31_spill] sm:$0xff] }
 0x16d   :  { %1035 = vrot.lane.b32.xlu1 %v7256_v27, %s4419_s11  ;;  %762 = vst.msk [vmem:[#allocation3 + $0xd0] sm:$0xff] %vm735_vm5, %v692_v32  ;;  %v7275_v32 = vld [vmem:[#allocation28_spill] sm:$0xff] }
 0x16f   :  { %v694_v10 = vpop.permute.xlu1 %693 }
 0x170   :  { %763 = vst.msk [vmem:[#allocation3 + $0xd8] sm:$0xff] %vm735_vm5, %v694_v10  ;;  %v7276_v10 = vld [vmem:[#allocation20_spill] sm:$0xff] }
 0x171   :  { %1025 = vrot.lane.b32.xlu2 %v7260_v28, %s4419_s11 }
 0x172   :  { %1039 = vrot.lane.b32.xlu0 %v7258_v23, %s4419_s11 }
 0x173   :  { %v702_v25 = vpop.permute.xlu2 %701 }
 0x174   :  { %v698_v22 = vpop.permute.xlu0 %697  ;;  %767 = vst.msk [vmem:[#allocation3 + $0xf8] sm:$0xff] %vm735_vm5, %v702_v25 }
 0x175   :  { %1041 = vrot.lane.b32.xlu1 %v7259_v38, %s4419_s11  ;;  %765 = vst.msk [vmem:[#allocation3 + $0xe8] sm:$0xff] %vm735_vm5, %v698_v22  ;;  %v5337_v22 = vld [vmem:[#allocation2 + $0x18a] sm:$0xff] }
 0x176   :  { %v7278_v38 = vld [vmem:[#allocation23_spill] sm:$0xff] }
 0x177   :  { %v700_v29 = vpop.permute.xlu1 %699 }
 0x178   :  { %766 = vst.msk [vmem:[#allocation3 + $0xf0] sm:$0xff] %vm735_vm5, %v700_v29 }
 0x179   :  { %1031 = vrot.lane.b32.xlu2 %v7263_v40, %s4419_s11 }
 0x17a   :  { %1045 = vrot.lane.b32.xlu0 %v7261_v35, %s4419_s11  ;;  %v1157_v35 = vld [vmem:[#allocation2 + $0x48] sm:$0xff] }
 0x17b   :  { %v837_v24 = vpop.permute.xlu2 %836 }
 0x17c   :  { %v833_v34 = vpop.permute.xlu0 %832  ;;  %931 = vst.msk [vmem:[#allocation3 + $0x10] sm:$0xff] %vm928_vm6, %v837_v24 }
 0x17d   :  { %1047 = vrot.lane.b32.xlu1 %v7262_v18, %s4419_s11  ;;  %929 = vst.msk [vmem:[#allocation3] sm:$0xff] %vm928_vm6, %v833_v34  ;;  %v7279_v34 = vld [vmem:[#allocation26_spill] sm:$0xff] }
 0x17f   :  { %v835_v41 = vpop.permute.xlu1 %834 }
 0x180   :  { %930 = vst.msk [vmem:[#allocation3 + $0x8] sm:$0xff] %vm928_vm6, %v835_v41  ;;  %v1158_v41 = vld [vmem:[#allocation2 + $0x50] sm:$0xff] }
 0x181   :  { %1037 = vrot.lane.b32.xlu2 %v7266_v49, %s4419_s11 }
 0x182   :  { %1051 = vrot.lane.b32.xlu0 %v7264_v47, %s4419_s11  ;;  %v7280_v47 = vld [vmem:[#allocation29_spill] sm:$0xff] }
 0x183   :  { %v843_v36 = vpop.permute.xlu2 %842 }
 0x184   :  { %v839_v46 = vpop.permute.xlu0 %838  ;;  %934 = vst.msk [vmem:[#allocation3 + $0x28] sm:$0xff] %vm928_vm6, %v843_v36 }
 0x185   :  { %1053 = vrot.lane.b32.xlu1 %v7265_v30, %s4419_s11  ;;  %932 = vst.msk [vmem:[#allocation3 + $0x18] sm:$0xff] %vm928_vm6, %v839_v46 }
 0x187   :  { %v841_v50 = vpop.permute.xlu1 %840 }
 0x188   :  { %933 = vst.msk [vmem:[#allocation3 + $0x20] sm:$0xff] %vm928_vm6, %v841_v50  ;;  %v5360_v50 = vld [vmem:[#allocation2 + $0x182] sm:$0xff] }
 0x189   :  { %1043 = vrot.lane.b32.xlu2 %v7269_v55, %s4419_s11  ;;  %v1162_v55 = vld [vmem:[#allocation2 + $0x80] sm:$0xff] }
 0x18a   :  { %1057 = vrot.lane.b32.xlu0 %v7267_v53, %s4419_s11  ;;  %v1156_v53 = vld [vmem:[#allocation2 + $0x38] sm:$0xff] }
 0x18b   :  { %v849_v6 = vpop.permute.xlu2 %848 }
 0x18c   :  { %v845_v52 = vpop.permute.xlu0 %844  ;;  %937 = vst.msk [vmem:[#allocation3 + $0x40] sm:$0xff] %vm928_vm6, %v849_v6 }
 0x18d   :  { %1059 = vrot.lane.b32.xlu1 %v7268_v42, %s4419_s11  ;;  %935 = vst.msk [vmem:[#allocation3 + $0x30] sm:$0xff] %vm928_vm6, %v845_v52  ;;  %v1159_v42 = vld [vmem:[#allocation2 + $0x60] sm:$0xff] }
 0x18f   :  { %v847_v0 = vpop.permute.xlu1 %846 }
 0x190   :  { %936 = vst.msk [vmem:[#allocation3 + $0x38] sm:$0xff] %vm928_vm6, %v847_v0 }
 0x191   :  { %1049 = vrot.lane.b32.xlu2 %v7272_v51, %s4419_s11  ;;  %v1171_v51 = vld [vmem:[#allocation2 + $0xf0] sm:$0xff] }
 0x192   :  { %1063 = vrot.lane.b32.xlu0 %v7270_v48, %s4419_s11  ;;  %v1165_v48 = vld [vmem:[#allocation2 + $0xa8] sm:$0xff] }
 0x193   :  { %v855_v58 = vpop.permute.xlu2 %854 }
 0x194   :  { %v851_v37 = vpop.permute.xlu0 %850  ;;  %940 = vst.msk [vmem:[#allocation3 + $0x58] sm:$0xff] %vm928_vm6, %v855_v58 }
 0x195   :  { %1065 = vrot.lane.b32.xlu1 %v7271_v57, %s4419_s11  ;;  %938 = vst.msk [vmem:[#allocation3 + $0x48] sm:$0xff] %vm928_vm6, %v851_v37  ;;  %v1168_v57 = vld [vmem:[#allocation2 + $0xc8] sm:$0xff] }
 0x197   :  { %v853_v43 = vpop.permute.xlu1 %852 }
 0x198   :  { %939 = vst.msk [vmem:[#allocation3 + $0x50] sm:$0xff] %vm928_vm6, %v853_v43 }
 0x199   :  { %1055 = vrot.lane.b32.xlu2 %v7274_v54, %s4419_s11  ;;  %v1177_v54 = vld [vmem:[#allocation2 + $0x138] sm:$0xff] }
 0x19a   :  { %1069 = vrot.lane.b32.xlu0 %v5026_v61, %s4419_s11 }
 0x19b   :  { %v861_v13 = vpop.permute.xlu2 %860 }
 0x19c   :  { %v857_v16 = vpop.permute.xlu0 %856  ;;  %943 = vst.msk [vmem:[#allocation3 + $0x70] sm:$0xff] %vm928_vm6, %v861_v13  ;;  %v1348_v13 = vld [vmem:[#allocation2 + $0x31] sm:$0xff] }
 0x19d   :  { %1071 = vrot.lane.b32.xlu1 %v7273_v5, %s4419_s11  ;;  %941 = vst.msk [vmem:[#allocation3 + $0x60] sm:$0xff] %vm928_vm6, %v857_v16  ;;  %v1174_v16 = vld [vmem:[#allocation2 + $0x110] sm:$0xff] }
 0x19f   :  { %v859_v14 = vpop.permute.xlu1 %858 }
 0x1a0   :  { %942 = vst.msk [vmem:[#allocation3 + $0x68] sm:$0xff] %vm928_vm6, %v859_v14  ;;  %v1185_v14 = vld [vmem:[#allocation2 + $0x198] sm:$0xff] }
 0x1a1   :  { %1061 = vrot.lane.b32.xlu2 %v7276_v10, %s4419_s11  ;;  %v1351_v10 = vld [vmem:[#allocation2 + $0x51] sm:$0xff] }
 0x1a2   :  { %1075 = vrot.lane.b32.xlu0 %v5036_v15, %s4419_s11 }
 0x1a3   :  { %v867_v17 = vpop.permute.xlu2 %866 }
 0x1a4   :  { %v863_v61 = vpop.permute.xlu0 %862  ;;  %946 = vst.msk [vmem:[#allocation3 + $0x88] sm:$0xff] %vm928_vm6, %v867_v17 }
 0x1a5   :  { %1077 = vrot.lane.b32.xlu1 %v7275_v32, %s4419_s11  ;;  %944 = vst.msk [vmem:[#allocation3 + $0x78] sm:$0xff] %vm928_vm6, %v863_v61 }
 0x1a7   :  { %v865_v27 = vpop.permute.xlu1 %864 }
 0x1a8   :  { %945 = vst.msk [vmem:[#allocation3 + $0x80] sm:$0xff] %vm928_vm6, %v865_v27 }
 0x1a9   :  { %1067 = vrot.lane.b32.xlu2 %v7278_v38, %s4419_s11  ;;  %v1354_v38 = vld [vmem:[#allocation2 + $0x79] sm:$0xff] }
 0x1aa   :  { %1081 = vrot.lane.b32.xlu0 %v5047_v59, %s4419_s11  ;;  %v1155_v59 = vld [vmem:[#allocation2 + $0x30] sm:$0xff] }
 0x1ab   :  { %v873_v29 = vpop.permute.xlu2 %872 }
 0x1ac   :  { %v869_v15 = vpop.permute.xlu0 %868  ;;  %949 = vst.msk [vmem:[#allocation3 + $0xa0] sm:$0xff] %vm928_vm6, %v873_v29  ;;  %v1355_v29 = vld [vmem:[#allocation2 + $0x81] sm:$0xff] }
 0x1ad   :  { %1083 = vrot.lane.b32.xlu1 %v7277_v1, %s4419_s11  ;;  %947 = vst.msk [vmem:[#allocation3 + $0x90] sm:$0xff] %vm928_vm6, %v869_v15  ;;  %v1352_v15 = vld [vmem:[#allocation2 + $0x61] sm:$0xff] }
 0x1af   :  { %v871_v23 = vpop.permute.xlu1 %870 }
 0x1b0   :  { %948 = vst.msk [vmem:[#allocation3 + $0x98] sm:$0xff] %vm928_vm6, %v871_v23 }
 0x1b1   :  { %1073 = vrot.lane.b32.xlu2 %v7279_v34, %s4419_s11  ;;  %v1358_v34 = vld [vmem:[#allocation2 + $0xa9] sm:$0xff] }
 0x1b2   :  { %1087 = vrot.lane.b32.xlu0 %v5337_v22, %s4419_s11 }
 0x1b3   :  { %v879_v18 = vpop.permute.xlu2 %878 }
 0x1b4   :  { %v875_v28 = vpop.permute.xlu0 %874  ;;  %952 = vst.msk [vmem:[#allocation3 + $0xb8] sm:$0xff] %vm928_vm6, %v879_v18 }
 0x1b5   :  { %1219 = vrot.lane.b32.xlu1 %v1155_v59, %s4420_s12  ;;  %950 = vst.msk [vmem:[#allocation3 + $0xa8] sm:$0xff] %vm928_vm6, %v875_v28  ;;  %v1186_v28 = vld [vmem:[#allocation2 + $0x1a0] sm:$0xff] }
 0x1b7   :  { %v877_v25 = vpop.permute.xlu1 %876 }
 0x1b8   :  { %951 = vst.msk [vmem:[#allocation3 + $0xb0] sm:$0xff] %vm928_vm6, %v877_v25 }
 0x1b9   :  { %1079 = vrot.lane.b32.xlu2 %v7280_v47, %s4419_s11 }
 0x1ba   :  { %1223 = vrot.lane.b32.xlu0 %v1157_v35, %s4420_s12  ;;  %v1357_v35 = vld [vmem:[#allocation2 + $0x99] sm:$0xff] }
 0x1bb   :  { %v885_v46 = vpop.permute.xlu2 %884 }
 0x1bc   :  { %v881_v40 = vpop.permute.xlu0 %880  ;;  %955 = vst.msk [vmem:[#allocation3 + $0xd0] sm:$0xff] %vm928_vm6, %v885_v46  ;;  %v1361_v46 = vld [vmem:[#allocation2 + $0xc9] sm:$0xff] }
 0x1bd   :  { %1225 = vrot.lane.b32.xlu1 %v1158_v41, %s4420_s12  ;;  %953 = vst.msk [vmem:[#allocation3 + $0xc0] sm:$0xff] %vm928_vm6, %v881_v40  ;;  %v1350_v41 = vld [vmem:[#allocation2 + $0x49] sm:$0xff] }
 0x1bf   :  { %v883_v24 = vpop.permute.xlu1 %882 }
 0x1c0   :  { %954 = vst.msk [vmem:[#allocation3 + $0xc8] sm:$0xff] %vm928_vm6, %v883_v24  ;;  %v1360_v24 = vld [vmem:[#allocation2 + $0xc1] sm:$0xff] }
 0x1c1   :  { %1085 = vrot.lane.b32.xlu2 %v5360_v50, %s4419_s11 }
 0x1c2   :  { %1229 = vrot.lane.b32.xlu0 %v4828_v21, %s4420_s12 }
 0x1c3   :  { %v891_v36 = vpop.permute.xlu2 %890 }
 0x1c4   :  { %v887_v30 = vpop.permute.xlu0 %886  ;;  %958 = vst.msk [vmem:[#allocation3 + $0xe8] sm:$0xff] %vm928_vm6, %v891_v36 }
 0x1c5   :  { %1231 = vrot.lane.b32.xlu1 %v4834_v26, %s4420_s12  ;;  %956 = vst.msk [vmem:[#allocation3 + $0xd8] sm:$0xff] %vm928_vm6, %v887_v30 }
 0x1c7   :  { %v889_v49 = vpop.permute.xlu1 %888 }
 0x1c8   :  { %957 = vst.msk [vmem:[#allocation3 + $0xe0] sm:$0xff] %vm928_vm6, %v889_v49  ;;  %v1353_v49 = vld [vmem:[#allocation2 + $0x69] sm:$0xff] }
 0x1c9   :  { %1221 = vrot.lane.b32.xlu2 %v1156_v53, %s4420_s12 }
 0x1ca   :  { %1235 = vrot.lane.b32.xlu0 %v4855_v39, %s4420_s12 }
 0x1cb   :  { %v1026_v52 = vpop.permute.xlu2 %1025 }
 0x1cc   :  { %v893_v21 = vpop.permute.xlu0 %892  ;;  %1122 = vst.msk [vmem:[#allocation3] sm:$0xff] %vm1121_vm7, %v1026_v52 }
 0x1cd   :  { %1237 = vrot.lane.b32.xlu1 %v4861_v44, %s4420_s12  ;;  %959 = vst.msk [vmem:[#allocation3 + $0xf0] sm:$0xff] %vm928_vm6, %v893_v21  ;;  %v1363_v21 = vld [vmem:[#allocation2 + $0xe1] sm:$0xff] }
 0x1cf   :  { %v895_v26 = vpop.permute.xlu1 %894 }
 0x1d0   :  { %960 = vst.msk [vmem:[#allocation3 + $0xf8] sm:$0xff] %vm928_vm6, %v895_v26  ;;  %v1364_v26 = vld [vmem:[#allocation2 + $0xf1] sm:$0xff] }
 0x1d1   :  { %1227 = vrot.lane.b32.xlu2 %v1159_v42, %s4420_s12 }
 0x1d2   :  { %1241 = vrot.lane.b32.xlu0 %v4882_v9, %s4420_s12 }
 0x1d3   :  { %v1032_v0 = vpop.permute.xlu2 %1031 }
 0x1d4   :  { %v1028_v39 = vpop.permute.xlu0 %1027  ;;  %1125 = vst.msk [vmem:[#allocation3 + $0x18] sm:$0xff] %vm1121_vm7, %v1032_v0 }
 0x1d5   :  { %1243 = vrot.lane.b32.xlu1 %v4888_v19, %s4420_s12  ;;  %1123 = vst.msk [vmem:[#allocation3 + $0x8] sm:$0xff] %vm1121_vm7, %v1028_v39  ;;  %v1356_v39 = vld [vmem:[#allocation2 + $0x91] sm:$0xff] }
 0x1d7   :  { %v1030_v44 = vpop.permute.xlu1 %1029 }
 0x1d8   :  { %1124 = vst.msk [vmem:[#allocation3 + $0x10] sm:$0xff] %vm1121_vm7, %v1030_v44  ;;  %v1366_v44 = vld [vmem:[#allocation2 + $0x109] sm:$0xff] }
 0x1d9   :  { %1233 = vrot.lane.b32.xlu2 %v1162_v55, %s4420_s12 }
 0x1da   :  { %1247 = vrot.lane.b32.xlu0 %v4909_v45, %s4420_s12 }
 0x1db   :  { %v1038_v6 = vpop.permute.xlu2 %1037 }
 0x1dc   :  { %v1034_v9 = vpop.permute.xlu0 %1033  ;;  %1128 = vst.msk [vmem:[#allocation3 + $0x30] sm:$0xff] %vm1121_vm7, %v1038_v6 }
 0x1dd   :  { %1249 = vrot.lane.b32.xlu1 %v4915_v31, %s4420_s12  ;;  %1126 = vst.msk [vmem:[#allocation3 + $0x20] sm:$0xff] %vm1121_vm7, %v1034_v9  ;;  %v1367_v9 = vld [vmem:[#allocation2 + $0x111] sm:$0xff] }
 0x1df   :  { %v1036_v19 = vpop.permute.xlu1 %1035 }
 0x1e0   :  { %1127 = vst.msk [vmem:[#allocation3 + $0x28] sm:$0xff] %vm1121_vm7, %v1036_v19  ;;  %v1359_v19 = vld [vmem:[#allocation2 + $0xb1] sm:$0xff] }
 0x1e1   :  { %1239 = vrot.lane.b32.xlu2 %v1165_v48, %s4420_s12 }
 0x1e2   :  { %1253 = vrot.lane.b32.xlu0 %v4936_v62, %s4420_s12 }
 0x1e3   :  { %v1044_v37 = vpop.permute.xlu2 %1043 }
 0x1e4   :  { %v1040_v45 = vpop.permute.xlu0 %1039  ;;  %1131 = vst.msk [vmem:[#allocation3 + $0x48] sm:$0xff] %vm1121_vm7, %v1044_v37 }
 0x1e5   :  { %1255 = vrot.lane.b32.xlu1 %v4940_v2, %s4420_s12  ;;  %1129 = vst.msk [vmem:[#allocation3 + $0x38] sm:$0xff] %vm1121_vm7, %v1040_v45  ;;  %v1369_v45 = vld [vmem:[#allocation2 + $0x129] sm:$0xff] }
 0x1e7   :  { %v1042_v31 = vpop.permute.xlu1 %1041 }
 0x1e8   :  { %1130 = vst.msk [vmem:[#allocation3 + $0x40] sm:$0xff] %vm1121_vm7, %v1042_v31  ;;  %v1370_v31 = vld [vmem:[#allocation2 + $0x139] sm:$0xff] }
 0x1e9   :  { %1245 = vrot.lane.b32.xlu2 %v1168_v57, %s4420_s12 }
 0x1ea   :  { %1259 = vrot.lane.b32.xlu0 %v4963_v7, %s4420_s12 }
 0x1eb   :  { %v1050_v43 = vpop.permute.xlu2 %1049 }
 0x1ec   :  { %v1046_v62 = vpop.permute.xlu0 %1045  ;;  %1134 = vst.msk [vmem:[#allocation3 + $0x60] sm:$0xff] %vm1121_vm7, %v1050_v43 }
 0x1ed   :  { %1261 = vrot.lane.b32.xlu1 %v4975_v33, %s4420_s12  ;;  %1132 = vst.msk [vmem:[#allocation3 + $0x50] sm:$0xff] %vm1121_vm7, %v1046_v62  ;;  %v1362_v62 = vld [vmem:[#allocation2 + $0xd9] sm:$0xff] }
 0x1ef   :  { %v1048_v2 = vpop.permute.xlu1 %1047 }
 0x1f0   :  { %1133 = vst.msk [vmem:[#allocation3 + $0x58] sm:$0xff] %vm1121_vm7, %v1048_v2  ;;  %v1372_v2 = vld [vmem:[#allocation2 + $0x151] sm:$0xff] }
 0x1f1   :  { %1251 = vrot.lane.b32.xlu2 %v1171_v51, %s4420_s12 }
 0x1f2   :  { %1265 = vrot.lane.b32.xlu0 %v4990_v11, %s4420_s12 }
 0x1f3   :  { %v1056_v58 = vpop.permute.xlu2 %1055 }
 0x1f4   :  { %v1052_v7 = vpop.permute.xlu0 %1051  ;;  %1137 = vst.msk [vmem:[#allocation3 + $0x78] sm:$0xff] %vm1121_vm7, %v1056_v58 }
 0x1f5   :  { %1267 = vrot.lane.b32.xlu1 %v5002_v4, %s4420_s12  ;;  %1135 = vst.msk [vmem:[#allocation3 + $0x68] sm:$0xff] %vm1121_vm7, %v1052_v7  ;;  %v1373_v7 = vld [vmem:[#allocation2 + $0x159] sm:$0xff] }
 0x1f7   :  { %v1054_v33 = vpop.permute.xlu1 %1053 }
 0x1f8   :  { %1136 = vst.msk [vmem:[#allocation3 + $0x70] sm:$0xff] %vm1121_vm7, %v1054_v33  ;;  %v1365_v33 = vld [vmem:[#allocation2 + $0xf9] sm:$0xff] }
 0x1f9   :  { %1257 = vrot.lane.b32.xlu2 %v1174_v16, %s4420_s12 }
 0x1fa   :  { %1271 = vrot.lane.b32.xlu0 %v5016_v56, %s4420_s12 }
 0x1fb   :  { %v1062_v5 = vpop.permute.xlu2 %1061 }
 0x1fc   :  { %v1058_v11 = vpop.permute.xlu0 %1057  ;;  %1140 = vst.msk [vmem:[#allocation3 + $0x90] sm:$0xff] %vm1121_vm7, %v1062_v5  ;;  %v1368_v5 = vld [vmem:[#allocation2 + $0x121] sm:$0xff] }
 0x1fd   :  { %1273 = vrot.lane.b32.xlu1 %v5022_v3, %s4420_s12  ;;  %1138 = vst.msk [vmem:[#allocation3 + $0x80] sm:$0xff] %vm1121_vm7, %v1058_v11  ;;  %v1375_v11 = vld [vmem:[#allocation2 + $0x171] sm:$0xff] }
 0x1ff   :  { %v1060_v4 = vpop.permute.xlu1 %1059 }
 0x200   :  { %1139 = vst.msk [vmem:[#allocation3 + $0x88] sm:$0xff] %vm1121_vm7, %v1060_v4 }
 0x201   :  { %1263 = vrot.lane.b32.xlu2 %v1177_v54, %s4420_s12 }
 0x202   :  { %1277 = vrot.lane.b32.xlu0 %v5158_v20, %s4420_s12  ;;  %v1349_v20 = vld [vmem:[#allocation2 + $0x39] sm:$0xff] }
 0x203   :  { %v1068_v61 = vpop.permute.xlu2 %1067 }
 0x204   :  { %v1064_v56 = vpop.permute.xlu0 %1063  ;;  %1143 = vst.msk [vmem:[#allocation3 + $0xa8] sm:$0xff] %vm1121_vm7, %v1068_v61  ;;  %v1371_v61 = vld [vmem:[#allocation2 + $0x141] sm:$0xff] }
 0x205   :  { %1279 = vrot.lane.b32.xlu1 %v1185_v14, %s4420_s12  ;;  %1141 = vst.msk [vmem:[#allocation3 + $0x98] sm:$0xff] %vm1121_vm7, %v1064_v56  ;;  %v1378_v56 = vld [vmem:[#allocation2 + $0x199] sm:$0xff] }
 0x207   :  { %v1066_v3 = vpop.permute.xlu1 %1065 }
 0x208   :  { %1142 = vst.msk [vmem:[#allocation3 + $0xa0] sm:$0xff] %vm1121_vm7, %v1066_v3  ;;  %v1379_v3 = vld [vmem:[#allocation2 + $0x1a1] sm:$0xff] }
 0x209   :  { %1269 = vrot.lane.b32.xlu2 %v4992_v60, %s4420_s12 }
 0x20a   :  { %1412 = vrot.lane.b32.xlu0 %v1348_v13, %s4421_s13 }
 0x20b   :  { %v1074_v17 = vpop.permute.xlu2 %1073 }
 0x20c   :  { %v1070_v32 = vpop.permute.xlu0 %1069  ;;  %1146 = vst.msk [vmem:[#allocation3 + $0xc0] sm:$0xff] %vm1121_vm7, %v1074_v17  ;;  %v1374_v17 = vld [vmem:[#allocation2 + $0x169] sm:$0xff] }
 0x20d   :  { %1414 = vrot.lane.b32.xlu1 %v1349_v20, %s4421_s13  ;;  %1144 = vst.msk [vmem:[#allocation3 + $0xb0] sm:$0xff] %vm1121_vm7, %v1070_v32  ;;  %v1542_v20 = vld [vmem:[#allocation2 + $0x3a] sm:$0xff] }
 0x20f   :  { %v1072_v27 = vpop.permute.xlu1 %1071 }
 0x210   :  { %1145 = vst.msk [vmem:[#allocation3 + $0xb8] sm:$0xff] %vm1121_vm7, %v1072_v27  ;;  %v1543_v27 = vld [vmem:[#allocation2 + $0x4a] sm:$0xff] }
 0x211   :  { %1275 = vrot.lane.b32.xlu2 %v5128_v12, %s4420_s12 }
 0x212   :  { %1418 = vrot.lane.b32.xlu0 %v1351_v10, %s4421_s13 }
 0x213   :  { %v1080_v60 = vpop.permute.xlu2 %1079 }
 0x214   :  { %v1076_v1 = vpop.permute.xlu0 %1075  ;;  %1149 = vst.msk [vmem:[#allocation3 + $0xd8] sm:$0xff] %vm1121_vm7, %v1080_v60 }
 0x215   :  { %1420 = vrot.lane.b32.xlu1 %v1352_v15, %s4421_s13  ;;  %1147 = vst.msk [vmem:[#allocation3 + $0xc8] sm:$0xff] %vm1121_vm7, %v1076_v1  ;;  %v1545_v1 = vld [vmem:[#allocation2 + $0x62] sm:$0xff] }
 0x217   :  { %v1078_v23 = vpop.permute.xlu1 %1077 }
 0x218   :  { %1148 = vst.msk [vmem:[#allocation3 + $0xd0] sm:$0xff] %vm1121_vm7, %v1078_v23 }
 0x219   :  { %1281 = vrot.lane.b32.xlu2 %v1186_v28, %s4420_s12 }
 0x21a   :  { %1424 = vrot.lane.b32.xlu0 %v1354_v38, %s4421_s13  ;;  %v1546_v38 = vld [vmem:[#allocation2 + $0x6a] sm:$0xff] }
 0x21b   :  { %v1086_v12 = vpop.permute.xlu2 %1085 }
 0x21c   :  { %v1082_v59 = vpop.permute.xlu0 %1081  ;;  %1152 = vst.msk [vmem:[#allocation3 + $0xf0] sm:$0xff] %vm1121_vm7, %v1086_v12  ;;  %v1541_v12 = vld [vmem:[#allocation2 + $0x32] sm:$0xff] }
 0x21d   :  { %1426 = vrot.lane.b32.xlu1 %v1355_v29, %s4421_s13  ;;  %1150 = vst.msk [vmem:[#allocation3 + $0xe0] sm:$0xff] %vm1121_vm7, %v1082_v59  ;;  %v1548_v59 = vld [vmem:[#allocation2 + $0x82] sm:$0xff] }
 0x21f   :  { %v1084_v25 = vpop.permute.xlu1 %1083 }
 0x220   :  { %1151 = vst.msk [vmem:[#allocation3 + $0xe8] sm:$0xff] %vm1121_vm7, %v1084_v25  ;;  %v1549_v25 = vld [vmem:[#allocation2 + $0x92] sm:$0xff] }
 0x221   :  { %1416 = vrot.lane.b32.xlu2 %v1350_v41, %s4421_s13  ;;  %v1552_v41 = vld [vmem:[#allocation2 + $0xb2] sm:$0xff] }
 0x222   :  { %1430 = vrot.lane.b32.xlu0 %v1357_v35, %s4421_s13 }
 0x223   :  { %v1222_v47 = vpop.permute.xlu2 %1221 }
 0x224   :  { %v1088_v18 = vpop.permute.xlu0 %1087  ;;  %1317 = vst.msk [vmem:[#allocation3 + $0x8] sm:$0xff] %vm1315_vm8, %v1222_v47 }
 0x225   :  { %1432 = vrot.lane.b32.xlu1 %v1358_v34, %s4421_s13  ;;  %1153 = vst.msk [vmem:[#allocation3 + $0xf8] sm:$0xff] %vm1121_vm7, %v1088_v18  ;;  %v1551_v18 = vld [vmem:[#allocation2 + $0xaa] sm:$0xff] }
 0x227   :  { %v1220_v40 = vpop.permute.xlu1 %1219 }
 0x228   :  { %1316 = vst.msk [vmem:[#allocation3] sm:$0xff] %vm1315_vm8, %v1220_v40 }
 0x229   :  { %1422 = vrot.lane.b32.xlu2 %v1353_v49, %s4421_s13  ;;  %v1555_v49 = vld [vmem:[#allocation2 + $0xda] sm:$0xff] }
 0x22a   :  { %1436 = vrot.lane.b32.xlu0 %v1360_v24, %s4421_s13  ;;  %v1544_v24 = vld [vmem:[#allocation2 + $0x52] sm:$0xff] }
 0x22b   :  { %v1228_v53 = vpop.permute.xlu2 %1227 }
 0x22c   :  { %v1224_v30 = vpop.permute.xlu0 %1223  ;;  %1320 = vst.msk [vmem:[#allocation3 + $0x20] sm:$0xff] %vm1315_vm8, %v1228_v53 }
 0x22d   :  { %1438 = vrot.lane.b32.xlu1 %v1361_v46, %s4421_s13  ;;  %1318 = vst.msk [vmem:[#allocation3 + $0x10] sm:$0xff] %vm1315_vm8, %v1224_v30  ;;  %v1554_v46 = vld [vmem:[#allocation2 + $0xca] sm:$0xff] }
 0x22f   :  { %v1226_v36 = vpop.permute.xlu1 %1225 }
 0x230   :  { %1319 = vst.msk [vmem:[#allocation3 + $0x18] sm:$0xff] %vm1315_vm8, %v1226_v36 }
 0x231   :  { %1428 = vrot.lane.b32.xlu2 %v1356_v39, %s4421_s13  ;;  %v1558_v39 = vld [vmem:[#allocation2 + $0xfa] sm:$0xff] }
 0x232   :  { %1442 = vrot.lane.b32.xlu0 %v1363_v21, %s4421_s13  ;;  %v1547_v21 = vld [vmem:[#allocation2 + $0x7a] sm:$0xff] }
 0x233   :  { %v1234_v0 = vpop.permute.xlu2 %1233 }
 0x234   :  { %v1230_v52 = vpop.permute.xlu0 %1229  ;;  %1323 = vst.msk [vmem:[#allocation3 + $0x38] sm:$0xff] %vm1315_vm8, %v1234_v0  ;;  %v1550_v0 = vld [vmem:[#allocation2 + $0x9a] sm:$0xff] }
 0x235   :  { %1444 = vrot.lane.b32.xlu1 %v1364_v26, %s4421_s13  ;;  %1321 = vst.msk [vmem:[#allocation3 + $0x28] sm:$0xff] %vm1315_vm8, %v1230_v52  ;;  %v1557_v26 = vld [vmem:[#allocation2 + $0xf2] sm:$0xff] }
 0x237   :  { %v1232_v42 = vpop.permute.xlu1 %1231 }
 0x238   :  { %1322 = vst.msk [vmem:[#allocation3 + $0x30] sm:$0xff] %vm1315_vm8, %v1232_v42  ;;  %v4312_v42 = vld [vmem:[%s7192_s0 + $0x1f0] sm:$0xff] }
 0x239   :  { %1434 = vrot.lane.b32.xlu2 %v1359_v19, %s4421_s13  ;;  %1797 = vst.msk [vmem:[#allocation2 + $0x181] sm:$0xff] %vm14_vm0, %v4312_v42  ;;  %v4313_v19 = vld [vmem:[%s7192_s0 + $0x1f8] sm:$0xff] }
 0x23a   :  { %1448 = vrot.lane.b32.xlu0 %v1366_v44, %s4421_s13  ;;  %1798 = vst.msk [vmem:[#allocation2 + $0x189] sm:$0xff] %vm14_vm0, %v4313_v19  ;;  %v4293_v19 = vld [vmem:[%s7192_s0 + $0x158] sm:$0xff] }
 0x23b   :  { %v1240_v48 = vpop.permute.xlu2 %1239  ;;  %1778 = vst.msk [vmem:[#allocation2 + $0x99] sm:$0xff] %vm14_vm0, %v4293_v19 }
 0x23c   :  { %v1236_v55 = vpop.permute.xlu0 %1235  ;;  %1326 = vst.msk [vmem:[#allocation3 + $0x50] sm:$0xff] %vm1315_vm8, %v1240_v48 }
 0x23d   :  { %1450 = vrot.lane.b32.xlu1 %v1367_v9, %s4421_s13  ;;  %1324 = vst.msk [vmem:[#allocation3 + $0x40] sm:$0xff] %vm1315_vm8, %v1236_v55  ;;  %v1560_v55 = vld [vmem:[#allocation2 + $0x112] sm:$0xff] }
 0x23f   :  { %v1238_v6 = vpop.permute.xlu1 %1237 }
 0x240   :  { %1325 = vst.msk [vmem:[#allocation3 + $0x48] sm:$0xff] %vm1315_vm8, %v1238_v6 }
 0x241   :  { %1440 = vrot.lane.b32.xlu2 %v1362_v62, %s4421_s13  ;;  %v1563_v62 = vld [vmem:[#allocation2 + $0x13a] sm:$0xff] }
 0x242   :  { %1454 = vrot.lane.b32.xlu0 %v1369_v45, %s4421_s13  ;;  %v1561_v45 = vld [vmem:[#allocation2 + $0x122] sm:$0xff] }
 0x243   :  { %v1246_v43 = vpop.permute.xlu2 %1245 }
 0x244   :  { %v1242_v37 = vpop.permute.xlu0 %1241  ;;  %1329 = vst.msk [vmem:[#allocation3 + $0x68] sm:$0xff] %vm1315_vm8, %v1246_v43 }
 0x245   :  { %1456 = vrot.lane.b32.xlu1 %v1370_v31, %s4421_s13  ;;  %1327 = vst.msk [vmem:[#allocation3 + $0x58] sm:$0xff] %vm1315_vm8, %v1242_v37  ;;  %v1553_v31 = vld [vmem:[#allocation2 + $0xc2] sm:$0xff] }
 0x247   :  { %v1244_v57 = vpop.permute.xlu1 %1243 }
 0x248   :  { %1328 = vst.msk [vmem:[#allocation3 + $0x60] sm:$0xff] %vm1315_vm8, %v1244_v57 }
 0x249   :  { %1446 = vrot.lane.b32.xlu2 %v1365_v33, %s4421_s13  ;;  %v1566_v33 = vld [vmem:[#allocation2 + $0x15a] sm:$0xff] }
 0x24a   :  { %1460 = vrot.lane.b32.xlu0 %v1372_v2, %s4421_s13  ;;  %v1564_v2 = vld [vmem:[#allocation2 + $0x142] sm:$0xff] }
 0x24b   :  { %v1252_v16 = vpop.permute.xlu2 %1251 }
 0x24c   :  { %v1248_v51 = vpop.permute.xlu0 %1247  ;;  %1332 = vst.msk [vmem:[#allocation3 + $0x80] sm:$0xff] %vm1315_vm8, %v1252_v16 }
 0x24d   :  { %1462 = vrot.lane.b32.xlu1 %v1373_v7, %s4421_s13  ;;  %1330 = vst.msk [vmem:[#allocation3 + $0x70] sm:$0xff] %vm1315_vm8, %v1248_v51  ;;  %v1556_v7 = vld [vmem:[#allocation2 + $0xe2] sm:$0xff] }
 0x24f   :  { %v1250_v58 = vpop.permute.xlu1 %1249 }
 0x250   :  { %1331 = vst.msk [vmem:[#allocation3 + $0x78] sm:$0xff] %vm1315_vm8, %v1250_v58  ;;  %v4285_v58 = vld [vmem:[%s7192_s0 + $0x118] sm:$0xff] }
 0x251   :  { %1452 = vrot.lane.b32.xlu2 %v1368_v5, %s4421_s13  ;;  %1770 = vst.msk [vmem:[#allocation2 + $0x39] sm:$0xff] %vm14_vm0, %v4285_v58 }
 0x252   :  { %1466 = vrot.lane.b32.xlu0 %v1375_v11, %s4421_s13  ;;  %v4286_v11 = vld [vmem:[%s7192_s0 + $0x120] sm:$0xff] }
 0x253   :  { %v1258_v54 = vpop.permute.xlu2 %1257  ;;  %1771 = vst.msk [vmem:[#allocation2 + $0x49] sm:$0xff] %vm14_vm0, %v4286_v11 }
 0x254   :  { %v1254_v4 = vpop.permute.xlu0 %1253  ;;  %1335 = vst.msk [vmem:[#allocation3 + $0x98] sm:$0xff] %vm1315_vm8, %v1258_v54  ;;  %v4288_v54 = vld [vmem:[%s7192_s0 + $0x130] sm:$0xff] }
 0x255   :  { %1468 = vrot.lane.b32.xlu1 %v5234_v8, %s4421_s13  ;;  %1333 = vst.msk [vmem:[#allocation3 + $0x88] sm:$0xff] %vm1315_vm8, %v1254_v4  ;;  %v1567_v4 = vld [vmem:[#allocation2 + $0x16a] sm:$0xff] }
 0x256   :  { %1773 = vst.msk [vmem:[#allocation2 + $0x61] sm:$0xff] %vm14_vm0, %v4288_v54 }
 0x257   :  { %v1256_v14 = vpop.permute.xlu1 %1255 }
 0x258   :  { %1334 = vst.msk [vmem:[#allocation3 + $0x90] sm:$0xff] %vm1315_vm8, %v1256_v14  ;;  %v1559_v14 = vld [vmem:[#allocation2 + $0x10a] sm:$0xff] }
 0x259   :  { %1458 = vrot.lane.b32.xlu2 %v1371_v61, %s4421_s13 }
 0x25a   :  { %1472 = vrot.lane.b32.xlu0 %v1378_v56, %s4421_s13 }
 0x25b   :  { %v1264_v32 = vpop.permute.xlu2 %1263 }
 0x25c   :  { %v1260_v13 = vpop.permute.xlu0 %1259  ;;  %1338 = vst.msk [vmem:[#allocation3 + $0xb0] sm:$0xff] %vm1315_vm8, %v1264_v32 }
 0x25d   :  { %1474 = vrot.lane.b32.xlu1 %v1379_v3, %s4421_s13  ;;  %1336 = vst.msk [vmem:[#allocation3 + $0xa0] sm:$0xff] %vm1315_vm8, %v1260_v13  ;;  %v3471_v3 = vld [vmem:[%s7193_s1 + $0x40] sm:$0xff]  ;;  %v4289_v13 = vld [vmem:[%s7192_s0 + $0x138] sm:$0xff] }
 0x25e   :  { %3672 = vmatpush.msra.mxu0 %v3471_v3  ;;  %4378 = vmatpush.msra.mxu1 %v3471_v3  ;;  %1774 = vst.msk [vmem:[#allocation2 + $0x69] sm:$0xff] %vm14_vm0, %v4289_v13 }
 0x25f   :  { %v1262_v8 = vpop.permute.xlu1 %1261  ;;  %4379 = vmatpush.msra.mxu2 %v3471_v3  ;;  %4380 = vmatpush.msra.mxu3 %v3471_v3 }
 0x260   :  { %1337 = vst.msk [vmem:[#allocation3 + $0xa8] sm:$0xff] %vm1315_vm8, %v1262_v8  ;;  %v3470_v8 = vld [vmem:[%s7193_s1 + $0x38] sm:$0xff] }
 0x261   :  { %1464 = vrot.lane.b32.xlu2 %v1374_v17, %s4421_s13  ;;  %3673 = vmatpush.msra.mxu0 %v3470_v8  ;;  %v1572_v17 = vld [vmem:[#allocation2 + $0x1a2] sm:$0xff] }
 0x262   :  { %1607 = vrot.lane.b32.xlu0 %v1542_v20, %s4422_s14  ;;  %v3469_v20 = vld [vmem:[%s7193_s1 + $0x30] sm:$0xff]  ;;  %4381 = vmatpush.msra.mxu1 %v3470_v8 }
 0x263   :  { %v1270_v23 = vpop.permute.xlu2 %1269  ;;  %4382 = vmatpush.msra.mxu2 %v3470_v8  ;;  %3674 = vmatpush.msra.mxu0 %v3469_v20 }
 0x264   :  { %v1266_v10 = vpop.permute.xlu0 %1265  ;;  %1341 = vst.msk [vmem:[#allocation3 + $0xc8] sm:$0xff] %vm1315_vm8, %v1270_v23  ;;  %4384 = vmatpush.msra.mxu1 %v3469_v20  ;;  %4383 = vmatpush.msra.mxu3 %v3470_v8  ;;  %v4292_v23 = vld [vmem:[%s7192_s0 + $0x150] sm:$0xff] }
 0x265   :  { %1609 = vrot.lane.b32.xlu1 %v1543_v27, %s4422_s14  ;;  %1339 = vst.msk [vmem:[#allocation3 + $0xb8] sm:$0xff] %vm1315_vm8, %v1266_v10  ;;  %v1562_v27 = vld [vmem:[#allocation2 + $0x12a] sm:$0xff]  ;;  %4385 = vmatpush.msra.mxu2 %v3469_v20 }
 0x266   :  { %1777 = vst.msk [vmem:[#allocation2 + $0x91] sm:$0xff] %vm14_vm0, %v4292_v23  ;;  %4386 = vmatpush.msra.mxu3 %v3469_v20 }
 0x267   :  { %v1268_v15 = vpop.permute.xlu1 %1267 }
 0x268   :  { %1340 = vst.msk [vmem:[#allocation3 + $0xc0] sm:$0xff] %vm1315_vm8, %v1268_v15  ;;  %v4291_v15 = vld [vmem:[%s7192_s0 + $0x148] sm:$0xff] }
 0x269   :  { %1470 = vrot.lane.b32.xlu2 %v5241_v63, %s4421_s13  ;;  %1776 = vst.msk [vmem:[#allocation2 + $0x81] sm:$0xff] %vm14_vm0, %v4291_v15 }
 0x26a   :  { %1613 = vrot.lane.b32.xlu0 %v1545_v1, %s4422_s14  ;;  %v4284_v1 = vld [vmem:[%s7192_s0 + $0x110] sm:$0xff] }
 0x26b   :  { %v1276_v28 = vpop.permute.xlu2 %1275  ;;  %1769 = vst.msk [vmem:[#allocation2 + $0x31] sm:$0xff] %vm14_vm0, %v4284_v1 }
 0x26c   :  { %v1272_v60 = vpop.permute.xlu0 %1271  ;;  %1344 = vst.msk [vmem:[#allocation3 + $0xe0] sm:$0xff] %vm1315_vm8, %v1276_v28 }
 0x26d   :  { %1615 = vrot.lane.b32.xlu1 %v1546_v38, %s4422_s14  ;;  %1342 = vst.msk [vmem:[#allocation3 + $0xd0] sm:$0xff] %vm1315_vm8, %v1272_v60  ;;  %v1863_v60 = vld [vmem:[#allocation2 + $0x1] sm:$0xff] }
 0x26f   :  { %v1274_v29 = vpop.permute.xlu1 %1273 }
 0x270   :  { %1343 = vst.msk [vmem:[#allocation3 + $0xd8] sm:$0xff] %vm1315_vm8, %v1274_v29  ;;  %v3466_v29 = vld [vmem:[%s7193_s1 + $0x18] sm:$0xff] }
 0x271   :  { %1605 = vrot.lane.b32.xlu2 %v1541_v12, %s4422_s14 }
 0x272   :  { %1619 = vrot.lane.b32.xlu0 %v1548_v59, %s4422_s14  ;;  %v3465_v59 = vld [vmem:[%s7193_s1 + $0x10] sm:$0xff] }
 0x273   :  { %v1282_v63 = vpop.permute.xlu2 %1281  ;;  %v1867_v11 = vld [vmem:[#allocation2 + $0x31] sm:$0xff] }
 0x274   :  { %v1278_v35 = vpop.permute.xlu0 %1277  ;;  %1347 = vst.msk [vmem:[#allocation3 + $0xf8] sm:$0xff] %vm1315_vm8, %v1282_v63  ;;  %v3463_v63 = vld [vmem:[%s7193_s1] sm:$0xff] }
 0x275   :  { %1621 = vrot.lane.b32.xlu1 %v1549_v25, %s4422_s14  ;;  %1345 = vst.msk [vmem:[#allocation3 + $0xe8] sm:$0xff] %vm1315_vm8, %v1278_v35  ;;  %v1565_v25 = vld [vmem:[#allocation2 + $0x152] sm:$0xff]  ;;  %v3464_v35 = vld [vmem:[%s7193_s1 + $0x8] sm:$0xff] }
 0x277   :  { %v1280_v34 = vpop.permute.xlu1 %1279 }
 0x278   :  { %1346 = vst.msk [vmem:[#allocation3 + $0xf0] sm:$0xff] %vm1315_vm8, %v1280_v34  ;;  %v1865_v34 = vld [vmem:[#allocation2 + $0x19] sm:$0xff] }
 0x279   :  { %1611 = vrot.lane.b32.xlu2 %v1544_v24, %s4422_s14 }
 0x27a   :  { %1625 = vrot.lane.b32.xlu0 %v1551_v18, %s4422_s14  ;;  %v4294_v18 = vld [vmem:[%s7192_s0 + $0x160] sm:$0xff] }
 0x27b   :  { %v1417_v30 = vpop.permute.xlu2 %1416  ;;  %1779 = vst.msk [vmem:[#allocation2 + $0xa9] sm:$0xff] %vm14_vm0, %v4294_v18 }
 0x27c   :  { %v1413_v40 = vpop.permute.xlu0 %1412  ;;  %1511 = vst.msk [vmem:[#allocation3 + $0x10] sm:$0xff] %vm1508_vm9, %v1417_v30  ;;  %v1568_v30 = vld [vmem:[#allocation2 + $0x172] sm:$0xff] }
 0x27d   :  { %1627 = vrot.lane.b32.xlu1 %v1552_v41, %s4422_s14  ;;  %1509 = vst.msk [vmem:[#allocation3] sm:$0xff] %vm1508_vm9, %v1413_v40  ;;  %v4287_v41 = vld [vmem:[%s7192_s0 + $0x128] sm:$0xff] }
 0x27e   :  { %v4295_v40 = vld [vmem:[%s7192_s0 + $0x168] sm:$0xff]  ;;  %1772 = vst.msk [vmem:[#allocation2 + $0x51] sm:$0xff] %vm14_vm0, %v4287_v41 }
 0x27f   :  { %v1415_v47 = vpop.permute.xlu1 %1414  ;;  %1780 = vst.msk [vmem:[#allocation2 + $0xb1] sm:$0xff] %vm14_vm0, %v4295_v40 }
 0x280   :  { %1510 = vst.msk [vmem:[#allocation3 + $0x8] sm:$0xff] %vm1508_vm9, %v1415_v47  ;;  %v1866_v47 = vld [vmem:[#allocation2 + $0x21] sm:$0xff] }
 0x281   :  { %1617 = vrot.lane.b32.xlu2 %v1547_v21, %s4422_s14  ;;  %v4297_v21 = vld [vmem:[%s7192_s0 + $0x178] sm:$0xff] }
 0x282   :  { %1631 = vrot.lane.b32.xlu0 %v1554_v46, %s4422_s14  ;;  %1782 = vst.msk [vmem:[#allocation2 + $0xc9] sm:$0xff] %vm14_vm0, %v4297_v21 }
 0x283   :  { %v1423_v52 = vpop.permute.xlu2 %1422 }
 0x284   :  { %v1419_v36 = vpop.permute.xlu0 %1418  ;;  %1514 = vst.msk [vmem:[#allocation3 + $0x28] sm:$0xff] %vm1508_vm9, %v1423_v52 }
 0x285   :  { %1633 = vrot.lane.b32.xlu1 %v1555_v49, %s4422_s14  ;;  %1512 = vst.msk [vmem:[#allocation3 + $0x18] sm:$0xff] %vm1508_vm9, %v1419_v36  ;;  %v1868_v36 = vld [vmem:[#allocation2 + $0x39] sm:$0xff]  ;;  %v1870_v8 = vld [vmem:[#allocation2 + $0x51] sm:$0xff] }
 0x286   :  { %v1878_v13 = vld [vmem:[#allocation2 + $0xb1] sm:$0xff] }
 0x287   :  { %v1421_v53 = vpop.permute.xlu1 %1420 }
 0x288   :  { %1513 = vst.msk [vmem:[#allocation3 + $0x20] sm:$0xff] %vm1508_vm9, %v1421_v53  ;;  %v4290_v53 = vld [vmem:[%s7192_s0 + $0x140] sm:$0xff] }
 0x289   :  { %1623 = vrot.lane.b32.xlu2 %v1550_v0, %s4422_s14  ;;  %1775 = vst.msk [vmem:[#allocation2 + $0x79] sm:$0xff] %vm14_vm0, %v4290_v53 }
 0x28a   :  { %1637 = vrot.lane.b32.xlu0 %v1557_v26, %s4422_s14  ;;  %v4298_v26 = vld [vmem:[%s7192_s0 + $0x180] sm:$0xff] }
 0x28b   :  { %v1429_v6 = vpop.permute.xlu2 %1428  ;;  %1783 = vst.msk [vmem:[#allocation2 + $0xd9] sm:$0xff] %vm14_vm0, %v4298_v26 }
 0x28c   :  { %v1425_v44 = vpop.permute.xlu0 %1424  ;;  %1517 = vst.msk [vmem:[#allocation3 + $0x40] sm:$0xff] %vm1508_vm9, %v1429_v6  ;;  %v4301_v6 = vld [vmem:[%s7192_s0 + $0x198] sm:$0xff] }
 0x28d   :  { %1639 = vrot.lane.b32.xlu1 %v1558_v39, %s4422_s14  ;;  %1515 = vst.msk [vmem:[#allocation3 + $0x30] sm:$0xff] %vm1508_vm9, %v1425_v44  ;;  %v1869_v39 = vld [vmem:[#allocation2 + $0x49] sm:$0xff]  ;;  %v1571_v44 = vld [vmem:[#allocation2 + $0x19a] sm:$0xff] }
 0x28e   :  { %1786 = vst.msk [vmem:[#allocation2 + $0xf9] sm:$0xff] %vm14_vm0, %v4301_v6 }
 0x28f   :  { %v1427_v9 = vpop.permute.xlu1 %1426 }
 0x290   :  { %1516 = vst.msk [vmem:[#allocation3 + $0x38] sm:$0xff] %vm1508_vm9, %v1427_v9  ;;  %v1871_v9 = vld [vmem:[#allocation2 + $0x61] sm:$0xff]  ;;  %v1873_v23 = vld [vmem:[#allocation2 + $0x79] sm:$0xff] }
 0x291   :  { %1629 = vrot.lane.b32.xlu2 %v1553_v31, %s4422_s14 }
 0x292   :  { %1643 = vrot.lane.b32.xlu0 %v1560_v55, %s4422_s14  ;;  %v4300_v55 = vld [vmem:[%s7192_s0 + $0x190] sm:$0xff] }
 0x293   :  { %v1435_v57 = vpop.permute.xlu2 %1434  ;;  %1785 = vst.msk [vmem:[#allocation2 + $0xf1] sm:$0xff] %vm14_vm0, %v4300_v55 }
 0x294   :  { %v1431_v48 = vpop.permute.xlu0 %1430  ;;  %1520 = vst.msk [vmem:[#allocation3 + $0x58] sm:$0xff] %vm1508_vm9, %v1435_v57  ;;  %v1874_v57 = vld [vmem:[#allocation2 + $0x81] sm:$0xff] }
 0x295   :  { %1645 = vrot.lane.b32.xlu1 %v1561_v45, %s4422_s14  ;;  %1518 = vst.msk [vmem:[#allocation3 + $0x48] sm:$0xff] %vm1508_vm9, %v1431_v48  ;;  %v1872_v48 = vld [vmem:[#allocation2 + $0x69] sm:$0xff] }
 0x297   :  { %v1433_v37 = vpop.permute.xlu1 %1432 }
 0x298   :  { %1519 = vst.msk [vmem:[#allocation3 + $0x50] sm:$0xff] %vm1508_vm9, %v1433_v37  ;;  %v1864_v37 = vld [vmem:[#allocation2 + $0x9] sm:$0xff] }
 0x299   :  { %1635 = vrot.lane.b32.xlu2 %v1556_v7, %s4422_s14  ;;  %v4304_v7 = vld [vmem:[%s7192_s0 + $0x1b0] sm:$0xff] }
 0x29a   :  { %1649 = vrot.lane.b32.xlu0 %v1563_v62, %s4422_s14  ;;  %1789 = vst.msk [vmem:[#allocation2 + $0x121] sm:$0xff] %vm14_vm0, %v4304_v7 }
 0x29b   :  { %v1441_v16 = vpop.permute.xlu2 %1440 }
 0x29c   :  { %v1437_v43 = vpop.permute.xlu0 %1436  ;;  %1523 = vst.msk [vmem:[#allocation3 + $0x70] sm:$0xff] %vm1508_vm9, %v1441_v16 }
 0x29d   :  { %1651 = vrot.lane.b32.xlu1 %v1564_v2, %s4422_s14  ;;  %1521 = vst.msk [vmem:[#allocation3 + $0x60] sm:$0xff] %vm1508_vm9, %v1437_v43  ;;  %v4303_v2 = vld [vmem:[%s7192_s0 + $0x1a8] sm:$0xff]  ;;  %v4296_v43 = vld [vmem:[%s7192_s0 + $0x170] sm:$0xff] }
 0x29e   :  { %1788 = vst.msk [vmem:[#allocation2 + $0x111] sm:$0xff] %vm14_vm0, %v4303_v2  ;;  %v2056_v2 = vld [vmem:[#allocation2 + $0xa] sm:$0xff] }
 0x29f   :  { %v1439_v51 = vpop.permute.xlu1 %1438  ;;  %1781 = vst.msk [vmem:[#allocation2 + $0xc1] sm:$0xff] %vm14_vm0, %v4296_v43  ;;  %v1799_v43 = vld [vmem:[#allocation2] sm:$0xff] }
 0x2a0   :  { %1522 = vst.msk [vmem:[#allocation3 + $0x68] sm:$0xff] %vm1508_vm9, %v1439_v51 }
 0x2a1   :  { %1641 = vrot.lane.b32.xlu2 %v1559_v14, %s4422_s14  ;;  %v4299_v14 = vld [vmem:[%s7192_s0 + $0x188] sm:$0xff]  ;;  %1831 = vst.msk [vmem:[#allocation3 + $0x100] sm:$0xff] %vm14_vm0, %v1799_v43 }
 0x2a2   :  { %1655 = vrot.lane.b32.xlu0 %v1566_v33, %s4422_s14  ;;  %v1875_v33 = vld [vmem:[#allocation2 + $0x91] sm:$0xff]  ;;  %1784 = vst.msk [vmem:[#allocation2 + $0xe1] sm:$0xff] %vm14_vm0, %v4299_v14 }
 0x2a3   :  { %v1447_v61 = vpop.permute.xlu2 %1446 }
 0x2a4   :  { %v1443_v5 = vpop.permute.xlu0 %1442  ;;  %1526 = vst.msk [vmem:[#allocation3 + $0x88] sm:$0xff] %vm1508_vm9, %v1447_v61 }
 0x2a5   :  { %1657 = vrot.lane.b32.xlu1 %v1567_v4, %s4422_s14  ;;  %1524 = vst.msk [vmem:[#allocation3 + $0x78] sm:$0xff] %vm1508_vm9, %v1443_v5  ;;  %v1877_v4 = vld [vmem:[#allocation2 + $0xa9] sm:$0xff]  ;;  %v4306_v5 = vld [vmem:[%s7192_s0 + $0x1c0] sm:$0xff]  ;;  %v1886_v18 = vld [vmem:[#allocation2 + $0x111] sm:$0xff] }
 0x2a6   :  { %1791 = vst.msk [vmem:[#allocation2 + $0x139] sm:$0xff] %vm14_vm0, %v4306_v5 }
 0x2a7   :  { %v1445_v56 = vpop.permute.xlu1 %1444 }
 0x2a8   :  { %1525 = vst.msk [vmem:[#allocation3 + $0x80] sm:$0xff] %vm1508_vm9, %v1445_v56  ;;  %v4307_v56 = vld [vmem:[%s7192_s0 + $0x1c8] sm:$0xff] }
 0x2a9   :  { %1647 = vrot.lane.b32.xlu2 %v1562_v27, %s4422_s14  ;;  %1792 = vst.msk [vmem:[#allocation2 + $0x141] sm:$0xff] %vm14_vm0, %v4307_v56  ;;  %v4309_v27 = vld [vmem:[%s7192_s0 + $0x1d8] sm:$0xff]  ;;  %v2074_v43 = vld [vmem:[#allocation2 + $0xe2] sm:$0xff] }
 0x2aa   :  { %1661 = vrot.lane.b32.xlu0 %v5360_v50, %s4422_s14  ;;  %v3468_v50 = vld [vmem:[%s7193_s1 + $0x28] sm:$0xff]  ;;  %1794 = vst.msk [vmem:[#allocation2 + $0x159] sm:$0xff] %vm14_vm0, %v4309_v27  ;;  %v2059_v56 = vld [vmem:[#allocation2 + $0x32] sm:$0xff] }
 0x2ab   :  { %3675 = vmatpush.msra.mxu0 %v3468_v50  ;;  %4387 = vmatpush.msra.mxu1 %v3468_v50  ;;  %v1453_v38 = vpop.permute.xlu2 %1452  ;;  %v5815_v27 = vld [vmem:[#allocation2 + $0x50] sm:$0xff] }
 0x2ac   :  { %v1449_v32 = vpop.permute.xlu0 %1448  ;;  %4388 = vmatpush.msra.mxu2 %v3468_v50  ;;  %1529 = vst.msk [vmem:[#allocation3 + $0xa0] sm:$0xff] %vm1508_vm9, %v1453_v38  ;;  %4389 = vmatpush.msra.mxu3 %v3468_v50 }
 0x2ad   :  { %1663 = vrot.lane.b32.xlu1 %v5337_v22, %s4422_s14  ;;  %1527 = vst.msk [vmem:[#allocation3 + $0x90] sm:$0xff] %vm1508_vm9, %v1449_v32  ;;  %v3467_v22 = vld [vmem:[%s7193_s1 + $0x20] sm:$0xff]  ;;  %v1880_v32 = vld [vmem:[#allocation2 + $0xc9] sm:$0xff] }
 0x2ae   :  { %3676 = vmatpush.msra.mxu0 %v3467_v22  ;;  %4390 = vmatpush.msra.mxu1 %v3467_v22  ;;  %1838 = vst.msk [vmem:[#allocation3 + $0x138] sm:$0xff] %vm14_vm0, %v5815_v27 }
 0x2af   :  { %v1451_v10 = vpop.permute.xlu1 %1450  ;;  %4391 = vmatpush.msra.mxu2 %v3467_v22  ;;  %4392 = vmatpush.msra.mxu3 %v3467_v22  ;;  %v1881_v22 = vld [vmem:[#allocation2 + $0xd9] sm:$0xff] }
 0x2b0   :  { %1528 = vst.msk [vmem:[#allocation3 + $0x98] sm:$0xff] %vm1508_vm9, %v1451_v10  ;;  %3677 = vmatpush.msra.mxu0 %v3466_v29  ;;  %4393 = vmatpush.msra.mxu1 %v3466_v29  ;;  %v4302_v10 = vld [vmem:[%s7192_s0 + $0x1a0] sm:$0xff] }
 0x2b1   :  { %4394 = vmatpush.msra.mxu2 %v3466_v29  ;;  %1653 = vrot.lane.b32.xlu2 %v1565_v25, %s4422_s14  ;;  %1787 = vst.msk [vmem:[#allocation2 + $0x109] sm:$0xff] %vm14_vm0, %v4302_v10  ;;  %v1884_v25 = vld [vmem:[#allocation2 + $0xf9] sm:$0xff]  ;;  %v1890_v26 = vld [vmem:[#allocation2 + $0x141] sm:$0xff] }
 0x2b2   :  { %1667 = vrot.lane.b32.xlu0 %v1572_v17, %s4422_s14  ;;  %3678 = vmatpush.msra.mxu0 %v3465_v59  ;;  %v4310_v17 = vld [vmem:[%s7192_s0 + $0x1e0] sm:$0xff] }
 0x2b3   :  { %4396 = vmatpush.msra.mxu1 %v3465_v59  ;;  %4397 = vmatpush.msra.mxu2 %v3465_v59  ;;  %v1459_v24 = vpop.permute.xlu2 %1458  ;;  %1795 = vst.msk [vmem:[#allocation2 + $0x169] sm:$0xff] %vm14_vm0, %v4310_v17  ;;  %v2062_v17 = vld [vmem:[#allocation2 + $0x52] sm:$0xff] }
 0x2b4   :  { %v1455_v28 = vpop.permute.xlu0 %1454  ;;  %3679 = vmatpush.msra.mxu0 %v3464_v35  ;;  %1532 = vst.msk [vmem:[#allocation3 + $0xb8] sm:$0xff] %vm1508_vm9, %v1459_v24  ;;  %4395 = vmatpush.msra.mxu3 %v3466_v29  ;;  %v4305_v29 = vld [vmem:[%s7192_s0 + $0x1b8] sm:$0xff]  ;;  %v1887_v24 = vld [vmem:[#allocation2 + $0x121] sm:$0xff] }
 0x2b5   :  { %1927 = vrot.lane.b32.xlu1 %v1863_v60, %s4415_s27  ;;  %1530 = vst.msk [vmem:[#allocation3 + $0xa8] sm:$0xff] %vm1508_vm9, %v1455_v28  ;;  %4399 = vmatpush.msra.mxu1 %v3464_v35  ;;  %v1883_v60 = vld [vmem:[#allocation2 + $0xf1] sm:$0xff] }
 0x2b6   :  { %3680 = vmatpush.msra.mxu0 %v3463_v63  ;;  %4400 = vmatpush.msra.mxu2 %v3464_v35  ;;  %1790 = vst.msk [vmem:[#allocation2 + $0x129] sm:$0xff] %vm14_vm0, %v4305_v29  ;;  %v5833_v29 = vld [vmem:[#allocation2 + $0x60] sm:$0xff] }
 0x2b7   :  { %v1457_v12 = vpop.permute.xlu1 %1456  ;;  %4402 = vmatpush.msra.mxu1 %v3463_v63  ;;  %4398 = vmatpush.msra.mxu3 %v3465_v59  ;;  %1839 = vst.msk [vmem:[#allocation3 + $0x140] sm:$0xff] %vm14_vm0, %v5833_v29 }
 0x2b8   :  { %1531 = vst.msk [vmem:[#allocation3 + $0xb0] sm:$0xff] %vm1508_vm9, %v1457_v12  ;;  %4403 = vmatpush.msra.mxu2 %v3463_v63  ;;  %v1876_v12 = vld [vmem:[#allocation2 + $0x99] sm:$0xff] }
 0x2b9   :  { %1659 = vrot.lane.b32.xlu2 %v1568_v30, %s4422_s14  ;;  %4401 = vmatpush.msra.mxu3 %v3464_v35 }
 0x2ba   :  { %1931 = vrot.lane.b32.xlu0 %v1865_v34, %s4415_s27  ;;  %v1893_v55 = vld [vmem:[#allocation2 + $0x169] sm:$0xff] }
 0x2bb   :  { %v1465_v52 = vpop.permute.xlu2 %1464  ;;  %4404 = vmatpush.msra.mxu3 %v3463_v63  ;;  %v4308_v63 = vld [vmem:[%s7192_s0 + $0x1d0] sm:$0xff] }
 0x2bc   :  { %v1461_v46 = vpop.permute.xlu0 %1460  ;;  %1535 = vst.msk [vmem:[#allocation3 + $0xd0] sm:$0xff] %vm1508_vm9, %v1465_v52 }
 0x2bd   :  { %1933 = vrot.lane.b32.xlu1 %v1866_v47, %s4415_s27  ;;  %1533 = vst.msk [vmem:[#allocation3 + $0xc0] sm:$0xff] %vm1508_vm9, %v1461_v46  ;;  %v1879_v46 = vld [vmem:[#allocation2 + $0xc1] sm:$0xff] }
 0x2be   :  { %1793 = vst.msk [vmem:[#allocation2 + $0x151] sm:$0xff] %vm14_vm0, %v4308_v63  ;;  %v2057_v63 = vld [vmem:[#allocation2 + $0x1a] sm:$0xff] }
 0x2bf   :  { %v1463_v49 = vpop.permute.xlu1 %1462 }
 0x2c0   :  { %1534 = vst.msk [vmem:[#allocation3 + $0xc8] sm:$0xff] %vm1508_vm9, %v1463_v49  ;;  %v1889_v49 = vld [vmem:[#allocation2 + $0x139] sm:$0xff] }
 0x2c1   :  { %1665 = vrot.lane.b32.xlu2 %v1571_v44, %s4422_s14  ;;  %v1892_v44 = vld [vmem:[#allocation2 + $0x159] sm:$0xff] }
 0x2c2   :  { %1937 = vrot.lane.b32.xlu0 %v1868_v36, %s4415_s27  ;;  %v4311_v36 = vld [vmem:[%s7192_s0 + $0x1e8] sm:$0xff] }
 0x2c3   :  { %v1471_v45 = vpop.permute.xlu2 %1470  ;;  %1796 = vst.msk [vmem:[#allocation2 + $0x171] sm:$0xff] %vm14_vm0, %v4311_v36  ;;  %v5862_v36 = vld [vmem:[#allocation2 + $0x90] sm:$0xff] }
 0x2c4   :  { %v1467_v42 = vpop.permute.xlu0 %1466  ;;  %1538 = vst.msk [vmem:[#allocation3 + $0xe8] sm:$0xff] %vm1508_vm9, %v1471_v45  ;;  %v1885_v45 = vld [vmem:[#allocation2 + $0x109] sm:$0xff] }
 0x2c5   :  { %1939 = vrot.lane.b32.xlu1 %v1869_v39, %s4415_s27  ;;  %1536 = vst.msk [vmem:[#allocation3 + $0xd8] sm:$0xff] %vm1508_vm9, %v1467_v42  ;;  %v1882_v39 = vld [vmem:[#allocation2 + $0xe1] sm:$0xff] }
 0x2c6   :  { %1843 = vst.msk [vmem:[#allocation3 + $0x160] sm:$0xff] %vm14_vm0, %v5862_v36 }
 0x2c7   :  { %v1469_v0 = vpop.permute.xlu1 %1468 }
 0x2c8   :  { %1537 = vst.msk [vmem:[#allocation3 + $0xe0] sm:$0xff] %vm1508_vm9, %v1469_v0 }
 0x2c9   :  { %1929 = vrot.lane.b32.xlu2 %v1864_v37, %s4415_s27  ;;  %v1800_v37 = vld [vmem:[#allocation2 + $0x8] sm:$0xff] }
 0x2ca   :  { %1943 = vrot.lane.b32.xlu0 %v1871_v9, %s4415_s27  ;;  %1832 = vst.msk [vmem:[#allocation3 + $0x108] sm:$0xff] %vm14_vm0, %v1800_v37  ;;  %v2073_v37 = vld [vmem:[#allocation2 + $0xda] sm:$0xff] }
 0x2cb   :  { %v1606_v51 = vpop.permute.xlu2 %1605 }
 0x2cc   :  { %v1473_v31 = vpop.permute.xlu0 %1472  ;;  %1702 = vst.msk [vmem:[#allocation3] sm:$0xff] %vm1701_vm10, %v1606_v51 }
 0x2cd   :  { %1945 = vrot.lane.b32.xlu1 %v1872_v48, %s4415_s27  ;;  %1539 = vst.msk [vmem:[#allocation3 + $0xf0] sm:$0xff] %vm1508_vm9, %v1473_v31  ;;  %v2055_v31 = vld [vmem:[#allocation2 + $0x2] sm:$0xff] }
 0x2cf   :  { %v1475_v62 = vpop.permute.xlu1 %1474 }
 0x2d0   :  { %1540 = vst.msk [vmem:[#allocation3 + $0xf8] sm:$0xff] %vm1508_vm9, %v1475_v62 }
 0x2d1   :  { %1935 = vrot.lane.b32.xlu2 %v1867_v11, %s4415_s27  ;;  %v2058_v11 = vld [vmem:[#allocation2 + $0x22] sm:$0xff] }
 0x2d2   :  { %1949 = vrot.lane.b32.xlu0 %v1874_v57, %s4415_s27 }
 0x2d3   :  { %v1612_v54 = vpop.permute.xlu2 %1611  ;;  %v3399_v3 = vld [vmem:[#allocation3] sm:$0xff] }
 0x2d4   :  { %v1608_v58 = vpop.permute.xlu0 %1607  ;;  %1705 = vst.msk [vmem:[#allocation3 + $0x18] sm:$0xff] %vm1701_vm10, %v1612_v54  ;;  %4314 = vmatmul.msk.f32.vlgmr.msra.gmra.mxu0 %vm3472_vm11, %v3399_v3  ;;  %v5802_v54 = vld [vmem:[#allocation2 + $0x20] sm:$0xff] }
 0x2d5   :  { %1951 = vrot.lane.b32.xlu1 %v1875_v33, %s4415_s27  ;;  %1703 = vst.msk [vmem:[#allocation3 + $0x8] sm:$0xff] %vm1701_vm10, %v1608_v58  ;;  %v1888_v33 = vld [vmem:[#allocation2 + $0x129] sm:$0xff] }
 0x2d6   :  { %1834 = vst.msk [vmem:[#allocation3 + $0x118] sm:$0xff] %vm14_vm0, %v5802_v54 }
 0x2d7   :  { %v1610_v16 = vpop.permute.xlu1 %1609 }
 0x2d8   :  { %1704 = vst.msk [vmem:[#allocation3 + $0x10] sm:$0xff] %vm1701_vm10, %v1610_v16  ;;  %v5793_v16 = vld [vmem:[#allocation2 + $0x18] sm:$0xff] }
 0x2d9   :  { %1941 = vrot.lane.b32.xlu2 %v1870_v8, %s4415_s27  ;;  %1833 = vst.msk [vmem:[#allocation3 + $0x110] sm:$0xff] %vm14_vm0, %v5793_v16 }
 0x2da   :  { %1955 = vrot.lane.b32.xlu0 %v1877_v4, %s4415_s27  ;;  %v5795_v4 = vld [vmem:[#allocation2 + $0x30] sm:$0xff] }
 0x2db   :  { %v1618_v15 = vpop.permute.xlu2 %1617  ;;  %v3402_v40 = vld [vmem:[#allocation3 + $0x18] sm:$0xff]  ;;  %1835 = vst.msk [vmem:[#allocation3 + $0x120] sm:$0xff] %vm14_vm0, %v5795_v4 }
 0x2dc   :  { %v1614_v61 = vpop.permute.xlu0 %1613  ;;  %v3400_v50 = vld [vmem:[#allocation3 + $0x8] sm:$0xff]  ;;  %1708 = vst.msk [vmem:[#allocation3 + $0x30] sm:$0xff] %vm1701_vm10, %v1618_v15  ;;  %v5822_v15 = vld [vmem:[#allocation2 + $0x48] sm:$0xff] }
 0x2dd   :  { %1957 = vrot.lane.b32.xlu1 %v1878_v13, %s4415_s27  ;;  %1706 = vst.msk [vmem:[#allocation3 + $0x20] sm:$0xff] %vm1701_vm10, %v1614_v61  ;;  %4315 = vmatmul.msk.f32.gmra.mxu0 %vm3472_vm11, %v3400_v50  ;;  %v1891_v61 = vld [vmem:[#allocation2 + $0x151] sm:$0xff] }
 0x2de   :  { %1837 = vst.msk [vmem:[#allocation3 + $0x130] sm:$0xff] %vm14_vm0, %v5822_v15 }
 0x2df   :  { %v1616_v20 = vpop.permute.xlu1 %1615  ;;  %v3401_v28 = vld [vmem:[#allocation3 + $0x10] sm:$0xff] }
 0x2e0   :  { %1707 = vst.msk [vmem:[#allocation3 + $0x28] sm:$0xff] %vm1701_vm10, %v1616_v20  ;;  %v2061_v20 = vld [vmem:[#allocation2 + $0x4a] sm:$0xff] }
 0x2e1   :  { %1947 = vrot.lane.b32.xlu2 %v1873_v23, %s4415_s27  ;;  %v1894_v23 = vld [vmem:[#allocation2 + $0x171] sm:$0xff] }
 0x2e2   :  { %1961 = vrot.lane.b32.xlu0 %v1880_v32, %s4415_s27  ;;  %v5813_v32 = vld [vmem:[#allocation2 + $0x38] sm:$0xff] }
 0x2e3   :  { %v1624_v59 = vpop.permute.xlu2 %1623  ;;  %v3405_v57 = vld [vmem:[#allocation3 + $0x30] sm:$0xff]  ;;  %1836 = vst.msk [vmem:[#allocation3 + $0x128] sm:$0xff] %vm14_vm0, %v5813_v32 }
 0x2e4   :  { %v1620_v1 = vpop.permute.xlu0 %1619  ;;  %1711 = vst.msk [vmem:[#allocation3 + $0x48] sm:$0xff] %vm1701_vm10, %v1624_v59  ;;  %v3403_v53 = vld [vmem:[#allocation3 + $0x20] sm:$0xff]  ;;  %v5835_v59 = vld [vmem:[#allocation2 + $0x78] sm:$0xff] }
 0x2e5   :  { %1963 = vrot.lane.b32.xlu1 %v1881_v22, %s4415_s27  ;;  %1709 = vst.msk [vmem:[#allocation3 + $0x38] sm:$0xff] %vm1701_vm10, %v1620_v1  ;;  %4316 = vmatmul.msk.f32.gmra.mxu0 %vm3472_vm11, %v3401_v28 }
 0x2e6   :  { %1841 = vst.msk [vmem:[#allocation3 + $0x150] sm:$0xff] %vm14_vm0, %v5835_v59 }
 0x2e7   :  { %v1622_v38 = vpop.permute.xlu1 %1621  ;;  %v3404_v9 = vld [vmem:[#allocation3 + $0x28] sm:$0xff] }
 0x2e8   :  { %1710 = vst.msk [vmem:[#allocation3 + $0x40] sm:$0xff] %vm1701_vm10, %v1622_v38 }
 0x2e9   :  { %1953 = vrot.lane.b32.xlu2 %v1876_v12, %s4415_s27  ;;  %v5842_v12 = vld [vmem:[#allocation2 + $0x68] sm:$0xff] }
 0x2ea   :  { %1967 = vrot.lane.b32.xlu0 %v1883_v60, %s4415_s27  ;;  %v2064_v60 = vld [vmem:[#allocation2 + $0x6a] sm:$0xff]  ;;  %1840 = vst.msk [vmem:[#allocation3 + $0x148] sm:$0xff] %vm14_vm0, %v5842_v12 }
 0x2eb   :  { %v1630_v41 = vpop.permute.xlu2 %1629 }
 0x2ec   :  { %v1626_v35 = vpop.permute.xlu0 %1625  ;;  %1714 = vst.msk [vmem:[#allocation3 + $0x60] sm:$0xff] %vm1701_vm10, %v1630_v41  ;;  %v3406_v14 = vld [vmem:[#allocation3 + $0x38] sm:$0xff] }
 0x2ed   :  { %1969 = vrot.lane.b32.xlu1 %v1884_v25, %s4415_s27  ;;  %1712 = vst.msk [vmem:[#allocation3 + $0x50] sm:$0xff] %vm1701_vm10, %v1626_v35  ;;  %4317 = vmatmul.msk.f32.gmra.mxu0 %vm3472_vm11, %v3402_v40  ;;  %v3408_v25 = vld [vmem:[#allocation3 + $0x48] sm:$0xff] }
 0x2ee   :  { %v2065_v35 = vld [vmem:[#allocation2 + $0x7a] sm:$0xff]  ;;  %v2067_v40 = vld [vmem:[#allocation2 + $0x92] sm:$0xff] }
 0x2ef   :  { %v1628_v34 = vpop.permute.xlu1 %1627  ;;  %v3407_v10 = vld [vmem:[#allocation3 + $0x40] sm:$0xff] }
 0x2f0   :  { %1713 = vst.msk [vmem:[#allocation3 + $0x58] sm:$0xff] %vm1701_vm10, %v1628_v34 }
 0x2f1   :  { %1959 = vrot.lane.b32.xlu2 %v1879_v46, %s4415_s27 }
 0x2f2   :  { %1973 = vrot.lane.b32.xlu0 %v1886_v18, %s4415_s27 }
 0x2f3   :  { %v1636_v21 = vpop.permute.xlu2 %1635 }
 0x2f4   :  { %v1632_v47 = vpop.permute.xlu0 %1631  ;;  %1717 = vst.msk [vmem:[#allocation3 + $0x78] sm:$0xff] %vm1701_vm10, %v1636_v21 }
 0x2f5   :  { %1975 = vrot.lane.b32.xlu1 %v1887_v24, %s4415_s27  ;;  %1715 = vst.msk [vmem:[#allocation3 + $0x68] sm:$0xff] %vm1701_vm10, %v1632_v47  ;;  %4318 = vmatmul.msk.f32.gmra.mxu0 %vm3472_vm11, %v3403_v53  ;;  %v5853_v24 = vld [vmem:[#allocation2 + $0x80] sm:$0xff]  ;;  %v5855_v47 = vld [vmem:[#allocation2 + $0x98] sm:$0xff] }
 0x2f6   :  { %1842 = vst.msk [vmem:[#allocation3 + $0x158] sm:$0xff] %vm14_vm0, %v5853_v24 }
 0x2f7   :  { %v1634_v30 = vpop.permute.xlu1 %1633  ;;  %1844 = vst.msk [vmem:[#allocation3 + $0x168] sm:$0xff] %vm14_vm0, %v5855_v47 }
 0x2f8   :  { %1716 = vst.msk [vmem:[#allocation3 + $0x70] sm:$0xff] %vm1701_vm10, %v1634_v30  ;;  %v3409_v30 = vld [vmem:[#allocation3 + $0x50] sm:$0xff] }
 0x2f9   :  { %1965 = vrot.lane.b32.xlu2 %v1882_v39, %s4415_s27  ;;  %v2070_v39 = vld [vmem:[#allocation2 + $0xb2] sm:$0xff] }
 0x2fa   :  { %1979 = vrot.lane.b32.xlu0 %v1889_v49, %s4415_s27  ;;  %v2068_v49 = vld [vmem:[#allocation2 + $0x9a] sm:$0xff] }
 0x2fb   :  { %v1642_v0 = vpop.permute.xlu2 %1641 }
 0x2fc   :  { %v1638_v52 = vpop.permute.xlu0 %1637  ;;  %1720 = vst.msk [vmem:[#allocation3 + $0x90] sm:$0xff] %vm1701_vm10, %v1642_v0 }
 0x2fd   :  { %1981 = vrot.lane.b32.xlu1 %v1890_v26, %s4415_s27  ;;  %1718 = vst.msk [vmem:[#allocation3 + $0x80] sm:$0xff] %vm1701_vm10, %v1638_v52  ;;  %4319 = vmatmul.msk.f32.gmra.mxu0 %vm3472_vm11, %v3404_v9  ;;  %v2060_v26 = vld [vmem:[#allocation2 + $0x3a] sm:$0xff]  ;;  %v3410_v9 = vld [vmem:[#allocation3 + $0x58] sm:$0xff] }
 0x2ff   :  { %v1640_v42 = vpop.permute.xlu1 %1639 }
 0x300   :  { %1719 = vst.msk [vmem:[#allocation3 + $0x88] sm:$0xff] %vm1701_vm10, %v1640_v42  ;;  %v5873_v42 = vld [vmem:[#allocation2 + $0xa8] sm:$0xff] }
 0x301   :  { %1971 = vrot.lane.b32.xlu2 %v1885_v45, %s4415_s27  ;;  %1845 = vst.msk [vmem:[#allocation3 + $0x170] sm:$0xff] %vm14_vm0, %v5873_v42 }
 0x302   :  { %1985 = vrot.lane.b32.xlu0 %v1892_v44, %s4415_s27  ;;  %v5875_v44 = vld [vmem:[#allocation2 + $0xc0] sm:$0xff] }
 0x303   :  { %v1648_v62 = vpop.permute.xlu2 %1647  ;;  %v3417_v13 = vld [vmem:[#allocation3 + $0x90] sm:$0xff]  ;;  %1847 = vst.msk [vmem:[#allocation3 + $0x180] sm:$0xff] %vm14_vm0, %v5875_v44 }
 0x304   :  { %v1644_v19 = vpop.permute.xlu0 %1643  ;;  %v3415_v6 = vld [vmem:[#allocation3 + $0x80] sm:$0xff]  ;;  %1723 = vst.msk [vmem:[#allocation3 + $0xa8] sm:$0xff] %vm1701_vm10, %v1648_v62  ;;  %v5893_v62 = vld [vmem:[#allocation2 + $0xc8] sm:$0xff] }
 0x305   :  { %1987 = vrot.lane.b32.xlu1 %v1893_v55, %s4415_s27  ;;  %1721 = vst.msk [vmem:[#allocation3 + $0x98] sm:$0xff] %vm1701_vm10, %v1644_v19  ;;  %4330 = vmatmul.msk.f32.vlgmr.msra.gmra.mxu1 %vm3472_vm11, %v3415_v6  ;;  %v2071_v55 = vld [vmem:[#allocation2 + $0xc2] sm:$0xff]  ;;  %v5882_v19 = vld [vmem:[#allocation2 + $0xb0] sm:$0xff] }
 0x306   :  { %4320 = vmatmul.msk.f32.gmra.mxu0 %vm3472_vm11, %v3405_v57  ;;  %1846 = vst.msk [vmem:[#allocation3 + $0x178] sm:$0xff] %vm14_vm0, %v5882_v19 }
 0x307   :  { %v1646_v48 = vpop.permute.xlu1 %1645  ;;  %v3416_v51 = vld [vmem:[#allocation3 + $0x88] sm:$0xff]  ;;  %1848 = vst.msk [vmem:[#allocation3 + $0x188] sm:$0xff] %vm14_vm0, %v5893_v62 }
 0x308   :  { %1722 = vst.msk [vmem:[#allocation3 + $0xa0] sm:$0xff] %vm1701_vm10, %v1646_v48  ;;  %v2063_v48 = vld [vmem:[#allocation2 + $0x62] sm:$0xff] }
 0x309   :  { %1977 = vrot.lane.b32.xlu2 %v1888_v33, %s4415_s27 }
 0x30a   :  { %2119 = vrot.lane.b32.xlu0 %v2055_v31, %s4416_s25 }
 0x30b   :  { %v1654_v5 = vpop.permute.xlu2 %1653  ;;  %v3420_v53 = vld [vmem:[#allocation3 + $0xa8] sm:$0xff] }
 0x30c   :  { %v1650_v7 = vpop.permute.xlu0 %1649  ;;  %1726 = vst.msk [vmem:[#allocation3 + $0xc0] sm:$0xff] %vm1701_vm10, %v1654_v5  ;;  %v3418_v1 = vld [vmem:[#allocation3 + $0x98] sm:$0xff] }
 0x30d   :  { %2121 = vrot.lane.b32.xlu1 %v2056_v2, %s4416_s25  ;;  %1724 = vst.msk [vmem:[#allocation3 + $0xb0] sm:$0xff] %vm1701_vm10, %v1650_v7  ;;  %4331 = vmatmul.msk.f32.gmra.mxu1 %vm3472_vm11, %v3416_v51  ;;  %v3411_v2 = vld [vmem:[#allocation3 + $0x60] sm:$0xff]  ;;  %v5900_v7 = vld [vmem:[#allocation2 + $0xe0] sm:$0xff]  ;;  %v5902_v51 = vld [vmem:[#allocation2 + $0xd8] sm:$0xff] }
 0x30e   :  { %4321 = vmatmul.msk.f32.gmra.mxu0 %vm3472_vm11, %v3406_v14  ;;  %1850 = vst.msk [vmem:[#allocation3 + $0x198] sm:$0xff] %vm14_vm0, %v5900_v7  ;;  %v2076_v14 = vld [vmem:[#allocation2 + $0xfa] sm:$0xff] }
 0x30f   :  { %v1652_v58 = vpop.permute.xlu1 %1651  ;;  %v3419_v18 = vld [vmem:[#allocation3 + $0xa0] sm:$0xff]  ;;  %1849 = vst.msk [vmem:[#allocation3 + $0x190] sm:$0xff] %vm14_vm0, %v5902_v51 }
 0x310   :  { %1725 = vst.msk [vmem:[#allocation3 + $0xb8] sm:$0xff] %vm1701_vm10, %v1652_v58 }
 0x311   :  { %1983 = vrot.lane.b32.xlu2 %v1891_v61, %s4415_s27  ;;  %v2077_v61 = vld [vmem:[#allocation2 + $0x10a] sm:$0xff] }
 0x312   :  { %2125 = vrot.lane.b32.xlu0 %v2058_v11, %s4416_s25  ;;  %v2066_v11 = vld [vmem:[#allocation2 + $0x82] sm:$0xff] }
 0x313   :  { %v1660_v50 = vpop.permute.xlu2 %1659 }
 0x314   :  { %v1656_v3 = vpop.permute.xlu0 %1655  ;;  %1729 = vst.msk [vmem:[#allocation3 + $0xd8] sm:$0xff] %vm1701_vm10, %v1660_v50  ;;  %v3421_v45 = vld [vmem:[#allocation3 + $0xb0] sm:$0xff]  ;;  %v3423_v50 = vld [vmem:[#allocation3 + $0xc0] sm:$0xff] }
 0x315   :  { %2127 = vrot.lane.b32.xlu1 %v2059_v56, %s4416_s25  ;;  %1727 = vst.msk [vmem:[#allocation3 + $0xc8] sm:$0xff] %vm1701_vm10, %v1656_v3  ;;  %4332 = vmatmul.msk.f32.gmra.mxu1 %vm3472_vm11, %v3417_v13  ;;  %v5913_v56 = vld [vmem:[#allocation2 + $0xf0] sm:$0xff]  ;;  %v3412_v13 = vld [vmem:[#allocation3 + $0x68] sm:$0xff] }
 0x316   :  { %4322 = vmatmul.msk.f32.gmra.mxu0 %vm3472_vm11, %v3407_v10  ;;  %1851 = vst.msk [vmem:[#allocation3 + $0x1a0] sm:$0xff] %vm14_vm0, %v5913_v56  ;;  %v5922_v10 = vld [vmem:[#allocation2 + $0x108] sm:$0xff] }
 0x317   :  { %v1658_v8 = vpop.permute.xlu1 %1657  ;;  %v3422_v58 = vld [vmem:[#allocation3 + $0xb8] sm:$0xff]  ;;  %1853 = vst.msk [vmem:[#allocation3 + $0x1b0] sm:$0xff] %vm14_vm0, %v5922_v10 }
 0x318   :  { %1728 = vst.msk [vmem:[#allocation3 + $0xd0] sm:$0xff] %vm1701_vm10, %v1658_v8  ;;  %v5918_v8 = vld [vmem:[#allocation2 + $0xf8] sm:$0xff] }
 0x319   :  { %1989 = vrot.lane.b32.xlu2 %v1894_v23, %s4415_s27  ;;  %1852 = vst.msk [vmem:[#allocation3 + $0x1a8] sm:$0xff] %vm14_vm0, %v5918_v8  ;;  %v5933_v23 = vld [vmem:[#allocation2 + $0x110] sm:$0xff] }
 0x31a   :  { %2131 = vrot.lane.b32.xlu0 %v2061_v20, %s4416_s25  ;;  %1854 = vst.msk [vmem:[#allocation3 + $0x1b8] sm:$0xff] %vm14_vm0, %v5933_v23 }
 0x31b   :  { %v1666_v28 = vpop.permute.xlu2 %1665 }
 0x31c   :  { %v1662_v22 = vpop.permute.xlu0 %1661  ;;  %1732 = vst.msk [vmem:[#allocation3 + $0xf0] sm:$0xff] %vm1701_vm10, %v1666_v28  ;;  %v2080_v28 = vld [vmem:[#allocation2 + $0x12a] sm:$0xff] }
 0x31d   :  { %2133 = vrot.lane.b32.xlu1 %v2062_v17, %s4416_s25  ;;  %1730 = vst.msk [vmem:[#allocation3 + $0xe0] sm:$0xff] %vm1701_vm10, %v1662_v22  ;;  %4333 = vmatmul.msk.f32.gmra.mxu1 %vm3472_vm11, %v3418_v1  ;;  %v2069_v17 = vld [vmem:[#allocation2 + $0xaa] sm:$0xff]  ;;  %v2079_v1 = vld [vmem:[#allocation2 + $0x122] sm:$0xff] }
 0x31e   :  { %4323 = vmatmul.msk.f32.gmra.mxu0 %vm3472_vm11, %v3408_v25  ;;  %v5938_v25 = vld [vmem:[#allocation2 + $0x120] sm:$0xff] }
 0x31f   :  { %v1664_v38 = vpop.permute.xlu1 %1663  ;;  %1855 = vst.msk [vmem:[#allocation3 + $0x1c0] sm:$0xff] %vm14_vm0, %v5938_v25 }
 0x320   :  { %1731 = vst.msk [vmem:[#allocation3 + $0xe8] sm:$0xff] %vm1701_vm10, %v1664_v38 }
 0x321   :  { %2123 = vrot.lane.b32.xlu2 %v2057_v63, %s4416_s25  ;;  %v2072_v63 = vld [vmem:[#allocation2 + $0xca] sm:$0xff] }
 0x322   :  { %2137 = vrot.lane.b32.xlu0 %v2064_v60, %s4416_s25  ;;  %v3413_v60 = vld [vmem:[#allocation3 + $0x70] sm:$0xff] }
 0x323   :  { %v1930_v46 = vpop.permute.xlu2 %1929 }
 0x324   :  { %v1668_v34 = vpop.permute.xlu0 %1667  ;;  %2024 = vst.msk [vmem:[#allocation3 + $0x108] sm:$0xff] %vm349_vm3, %v1930_v46  ;;  %v5953_v46 = vld [vmem:[#allocation2 + $0x138] sm:$0xff] }
 0x325   :  { %2139 = vrot.lane.b32.xlu1 %v2065_v35, %s4416_s25  ;;  %1733 = vst.msk [vmem:[#allocation3 + $0xf8] sm:$0xff] %vm1701_vm10, %v1668_v34  ;;  %4334 = vmatmul.msk.f32.gmra.mxu1 %vm3472_vm11, %v3419_v18  ;;  %v3424_v34 = vld [vmem:[#allocation3 + $0xc8] sm:$0xff]  ;;  %v5942_v18 = vld [vmem:[#allocation2 + $0x128] sm:$0xff] }
 0x326   :  { %4324 = vmatmul.msk.f32.gmra.mxu0 %vm3472_vm11, %v3409_v30  ;;  %1856 = vst.msk [vmem:[#allocation3 + $0x1c8] sm:$0xff] %vm14_vm0, %v5942_v18 }
 0x327   :  { %v1928_v41 = vpop.permute.xlu1 %1927  ;;  %1857 = vst.msk [vmem:[#allocation3 + $0x1d0] sm:$0xff] %vm14_vm0, %v5953_v46 }
 0x328   :  { %2023 = vst.msk [vmem:[#allocation3 + $0x100] sm:$0xff] %vm349_vm3, %v1928_v41 }
 0x329   :  { %2129 = vrot.lane.b32.xlu2 %v2060_v26, %s4416_s25 }
 0x32a   :  { %2143 = vrot.lane.b32.xlu0 %v2067_v40, %s4416_s25  ;;  %v2082_v40 = vld [vmem:[#allocation2 + $0x142] sm:$0xff] }
 0x32b   :  { %v1936_v0 = vpop.permute.xlu2 %1935 }
 0x32c   :  { %v1932_v21 = vpop.permute.xlu0 %1931  ;;  %2027 = vst.msk [vmem:[#allocation3 + $0x120] sm:$0xff] %vm349_vm3, %v1936_v0  ;;  %v2075_v0 = vld [vmem:[#allocation2 + $0xf2] sm:$0xff] }
 0x32d   :  { %2145 = vrot.lane.b32.xlu1 %v2068_v49, %s4416_s25  ;;  %2025 = vst.msk [vmem:[#allocation3 + $0x110] sm:$0xff] %vm349_vm3, %v1932_v21  ;;  %4335 = vmatmul.msk.f32.gmra.mxu1 %vm3472_vm11, %v3420_v53  ;;  %v3414_v49 = vld [vmem:[#allocation3 + $0x78] sm:$0xff]  ;;  %v2083_v21 = vld [vmem:[#allocation2 + $0x152] sm:$0xff]  ;;  %v5958_v53 = vld [vmem:[#allocation2 + $0x140] sm:$0xff] }
 0x32e   :  { %4325 = vmatmul.msk.f32.gmra.mxu0 %vm3472_vm11, %v3410_v9  ;;  %1858 = vst.msk [vmem:[#allocation3 + $0x1d8] sm:$0xff] %vm14_vm0, %v5958_v53 }
 0x32f   :  { %v1934_v52 = vpop.permute.xlu1 %1933 }
 0x330   :  { %2026 = vst.msk [vmem:[#allocation3 + $0x118] sm:$0xff] %vm349_vm3, %v1934_v52  ;;  %v3425_v52 = vld [vmem:[#allocation3 + $0xd0] sm:$0xff] }
 0x331   :  { %2135 = vrot.lane.b32.xlu2 %v2063_v48, %s4416_s25 }
 0x332   :  { %2149 = vrot.lane.b32.xlu0 %v2070_v39, %s4416_s25  ;;  %v5962_v39 = vld [vmem:[#allocation2 + $0x150] sm:$0xff] }
 0x333   :  { %v1942_v57 = vpop.permute.xlu2 %1941  ;;  %1859 = vst.msk [vmem:[#allocation3 + $0x1e0] sm:$0xff] %vm14_vm0, %v5962_v39 }
 0x334   :  { %v1938_v6 = vpop.permute.xlu0 %1937  ;;  %2030 = vst.msk [vmem:[#allocation3 + $0x138] sm:$0xff] %vm349_vm3, %v1942_v57 }
 0x335   :  { %2151 = vrot.lane.b32.xlu1 %v2071_v55, %s4416_s25  ;;  %2028 = vst.msk [vmem:[#allocation3 + $0x128] sm:$0xff] %vm349_vm3, %v1938_v6  ;;  %4336 = vmatmul.msk.f32.gmra.mxu1 %vm3472_vm11, %v3421_v45  ;;  %v2085_v55 = vld [vmem:[#allocation2 + $0x16a] sm:$0xff]  ;;  %v5977_v45 = vld [vmem:[#allocation2 + $0x158] sm:$0xff] }
 0x336   :  { %4326 = vmatmul.msk.f32.gmra.mxu0 %vm3472_vm11, %v3411_v2  ;;  %1860 = vst.msk [vmem:[#allocation3 + $0x1e8] sm:$0xff] %vm14_vm0, %v5977_v45  ;;  %v3426_v2 = vld [vmem:[#allocation3 + $0xd8] sm:$0xff] }
 0x337   :  { %v1940_v31 = vpop.permute.xlu1 %1939 }
 0x338   :  { %2029 = vst.msk [vmem:[#allocation3 + $0x130] sm:$0xff] %vm349_vm3, %v1940_v31  ;;  %v2086_v31 = vld [vmem:[#allocation2 + $0x172] sm:$0xff] }
 0x339   :  { %2141 = vrot.lane.b32.xlu2 %v2066_v11, %s4416_s25 }
 0x33a   :  { %2155 = vrot.lane.b32.xlu0 %v2073_v37, %s4416_s25  ;;  %v5982_v37 = vld [vmem:[#allocation2 + $0x168] sm:$0xff] }
 0x33b   :  { %v1948_v3 = vpop.permute.xlu2 %1947  ;;  %1861 = vst.msk [vmem:[#allocation3 + $0x1f0] sm:$0xff] %vm14_vm0, %v5982_v37 }
 0x33c   :  { %v1944_v33 = vpop.permute.xlu0 %1943  ;;  %2033 = vst.msk [vmem:[#allocation3 + $0x150] sm:$0xff] %vm349_vm3, %v1948_v3 }
 0x33d   :  { %2157 = vrot.lane.b32.xlu1 %v2074_v43, %s4416_s25  ;;  %2031 = vst.msk [vmem:[#allocation3 + $0x140] sm:$0xff] %vm349_vm3, %v1944_v33  ;;  %4337 = vmatmul.msk.f32.gmra.mxu1 %vm3472_vm11, %v3422_v58  ;;  %v5985_v43 = vld [vmem:[#allocation2 + $0x170] sm:$0xff] }
 0x33e   :  { %4327 = vmatmul.msk.f32.gmra.mxu0 %vm3472_vm11, %v3412_v13  ;;  %v2078_v58 = vld [vmem:[#allocation2 + $0x112] sm:$0xff]  ;;  %1862 = vst.msk [vmem:[#allocation3 + $0x1f8] sm:$0xff] %vm14_vm0, %v5985_v43 }
 0x33f   :  { %v1946_v5 = vpop.permute.xlu1 %1945 }
 0x340   :  { %2032 = vst.msk [vmem:[#allocation3 + $0x148] sm:$0xff] %vm349_vm3, %v1946_v5 }
 0x341   :  { %2147 = vrot.lane.b32.xlu2 %v2069_v17, %s4416_s25 }
 0x342   :  { %2161 = vrot.lane.b32.xlu0 %v2076_v14, %s4416_s25 }
 0x343   :  { %v1954_v38 = vpop.permute.xlu2 %1953 }
 0x344   :  { %v1950_v20 = vpop.permute.xlu0 %1949  ;;  %2036 = vst.msk [vmem:[#allocation3 + $0x168] sm:$0xff] %vm349_vm3, %v1954_v38  ;;  %v3427_v38 = vld [vmem:[#allocation3 + $0xe0] sm:$0xff] }
 0x345   :  { %2163 = vrot.lane.b32.xlu1 %v2077_v61, %s4416_s25  ;;  %2034 = vst.msk [vmem:[#allocation3 + $0x158] sm:$0xff] %vm349_vm3, %v1950_v20  ;;  %4338 = vmatmul.msk.f32.gmra.mxu1 %vm3472_vm11, %v3423_v50 }
 0x346   :  { %4328 = vmatmul.msk.f32.gmra.mxu0 %vm3472_vm11, %v3413_v60  ;;  %v2081_v60 = vld [vmem:[#allocation2 + $0x13a] sm:$0xff] }
 0x347   :  { %v1952_v22 = vpop.permute.xlu1 %1951 }
 0x348   :  { %2035 = vst.msk [vmem:[#allocation3 + $0x160] sm:$0xff] %vm349_vm3, %v1952_v22 }
 0x349   :  { %2153 = vrot.lane.b32.xlu2 %v2072_v63, %s4416_s25 }
 0x34a   :  { %2167 = vrot.lane.b32.xlu0 %v2079_v1, %s4416_s25 }
 0x34b   :  { %v1960_v30 = vpop.permute.xlu2 %1959 }
 0x34c   :  { %v1956_v35 = vpop.permute.xlu0 %1955  ;;  %2039 = vst.msk [vmem:[#allocation3 + $0x180] sm:$0xff] %vm349_vm3, %v1960_v30 }
 0x34d   :  { %2169 = vrot.lane.b32.xlu1 %v2080_v28, %s4416_s25  ;;  %2037 = vst.msk [vmem:[#allocation3 + $0x170] sm:$0xff] %vm349_vm3, %v1956_v35  ;;  %4339 = vmatmul.msk.f32.gmra.mxu1 %vm3472_vm11, %v3424_v34 }
 0x34e   :  { %4329 = vmatmul.msk.f32.gmra.mxu0 %vm3472_vm11, %v3414_v49  ;;  %v3428_v49 = vld [vmem:[#allocation3 + $0xe8] sm:$0xff] }
 0x34f   :  { %v1958_v41 = vpop.permute.xlu1 %1957 }
 0x350   :  { %2038 = vst.msk [vmem:[#allocation3 + $0x178] sm:$0xff] %vm349_vm3, %v1958_v41 }
 0x351   :  { %v3682_v6 = vpop.f32.mrf.mxu0  ;;  %2159 = vrot.lane.b32.xlu2 %v2075_v0, %s4416_s25 }
 0x352   :  { %2173 = vrot.lane.b32.xlu0 %v2082_v40, %s4416_s25  ;;  %3874 = vst.msk [vmem:[%s7194_s2] sm:$0xff] %vm14_vm0, %v3682_v6  ;;  %v4072_v33 = vmul.f32 %v3682_v6, %v3682_v6  ;;  %v3938_v11 = vsel %vm14_vm0, %v3682_v6, 0.0 }
 0x353   :  { %v1966_v48 = vpop.permute.xlu2 %1965 }
 0x354   :  { %v1962_v26 = vpop.permute.xlu0 %1961  ;;  %2042 = vst.msk [vmem:[#allocation3 + $0x198] sm:$0xff] %vm349_vm3, %v1966_v48  ;;  %v4136_v3 = vsel %vm14_vm0, %v4072_v33, 0.0 }
 0x355   :  { %2175 = vrot.lane.b32.xlu1 %v2083_v21, %s4416_s25  ;;  %2040 = vst.msk [vmem:[#allocation3 + $0x188] sm:$0xff] %vm349_vm3, %v1962_v26  ;;  %4340 = vmatmul.msk.f32.gmra.mxu1 %vm3472_vm11, %v3425_v52  ;;  %v2084_v21 = vld [vmem:[#allocation2 + $0x15a] sm:$0xff] }
 0x357   :  { %v1964_v9 = vpop.permute.xlu1 %1963 }
 0x358   :  { %2041 = vst.msk [vmem:[#allocation3 + $0x190] sm:$0xff] %vm349_vm3, %v1964_v9 }
 0x359   :  { %2165 = vrot.lane.b32.xlu2 %v2078_v58, %s4416_s25 }
 0x35a   :  { %2179 = vrot.lane.b32.xlu0 %v2085_v55, %s4416_s25  ;;  %v3685_v14 = vpop.f32.mrf.mxu0 }
 0x35b   :  { %3875 = vst.msk [vmem:[%s7194_s2 + $0x8] sm:$0xff] %vm14_vm0, %v3685_v14  ;;  %v3939_v13 = vsel %vm14_vm0, %v3685_v14, 0.0  ;;  %v4073_v61 = vmul.f32 %v3685_v14, %v3685_v14  ;;  %v1972_v50 = vpop.permute.xlu2 %1971  ;;  %v3430_v14 = vld [vmem:[#allocation3 + $0xf8] sm:$0xff] }
 0x35c   :  { %v1968_v57 = vpop.permute.xlu0 %1967  ;;  %v3940_v20 = vadd.f32 %v3939_v13, %v3938_v11  ;;  %2045 = vst.msk [vmem:[#allocation3 + $0x1b0] sm:$0xff] %vm349_vm3, %v1972_v50 }
 0x35d   :  { %2181 = vrot.lane.b32.xlu1 %v2086_v31, %s4416_s25  ;;  %2043 = vst.msk [vmem:[#allocation3 + $0x1a0] sm:$0xff] %vm349_vm3, %v1968_v57  ;;  %4341 = vmatmul.msk.f32.gmra.mxu1 %vm3472_vm11, %v3426_v2  ;;  %v4137_v17 = vsel %vm14_vm0, %v4073_v61, 0.0  ;;  %v3429_v31 = vld [vmem:[#allocation3 + $0xf0] sm:$0xff] }
 0x35e   :  { %v4138_v22 = vadd.f32 %v4137_v17, %v4136_v3 }
 0x35f   :  { %v1970_v5 = vpop.permute.xlu1 %1969 }
 0x360   :  { %2044 = vst.msk [vmem:[#allocation3 + $0x1a8] sm:$0xff] %vm349_vm3, %v1970_v5 }
 0x361   :  { %2171 = vrot.lane.b32.xlu2 %v2081_v60, %s4416_s25 }
 0x362   :  { %2313 = vrot.lane.b32.xlu0 %v5802_v54, %s4417_s26  ;;  %v3688_v35 = vpop.f32.mrf.mxu0 }
 0x363   :  { %3876 = vst.msk [vmem:[%s7194_s2 + $0x10] sm:$0xff] %vm14_vm0, %v3688_v35  ;;  %v3941_v54 = vsel %vm14_vm0, %v3688_v35, 0.0  ;;  %v4074_v34 = vmul.f32 %v3688_v35, %v3688_v35  ;;  %v1978_v63 = vpop.permute.xlu2 %1977 }
 0x364   :  { %v1974_v1 = vpop.permute.xlu0 %1973  ;;  %2048 = vst.msk [vmem:[#allocation3 + $0x1c8] sm:$0xff] %vm349_vm3, %v1978_v63 }
 0x365   :  { %2315 = vrot.lane.b32.xlu1 %v5795_v4, %s4417_s26  ;;  %2046 = vst.msk [vmem:[#allocation3 + $0x1b8] sm:$0xff] %vm349_vm3, %v1974_v1  ;;  %4342 = vmatmul.msk.f32.gmra.mxu1 %vm3472_vm11, %v3427_v38  ;;  %v3942_v4 = vadd.f32 %v3941_v54, %v3940_v20  ;;  %v4139_v41 = vsel %vm14_vm0, %v4074_v34, 0.0 }
 0x366   :  { %v4140_v40 = vadd.f32 %v4139_v41, %v4138_v22 }
 0x367   :  { %v1976_v28 = vpop.permute.xlu1 %1975 }
 0x368   :  { %2047 = vst.msk [vmem:[#allocation3 + $0x1c0] sm:$0xff] %vm349_vm3, %v1976_v28 }
 0x369   :  { %2177 = vrot.lane.b32.xlu2 %v2084_v21, %s4416_s25 }
 0x36a   :  { %2319 = vrot.lane.b32.xlu0 %v5822_v15, %s4417_s26  ;;  %v3691_v52 = vpop.f32.mrf.mxu0 }
 0x36b   :  { %3877 = vst.msk [vmem:[%s7194_s2 + $0x18] sm:$0xff] %vm14_vm0, %v3691_v52  ;;  %v3943_v15 = vsel %vm14_vm0, %v3691_v52, 0.0  ;;  %v4075_v0 = vmul.f32 %v3691_v52, %v3691_v52  ;;  %v1984_v9 = vpop.permute.xlu2 %1983 }
 0x36c   :  { %v1980_v30 = vpop.permute.xlu0 %1979  ;;  %2051 = vst.msk [vmem:[#allocation3 + $0x1e0] sm:$0xff] %vm349_vm3, %v1984_v9 }
 0x36d   :  { %2321 = vrot.lane.b32.xlu1 %v5815_v27, %s4417_s26  ;;  %2049 = vst.msk [vmem:[#allocation3 + $0x1d0] sm:$0xff] %vm349_vm3, %v1980_v30  ;;  %4343 = vmatmul.msk.f32.gmra.mxu1 %vm3472_vm11, %v3428_v49  ;;  %v3944_v27 = vadd.f32 %v3943_v15, %v3942_v4  ;;  %v4141_v55 = vsel %vm14_vm0, %v4075_v0, 0.0 }
 0x36e   :  { %v4142_v6 = vadd.f32 %v4141_v55, %v4140_v40 }
 0x36f   :  { %v1982_v26 = vpop.permute.xlu1 %1981 }
 0x370   :  { %2050 = vst.msk [vmem:[#allocation3 + $0x1d8] sm:$0xff] %vm349_vm3, %v1982_v26 }
 0x371   :  { %2311 = vrot.lane.b32.xlu2 %v5793_v16, %s4417_s26 }
 0x372   :  { %2325 = vrot.lane.b32.xlu0 %v5842_v12, %s4417_s26  ;;  %v3694_v2 = vpop.f32.mrf.mxu0 }
 0x373   :  { %3878 = vst.msk [vmem:[%s7194_s2 + $0x20] sm:$0xff] %vm14_vm0, %v3694_v2  ;;  %v3945_v12 = vsel %vm14_vm0, %v3694_v2, 0.0  ;;  %v4076_v33 = vmul.f32 %v3694_v2, %v3694_v2  ;;  %v1990_v58 = vpop.permute.xlu2 %1989 }
 0x374   :  { %v1986_v48 = vpop.permute.xlu0 %1985  ;;  %2054 = vst.msk [vmem:[#allocation3 + $0x1f8] sm:$0xff] %vm349_vm3, %v1990_v58 }
 0x375   :  { %2327 = vrot.lane.b32.xlu1 %v5835_v59, %s4417_s26  ;;  %2052 = vst.msk [vmem:[#allocation3 + $0x1e8] sm:$0xff] %vm349_vm3, %v1986_v48  ;;  %4344 = vmatmul.msk.f32.gmra.mxu1 %vm3472_vm11, %v3429_v31  ;;  %v3946_v59 = vadd.f32 %v3945_v12, %v3944_v27  ;;  %v4143_v11 = vsel %vm14_vm0, %v4076_v33, 0.0 }
 0x376   :  { %v4144_v16 = vadd.f32 %v4143_v11, %v4142_v6 }
 0x377   :  { %v1988_v57 = vpop.permute.xlu1 %1987 }
 0x378   :  { %2053 = vst.msk [vmem:[#allocation3 + $0x1f0] sm:$0xff] %vm349_vm3, %v1988_v57 }
 0x379   :  { %2317 = vrot.lane.b32.xlu2 %v5813_v32, %s4417_s26 }
 0x37a   :  { %2331 = vrot.lane.b32.xlu0 %v5862_v36, %s4417_s26  ;;  %v3697_v13 = vpop.f32.mrf.mxu0 }
 0x37b   :  { %3879 = vst.msk [vmem:[%s7194_s2 + $0x28] sm:$0xff] %vm14_vm0, %v3697_v13  ;;  %v3947_v36 = vsel %vm14_vm0, %v3697_v13, 0.0  ;;  %v4077_v61 = vmul.f32 %v3697_v13, %v3697_v13  ;;  %v2124_v20 = vpop.permute.xlu2 %2123 }
 0x37c   :  { %v2120_v5 = vpop.permute.xlu0 %2119  ;;  %2217 = vst.msk [vmem:[#allocation3 + $0x110] sm:$0xff] %vm542_vm4, %v2124_v20 }
 0x37d   :  { %2333 = vrot.lane.b32.xlu1 %v5855_v47, %s4417_s26  ;;  %2215 = vst.msk [vmem:[#allocation3 + $0x100] sm:$0xff] %vm542_vm4, %v2120_v5  ;;  %4345 = vmatmul.msk.f32.gmra.mxu1 %vm3472_vm11, %v3430_v14  ;;  %v3948_v47 = vadd.f32 %v3947_v36, %v3946_v59  ;;  %v4145_v17 = vsel %vm14_vm0, %v4077_v61, 0.0  ;;  %v2278_v36 = vld [vmem:[#allocation2 + $0x188] sm:$0xff] }
 0x37e   :  { %v4146_v32 = vadd.f32 %v4145_v17, %v4144_v16 }
 0x37f   :  { %v2122_v3 = vpop.permute.xlu1 %2121 }
 0x380   :  { %2216 = vst.msk [vmem:[#allocation3 + $0x108] sm:$0xff] %vm542_vm4, %v2122_v3 }
 0x381   :  { %2323 = vrot.lane.b32.xlu2 %v5833_v29, %s4417_s26 }
 0x382   :  { %v6065_v50 = vpop.f32.mrf.mxu1  ;;  %2337 = vrot.lane.b32.xlu0 %v5882_v19, %s4417_s26 }
 0x383   :  { %3890 = vst.msk [vmem:[%s7194_s2 + $0x80] sm:$0xff] %vm14_vm0, %v6065_v50  ;;  %v3700_v38 = vpop.f32.mrf.mxu0  ;;  %v2130_v35 = vpop.permute.xlu2 %2129 }
 0x384   :  { %v2126_v22 = vpop.permute.xlu0 %2125  ;;  %3880 = vst.msk [vmem:[%s7194_s2 + $0x30] sm:$0xff] %vm14_vm0, %v3700_v38  ;;  %v3949_v19 = vsel %vm14_vm0, %v3700_v38, 0.0  ;;  %v4078_v60 = vmul.f32 %v3700_v38, %v3700_v38 }
 0x385   :  { %2339 = vrot.lane.b32.xlu1 %v5875_v44, %s4417_s26  ;;  %2218 = vst.msk [vmem:[#allocation3 + $0x118] sm:$0xff] %vm542_vm4, %v2126_v22  ;;  %v3950_v28 = vadd.f32 %v3949_v19, %v3948_v47  ;;  %v6209_v19 = vld [vmem:[#allocation2 + $0x31] sm:$0xff] }
 0x386   :  { %v4147_v54 = vsel %vm14_vm0, %v4078_v60, 0.0  ;;  %2220 = vst.msk [vmem:[#allocation3 + $0x128] sm:$0xff] %vm542_vm4, %v2130_v35 }
 0x387   :  { %v2128_v1 = vpop.permute.xlu1 %2127  ;;  %v4148_v29 = vadd.f32 %v4147_v54, %v4146_v32  ;;  %v2439_v32 = vld [vmem:[#allocation2 + $0x19] sm:$0xff] }
 0x388   :  { %2219 = vst.msk [vmem:[#allocation3 + $0x120] sm:$0xff] %vm542_vm4, %v2128_v1 }
 0x389   :  { %2329 = vrot.lane.b32.xlu2 %v5853_v24, %s4417_s26 }
 0x38a   :  { %v6087_v44 = vpop.f32.mrf.mxu1  ;;  %2343 = vrot.lane.b32.xlu0 %v5902_v51, %s4417_s26 }
 0x38b   :  { %3891 = vst.msk [vmem:[%s7194_s2 + $0x88] sm:$0xff] %vm14_vm0, %v6087_v44  ;;  %v3703_v63 = vpop.f32.mrf.mxu0  ;;  %v2136_v30 = vpop.permute.xlu2 %2135 }
 0x38c   :  { %v2132_v34 = vpop.permute.xlu0 %2131  ;;  %3881 = vst.msk [vmem:[%s7194_s2 + $0x38] sm:$0xff] %vm14_vm0, %v3703_v63  ;;  %v3951_v51 = vsel %vm14_vm0, %v3703_v63, 0.0  ;;  %v4079_v41 = vmul.f32 %v3703_v63, %v3703_v63 }
 0x38d   :  { %2345 = vrot.lane.b32.xlu1 %v5900_v7, %s4417_s26  ;;  %2221 = vst.msk [vmem:[#allocation3 + $0x130] sm:$0xff] %vm542_vm4, %v2132_v34  ;;  %v3952_v40 = vadd.f32 %v3951_v51, %v3950_v28 }
 0x38e   :  { %v4149_v49 = vsel %vm14_vm0, %v4079_v41, 0.0  ;;  %2223 = vst.msk [vmem:[#allocation3 + $0x140] sm:$0xff] %vm542_vm4, %v2136_v30 }
 0x38f   :  { %v2134_v4 = vpop.permute.xlu1 %2133  ;;  %v4150_v24 = vadd.f32 %v4149_v49, %v4148_v29 }
 0x390   :  { %2222 = vst.msk [vmem:[#allocation3 + $0x138] sm:$0xff] %vm542_vm4, %v2134_v4  ;;  %v6223_v4 = vld [vmem:[#allocation2 + $0x39] sm:$0xff] }
 0x391   :  { %2335 = vrot.lane.b32.xlu2 %v5873_v42, %s4417_s26 }
 0x392   :  { %v6109_v7 = vpop.f32.mrf.mxu1  ;;  %2349 = vrot.lane.b32.xlu0 %v5918_v8, %s4417_s26 }
 0x393   :  { %3892 = vst.msk [vmem:[%s7194_s2 + $0x90] sm:$0xff] %vm14_vm0, %v6109_v7  ;;  %v3706_v52 = vpop.f32.mrf.mxu0  ;;  %v2142_v27 = vpop.permute.xlu2 %2141 }
 0x394   :  { %v2138_v21 = vpop.permute.xlu0 %2137  ;;  %3882 = vst.msk [vmem:[%s7194_s2 + $0x40] sm:$0xff] %vm14_vm0, %v3706_v52  ;;  %v3953_v8 = vsel %vm14_vm0, %v3706_v52, 0.0  ;;  %v4080_v15 = vmul.f32 %v3706_v52, %v3706_v52 }
 0x395   :  { %2351 = vrot.lane.b32.xlu1 %v5922_v10, %s4417_s26  ;;  %2224 = vst.msk [vmem:[#allocation3 + $0x148] sm:$0xff] %vm542_vm4, %v2138_v21  ;;  %v3954_v0 = vadd.f32 %v3953_v8, %v3952_v40  ;;  %v6235_v40 = vld [vmem:[#allocation2 + $0x51] sm:$0xff]  ;;  %v6249_v8 = vld [vmem:[#allocation2 + $0x61] sm:$0xff] }
 0x396   :  { %v4151_v9 = vsel %vm14_vm0, %v4080_v15, 0.0  ;;  %2226 = vst.msk [vmem:[#allocation3 + $0x158] sm:$0xff] %vm542_vm4, %v2142_v27  ;;  %v2277_v27 = vld [vmem:[#allocation2 + $0x180] sm:$0xff] }
 0x397   :  { %v2140_v26 = vpop.permute.xlu1 %2139  ;;  %v4152_v42 = vadd.f32 %v4151_v9, %v4150_v24 }
 0x398   :  { %2225 = vst.msk [vmem:[#allocation3 + $0x150] sm:$0xff] %vm542_vm4, %v2140_v26 }
 0x399   :  { %2341 = vrot.lane.b32.xlu2 %v5893_v62, %s4417_s26 }
 0x39a   :  { %v6131_v10 = vpop.f32.mrf.mxu1  ;;  %2355 = vrot.lane.b32.xlu0 %v5938_v25, %s4417_s26 }
 0x39b   :  { %3893 = vst.msk [vmem:[%s7194_s2 + $0x98] sm:$0xff] %vm14_vm0, %v6131_v10  ;;  %v3709_v48 = vpop.f32.mrf.mxu0  ;;  %v2148_v2 = vpop.permute.xlu2 %2147 }
 0x39c   :  { %v2144_v55 = vpop.permute.xlu0 %2143  ;;  %3883 = vst.msk [vmem:[%s7194_s2 + $0x48] sm:$0xff] %vm14_vm0, %v3709_v48  ;;  %v3955_v25 = vsel %vm14_vm0, %v3709_v48, 0.0  ;;  %v4081_v31 = vmul.f32 %v3709_v48, %v3709_v48 }
 0x39d   :  { %2357 = vrot.lane.b32.xlu1 %v5942_v18, %s4417_s26  ;;  %2227 = vst.msk [vmem:[#allocation3 + $0x160] sm:$0xff] %vm542_vm4, %v2144_v55  ;;  %v3956_v57 = vadd.f32 %v3955_v25, %v3954_v0 }
 0x39e   :  { %v4153_v12 = vsel %vm14_vm0, %v4081_v31, 0.0  ;;  %2229 = vst.msk [vmem:[#allocation3 + $0x170] sm:$0xff] %vm542_vm4, %v2148_v2  ;;  %v6274_v2 = vld [vmem:[#allocation2 + $0x81] sm:$0xff] }
 0x39f   :  { %v2146_v6 = vpop.permute.xlu1 %2145  ;;  %v4154_v62 = vadd.f32 %v4153_v12, %v4152_v42  ;;  %v6261_v42 = vld [vmem:[#allocation2 + $0x79] sm:$0xff] }
 0x3a0   :  { %2228 = vst.msk [vmem:[#allocation3 + $0x168] sm:$0xff] %vm542_vm4, %v2146_v6 }
 0x3a1   :  { %2347 = vrot.lane.b32.xlu2 %v5913_v56, %s4417_s26 }
 0x3a2   :  { %v6153_v18 = vpop.f32.mrf.mxu1  ;;  %2361 = vrot.lane.b32.xlu0 %v5958_v53, %s4417_s26 }
 0x3a3   :  { %3894 = vst.msk [vmem:[%s7194_s2 + $0xa0] sm:$0xff] %vm14_vm0, %v6153_v18  ;;  %v3712_v58 = vpop.f32.mrf.mxu0  ;;  %v2154_v5 = vpop.permute.xlu2 %2153 }
 0x3a4   :  { %v2150_v33 = vpop.permute.xlu0 %2149  ;;  %3884 = vst.msk [vmem:[%s7194_s2 + $0x50] sm:$0xff] %vm14_vm0, %v3712_v58  ;;  %v3957_v53 = vsel %vm14_vm0, %v3712_v58, 0.0  ;;  %v4082_v11 = vmul.f32 %v3712_v58, %v3712_v58 }
 0x3a5   :  { %2363 = vrot.lane.b32.xlu1 %v5962_v39, %s4417_s26  ;;  %2230 = vst.msk [vmem:[#allocation3 + $0x178] sm:$0xff] %vm542_vm4, %v2150_v33  ;;  %v3958_v16 = vadd.f32 %v3957_v53, %v3956_v57  ;;  %v6286_v53 = vld [vmem:[#allocation2 + $0x99] sm:$0xff] }
 0x3a6   :  { %v4155_v14 = vsel %vm14_vm0, %v4082_v11, 0.0  ;;  %2232 = vst.msk [vmem:[#allocation3 + $0x188] sm:$0xff] %vm542_vm4, %v2154_v5 }
 0x3a7   :  { %v2152_v59 = vpop.permute.xlu1 %2151  ;;  %v4156_v56 = vadd.f32 %v4155_v14, %v4154_v62 }
 0x3a8   :  { %2231 = vst.msk [vmem:[#allocation3 + $0x180] sm:$0xff] %vm542_vm4, %v2152_v59  ;;  %v2440_v59 = vld [vmem:[#allocation2 + $0x21] sm:$0xff] }
 0x3a9   :  { %2353 = vrot.lane.b32.xlu2 %v5933_v23, %s4417_s26 }
 0x3aa   :  { %v6175_v39 = vpop.f32.mrf.mxu1  ;;  %2367 = vrot.lane.b32.xlu0 %v5982_v37, %s4417_s26 }
 0x3ab   :  { %3895 = vst.msk [vmem:[%s7194_s2 + $0xa8] sm:$0xff] %vm14_vm0, %v6175_v39  ;;  %v3715_v37 = vpop.f32.mrf.mxu0 }
 0x3ac   :  { %v2156_v3 = vpop.permute.xlu0 %2155  ;;  %3885 = vst.msk [vmem:[%s7194_s2 + $0x58] sm:$0xff] %vm14_vm0, %v3715_v37  ;;  %v3959_v61 = vsel %vm14_vm0, %v3715_v37, 0.0  ;;  %v4083_v47 = vmul.f32 %v3715_v37, %v3715_v37  ;;  %v3969_v37 = vsel %vm14_vm0, %v6065_v50, 0.0 }
 0x3ad   :  { %2369 = vrot.lane.b32.xlu1 %v5985_v43, %s4417_s26  ;;  %2233 = vst.msk [vmem:[#allocation3 + $0x190] sm:$0xff] %vm542_vm4, %v2156_v3  ;;  %v3960_v20 = vadd.f32 %v3959_v61, %v3958_v16  ;;  %v2160_v43 = vpop.permute.xlu2 %2159  ;;  %v4088_v16 = vmul.f32 %v6065_v50, %v6065_v50  ;;  %v4089_v61 = vmul.f32 %v6087_v44, %v6087_v44  ;;  %v3971_v50 = vsel %vm14_vm0, %v6087_v44, 0.0 }
 0x3ae   :  { %v4157_v22 = vsel %vm14_vm0, %v4083_v47, 0.0  ;;  %2235 = vst.msk [vmem:[#allocation3 + $0x1a0] sm:$0xff] %vm542_vm4, %v2160_v43  ;;  %v4091_v44 = vmul.f32 %v6131_v10, %v6131_v10 }
 0x3af   :  { %v2158_v13 = vpop.permute.xlu1 %2157  ;;  %v4158_v23 = vadd.f32 %v4157_v22, %v4156_v56  ;;  %v4167_v22 = vsel %vm14_vm0, %v4088_v16, 0.0 }
 0x3b0   :  { %2234 = vst.msk [vmem:[#allocation3 + $0x198] sm:$0xff] %vm542_vm4, %v2158_v13 }
 0x3b1   :  { %2359 = vrot.lane.b32.xlu2 %v5953_v46, %s4417_s26 }
 0x3b2   :  { %v6197_v17 = vpop.f32.mrf.mxu1  ;;  %2373 = vrot.lane.b32.xlu0 %v2278_v36, %s4417_s26  ;;  %v6301_v36 = vld [vmem:[#allocation2 + $0xa9] sm:$0xff] }
 0x3b3   :  { %3896 = vst.msk [vmem:[%s7194_s2 + $0xb0] sm:$0xff] %vm14_vm0, %v6197_v17  ;;  %v3718_v60 = vpop.f32.mrf.mxu0 }
 0x3b4   :  { %v2162_v1 = vpop.permute.xlu0 %2161  ;;  %3886 = vst.msk [vmem:[%s7194_s2 + $0x60] sm:$0xff] %vm14_vm0, %v3718_v60  ;;  %v3961_v28 = vsel %vm14_vm0, %v3718_v60, 0.0  ;;  %v4084_v35 = vmul.f32 %v3718_v60, %v3718_v60 }
 0x3b5   :  { %2503 = vrot.lane.b32.xlu1 %v2439_v32, %s4418_s6  ;;  %2236 = vst.msk [vmem:[#allocation3 + $0x1a8] sm:$0xff] %vm542_vm4, %v2162_v1  ;;  %v3962_v54 = vadd.f32 %v3961_v28, %v3960_v20  ;;  %v2166_v29 = vpop.permute.xlu2 %2165  ;;  %v6321_v1 = vld [vmem:[#allocation2 + $0x49] sm:$0xff]  ;;  %v4169_v28 = vsel %vm14_vm0, %v4089_v61, 0.0  ;;  %v6377_v61 = vld [vmem:[#allocation2 + $0xf1] sm:$0xff] }
 0x3b6   :  { %v4159_v46 = vsel %vm14_vm0, %v4084_v35, 0.0  ;;  %2238 = vst.msk [vmem:[#allocation3 + $0x1b8] sm:$0xff] %vm542_vm4, %v2166_v29  ;;  %v3973_v35 = vsel %vm14_vm0, %v6109_v7, 0.0  ;;  %v6329_v29 = vld [vmem:[#allocation2 + $0xc1] sm:$0xff] }
 0x3b7   :  { %v2164_v38 = vpop.permute.xlu1 %2163  ;;  %v4160_v63 = vadd.f32 %v4159_v46, %v4158_v23  ;;  %v4090_v23 = vmul.f32 %v6109_v7, %v6109_v7  ;;  %v4092_v7 = vmul.f32 %v6153_v18, %v6153_v18 }
 0x3b8   :  { %2237 = vst.msk [vmem:[#allocation3 + $0x1b0] sm:$0xff] %vm542_vm4, %v2164_v38 }
 0x3b9   :  { %2365 = vrot.lane.b32.xlu2 %v5977_v45, %s4417_s26 }
 0x3ba   :  { %v6219_v34 = vpop.f32.mrf.mxu1  ;;  %2507 = vrot.lane.b32.xlu0 %v6209_v19, %s4418_s6 }
 0x3bb   :  { %3897 = vst.msk [vmem:[%s7194_s2 + $0xb8] sm:$0xff] %vm14_vm0, %v6219_v34  ;;  %v3721_v30 = vpop.f32.mrf.mxu0 }
 0x3bc   :  { %v2168_v51 = vpop.permute.xlu0 %2167  ;;  %3887 = vst.msk [vmem:[%s7194_s2 + $0x68] sm:$0xff] %vm14_vm0, %v3721_v30  ;;  %v3963_v49 = vsel %vm14_vm0, %v3721_v30, 0.0  ;;  %v4085_v24 = vmul.f32 %v3721_v30, %v3721_v30 }
 0x3bd   :  { %2509 = vrot.lane.b32.xlu1 %v6223_v4, %s4418_s6  ;;  %2239 = vst.msk [vmem:[#allocation3 + $0x1c0] sm:$0xff] %vm542_vm4, %v2168_v51  ;;  %v3964_v21 = vadd.f32 %v3963_v49, %v3962_v54  ;;  %v2172_v26 = vpop.permute.xlu2 %2171  ;;  %v4171_v51 = vsel %vm14_vm0, %v4090_v23, 0.0 }
 0x3be   :  { %v4161_v45 = vsel %vm14_vm0, %v4085_v24, 0.0  ;;  %2241 = vst.msk [vmem:[#allocation3 + $0x1d0] sm:$0xff] %vm542_vm4, %v2172_v26  ;;  %v2454_v26 = vld [vmem:[#allocation2 + $0xc9] sm:$0xff] }
 0x3bf   :  { %v2170_v41 = vpop.permute.xlu1 %2169  ;;  %v4162_v15 = vadd.f32 %v4161_v45, %v4160_v63  ;;  %v4173_v45 = vsel %vm14_vm0, %v4091_v44, 0.0 }
 0x3c0   :  { %2240 = vst.msk [vmem:[#allocation3 + $0x1c8] sm:$0xff] %vm542_vm4, %v2170_v41  ;;  %v3975_v41 = vsel %vm14_vm0, %v6131_v10, 0.0  ;;  %v4093_v10 = vmul.f32 %v6175_v39, %v6175_v39 }
 0x3c1   :  { %2371 = vrot.lane.b32.xlu2 %v2277_v27, %s4417_s26 }
 0x3c2   :  { %v6245_v52 = vpop.f32.mrf.mxu1  ;;  %2513 = vrot.lane.b32.xlu0 %v6235_v40, %s4418_s6 }
 0x3c3   :  { %3898 = vst.msk [vmem:[%s7194_s2 + $0xc0] sm:$0xff] %vm14_vm0, %v6245_v52  ;;  %v3724_v55 = vpop.f32.mrf.mxu0 }
 0x3c4   :  { %v2174_v0 = vpop.permute.xlu0 %2173  ;;  %3888 = vst.msk [vmem:[%s7194_s2 + $0x70] sm:$0xff] %vm14_vm0, %v3724_v55  ;;  %v3965_v6 = vsel %vm14_vm0, %v3724_v55, 0.0  ;;  %v4086_v48 = vmul.f32 %v3724_v55, %v3724_v55  ;;  %v4175_v55 = vsel %vm14_vm0, %v4092_v7, 0.0 }
 0x3c5   :  { %2515 = vrot.lane.b32.xlu1 %v6249_v8, %s4418_s6  ;;  %2242 = vst.msk [vmem:[#allocation3 + $0x1d8] sm:$0xff] %vm542_vm4, %v2174_v0  ;;  %v3966_v25 = vadd.f32 %v3965_v6, %v3964_v21  ;;  %v2178_v31 = vpop.permute.xlu2 %2177  ;;  %v3979_v6 = vsel %vm14_vm0, %v6175_v39, 0.0 }
 0x3c6   :  { %v4163_v12 = vsel %vm14_vm0, %v4086_v48, 0.0  ;;  %2244 = vst.msk [vmem:[#allocation3 + $0x1e8] sm:$0xff] %vm542_vm4, %v2178_v31  ;;  %v6360_v48 = vld [vmem:[#allocation2 + $0x69] sm:$0xff] }
 0x3c7   :  { %v2176_v9 = vpop.permute.xlu1 %2175  ;;  %v4164_v62 = vadd.f32 %v4163_v12, %v4162_v15  ;;  %v3977_v15 = vsel %vm14_vm0, %v6153_v18, 0.0  ;;  %v4094_v18 = vmul.f32 %v6197_v17, %v6197_v17  ;;  %v4177_v12 = vsel %vm14_vm0, %v4093_v10, 0.0 }
 0x3c8   :  { %2243 = vst.msk [vmem:[#allocation3 + $0x1e0] sm:$0xff] %vm542_vm4, %v2176_v9 }
 0x3c9   :  { %2505 = vrot.lane.b32.xlu2 %v2440_v59, %s4418_s6  ;;  %v2456_v59 = vld [vmem:[#allocation2 + $0xe1] sm:$0xff]  ;;  %v4179_v16 = vsel %vm14_vm0, %v4094_v18, 0.0 }
 0x3ca   :  { %v6270_v57 = vpop.f32.mrf.mxu1  ;;  %2519 = vrot.lane.b32.xlu0 %v6261_v42, %s4418_s6 }
 0x3cb   :  { %3899 = vst.msk [vmem:[%s7194_s2 + $0xc8] sm:$0xff] %vm14_vm0, %v6270_v57  ;;  %v3727_v11 = vpop.f32.mrf.mxu0  ;;  %v3987_v23 = vsel %vm14_vm0, %v6270_v57, 0.0 }
 0x3cc   :  { %v2180_v33 = vpop.permute.xlu0 %2179  ;;  %3889 = vst.msk [vmem:[%s7194_s2 + $0x78] sm:$0xff] %vm14_vm0, %v3727_v11  ;;  %v3967_v5 = vsel %vm14_vm0, %v3727_v11, 0.0  ;;  %v4087_v14 = vmul.f32 %v3727_v11, %v3727_v11 }
 0x3cd   :  { %2521 = vrot.lane.b32.xlu1 %v6274_v2, %s4418_s6  ;;  %2245 = vst.msk [vmem:[#allocation3 + $0x1f0] sm:$0xff] %vm542_vm4, %v2180_v33  ;;  %v3968_v56 = vadd.f32 %v3967_v5, %v3966_v25  ;;  %v2312_v3 = vpop.permute.xlu2 %2311  ;;  %v4095_v33 = vmul.f32 %v6219_v34, %v6219_v34  ;;  %v3983_v5 = vsel %vm14_vm0, %v6219_v34, 0.0 }
 0x3ce   :  { %v4165_v47 = vsel %vm14_vm0, %v4087_v14, 0.0  ;;  %2407 = vst.msk [vmem:[#allocation3 + $0x100] sm:$0xff] %vm735_vm5, %v2312_v3 }
 0x3cf   :  { %v2182_v58 = vpop.permute.xlu1 %2181  ;;  %v3970_v20 = vadd.f32 %v3969_v37, %v3968_v56  ;;  %v4166_v43 = vadd.f32 %v4165_v47, %v4164_v62  ;;  %v3981_v62 = vsel %vm14_vm0, %v6197_v17, 0.0  ;;  %v4096_v17 = vmul.f32 %v6245_v52, %v6245_v52 }
 0x3d0   :  { %2246 = vst.msk [vmem:[#allocation3 + $0x1f8] sm:$0xff] %vm542_vm4, %v2182_v58  ;;  %v4181_v47 = vsel %vm14_vm0, %v4095_v33, 0.0  ;;  %v6431_v33 = vld [vmem:[#allocation2 + $0x129] sm:$0xff] }
 0x3d1   :  { %v3972_v38 = vadd.f32 %v3971_v50, %v3970_v20  ;;  %v4168_v60 = vadd.f32 %v4167_v22, %v4166_v43  ;;  %2511 = vrot.lane.b32.xlu2 %v6321_v1, %s4418_s6  ;;  %v3985_v20 = vsel %vm14_vm0, %v6245_v52, 0.0  ;;  %v4097_v43 = vmul.f32 %v6270_v57, %v6270_v57 }
 0x3d2   :  { %v6297_v13 = vpop.f32.mrf.mxu1  ;;  %2525 = vrot.lane.b32.xlu0 %v6286_v53, %s4418_s6  ;;  %v4183_v50 = vsel %vm14_vm0, %v4096_v17, 0.0 }
 0x3d3   :  { %3900 = vst.msk [vmem:[%s7194_s2 + $0xd0] sm:$0xff] %vm14_vm0, %v6297_v13  ;;  %v3974_v46 = vadd.f32 %v3973_v35, %v3972_v38  ;;  %v4170_v63 = vadd.f32 %v4169_v28, %v4168_v60  ;;  %v4098_v52 = vmul.f32 %v6297_v13, %v6297_v13  ;;  %v6396_v38 = vld [vmem:[#allocation2 + $0x91] sm:$0xff]  ;;  %v4185_v35 = vsel %vm14_vm0, %v4097_v43, 0.0 }
 0x3d4   :  { %v2314_v32 = vpop.permute.xlu0 %2313  ;;  %v3989_v44 = vsel %vm14_vm0, %v6297_v13, 0.0 }
 0x3d5   :  { %2527 = vrot.lane.b32.xlu1 %v6301_v36, %s4418_s6  ;;  %2408 = vst.msk [vmem:[#allocation3 + $0x108] sm:$0xff] %vm735_vm5, %v2314_v32  ;;  %v3976_v30 = vadd.f32 %v3975_v41, %v3974_v46  ;;  %v4172_v49 = vadd.f32 %v4171_v51, %v4170_v63  ;;  %v2318_v24 = vpop.permute.xlu2 %2317  ;;  %v6404_v46 = vld [vmem:[#allocation2 + $0x109] sm:$0xff]  ;;  %v4187_v41 = vsel %vm14_vm0, %v4098_v52, 0.0 }
 0x3d6   :  { %2410 = vst.msk [vmem:[#allocation3 + $0x118] sm:$0xff] %vm735_vm5, %v2318_v24 }
 0x3d7   :  { %v2316_v54 = vpop.permute.xlu1 %2315  ;;  %v3978_v0 = vadd.f32 %v3977_v15, %v3976_v30  ;;  %v4174_v27 = vadd.f32 %v4173_v45, %v4172_v49  ;;  %v6414_v45 = vld [vmem:[#allocation2 + $0x111] sm:$0xff] }
 0x3d8   :  { %2409 = vst.msk [vmem:[#allocation3 + $0x110] sm:$0xff] %vm735_vm5, %v2316_v54 }
 0x3d9   :  { %v4176_v25 = vadd.f32 %v4175_v55, %v4174_v27  ;;  %v3980_v31 = vadd.f32 %v3979_v6, %v3978_v0  ;;  %2517 = vrot.lane.b32.xlu2 %v6360_v48, %s4418_s6 }
 0x3da   :  { %v6339_v21 = vpop.f32.mrf.mxu1  ;;  %2531 = vrot.lane.b32.xlu0 %v6329_v29, %s4418_s6 }
 0x3db   :  { %3901 = vst.msk [vmem:[%s7194_s2 + $0xd8] sm:$0xff] %vm14_vm0, %v6339_v21  ;;  %v3982_v58 = vadd.f32 %v3981_v62, %v3980_v31  ;;  %v4178_v11 = vadd.f32 %v4177_v12, %v4176_v25  ;;  %v4099_v57 = vmul.f32 %v6339_v21, %v6339_v21  ;;  %v3991_v7 = vsel %vm14_vm0, %v6339_v21, 0.0  ;;  %v6428_v25 = vld [vmem:[#allocation2 + $0xb1] sm:$0xff] }
 0x3dc   :  { %v2320_v9 = vpop.permute.xlu0 %2319 }
 0x3dd   :  { %2533 = vrot.lane.b32.xlu1 %v2454_v26, %s4418_s6  ;;  %2411 = vst.msk [vmem:[#allocation3 + $0x120] sm:$0xff] %vm735_vm5, %v2320_v9  ;;  %v3984_v14 = vadd.f32 %v3983_v5, %v3982_v58  ;;  %v4180_v56 = vadd.f32 %v4179_v16, %v4178_v11  ;;  %v2324_v3 = vpop.permute.xlu2 %2323  ;;  %v4189_v15 = vsel %vm14_vm0, %v4099_v57, 0.0  ;;  %v6438_v11 = vld [vmem:[#allocation2 + $0x139] sm:$0xff]  ;;  %v6477_v57 = vld [vmem:[#allocation2 + $0x171] sm:$0xff] }
 0x3de   :  { %2413 = vst.msk [vmem:[#allocation3 + $0x130] sm:$0xff] %vm735_vm5, %v2324_v3  ;;  %v6449_v3 = vld [vmem:[#allocation2 + $0xd9] sm:$0xff] }
 0x3df   :  { %v2322_v39 = vpop.permute.xlu1 %2321  ;;  %v3986_v34 = vadd.f32 %v3985_v20, %v3984_v14  ;;  %v4182_v32 = vadd.f32 %v4181_v47, %v4180_v56  ;;  %v6452_v20 = vld [vmem:[#allocation2 + $0x151] sm:$0xff] }
 0x3e0   :  { %2412 = vst.msk [vmem:[#allocation3 + $0x128] sm:$0xff] %vm735_vm5, %v2322_v39 }
 0x3e1   :  { %v3988_v60 = vadd.f32 %v3987_v23, %v3986_v34  ;;  %v4184_v28 = vadd.f32 %v4183_v50, %v4182_v32  ;;  %2523 = vrot.lane.b32.xlu2 %v6396_v38, %s4418_s6  ;;  %v6459_v32 = vld [vmem:[#allocation2 + $0x159] sm:$0xff] }
 0x3e2   :  { %v3766_v37 = vpop.f32.mrf.mxu1  ;;  %2537 = vrot.lane.b32.xlu0 %v2456_v59, %s4418_s6 }
 0x3e3   :  { %3902 = vst.msk [vmem:[%s7194_s2 + $0xe0] sm:$0xff] %vm14_vm0, %v3766_v37  ;;  %v3990_v63 = vadd.f32 %v3989_v44, %v3988_v60  ;;  %v4186_v51 = vadd.f32 %v4185_v35, %v4184_v28  ;;  %v4100_v30 = vmul.f32 %v3766_v37, %v3766_v37  ;;  %v3993_v10 = vsel %vm14_vm0, %v3766_v37, 0.0  ;;  %v6472_v28 = vld [vmem:[#allocation2 + $0xf9] sm:$0xff] }
 0x3e4   :  { %v2326_v22 = vpop.permute.xlu0 %2325 }
 0x3e5   :  { %2539 = vrot.lane.b32.xlu1 %v6377_v61, %s4418_s6  ;;  %2414 = vst.msk [vmem:[#allocation3 + $0x138] sm:$0xff] %vm735_vm5, %v2326_v22  ;;  %v4188_v13 = vadd.f32 %v4187_v41, %v4186_v51  ;;  %v3992_v49 = vadd.f32 %v3991_v7, %v3990_v63  ;;  %v2330_v24 = vpop.permute.xlu2 %2329  ;;  %v4191_v6 = vsel %vm14_vm0, %v4100_v30, 0.0  ;;  %v2469_v63 = vld [vmem:[#allocation2 + $0x181] sm:$0xff] }
 0x3e6   :  { %2416 = vst.msk [vmem:[#allocation3 + $0x148] sm:$0xff] %vm735_vm5, %v2330_v24  ;;  %v6486_v41 = vld [vmem:[#allocation2 + $0x121] sm:$0xff] }
 0x3e7   :  { %v2328_v54 = vpop.permute.xlu1 %2327  ;;  %v4190_v21 = vadd.f32 %v4189_v15, %v4188_v13  ;;  %v3994_v9 = vadd.f32 %v3993_v10, %v3992_v49  ;;  %v2631_v30 = vld [vmem:[#allocation2 + $0x1a] sm:$0xff]  ;;  %v2632_v49 = vld [vmem:[#allocation2 + $0x22] sm:$0xff] }
 0x3e8   :  { %2415 = vst.msk [vmem:[#allocation3 + $0x140] sm:$0xff] %vm735_vm5, %v2328_v54  ;;  %v6498_v10 = vld [vmem:[#allocation2 + $0x3a] sm:$0xff] }
 0x3e9   :  { %v4192_v31 = vadd.f32 %v4191_v6, %v4190_v21  ;;  %2529 = vrot.lane.b32.xlu2 %v6428_v25, %s4418_s6  ;;  %v6513_v6 = vld [vmem:[#allocation2 + $0x62] sm:$0xff] }
 0x3ea   :  { %v3769_v26 = vpop.f32.mrf.mxu1  ;;  %2543 = vrot.lane.b32.xlu0 %v6404_v46, %s4418_s6 }
 0x3eb   :  { %v3995_v0 = vsel %vm14_vm0, %v3769_v26, 0.0  ;;  %v4101_v27 = vmul.f32 %v3769_v26, %v3769_v26  ;;  %3903 = vst.msk [vmem:[%s7194_s2 + $0xe8] sm:$0xff] %vm14_vm0, %v3769_v26  ;;  %v6495_v26 = vld [vmem:[#allocation2 + $0x141] sm:$0xff] }
 0x3ec   :  { %v2332_v55 = vpop.permute.xlu0 %2331  ;;  %v3996_v12 = vadd.f32 %v3995_v0, %v3994_v9  ;;  %v6510_v9 = vld [vmem:[#allocation2 + $0x169] sm:$0xff] }
 0x3ed   :  { %v4193_v18 = vsel %vm14_vm0, %v4101_v27, 0.0  ;;  %2545 = vrot.lane.b32.xlu1 %v6414_v45, %s4418_s6  ;;  %2417 = vst.msk [vmem:[#allocation3 + $0x150] sm:$0xff] %vm735_vm5, %v2332_v55  ;;  %v2336_v59 = vpop.permute.xlu2 %2335  ;;  %v6505_v27 = vld [vmem:[#allocation2 + $0x4a] sm:$0xff] }
 0x3ee   :  { %v4194_v39 = vadd.f32 %v4193_v18, %v4192_v31  ;;  %2419 = vst.msk [vmem:[#allocation3 + $0x160] sm:$0xff] %vm735_vm5, %v2336_v59  ;;  %v6520_v31 = vld [vmem:[#allocation2 + $0x6a] sm:$0xff]  ;;  %v6526_v59 = vld [vmem:[#allocation2 + $0x82] sm:$0xff] }
 0x3ef   :  { %v2334_v62 = vpop.permute.xlu1 %2333 }
 0x3f0   :  { %2418 = vst.msk [vmem:[#allocation3 + $0x158] sm:$0xff] %vm735_vm5, %v2334_v62  ;;  %v2470_v62 = vld [vmem:[#allocation2 + $0x189] sm:$0xff] }
 0x3f1   :  { %2535 = vrot.lane.b32.xlu2 %v6449_v3, %s4418_s6 }
 0x3f2   :  { %v3772_v58 = vpop.f32.mrf.mxu1  ;;  %2549 = vrot.lane.b32.xlu0 %v6431_v33, %s4418_s6 }
 0x3f3   :  { %v3997_v16 = vsel %vm14_vm0, %v3772_v58, 0.0  ;;  %v4102_v5 = vmul.f32 %v3772_v58, %v3772_v58  ;;  %3904 = vst.msk [vmem:[%s7194_s2 + $0xf0] sm:$0xff] %vm14_vm0, %v3772_v58 }
 0x3f4   :  { %v3998_v17 = vadd.f32 %v3997_v16, %v3996_v12  ;;  %v2338_v14 = vpop.permute.xlu0 %2337  ;;  %v6532_v16 = vld [vmem:[#allocation2 + $0x92] sm:$0xff] }
 0x3f5   :  { %v4195_v56 = vsel %vm14_vm0, %v4102_v5, 0.0  ;;  %2551 = vrot.lane.b32.xlu1 %v6438_v11, %s4418_s6  ;;  %2420 = vst.msk [vmem:[#allocation3 + $0x168] sm:$0xff] %vm735_vm5, %v2338_v14  ;;  %v2342_v43 = vpop.permute.xlu2 %2341 }
 0x3f6   :  { %v4196_v37 = vadd.f32 %v4195_v56, %v4194_v39  ;;  %2422 = vst.msk [vmem:[#allocation3 + $0x178] sm:$0xff] %vm735_vm5, %v2342_v43  ;;  %v2823_v56 = vld [vmem:[#allocation2 + $0x30] sm:$0xff] }
 0x3f7   :  { %v2340_v47 = vpop.permute.xlu1 %2339  ;;  %v6544_v43 = vld [vmem:[#allocation2 + $0x52] sm:$0xff] }
 0x3f8   :  { %2421 = vst.msk [vmem:[#allocation3 + $0x170] sm:$0xff] %vm735_vm5, %v2340_v47 }
 0x3f9   :  { %2541 = vrot.lane.b32.xlu2 %v6472_v28, %s4418_s6 }
 0x3fa   :  { %v3775_v34 = vpop.f32.mrf.mxu1  ;;  %2555 = vrot.lane.b32.xlu0 %v6452_v20, %s4418_s6 }
 0x3fb   :  { %v3999_v22 = vsel %vm14_vm0, %v3775_v34, 0.0  ;;  %v4103_v50 = vmul.f32 %v3775_v34, %v3775_v34  ;;  %3905 = vst.msk [vmem:[%s7194_s2 + $0xf8] sm:$0xff] %vm14_vm0, %v3775_v34 }
 0x3fc   :  { %v6467_v23 = vadd.f32 %v3999_v22, %v3998_v17  ;;  %v2344_v52 = vpop.permute.xlu0 %2343  ;;  %v2633_v17 = vld [vmem:[#allocation2 + $0x32] sm:$0xff] }
 0x3fd   :  { %v4197_v60 = vsel %vm14_vm0, %v4103_v50, 0.0  ;;  %2557 = vrot.lane.b32.xlu1 %v6459_v32, %s4418_s6  ;;  %2423 = vst.msk [vmem:[#allocation3 + $0x180] sm:$0xff] %vm735_vm5, %v2344_v52  ;;  %v2348_v54 = vpop.permute.xlu2 %2347  ;;  %v2824_v22 = vld [vmem:[#allocation2 + $0x38] sm:$0xff] }
 0x3fe   :  { %v6475_v35 = vadd.f32 %v4197_v60, %v4196_v37  ;;  %2425 = vst.msk [vmem:[#allocation3 + $0x190] sm:$0xff] %vm735_vm5, %v2348_v54 }
 0x3ff   :  { %v2346_v44 = vpop.permute.xlu1 %2345 }
 0x400   :  { %2424 = vst.msk [vmem:[#allocation3 + $0x188] sm:$0xff] %vm735_vm5, %v2346_v44  ;;  %v2825_v44 = vld [vmem:[#allocation2 + $0x48] sm:$0xff] }
 0x401   :  { %2547 = vrot.lane.b32.xlu2 %v6486_v41, %s4418_s6 }
 0x402   :  { %2561 = vrot.lane.b32.xlu0 %v6477_v57, %s4418_s6 }
 0x404   :  { %v2350_v51 = vpop.permute.xlu0 %2349 }
 0x405   :  { %2563 = vrot.lane.b32.xlu1 %v2469_v63, %s4418_s6  ;;  %2426 = vst.msk [vmem:[#allocation3 + $0x198] sm:$0xff] %vm735_vm5, %v2350_v51  ;;  %v2354_v13 = vpop.permute.xlu2 %2353 }
 0x406   :  { %2428 = vst.msk [vmem:[#allocation3 + $0x1a8] sm:$0xff] %vm735_vm5, %v2354_v13 }
 0x407   :  { %v2352_v7 = vpop.permute.xlu1 %2351 }
 0x408   :  { %2427 = vst.msk [vmem:[#allocation3 + $0x1a0] sm:$0xff] %vm735_vm5, %v2352_v7  ;;  %v2826_v7 = vld [vmem:[#allocation2 + $0x50] sm:$0xff] }
 0x409   :  { %2553 = vrot.lane.b32.xlu2 %v6495_v26, %s4418_s6 }
 0x40a   :  { %2695 = vrot.lane.b32.xlu0 %v2631_v30, %s4419_s11 }
 0x40c   :  { %v2356_v24 = vpop.permute.xlu0 %2355 }
 0x40d   :  { %2697 = vrot.lane.b32.xlu1 %v2632_v49, %s4419_s11  ;;  %2429 = vst.msk [vmem:[#allocation3 + $0x1b0] sm:$0xff] %vm735_vm5, %v2356_v24  ;;  %v2360_v0 = vpop.permute.xlu2 %2359  ;;  %v6575_v49 = vld [vmem:[#allocation2 + $0xda] sm:$0xff] }
 0x40e   :  { %2431 = vst.msk [vmem:[#allocation3 + $0x1c0] sm:$0xff] %vm735_vm5, %v2360_v0 }
 0x40f   :  { %v2358_v15 = vpop.permute.xlu1 %2357 }
 0x410   :  { %2430 = vst.msk [vmem:[#allocation3 + $0x1b8] sm:$0xff] %vm735_vm5, %v2358_v15  ;;  %v2827_v15 = vld [vmem:[#allocation2 + $0x60] sm:$0xff] }
 0x411   :  { %2559 = vrot.lane.b32.xlu2 %v6510_v9, %s4418_s6 }
 0x412   :  { %2701 = vrot.lane.b32.xlu0 %v6498_v10, %s4419_s11 }
 0x414   :  { %v2362_v21 = vpop.permute.xlu0 %2361 }
 0x415   :  { %2703 = vrot.lane.b32.xlu1 %v6505_v27, %s4419_s11  ;;  %2432 = vst.msk [vmem:[#allocation3 + $0x1c8] sm:$0xff] %vm735_vm5, %v2362_v21  ;;  %v2366_v18 = vpop.permute.xlu2 %2365 }
 0x416   :  { %2434 = vst.msk [vmem:[#allocation3 + $0x1d8] sm:$0xff] %vm735_vm5, %v2366_v18 }
 0x417   :  { %v2364_v55 = vpop.permute.xlu1 %2363 }
 0x418   :  { %2433 = vst.msk [vmem:[#allocation3 + $0x1d0] sm:$0xff] %vm735_vm5, %v2364_v55 }
 0x419   :  { %2565 = vrot.lane.b32.xlu2 %v2470_v62, %s4418_s6  ;;  %v6597_v62 = vld [vmem:[#allocation2 + $0xe2] sm:$0xff] }
 0x41a   :  { %2707 = vrot.lane.b32.xlu0 %v6513_v6, %s4419_s11 }
 0x41c   :  { %v2368_v12 = vpop.permute.xlu0 %2367 }
 0x41d   :  { %2709 = vrot.lane.b32.xlu1 %v6520_v31, %s4419_s11  ;;  %2435 = vst.msk [vmem:[#allocation3 + $0x1e0] sm:$0xff] %vm735_vm5, %v2368_v12  ;;  %v2372_v58 = vpop.permute.xlu2 %2371  ;;  %v3223_v12 = vld [vmem:[#allocation2 + $0xf2] sm:$0xff] }
 0x41e   :  { %2437 = vst.msk [vmem:[#allocation3 + $0x1f0] sm:$0xff] %vm735_vm5, %v2372_v58 }
 0x41f   :  { %v2370_v39 = vpop.permute.xlu1 %2369 }
 0x420   :  { %2436 = vst.msk [vmem:[#allocation3 + $0x1e8] sm:$0xff] %vm735_vm5, %v2370_v39  ;;  %v2840_v39 = vld [vmem:[#allocation2 + $0xf8] sm:$0xff] }
 0x421   :  { %2699 = vrot.lane.b32.xlu2 %v2633_v17, %s4419_s11 }
 0x422   :  { %2713 = vrot.lane.b32.xlu0 %v6526_v59, %s4419_s11 }
 0x424   :  { %v2374_v5 = vpop.permute.xlu0 %2373 }
 0x425   :  { %2715 = vrot.lane.b32.xlu1 %v6532_v16, %s4419_s11  ;;  %2438 = vst.msk [vmem:[#allocation3 + $0x1f8] sm:$0xff] %vm735_vm5, %v2374_v5  ;;  %v2506_v37 = vpop.permute.xlu2 %2505  ;;  %v2839_v5 = vld [vmem:[#allocation2 + $0xf0] sm:$0xff] }
 0x426   :  { %2600 = vst.msk [vmem:[#allocation3 + $0x108] sm:$0xff] %vm928_vm6, %v2506_v37 }
 0x427   :  { %v2504_v14 = vpop.permute.xlu1 %2503 }
 0x428   :  { %2599 = vst.msk [vmem:[#allocation3 + $0x100] sm:$0xff] %vm928_vm6, %v2504_v14 }
 0x429   :  { %2705 = vrot.lane.b32.xlu2 %v6544_v43, %s4419_s11 }
 0x42a   :  { %2887 = vrot.lane.b32.xlu0 %v2823_v56, %s4420_s12  ;;  %v3224_v56 = vld [vmem:[#allocation2 + $0xfa] sm:$0xff] }
 0x42c   :  { %v2508_v47 = vpop.permute.xlu0 %2507 }
 0x42d   :  { %3079 = vrot.lane.b32.xlu1 %v6209_v19, %s4421_s13  ;;  %2601 = vst.msk [vmem:[#allocation3 + $0x110] sm:$0xff] %vm928_vm6, %v2508_v47  ;;  %v2512_v50 = vpop.permute.xlu2 %2511  ;;  %v6554_v19 = vld [vmem:[#allocation2 + $0x7a] sm:$0xff] }
 0x42e   :  { %2603 = vst.msk [vmem:[#allocation3 + $0x120] sm:$0xff] %vm928_vm6, %v2512_v50  ;;  %v2829_v47 = vld [vmem:[#allocation2 + $0x78] sm:$0xff] }
 0x42f   :  { %v2510_v34 = vpop.permute.xlu1 %2509 }
 0x430   :  { %2602 = vst.msk [vmem:[#allocation3 + $0x118] sm:$0xff] %vm928_vm6, %v2510_v34  ;;  %v2841_v34 = vld [vmem:[#allocation2 + $0x108] sm:$0xff] }
 0x431   :  { %2711 = vrot.lane.b32.xlu2 %v6554_v19, %s4419_s11 }
 0x432   :  { %2889 = vrot.lane.b32.xlu0 %v2824_v22, %s4420_s12  ;;  %v2828_v22 = vld [vmem:[#allocation2 + $0x68] sm:$0xff] }
 0x434   :  { %v2514_v52 = vpop.permute.xlu0 %2513 }
 0x435   :  { %3081 = vrot.lane.b32.xlu1 %v6223_v4, %s4421_s13  ;;  %2604 = vst.msk [vmem:[#allocation3 + $0x128] sm:$0xff] %vm928_vm6, %v2514_v52  ;;  %v2518_v54 = vpop.permute.xlu2 %2517  ;;  %v6564_v4 = vld [vmem:[#allocation2 + $0x9a] sm:$0xff] }
 0x436   :  { %2606 = vst.msk [vmem:[#allocation3 + $0x138] sm:$0xff] %vm928_vm6, %v2518_v54  ;;  %v2830_v54 = vld [vmem:[#allocation2 + $0x80] sm:$0xff] }
 0x437   :  { %v2516_v60 = vpop.permute.xlu1 %2515 }
 0x438   :  { %2605 = vst.msk [vmem:[#allocation3 + $0x130] sm:$0xff] %vm928_vm6, %v2516_v60 }
 0x439   :  { %2717 = vrot.lane.b32.xlu2 %v6564_v4, %s4419_s11 }
 0x43a   :  { %2891 = vrot.lane.b32.xlu0 %v2825_v44, %s4420_s12 }
 0x43c   :  { %v2520_v63 = vpop.permute.xlu0 %2519 }
 0x43d   :  { %3083 = vrot.lane.b32.xlu1 %v6321_v1, %s4421_s13  ;;  %2607 = vst.msk [vmem:[#allocation3 + $0x140] sm:$0xff] %vm928_vm6, %v2520_v63  ;;  %v2524_v30 = vpop.permute.xlu2 %2523 }
 0x43e   :  { %2609 = vst.msk [vmem:[#allocation3 + $0x150] sm:$0xff] %vm928_vm6, %v2524_v30 }
 0x43f   :  { %v2522_v51 = vpop.permute.xlu1 %2521 }
 0x440   :  { %2608 = vst.msk [vmem:[#allocation3 + $0x148] sm:$0xff] %vm928_vm6, %v2522_v51 }
 0x441   :  { %3271 = vrot.lane.b32.xlu2 %v2633_v17, %s4422_s14 }
 0x442   :  { %2893 = vrot.lane.b32.xlu0 %v2826_v7, %s4420_s12  ;;  %v6648_v7 = vld [vmem:[#allocation2 + $0x112] sm:$0xff] }
 0x444   :  { %v2526_v13 = vpop.permute.xlu0 %2525 }
 0x445   :  { %3085 = vrot.lane.b32.xlu1 %v6235_v40, %s4421_s13  ;;  %2610 = vst.msk [vmem:[#allocation3 + $0x158] sm:$0xff] %vm928_vm6, %v2526_v13  ;;  %v2530_v24 = vpop.permute.xlu2 %2529 }
 0x446   :  { %2612 = vst.msk [vmem:[#allocation3 + $0x168] sm:$0xff] %vm928_vm6, %v2530_v24 }
 0x447   :  { %v2528_v1 = vpop.permute.xlu1 %2527 }
 0x448   :  { %2611 = vst.msk [vmem:[#allocation3 + $0x160] sm:$0xff] %vm928_vm6, %v2528_v1  ;;  %v2843_v1 = vld [vmem:[#allocation2 + $0x120] sm:$0xff] }
 0x449   :  { %3273 = vrot.lane.b32.xlu2 %v6498_v10, %s4422_s14 }
 0x44a   :  { %2727 = vrot.lane.b32.xlu0 %v6575_v49, %s4419_s11 }
 0x44c   :  { %v2532_v0 = vpop.permute.xlu0 %2531 }
 0x44d   :  { %2895 = vrot.lane.b32.xlu1 %v2827_v15, %s4420_s12  ;;  %2613 = vst.msk [vmem:[#allocation3 + $0x170] sm:$0xff] %vm928_vm6, %v2532_v0  ;;  %v2536_v21 = vpop.permute.xlu2 %2535  ;;  %v2842_v15 = vld [vmem:[#allocation2 + $0x110] sm:$0xff] }
 0x44e   :  { %2615 = vst.msk [vmem:[#allocation3 + $0x180] sm:$0xff] %vm928_vm6, %v2536_v21  ;;  %v3227_v21 = vld [vmem:[#allocation2 + $0x122] sm:$0xff] }
 0x44f   :  { %v2534_v40 = vpop.permute.xlu1 %2533 }
 0x450   :  { %2614 = vst.msk [vmem:[#allocation3 + $0x178] sm:$0xff] %vm928_vm6, %v2534_v40 }
 0x451   :  { %3275 = vrot.lane.b32.xlu2 %v6505_v27, %s4422_s14 }
 0x452   :  { %3087 = vrot.lane.b32.xlu0 %v6249_v8, %s4421_s13 }
 0x454   :  { %v2538_v55 = vpop.permute.xlu0 %2537 }
 0x455   :  { %3111 = vrot.lane.b32.xlu1 %v6377_v61, %s4421_s13  ;;  %2616 = vst.msk [vmem:[#allocation3 + $0x188] sm:$0xff] %vm928_vm6, %v2538_v55  ;;  %v2542_v10 = vpop.permute.xlu2 %2541 }
 0x456   :  { %2618 = vst.msk [vmem:[#allocation3 + $0x198] sm:$0xff] %vm928_vm6, %v2542_v10 }
 0x457   :  { %v2540_v18 = vpop.permute.xlu1 %2539 }
 0x458   :  { %2617 = vst.msk [vmem:[#allocation3 + $0x190] sm:$0xff] %vm928_vm6, %v2540_v18  ;;  %v2832_v18 = vld [vmem:[#allocation2 + $0x98] sm:$0xff] }
 0x459   :  { %3277 = vrot.lane.b32.xlu2 %v6544_v43, %s4422_s14 }
 0x45a   :  { %3303 = vrot.lane.b32.xlu0 %v3223_v12, %s4422_s14 }
 0x45c   :  { %v2544_v8 = vpop.permute.xlu0 %2543 }
 0x45d   :  { %2729 = vrot.lane.b32.xlu1 %v6597_v62, %s4419_s11  ;;  %2619 = vst.msk [vmem:[#allocation3 + $0x1a0] sm:$0xff] %vm928_vm6, %v2544_v8  ;;  %v2548_v27 = vpop.permute.xlu2 %2547 }
 0x45e   :  { %2621 = vst.msk [vmem:[#allocation3 + $0x1b0] sm:$0xff] %vm928_vm6, %v2548_v27 }
 0x45f   :  { %v2546_v61 = vpop.permute.xlu1 %2545 }
 0x460   :  { %2620 = vst.msk [vmem:[#allocation3 + $0x1a8] sm:$0xff] %vm928_vm6, %v2546_v61  ;;  %v2831_v61 = vld [vmem:[#allocation2 + $0x90] sm:$0xff] }
 0x461   :  { %2919 = vrot.lane.b32.xlu2 %v2839_v5, %s4420_s12 }
 0x462   :  { %2921 = vrot.lane.b32.xlu0 %v2840_v39, %s4420_s12 }
 0x464   :  { %v2550_v58 = vpop.permute.xlu0 %2549 }
 0x465   :  { %3089 = vrot.lane.b32.xlu1 %v6360_v48, %s4421_s13  ;;  %2622 = vst.msk [vmem:[#allocation3 + $0x1b8] sm:$0xff] %vm928_vm6, %v2550_v58  ;;  %v2554_v14 = vpop.permute.xlu2 %2553 }
 0x466   :  { %2624 = vst.msk [vmem:[#allocation3 + $0x1c8] sm:$0xff] %vm928_vm6, %v2554_v14 }
 0x467   :  { %v2552_v17 = vpop.permute.xlu1 %2551 }
 0x468   :  { %2623 = vst.msk [vmem:[#allocation3 + $0x1c0] sm:$0xff] %vm928_vm6, %v2552_v17 }
 0x469   :  { %3279 = vrot.lane.b32.xlu2 %v6513_v6, %s4422_s14 }
 0x46a   :  { %3281 = vrot.lane.b32.xlu0 %v6520_v31, %s4422_s14 }
 0x46c   :  { %v2556_v37 = vpop.permute.xlu0 %2555 }
 0x46d   :  { %3305 = vrot.lane.b32.xlu1 %v3224_v56, %s4422_s14  ;;  %2625 = vst.msk [vmem:[#allocation3 + $0x1d0] sm:$0xff] %vm928_vm6, %v2556_v37  ;;  %v2560_v43 = vpop.permute.xlu2 %2559 }
 0x46e   :  { %2627 = vst.msk [vmem:[#allocation3 + $0x1e0] sm:$0xff] %vm928_vm6, %v2560_v43  ;;  %v3229_v43 = vld [vmem:[#allocation2 + $0x13a] sm:$0xff] }
 0x46f   :  { %v2558_v48 = vpop.permute.xlu1 %2557 }
 0x470   :  { %2626 = vst.msk [vmem:[#allocation3 + $0x1d8] sm:$0xff] %vm928_vm6, %v2558_v48 }
 0x471   :  { %2897 = vrot.lane.b32.xlu2 %v2828_v22, %s4420_s12  ;;  %v2846_v22 = vld [vmem:[#allocation2 + $0x140] sm:$0xff] }
 0x472   :  { %2899 = vrot.lane.b32.xlu0 %v2829_v47, %s4420_s12 }
 0x474   :  { %v2562_v31 = vpop.permute.xlu0 %2561 }
 0x475   :  { %2923 = vrot.lane.b32.xlu1 %v2841_v34, %s4420_s12  ;;  %2628 = vst.msk [vmem:[#allocation3 + $0x1e8] sm:$0xff] %vm928_vm6, %v2562_v31  ;;  %v2566_v6 = vpop.permute.xlu2 %2565 }
 0x476   :  { %2630 = vst.msk [vmem:[#allocation3 + $0x1f8] sm:$0xff] %vm928_vm6, %v2566_v6 }
 0x477   :  { %v2564_v50 = vpop.permute.xlu1 %2563 }
 0x478   :  { %2629 = vst.msk [vmem:[#allocation3 + $0x1f0] sm:$0xff] %vm928_vm6, %v2564_v50 }
 0x479   :  { %3113 = vrot.lane.b32.xlu2 %v6472_v28, %s4421_s13 }
 0x47a   :  { %3115 = vrot.lane.b32.xlu0 %v6404_v46, %s4421_s13 }
 0x47c   :  { %v2696_v52 = vpop.permute.xlu0 %2695 }
 0x47d   :  { %3283 = vrot.lane.b32.xlu1 %v6554_v19, %s4422_s14  ;;  %2791 = vst.msk [vmem:[#allocation3 + $0x100] sm:$0xff] %vm1121_vm7, %v2696_v52  ;;  %v2700_v44 = vpop.permute.xlu2 %2699 }
 0x47e   :  { %2793 = vst.msk [vmem:[#allocation3 + $0x110] sm:$0xff] %vm1121_vm7, %v2700_v44 }
 0x47f   :  { %v2698_v60 = vpop.permute.xlu1 %2697 }
 0x480   :  { %2792 = vst.msk [vmem:[#allocation3 + $0x108] sm:$0xff] %vm1121_vm7, %v2698_v60  ;;  %v2845_v60 = vld [vmem:[#allocation2 + $0x138] sm:$0xff] }
 0x481   :  { %2731 = vrot.lane.b32.xlu2 %v3223_v12, %s4419_s11 }
 0x482   :  { %2733 = vrot.lane.b32.xlu0 %v3224_v56, %s4419_s11 }
 0x484   :  { %v2702_v46 = vpop.permute.xlu0 %2701 }
 0x485   :  { %2901 = vrot.lane.b32.xlu1 %v2830_v54, %s4420_s12  ;;  %2794 = vst.msk [vmem:[#allocation3 + $0x118] sm:$0xff] %vm1121_vm7, %v2702_v46  ;;  %v2706_v63 = vpop.permute.xlu2 %2705  ;;  %v3218_v54 = vld [vmem:[#allocation2 + $0xb2] sm:$0xff] }
 0x486   :  { %2796 = vst.msk [vmem:[#allocation3 + $0x128] sm:$0xff] %vm1121_vm7, %v2706_v63 }
 0x487   :  { %v2704_v19 = vpop.permute.xlu1 %2703 }
 0x488   :  { %2795 = vst.msk [vmem:[#allocation3 + $0x120] sm:$0xff] %vm1121_vm7, %v2704_v19  ;;  %v6726_v19 = vld [vmem:[#allocation2 + $0x142] sm:$0xff] }
 0x489   :  { %3091 = vrot.lane.b32.xlu2 %v6261_v42, %s4421_s13 }
 0x48a   :  { %3093 = vrot.lane.b32.xlu0 %v6274_v2, %s4421_s13  ;;  %v2651_v2 = vld [vmem:[#allocation2 + $0x10a] sm:$0xff] }
 0x48c   :  { %v2708_v28 = vpop.permute.xlu0 %2707 }
 0x48d   :  { %3117 = vrot.lane.b32.xlu1 %v6414_v45, %s4421_s13  ;;  %2797 = vst.msk [vmem:[#allocation3 + $0x130] sm:$0xff] %vm1121_vm7, %v2708_v28  ;;  %v2712_v30 = vpop.permute.xlu2 %2711 }
 0x48e   :  { %2799 = vst.msk [vmem:[#allocation3 + $0x140] sm:$0xff] %vm1121_vm7, %v2712_v30 }
 0x48f   :  { %v2710_v51 = vpop.permute.xlu1 %2709 }
 0x490   :  { %2798 = vst.msk [vmem:[#allocation3 + $0x138] sm:$0xff] %vm1121_vm7, %v2710_v51 }
 0x491   :  { %3307 = vrot.lane.b32.xlu2 %v2651_v2, %s4422_s14 }
 0x492   :  { %3309 = vrot.lane.b32.xlu0 %v6648_v7, %s4422_s14 }
 0x494   :  { %v2714_v13 = vpop.permute.xlu0 %2713 }
 0x495   :  { %2735 = vrot.lane.b32.xlu1 %v2651_v2, %s4419_s11  ;;  %2800 = vst.msk [vmem:[#allocation3 + $0x148] sm:$0xff] %vm1121_vm7, %v2714_v13  ;;  %v2718_v42 = vpop.permute.xlu2 %2717  ;;  %v2834_v13 = vld [vmem:[#allocation2 + $0xb0] sm:$0xff] }
 0x496   :  { %2802 = vst.msk [vmem:[#allocation3 + $0x158] sm:$0xff] %vm1121_vm7, %v2718_v42 }
 0x497   :  { %v2716_v45 = vpop.permute.xlu1 %2715 }
 0x498   :  { %2801 = vst.msk [vmem:[#allocation3 + $0x150] sm:$0xff] %vm1121_vm7, %v2716_v45 }
 0x499   :  { %2925 = vrot.lane.b32.xlu2 %v2842_v15, %s4420_s12 }
 0x49a   :  { %2927 = vrot.lane.b32.xlu0 %v2843_v1, %s4420_s12 }
 0x49c   :  { %v2888_v24 = vpop.permute.xlu0 %2887 }
 0x49d   :  { %3095 = vrot.lane.b32.xlu1 %v6396_v38, %s4421_s13  ;;  %2983 = vst.msk [vmem:[#allocation3 + $0x100] sm:$0xff] %vm1315_vm8, %v2888_v24  ;;  %v3272_v40 = vpop.permute.xlu2 %3271 }
 0x49f   :  { %v3080_v0 = vpop.permute.xlu1 %3079 }
 0x4a0   :  { %3175 = vst.msk [vmem:[#allocation3 + $0x100] sm:$0xff] %vm1508_vm9, %v3080_v0  ;;  %v3231_v0 = vld [vmem:[#allocation2 + $0x152] sm:$0xff] }
 0x4a1   :  { %3367 = vst.msk [vmem:[#allocation3 + $0x100] sm:$0xff] %vm1701_vm10, %v3272_v40  ;;  %3285 = vrot.lane.b32.xlu2 %v6526_v59, %s4422_s14 }
 0x4a2   :  { %3287 = vrot.lane.b32.xlu0 %v6532_v16, %s4422_s14  ;;  %v2844_v16 = vld [vmem:[#allocation2 + $0x128] sm:$0xff] }
 0x4a4   :  { %v2890_v55 = vpop.permute.xlu0 %2889 }
 0x4a5   :  { %3311 = vrot.lane.b32.xlu1 %v3227_v21, %s4422_s14  ;;  %2984 = vst.msk [vmem:[#allocation3 + $0x108] sm:$0xff] %vm1315_vm8, %v2890_v55  ;;  %v3274_v12 = vpop.permute.xlu2 %3273  ;;  %v2836_v55 = vld [vmem:[#allocation2 + $0xc8] sm:$0xff] }
 0x4a7   :  { %v3082_v38 = vpop.permute.xlu1 %3081 }
 0x4a8   :  { %3176 = vst.msk [vmem:[#allocation3 + $0x108] sm:$0xff] %vm1508_vm9, %v3082_v38  ;;  %v3431_v10 = vld [vmem:[#allocation3 + $0x100] sm:$0xff]  ;;  %v2848_v38 = vld [vmem:[#allocation2 + $0x158] sm:$0xff] }
 0x4a9   :  { %3368 = vst.msk [vmem:[#allocation3 + $0x108] sm:$0xff] %vm1701_vm10, %v3274_v12  ;;  %4346 = vmatmul.msk.f32.vlgmr.msra.gmra.mxu2 %vm3472_vm11, %v3431_v10  ;;  %2903 = vrot.lane.b32.xlu2 %v2831_v61, %s4420_s12  ;;  %v2847_v10 = vld [vmem:[#allocation2 + $0x150] sm:$0xff] }
 0x4aa   :  { %2905 = vrot.lane.b32.xlu0 %v2832_v18, %s4420_s12  ;;  %v6767_v61 = vld [vmem:[#allocation2 + $0xca] sm:$0xff] }
 0x4ac   :  { %v2892_v8 = vpop.permute.xlu0 %2891 }
 0x4ad   :  { %2929 = vrot.lane.b32.xlu1 %v2844_v16, %s4420_s12  ;;  %2985 = vst.msk [vmem:[#allocation3 + $0x110] sm:$0xff] %vm1315_vm8, %v2892_v8  ;;  %v3276_v59 = vpop.permute.xlu2 %3275 }
 0x4af   :  { %v3084_v39 = vpop.permute.xlu1 %3083 }
 0x4b0   :  { %3177 = vst.msk [vmem:[#allocation3 + $0x110] sm:$0xff] %vm1508_vm9, %v3084_v39  ;;  %v3432_v27 = vld [vmem:[#allocation3 + $0x108] sm:$0xff] }
 0x4b1   :  { %3369 = vst.msk [vmem:[#allocation3 + $0x110] sm:$0xff] %vm1701_vm10, %v3276_v59  ;;  %4347 = vmatmul.msk.f32.gmra.mxu2 %vm3472_vm11, %v3432_v27  ;;  %3119 = vrot.lane.b32.xlu2 %v6486_v41, %s4421_s13  ;;  %v3219_v59 = vld [vmem:[#allocation2 + $0xc2] sm:$0xff] }
 0x4b2   :  { %3121 = vrot.lane.b32.xlu0 %v6431_v33, %s4421_s13  ;;  %v2833_v33 = vld [vmem:[#allocation2 + $0xa8] sm:$0xff] }
 0x4b4   :  { %v2894_v58 = vpop.permute.xlu0 %2893 }
 0x4b5   :  { %3289 = vrot.lane.b32.xlu1 %v6564_v4, %s4422_s14  ;;  %2986 = vst.msk [vmem:[#allocation3 + $0x118] sm:$0xff] %vm1315_vm8, %v2894_v58  ;;  %v3278_v17 = vpop.permute.xlu2 %3277 }
 0x4b7   :  { %v3086_v5 = vpop.permute.xlu1 %3085 }
 0x4b8   :  { %3178 = vst.msk [vmem:[#allocation3 + $0x118] sm:$0xff] %vm1508_vm9, %v3086_v5  ;;  %v3433_v14 = vld [vmem:[#allocation3 + $0x110] sm:$0xff] }
 0x4b9   :  { %3370 = vst.msk [vmem:[#allocation3 + $0x118] sm:$0xff] %vm1701_vm10, %v3278_v17  ;;  %4348 = vmatmul.msk.f32.gmra.mxu2 %vm3472_vm11, %v3433_v14  ;;  %2737 = vrot.lane.b32.xlu2 %v6648_v7, %s4419_s11  ;;  %v2835_v7 = vld [vmem:[#allocation2 + $0xc0] sm:$0xff] }
 0x4ba   :  { %2739 = vrot.lane.b32.xlu0 %v3227_v21, %s4419_s11 }
 0x4bc   :  { %v2728_v56 = vpop.permute.xlu0 %2727 }
 0x4bd   :  { %2907 = vrot.lane.b32.xlu1 %v2833_v33, %s4420_s12  ;;  %2807 = vst.msk [vmem:[#allocation3 + $0x180] sm:$0xff] %vm1121_vm7, %v2728_v56  ;;  %v2920_v41 = vpop.permute.xlu2 %2919  ;;  %v2849_v33 = vld [vmem:[#allocation2 + $0x168] sm:$0xff] }
 0x4be   :  { %2999 = vst.msk [vmem:[#allocation3 + $0x180] sm:$0xff] %vm1315_vm8, %v2920_v41  ;;  %v3028_v41 = vld [vmem:[#allocation2 + $0xc9] sm:$0xff] }
 0x4bf   :  { %v2896_v4 = vpop.permute.xlu1 %2895 }
 0x4c0   :  { %2987 = vst.msk [vmem:[#allocation3 + $0x120] sm:$0xff] %vm1315_vm8, %v2896_v4  ;;  %v3434_v37 = vld [vmem:[#allocation3 + $0x118] sm:$0xff] }
 0x4c1   :  { %4349 = vmatmul.msk.f32.gmra.mxu2 %vm3472_vm11, %v3434_v37  ;;  %3097 = vrot.lane.b32.xlu2 %v6286_v53, %s4421_s13 }
 0x4c2   :  { %3099 = vrot.lane.b32.xlu0 %v6301_v36, %s4421_s13  ;;  %v2654_v36 = vld [vmem:[#allocation2 + $0x12a] sm:$0xff] }
 0x4c4   :  { %v3088_v48 = vpop.permute.xlu0 %3087 }
 0x4c5   :  { %3123 = vrot.lane.b32.xlu1 %v6438_v11, %s4421_s13  ;;  %3179 = vst.msk [vmem:[#allocation3 + $0x120] sm:$0xff] %vm1508_vm9, %v3088_v48  ;;  %v3280_v34 = vpop.permute.xlu2 %3279 }
 0x4c6   :  { %3371 = vst.msk [vmem:[#allocation3 + $0x120] sm:$0xff] %vm1701_vm10, %v3280_v34 }
 0x4c7   :  { %v3112_v47 = vpop.permute.xlu1 %3111 }
 0x4c8   :  { %3191 = vst.msk [vmem:[#allocation3 + $0x180] sm:$0xff] %vm1508_vm9, %v3112_v47  ;;  %v3233_v47 = vld [vmem:[#allocation2 + $0x16a] sm:$0xff] }
 0x4c9   :  { %3313 = vrot.lane.b32.xlu2 %v2654_v36, %s4422_s14 }
 0x4ca   :  { %3315 = vrot.lane.b32.xlu0 %v3229_v43, %s4422_s14 }
 0x4cc   :  { %v3304_v31 = vpop.permute.xlu0 %3303 }
 0x4cd   :  { %2741 = vrot.lane.b32.xlu1 %v2654_v36, %s4419_s11  ;;  %3383 = vst.msk [vmem:[#allocation3 + $0x180] sm:$0xff] %vm1701_vm10, %v3304_v31  ;;  %v2898_v53 = vpop.permute.xlu2 %2897  ;;  %v3435_v50 = vld [vmem:[#allocation3 + $0x120] sm:$0xff] }
 0x4ce   :  { %2988 = vst.msk [vmem:[#allocation3 + $0x128] sm:$0xff] %vm1315_vm8, %v2898_v53  ;;  %4350 = vmatmul.msk.f32.gmra.mxu2 %vm3472_vm11, %v3435_v50  ;;  %v2837_v53 = vld [vmem:[#allocation2 + $0xd8] sm:$0xff] }
 0x4cf   :  { %v2730_v11 = vpop.permute.xlu1 %2729 }
 0x4d0   :  { %2808 = vst.msk [vmem:[#allocation3 + $0x188] sm:$0xff] %vm1121_vm7, %v2730_v11  ;;  %v2838_v11 = vld [vmem:[#allocation2 + $0xe0] sm:$0xff] }
 0x4d1   :  { %2931 = vrot.lane.b32.xlu2 %v2845_v60, %s4420_s12 }
 0x4d2   :  { %2933 = vrot.lane.b32.xlu0 %v2846_v22, %s4420_s12 }
 0x4d4   :  { %v2922_v6 = vpop.permute.xlu0 %2921  ;;  %v3447_v52 = vld [vmem:[#allocation3 + $0x180] sm:$0xff] }
 0x4d5   :  { %3101 = vrot.lane.b32.xlu1 %v6428_v25, %s4421_s13  ;;  %3000 = vst.msk [vmem:[#allocation3 + $0x188] sm:$0xff] %vm1315_vm8, %v2922_v6  ;;  %4362 = vmatmul.msk.f32.vlgmr.msra.gmra.mxu3 %vm3472_vm11, %v3447_v52  ;;  %v3114_v46 = vpop.permute.xlu2 %3113  ;;  %v3217_v25 = vld [vmem:[#allocation2 + $0xaa] sm:$0xff]  ;;  %v3030_v6 = vld [vmem:[#allocation2 + $0xe1] sm:$0xff] }
 0x4d6   :  { %3192 = vst.msk [vmem:[#allocation3 + $0x188] sm:$0xff] %vm1508_vm9, %v3114_v46 }
 0x4d7   :  { %v3090_v44 = vpop.permute.xlu1 %3089 }
 0x4d8   :  { %3180 = vst.msk [vmem:[#allocation3 + $0x128] sm:$0xff] %vm1508_vm9, %v3090_v44 }
 0x4d9   :  { %3291 = vrot.lane.b32.xlu2 %v3217_v25, %s4422_s14 }
 0x4da   :  { %3293 = vrot.lane.b32.xlu0 %v3218_v54, %s4422_s14 }
 0x4dc   :  { %v3282_v63 = vpop.permute.xlu0 %3281 }
 0x4dd   :  { %3317 = vrot.lane.b32.xlu1 %v6726_v19, %s4422_s14  ;;  %3372 = vst.msk [vmem:[#allocation3 + $0x128] sm:$0xff] %vm1701_vm10, %v3282_v63  ;;  %v2732_v51 = vpop.permute.xlu2 %2731 }
 0x4de   :  { %2809 = vst.msk [vmem:[#allocation3 + $0x190] sm:$0xff] %vm1121_vm7, %v2732_v51 }
 0x4df   :  { %v3306_v28 = vpop.permute.xlu1 %3305 }
 0x4e0   :  { %3384 = vst.msk [vmem:[#allocation3 + $0x188] sm:$0xff] %vm1701_vm10, %v3306_v28 }
 0x4e1   :  { %2909 = vrot.lane.b32.xlu2 %v2834_v13, %s4420_s12 }
 0x4e2   :  { %2743 = vrot.lane.b32.xlu0 %v3229_v43, %s4419_s11 }
 0x4e4   :  { %v2900_v30 = vpop.permute.xlu0 %2899  ;;  %v3436_v2 = vld [vmem:[#allocation3 + $0x128] sm:$0xff] }
 0x4e5   :  { %2911 = vrot.lane.b32.xlu1 %v2835_v7, %s4420_s12  ;;  %2989 = vst.msk [vmem:[#allocation3 + $0x130] sm:$0xff] %vm1315_vm8, %v2900_v30  ;;  %4351 = vmatmul.msk.f32.gmra.mxu2 %vm3472_vm11, %v3436_v2  ;;  %v3092_v42 = vpop.permute.xlu2 %3091 }
 0x4e6   :  { %3181 = vst.msk [vmem:[#allocation3 + $0x130] sm:$0xff] %vm1508_vm9, %v3092_v42 }
 0x4e7   :  { %v2924_v45 = vpop.permute.xlu1 %2923  ;;  %v3448_v1 = vld [vmem:[#allocation3 + $0x188] sm:$0xff] }
 0x4e8   :  { %3001 = vst.msk [vmem:[#allocation3 + $0x190] sm:$0xff] %vm1315_vm8, %v2924_v45  ;;  %4363 = vmatmul.msk.f32.gmra.mxu3 %vm3472_vm11, %v3448_v1  ;;  %v3043_v45 = vld [vmem:[#allocation2 + $0x181] sm:$0xff] }
 0x4e9   :  { %3125 = vrot.lane.b32.xlu2 %v6495_v26, %s4421_s13 }
 0x4ea   :  { %3103 = vrot.lane.b32.xlu0 %v6329_v29, %s4421_s13 }
 0x4ec   :  { %v3116_v24 = vpop.permute.xlu0 %3115 }
 0x4ed   :  { %3127 = vrot.lane.b32.xlu1 %v6452_v20, %s4421_s13  ;;  %3193 = vst.msk [vmem:[#allocation3 + $0x190] sm:$0xff] %vm1508_vm9, %v3116_v24  ;;  %v3308_v40 = vpop.permute.xlu2 %3307 }
 0x4ee   :  { %3385 = vst.msk [vmem:[#allocation3 + $0x190] sm:$0xff] %vm1701_vm10, %v3308_v40 }
 0x4ef   :  { %v3284_v15 = vpop.permute.xlu1 %3283 }
 0x4f0   :  { %3373 = vst.msk [vmem:[#allocation3 + $0x130] sm:$0xff] %vm1701_vm10, %v3284_v15 }
 0x4f1   :  { %2719 = vrot.lane.b32.xlu2 %v3217_v25, %s4419_s11  ;;  %v6816_v25 = vld [vmem:[#allocation2 + $0x172] sm:$0xff] }
 0x4f2   :  { %3319 = vrot.lane.b32.xlu0 %v3231_v0, %s4422_s14 }
 0x4f4   :  { %v2734_v29 = vpop.permute.xlu0 %2733 }
 0x4f5   :  { %2721 = vrot.lane.b32.xlu1 %v3218_v54, %s4419_s11  ;;  %2810 = vst.msk [vmem:[#allocation3 + $0x198] sm:$0xff] %vm1121_vm7, %v2734_v29  ;;  %v2926_v26 = vpop.permute.xlu2 %2925  ;;  %v3449_v18 = vld [vmem:[#allocation3 + $0x190] sm:$0xff]  ;;  %v2850_v29 = vld [vmem:[#allocation2 + $0x170] sm:$0xff] }
 0x4f6   :  { %3002 = vst.msk [vmem:[#allocation3 + $0x198] sm:$0xff] %vm1315_vm8, %v2926_v26  ;;  %4364 = vmatmul.msk.f32.gmra.mxu3 %vm3472_vm11, %v3449_v18 }
 0x4f7   :  { %v2902_v20 = vpop.permute.xlu1 %2901  ;;  %v3437_v21 = vld [vmem:[#allocation3 + $0x130] sm:$0xff] }
 0x4f8   :  { %2990 = vst.msk [vmem:[#allocation3 + $0x138] sm:$0xff] %vm1315_vm8, %v2902_v20  ;;  %4352 = vmatmul.msk.f32.gmra.mxu2 %vm3472_vm11, %v3437_v21 }
 0x4f9   :  { %2935 = vrot.lane.b32.xlu2 %v2847_v10, %s4420_s12 }
 0x4fa   :  { %2913 = vrot.lane.b32.xlu0 %v2836_v55, %s4420_s12 }
 0x4fc   :  { %v3094_v12 = vpop.permute.xlu0 %3093 }
 0x4fd   :  { %2937 = vrot.lane.b32.xlu1 %v2848_v38, %s4420_s12  ;;  %3182 = vst.msk [vmem:[#allocation3 + $0x138] sm:$0xff] %vm1508_vm9, %v3094_v12  ;;  %v3286_v8 = vpop.permute.xlu2 %3285  ;;  %v2852_v38 = vld [vmem:[#allocation2 + $0x188] sm:$0xff] }
 0x4fe   :  { %3374 = vst.msk [vmem:[#allocation3 + $0x138] sm:$0xff] %vm1701_vm10, %v3286_v8 }
 0x4ff   :  { %v3118_v16 = vpop.permute.xlu1 %3117 }
 0x500   :  { %3194 = vst.msk [vmem:[#allocation3 + $0x198] sm:$0xff] %vm1508_vm9, %v3118_v16 }
 0x501   :  { %3295 = vrot.lane.b32.xlu2 %v3219_v59, %s4422_s14 }
 0x502   :  { %3129 = vrot.lane.b32.xlu0 %v6459_v32, %s4421_s13 }
 0x504   :  { %v3310_v39 = vpop.permute.xlu0 %3309 }
 0x505   :  { %3297 = vrot.lane.b32.xlu1 %v6767_v61, %s4422_s14  ;;  %3386 = vst.msk [vmem:[#allocation3 + $0x198] sm:$0xff] %vm1701_vm10, %v3310_v39  ;;  %v2904_v58 = vpop.permute.xlu2 %2903  ;;  %v3438_v5 = vld [vmem:[#allocation3 + $0x138] sm:$0xff] }
 0x506   :  { %2991 = vst.msk [vmem:[#allocation3 + $0x140] sm:$0xff] %vm1315_vm8, %v2904_v58  ;;  %4353 = vmatmul.msk.f32.gmra.mxu2 %vm3472_vm11, %v3438_v5 }
 0x507   :  { %v2736_v27 = vpop.permute.xlu1 %2735 }
 0x508   :  { %2811 = vst.msk [vmem:[#allocation3 + $0x1a0] sm:$0xff] %vm1121_vm7, %v2736_v27 }
 0x509   :  { %2745 = vrot.lane.b32.xlu2 %v6726_v19, %s4419_s11 }
 0x50a   :  { %2723 = vrot.lane.b32.xlu0 %v3219_v59, %s4419_s11 }
 0x50c   :  { %v2928_v32 = vpop.permute.xlu0 %2927  ;;  %v3450_v17 = vld [vmem:[#allocation3 + $0x198] sm:$0xff] }
 0x50d   :  { %2747 = vrot.lane.b32.xlu1 %v3231_v0, %s4419_s11  ;;  %3003 = vst.msk [vmem:[#allocation3 + $0x1a0] sm:$0xff] %vm1315_vm8, %v2928_v32  ;;  %4365 = vmatmul.msk.f32.gmra.mxu3 %vm3472_vm11, %v3450_v17  ;;  %v3120_v56 = vpop.permute.xlu2 %3119  ;;  %v3235_v0 = vld [vmem:[#allocation2 + $0x182] sm:$0xff] }
 0x50e   :  { %3195 = vst.msk [vmem:[#allocation3 + $0x1a0] sm:$0xff] %vm1508_vm9, %v3120_v56 }
 0x50f   :  { %v3096_v14 = vpop.permute.xlu1 %3095 }
 0x510   :  { %3183 = vst.msk [vmem:[#allocation3 + $0x140] sm:$0xff] %vm1508_vm9, %v3096_v14 }
 0x511   :  { %3105 = vrot.lane.b32.xlu2 %v3028_v41, %s4421_s13 }
 0x512   :  { %2939 = vrot.lane.b32.xlu0 %v2849_v33, %s4420_s12 }
 0x514   :  { %v3288_v4 = vpop.permute.xlu0 %3287 }
 0x515   :  { %3107 = vrot.lane.b32.xlu1 %v6449_v3, %s4421_s13  ;;  %3375 = vst.msk [vmem:[#allocation3 + $0x140] sm:$0xff] %vm1701_vm10, %v3288_v4  ;;  %v2738_v48 = vpop.permute.xlu2 %2737  ;;  %v3232_v3 = vld [vmem:[#allocation2 + $0x15a] sm:$0xff] }
 0x516   :  { %2812 = vst.msk [vmem:[#allocation3 + $0x1a8] sm:$0xff] %vm1121_vm7, %v2738_v48  ;;  %v2853_v4 = vld [vmem:[#allocation2 + $0x198] sm:$0xff] }
 0x517   :  { %v3312_v37 = vpop.permute.xlu1 %3311 }
 0x518   :  { %3387 = vst.msk [vmem:[#allocation3 + $0x1a0] sm:$0xff] %vm1701_vm10, %v3312_v37  ;;  %v2851_v37 = vld [vmem:[#allocation2 + $0x180] sm:$0xff] }
 0x519   :  { %3321 = vrot.lane.b32.xlu2 %v3232_v3, %s4422_s14 }
 0x51a   :  { %3299 = vrot.lane.b32.xlu0 %v6575_v49, %s4422_s14 }
 0x51c   :  { %v2906_v43 = vpop.permute.xlu0 %2905  ;;  %v3439_v34 = vld [vmem:[#allocation3 + $0x140] sm:$0xff] }
 0x51d   :  { %3323 = vrot.lane.b32.xlu1 %v3233_v47, %s4422_s14  ;;  %2992 = vst.msk [vmem:[#allocation3 + $0x148] sm:$0xff] %vm1315_vm8, %v2906_v43  ;;  %4354 = vmatmul.msk.f32.gmra.mxu2 %vm3472_vm11, %v3439_v34  ;;  %v3098_v49 = vpop.permute.xlu2 %3097  ;;  %v2662_v43 = vld [vmem:[#allocation2 + $0x18a] sm:$0xff] }
 0x51e   :  { %3184 = vst.msk [vmem:[#allocation3 + $0x148] sm:$0xff] %vm1508_vm9, %v3098_v49 }
 0x51f   :  { %v2930_v36 = vpop.permute.xlu1 %2929  ;;  %v3451_v31 = vld [vmem:[#allocation3 + $0x1a0] sm:$0xff] }
 0x520   :  { %3004 = vst.msk [vmem:[#allocation3 + $0x1a8] sm:$0xff] %vm1315_vm8, %v2930_v36  ;;  %4366 = vmatmul.msk.f32.gmra.mxu3 %vm3472_vm11, %v3451_v31 }
 0x521   :  { %2915 = vrot.lane.b32.xlu2 %v2837_v53, %s4420_s12  ;;  %v3046_v53 = vld [vmem:[#allocation2 + $0x1a1] sm:$0xff] }
 0x522   :  { %2749 = vrot.lane.b32.xlu0 %v3232_v3, %s4419_s11 }
 0x524   :  { %v3122_v22 = vpop.permute.xlu0 %3121 }
 0x525   :  { %2917 = vrot.lane.b32.xlu1 %v2838_v11, %s4420_s12  ;;  %3196 = vst.msk [vmem:[#allocation3 + $0x1a8] sm:$0xff] %vm1508_vm9, %v3122_v22  ;;  %v3314_v52 = vpop.permute.xlu2 %3313 }
 0x526   :  { %3388 = vst.msk [vmem:[#allocation3 + $0x1a8] sm:$0xff] %vm1701_vm10, %v3314_v52 }
 0x527   :  { %v3290_v50 = vpop.permute.xlu1 %3289 }
 0x528   :  { %3376 = vst.msk [vmem:[#allocation3 + $0x148] sm:$0xff] %vm1701_vm10, %v3290_v50 }
 0x529   :  { %3131 = vrot.lane.b32.xlu2 %v6510_v9, %s4421_s13 }
 0x52a   :  { %3109 = vrot.lane.b32.xlu0 %v3030_v6, %s4421_s13 }
 0x52c   :  { %v2740_v60 = vpop.permute.xlu0 %2739  ;;  %v3778_v44 = vpop.f32.mrf.mxu2 }
 0x52d   :  { %3133 = vrot.lane.b32.xlu1 %v6477_v57, %s4421_s13  ;;  %2813 = vst.msk [vmem:[#allocation3 + $0x1b0] sm:$0xff] %vm1121_vm7, %v2740_v60  ;;  %v4001_v54 = vsel %vm14_vm0, %v3778_v44, 0.0  ;;  %v4104_v46 = vmul.f32 %v3778_v44, %v3778_v44  ;;  %v2932_v7 = vpop.permute.xlu2 %2931  ;;  %v3452_v30 = vld [vmem:[#allocation3 + $0x1a8] sm:$0xff] }
 0x52e   :  { %3906 = vst.msk [vmem:[%s7194_s2 + $0x100] sm:$0xff] %vm14_vm0, %v3778_v44  ;;  %v4002_v28 = vadd.f32 %v4001_v54, %v6467_v23  ;;  %4367 = vmatmul.msk.f32.gmra.mxu3 %vm3472_vm11, %v3452_v30  ;;  %v3238_v54 = vld [vmem:[#allocation2 + $0x1a2] sm:$0xff] }
 0x52f   :  { %v2908_v19 = vpop.permute.xlu1 %2907  ;;  %v3440_v63 = vld [vmem:[#allocation3 + $0x148] sm:$0xff]  ;;  %v4199_v57 = vsel %vm14_vm0, %v4104_v46, 0.0  ;;  %3005 = vst.msk [vmem:[#allocation3 + $0x1b0] sm:$0xff] %vm1315_vm8, %v2932_v7 }
 0x530   :  { %2993 = vst.msk [vmem:[#allocation3 + $0x150] sm:$0xff] %vm1315_vm8, %v2908_v19  ;;  %4355 = vmatmul.msk.f32.gmra.mxu2 %vm3472_vm11, %v3440_v63  ;;  %v4200_v51 = vadd.f32 %v4199_v57, %v6475_v35 }
 0x531   :  { %2725 = vrot.lane.b32.xlu2 %v6767_v61, %s4419_s11  ;;  %v3044_v61 = vld [vmem:[#allocation2 + $0x189] sm:$0xff] }
 0x532   :  { %3325 = vrot.lane.b32.xlu0 %v6816_v25, %s4422_s14 }
 0x534   :  { %v3100_v23 = vpop.permute.xlu0 %3099  ;;  %v3781_v9 = vpop.f32.mrf.mxu2 }
 0x535   :  { %2751 = vrot.lane.b32.xlu1 %v3233_v47, %s4419_s11  ;;  %3185 = vst.msk [vmem:[#allocation3 + $0x150] sm:$0xff] %vm1508_vm9, %v3100_v23  ;;  %v4003_v35 = vsel %vm14_vm0, %v3781_v9, 0.0  ;;  %v4105_v2 = vmul.f32 %v3781_v9, %v3781_v9  ;;  %v3292_v15 = vpop.permute.xlu2 %3291  ;;  %v3237_v47 = vld [vmem:[#allocation2 + $0x19a] sm:$0xff] }
 0x536   :  { %3907 = vst.msk [vmem:[%s7194_s2 + $0x108] sm:$0xff] %vm14_vm0, %v3781_v9  ;;  %v4004_v1 = vadd.f32 %v4003_v35, %v4002_v28  ;;  %v3045_v28 = vld [vmem:[#allocation2 + $0x199] sm:$0xff] }
 0x537   :  { %v3124_v13 = vpop.permute.xlu1 %3123  ;;  %v4201_v42 = vsel %vm14_vm0, %v4105_v2, 0.0  ;;  %3377 = vst.msk [vmem:[#allocation3 + $0x150] sm:$0xff] %vm1701_vm10, %v3292_v15 }
 0x538   :  { %3197 = vst.msk [vmem:[#allocation3 + $0x1b0] sm:$0xff] %vm1508_vm9, %v3124_v13  ;;  %v4202_v24 = vadd.f32 %v4201_v42, %v4200_v51 }
 0x539   :  { %2941 = vrot.lane.b32.xlu2 %v2850_v29, %s4420_s12 }
 0x53a   :  { %3135 = vrot.lane.b32.xlu0 %v3043_v45, %s4421_s13 }
 0x53c   :  { %v3316_v40 = vpop.permute.xlu0 %3315  ;;  %v3784_v20 = vpop.f32.mrf.mxu2 }
 0x53d   :  { %3327 = vrot.lane.b32.xlu1 %v3235_v0, %s4422_s14  ;;  %3389 = vst.msk [vmem:[#allocation3 + $0x1b0] sm:$0xff] %vm1701_vm10, %v3316_v40  ;;  %v4005_v21 = vsel %vm14_vm0, %v3784_v20, 0.0  ;;  %v4106_v55 = vmul.f32 %v3784_v20, %v3784_v20  ;;  %v2910_v16 = vpop.permute.xlu2 %2909 }
 0x53e   :  { %3908 = vst.msk [vmem:[%s7194_s2 + $0x110] sm:$0xff] %vm14_vm0, %v3784_v20  ;;  %v4006_v18 = vadd.f32 %v4005_v21, %v4004_v1  ;;  %v3441_v8 = vld [vmem:[#allocation3 + $0x150] sm:$0xff] }
 0x53f   :  { %v2742_v26 = vpop.permute.xlu1 %2741  ;;  %v4203_v12 = vsel %vm14_vm0, %v4106_v55, 0.0  ;;  %2994 = vst.msk [vmem:[#allocation3 + $0x158] sm:$0xff] %vm1315_vm8, %v2910_v16  ;;  %4356 = vmatmul.msk.f32.gmra.mxu2 %vm3472_vm11, %v3441_v8 }
 0x540   :  { %2814 = vst.msk [vmem:[#allocation3 + $0x1b8] sm:$0xff] %vm1121_vm7, %v2742_v26  ;;  %v4204_v10 = vadd.f32 %v4203_v12, %v4202_v24  ;;  %v2854_v24 = vld [vmem:[#allocation2 + $0x1a0] sm:$0xff] }
 0x541   :  { %3301 = vrot.lane.b32.xlu2 %v6597_v62, %s4422_s14 }
 0x542   :  { %2945 = vrot.lane.b32.xlu0 %v2852_v38, %s4420_s12 }
 0x544   :  { %v2934_v39 = vpop.permute.xlu0 %2933  ;;  %v3453_v59 = vld [vmem:[#allocation3 + $0x1b0] sm:$0xff]  ;;  %v3787_v27 = vpop.f32.mrf.mxu2 }
 0x545   :  { %3137 = vrot.lane.b32.xlu1 %v3044_v61, %s4421_s13  ;;  %3006 = vst.msk [vmem:[#allocation3 + $0x1b8] sm:$0xff] %vm1315_vm8, %v2934_v39  ;;  %4368 = vmatmul.msk.f32.gmra.mxu3 %vm3472_vm11, %v3453_v59  ;;  %v4007_v58 = vsel %vm14_vm0, %v3787_v27, 0.0  ;;  %v4107_v5 = vmul.f32 %v3787_v27, %v3787_v27  ;;  %v3126_v56 = vpop.permute.xlu2 %3125 }
 0x546   :  { %3909 = vst.msk [vmem:[%s7194_s2 + $0x118] sm:$0xff] %vm14_vm0, %v3787_v27  ;;  %v4008_v17 = vadd.f32 %v4007_v58, %v4006_v18 }
 0x547   :  { %v3102_v32 = vpop.permute.xlu1 %3101  ;;  %v4205_v14 = vsel %vm14_vm0, %v4107_v5, 0.0  ;;  %3198 = vst.msk [vmem:[#allocation3 + $0x1b8] sm:$0xff] %vm1508_vm9, %v3126_v56 }
 0x548   :  { %3186 = vst.msk [vmem:[#allocation3 + $0x158] sm:$0xff] %vm1508_vm9, %v3102_v32  ;;  %v4206_v33 = vadd.f32 %v4205_v14, %v4204_v10 }
 0x549   :  { %2943 = vrot.lane.b32.xlu2 %v2851_v37, %s4420_s12 }
 0x54a   :  { %2755 = vrot.lane.b32.xlu0 %v3235_v0, %s4419_s11 }
 0x54c   :  { %v3294_v41 = vpop.permute.xlu0 %3293 }
 0x54d   :  { %2947 = vrot.lane.b32.xlu1 %v2853_v4, %s4420_s12  ;;  %3378 = vst.msk [vmem:[#allocation3 + $0x158] sm:$0xff] %vm1701_vm10, %v3294_v41  ;;  %v2720_v62 = vpop.permute.xlu2 %2719 }
 0x54e   :  { %2803 = vst.msk [vmem:[#allocation3 + $0x160] sm:$0xff] %vm1121_vm7, %v2720_v62 }
 0x54f   :  { %v3318_v48 = vpop.permute.xlu1 %3317 }
 0x550   :  { %3390 = vst.msk [vmem:[#allocation3 + $0x1b8] sm:$0xff] %vm1701_vm10, %v3318_v48 }
 0x551   :  { %v3790_v36 = vpop.f32.mrf.mxu2  ;;  %2753 = vrot.lane.b32.xlu2 %v6816_v25, %s4419_s11 }
 0x552   :  { %3331 = vrot.lane.b32.xlu0 %v3237_v47, %s4422_s14  ;;  %3910 = vst.msk [vmem:[%s7194_s2 + $0x120] sm:$0xff] %vm14_vm0, %v3790_v36  ;;  %v4009_v31 = vsel %vm14_vm0, %v3790_v36, 0.0  ;;  %v4108_v49 = vmul.f32 %v3790_v36, %v3790_v36 }
 0x553   :  { %v4010_v50 = vadd.f32 %v4009_v31, %v4008_v17 }
 0x554   :  { %v2744_v34 = vpop.permute.xlu0 %2743  ;;  %v3442_v3 = vld [vmem:[#allocation3 + $0x158] sm:$0xff]  ;;  %v4207_v52 = vsel %vm14_vm0, %v4108_v49, 0.0 }
 0x555   :  { %2757 = vrot.lane.b32.xlu1 %v2662_v43, %s4419_s11  ;;  %2815 = vst.msk [vmem:[#allocation3 + $0x1c0] sm:$0xff] %vm1121_vm7, %v2744_v34  ;;  %4357 = vmatmul.msk.f32.gmra.mxu2 %vm3472_vm11, %v3442_v3  ;;  %v4208_v60 = vadd.f32 %v4207_v52, %v4206_v33  ;;  %v2936_v44 = vpop.permute.xlu2 %2935 }
 0x556   :  { %3007 = vst.msk [vmem:[#allocation3 + $0x1c0] sm:$0xff] %vm1315_vm8, %v2936_v44 }
 0x557   :  { %v2912_v11 = vpop.permute.xlu1 %2911  ;;  %v3454_v22 = vld [vmem:[#allocation3 + $0x1b8] sm:$0xff] }
 0x558   :  { %2995 = vst.msk [vmem:[#allocation3 + $0x160] sm:$0xff] %vm1315_vm8, %v2912_v11  ;;  %4369 = vmatmul.msk.f32.gmra.mxu3 %vm3472_vm11, %v3454_v22  ;;  %v6887_v6 = vpop.f32.mrf.mxu3 }
 0x559   :  { %3922 = vst.msk [vmem:[%s7194_s2 + $0x180] sm:$0xff] %vm14_vm0, %v6887_v6  ;;  %3329 = vrot.lane.b32.xlu2 %v2662_v43, %s4422_s14 }
 0x55a   :  { %3141 = vrot.lane.b32.xlu0 %v3046_v53, %s4421_s13 }
 0x55c   :  { %v3104_v46 = vpop.permute.xlu0 %3103 }
 0x55d   :  { %3333 = vrot.lane.b32.xlu1 %v3238_v54, %s4422_s14  ;;  %3187 = vst.msk [vmem:[#allocation3 + $0x160] sm:$0xff] %vm1508_vm9, %v3104_v46  ;;  %v3296_v63 = vpop.permute.xlu2 %3295 }
 0x55e   :  { %3379 = vst.msk [vmem:[#allocation3 + $0x160] sm:$0xff] %vm1701_vm10, %v3296_v63 }
 0x55f   :  { %v3128_v19 = vpop.permute.xlu1 %3127 }
 0x560   :  { %3199 = vst.msk [vmem:[#allocation3 + $0x1c0] sm:$0xff] %vm1508_vm9, %v3128_v19 }
 0x561   :  { %3139 = vrot.lane.b32.xlu2 %v3045_v28, %s4421_s13 }
 0x564   :  { %v3320_v25 = vpop.permute.xlu0 %3319 }
 0x565   :  { %3391 = vst.msk [vmem:[#allocation3 + $0x1c0] sm:$0xff] %vm1701_vm10, %v3320_v25  ;;  %v2746_v23 = vpop.permute.xlu2 %2745  ;;  %v3443_v9 = vld [vmem:[#allocation3 + $0x160] sm:$0xff] }
 0x566   :  { %2816 = vst.msk [vmem:[#allocation3 + $0x1c8] sm:$0xff] %vm1121_vm7, %v2746_v23  ;;  %4358 = vmatmul.msk.f32.gmra.mxu2 %vm3472_vm11, %v3443_v9 }
 0x567   :  { %v2722_v57 = vpop.permute.xlu1 %2721 }
 0x568   :  { %2804 = vst.msk [vmem:[#allocation3 + $0x168] sm:$0xff] %vm1121_vm7, %v2722_v57  ;;  %v3793_v51 = vpop.f32.mrf.mxu2 }
 0x569   :  { %3911 = vst.msk [vmem:[%s7194_s2 + $0x128] sm:$0xff] %vm14_vm0, %v3793_v51  ;;  %v4011_v7 = vsel %vm14_vm0, %v3793_v51, 0.0  ;;  %v4109_v30 = vmul.f32 %v3793_v51, %v3793_v51  ;;  %2949 = vrot.lane.b32.xlu2 %v2854_v24, %s4420_s12 }
 0x56a   :  { %v4012_v35 = vadd.f32 %v4011_v7, %v4010_v50 }
 0x56b   :  { %v4209_v2 = vsel %vm14_vm0, %v4109_v30, 0.0  ;;  %v6913_v13 = vpop.f32.mrf.mxu3 }
 0x56c   :  { %v4210_v45 = vadd.f32 %v4209_v2, %v4208_v60  ;;  %3923 = vst.msk [vmem:[%s7194_s2 + $0x188] sm:$0xff] %vm14_vm0, %v6913_v13  ;;  %v2914_v1 = vpop.permute.xlu0 %2913  ;;  %v3455_v42 = vld [vmem:[#allocation3 + $0x1c0] sm:$0xff] }
 0x56d   :  { %2996 = vst.msk [vmem:[#allocation3 + $0x168] sm:$0xff] %vm1315_vm8, %v2914_v1  ;;  %4370 = vmatmul.msk.f32.gmra.mxu3 %vm3472_vm11, %v3455_v42  ;;  %v3106_v0 = vpop.permute.xlu2 %3105 }
 0x56e   :  { %3188 = vst.msk [vmem:[#allocation3 + $0x168] sm:$0xff] %vm1508_vm9, %v3106_v0 }
 0x56f   :  { %v2938_v15 = vpop.permute.xlu1 %2937 }
 0x570   :  { %3008 = vst.msk [vmem:[#allocation3 + $0x1c8] sm:$0xff] %vm1315_vm8, %v2938_v15 }
 0x574   :  { %v3130_v40 = vpop.permute.xlu0 %3129 }
 0x575   :  { %3200 = vst.msk [vmem:[#allocation3 + $0x1c8] sm:$0xff] %vm1508_vm9, %v3130_v40  ;;  %v3322_v20 = vpop.permute.xlu2 %3321 }
 0x576   :  { %3392 = vst.msk [vmem:[#allocation3 + $0x1c8] sm:$0xff] %vm1701_vm10, %v3322_v20 }
 0x577   :  { %v3298_v29 = vpop.permute.xlu1 %3297 }
 0x578   :  { %3380 = vst.msk [vmem:[#allocation3 + $0x168] sm:$0xff] %vm1701_vm10, %v3298_v29 }
 0x579   :  { %v6935_v10 = vpop.f32.mrf.mxu3 }
 0x57a   :  { %3924 = vst.msk [vmem:[%s7194_s2 + $0x190] sm:$0xff] %vm14_vm0, %v6935_v10 }
 0x57b   :  { %v3796_v21 = vpop.f32.mrf.mxu2 }
 0x57c   :  { %3912 = vst.msk [vmem:[%s7194_s2 + $0x130] sm:$0xff] %vm14_vm0, %v3796_v21  ;;  %v4013_v55 = vsel %vm14_vm0, %v3796_v21, 0.0  ;;  %v4110_v26 = vmul.f32 %v3796_v21, %v3796_v21  ;;  %v2724_v38 = vpop.permute.xlu0 %2723 }
 0x57d   :  { %v4014_v18 = vadd.f32 %v4013_v55, %v4012_v35  ;;  %2805 = vst.msk [vmem:[#allocation3 + $0x170] sm:$0xff] %vm1121_vm7, %v2724_v38  ;;  %v2916_v39 = vpop.permute.xlu2 %2915  ;;  %v3456_v59 = vld [vmem:[#allocation3 + $0x1c8] sm:$0xff] }
 0x57e   :  { %v4211_v12 = vsel %vm14_vm0, %v4110_v26, 0.0  ;;  %2997 = vst.msk [vmem:[#allocation3 + $0x170] sm:$0xff] %vm1315_vm8, %v2916_v39  ;;  %4371 = vmatmul.msk.f32.gmra.mxu3 %vm3472_vm11, %v3456_v59 }
 0x57f   :  { %v4212_v16 = vadd.f32 %v4211_v12, %v4210_v45  ;;  %v2748_v8 = vpop.permute.xlu1 %2747  ;;  %v3444_v61 = vld [vmem:[#allocation3 + $0x168] sm:$0xff] }
 0x580   :  { %2817 = vst.msk [vmem:[#allocation3 + $0x1d0] sm:$0xff] %vm1121_vm7, %v2748_v8  ;;  %4359 = vmatmul.msk.f32.gmra.mxu2 %vm3472_vm11, %v3444_v61 }
 0x584   :  { %v2940_v27 = vpop.permute.xlu0 %2939 }
 0x585   :  { %3009 = vst.msk [vmem:[#allocation3 + $0x1d0] sm:$0xff] %vm1315_vm8, %v2940_v27  ;;  %v3132_v5 = vpop.permute.xlu2 %3131 }
 0x586   :  { %3201 = vst.msk [vmem:[#allocation3 + $0x1d0] sm:$0xff] %vm1508_vm9, %v3132_v5 }
 0x587   :  { %v3108_v58 = vpop.permute.xlu1 %3107 }
 0x588   :  { %3189 = vst.msk [vmem:[#allocation3 + $0x170] sm:$0xff] %vm1508_vm9, %v3108_v58 }
 0x589   :  { %v3799_v17 = vpop.f32.mrf.mxu2 }
 0x58a   :  { %3913 = vst.msk [vmem:[%s7194_s2 + $0x138] sm:$0xff] %vm14_vm0, %v3799_v17  ;;  %v4015_v14 = vsel %vm14_vm0, %v3799_v17, 0.0  ;;  %v4111_v33 = vmul.f32 %v3799_v17, %v3799_v17 }
 0x58b   :  { %v4016_v4 = vadd.f32 %v4015_v14, %v4014_v18 }
 0x58c   :  { %v3300_v32 = vpop.permute.xlu0 %3299  ;;  %v4213_v37 = vsel %vm14_vm0, %v4111_v33, 0.0 }
 0x58d   :  { %3381 = vst.msk [vmem:[#allocation3 + $0x170] sm:$0xff] %vm1701_vm10, %v3300_v32  ;;  %v4214_v48 = vadd.f32 %v4213_v37, %v4212_v16  ;;  %v2726_v47 = vpop.permute.xlu2 %2725 }
 0x58e   :  { %2806 = vst.msk [vmem:[#allocation3 + $0x178] sm:$0xff] %vm1121_vm7, %v2726_v47 }
 0x58f   :  { %v3324_v56 = vpop.permute.xlu1 %3323 }
 0x590   :  { %3393 = vst.msk [vmem:[#allocation3 + $0x1d0] sm:$0xff] %vm1701_vm10, %v3324_v56  ;;  %v6956_v41 = vpop.f32.mrf.mxu3 }
 0x591   :  { %3925 = vst.msk [vmem:[%s7194_s2 + $0x198] sm:$0xff] %vm14_vm0, %v6956_v41 }
 0x594   :  { %v2750_v62 = vpop.permute.xlu0 %2749  ;;  %v3445_v43 = vld [vmem:[#allocation3 + $0x170] sm:$0xff] }
 0x595   :  { %2818 = vst.msk [vmem:[#allocation3 + $0x1d8] sm:$0xff] %vm1121_vm7, %v2750_v62  ;;  %4360 = vmatmul.msk.f32.gmra.mxu2 %vm3472_vm11, %v3445_v43  ;;  %v2942_v36 = vpop.permute.xlu2 %2941 }
 0x596   :  { %3010 = vst.msk [vmem:[#allocation3 + $0x1d8] sm:$0xff] %vm1315_vm8, %v2942_v36 }
 0x597   :  { %v2918_v34 = vpop.permute.xlu1 %2917  ;;  %v3457_v3 = vld [vmem:[#allocation3 + $0x1d0] sm:$0xff] }
 0x598   :  { %2998 = vst.msk [vmem:[#allocation3 + $0x178] sm:$0xff] %vm1315_vm8, %v2918_v34  ;;  %4372 = vmatmul.msk.f32.gmra.mxu3 %vm3472_vm11, %v3457_v3 }
 0x59c   :  { %v3110_v31 = vpop.permute.xlu0 %3109 }
 0x59d   :  { %3190 = vst.msk [vmem:[#allocation3 + $0x178] sm:$0xff] %vm1508_vm9, %v3110_v31  ;;  %v3302_v50 = vpop.permute.xlu2 %3301 }
 0x59e   :  { %3382 = vst.msk [vmem:[#allocation3 + $0x178] sm:$0xff] %vm1701_vm10, %v3302_v50 }
 0x59f   :  { %v3134_v49 = vpop.permute.xlu1 %3133 }
 0x5a0   :  { %3202 = vst.msk [vmem:[#allocation3 + $0x1d8] sm:$0xff] %vm1508_vm9, %v3134_v49  ;;  %v3802_v11 = vpop.f32.mrf.mxu2 }
 0x5a1   :  { %3914 = vst.msk [vmem:[%s7194_s2 + $0x140] sm:$0xff] %vm14_vm0, %v3802_v11  ;;  %v4017_v22 = vsel %vm14_vm0, %v3802_v11, 0.0  ;;  %v4112_v53 = vmul.f32 %v3802_v11, %v3802_v11 }
 0x5a2   :  { %v4018_v52 = vadd.f32 %v4017_v22, %v4016_v4 }
 0x5a3   :  { %v4215_v60 = vsel %vm14_vm0, %v4112_v53, 0.0  ;;  %v6979_v44 = vpop.f32.mrf.mxu3 }
 0x5a4   :  { %v4216_v54 = vadd.f32 %v4215_v60, %v4214_v48  ;;  %3926 = vst.msk [vmem:[%s7194_s2 + $0x1a0] sm:$0xff] %vm14_vm0, %v6979_v44  ;;  %v3326_v46 = vpop.permute.xlu0 %3325 }
 0x5a5   :  { %3394 = vst.msk [vmem:[#allocation3 + $0x1d8] sm:$0xff] %vm1701_vm10, %v3326_v46  ;;  %v3446_v63 = vld [vmem:[#allocation3 + $0x178] sm:$0xff]  ;;  %v2944_v25 = vpop.permute.xlu2 %2943 }
 0x5a6   :  { %4361 = vmatmul.msk.f32.gmra.mxu2 %vm3472_vm11, %v3446_v63 }
 0x5a7   :  { %v2752_v19 = vpop.permute.xlu1 %2751 }
 0x5a8   :  { %2819 = vst.msk [vmem:[#allocation3 + $0x1e0] sm:$0xff] %vm1121_vm7, %v2752_v19 }
 0x5a9   :  { %3011 = vst.msk [vmem:[#allocation3 + $0x1e0] sm:$0xff] %vm1315_vm8, %v2944_v25 }
 0x5ac   :  { %v3136_v28 = vpop.permute.xlu0 %3135  ;;  %v3458_v57 = vld [vmem:[#allocation3 + $0x1d8] sm:$0xff] }
 0x5ad   :  { %3203 = vst.msk [vmem:[#allocation3 + $0x1e0] sm:$0xff] %vm1508_vm9, %v3136_v28  ;;  %4373 = vmatmul.msk.f32.gmra.mxu3 %vm3472_vm11, %v3458_v57  ;;  %v2754_v7 = vpop.permute.xlu2 %2753 }
 0x5ae   :  { %2820 = vst.msk [vmem:[#allocation3 + $0x1e8] sm:$0xff] %vm1121_vm7, %v2754_v7 }
 0x5af   :  { %v3328_v51 = vpop.permute.xlu1 %3327 }
 0x5b0   :  { %3395 = vst.msk [vmem:[#allocation3 + $0x1e0] sm:$0xff] %vm1701_vm10, %v3328_v51  ;;  %v4120_v51 = vmul.f32 %v6887_v6, %v6887_v6 }
 0x5b1   :  { %v7001_v1 = vpop.f32.mrf.mxu3 }
 0x5b2   :  { %3927 = vst.msk [vmem:[%s7194_s2 + $0x1a8] sm:$0xff] %vm14_vm0, %v7001_v1 }
 0x5b3   :  { %v3805_v30 = vpop.f32.mrf.mxu2 }
 0x5b4   :  { %3915 = vst.msk [vmem:[%s7194_s2 + $0x148] sm:$0xff] %vm14_vm0, %v3805_v30  ;;  %v4019_v23 = vsel %vm14_vm0, %v3805_v30, 0.0  ;;  %v4113_v9 = vmul.f32 %v3805_v30, %v3805_v30  ;;  %v2946_v35 = vpop.permute.xlu0 %2945 }
 0x5b5   :  { %v4020_v2 = vadd.f32 %v4019_v23, %v4018_v52  ;;  %3012 = vst.msk [vmem:[#allocation3 + $0x1e8] sm:$0xff] %vm1315_vm8, %v2946_v35  ;;  %v3330_v0 = vpop.permute.xlu2 %3329 }
 0x5b6   :  { %v4217_v45 = vsel %vm14_vm0, %v4113_v9, 0.0 }
 0x5b7   :  { %v4218_v42 = vadd.f32 %v4217_v45, %v4216_v54  ;;  %v3138_v24 = vpop.permute.xlu1 %3137  ;;  %v3459_v15 = vld [vmem:[#allocation3 + $0x1e0] sm:$0xff]  ;;  %v4121_v45 = vmul.f32 %v6913_v13, %v6913_v13 }
 0x5b8   :  { %3204 = vst.msk [vmem:[#allocation3 + $0x1e8] sm:$0xff] %vm1508_vm9, %v3138_v24  ;;  %4374 = vmatmul.msk.f32.gmra.mxu3 %vm3472_vm11, %v3459_v15 }
 0x5b9   :  { %3396 = vst.msk [vmem:[#allocation3 + $0x1e8] sm:$0xff] %vm1701_vm10, %v3330_v0  ;;  %v4231_v0 = vsel %vm14_vm0, %v4120_v51, 0.0 }
 0x5bc   :  { %v2756_v40 = vpop.permute.xlu0 %2755 }
 0x5bd   :  { %2821 = vst.msk [vmem:[#allocation3 + $0x1f0] sm:$0xff] %vm1121_vm7, %v2756_v40  ;;  %v3140_v21 = vpop.permute.xlu2 %3139  ;;  %v4035_v40 = vsel %vm14_vm0, %v6913_v13, 0.0  ;;  %v4039_v13 = vsel %vm14_vm0, %v6956_v41, 0.0 }
 0x5bf   :  { %v2948_v29 = vpop.permute.xlu1 %2947 }
 0x5c0   :  { %3013 = vst.msk [vmem:[#allocation3 + $0x1f0] sm:$0xff] %vm1315_vm8, %v2948_v29  ;;  %v3460_v20 = vld [vmem:[#allocation3 + $0x1e8] sm:$0xff] }
 0x5c1   :  { %4375 = vmatmul.msk.f32.gmra.mxu3 %vm3472_vm11, %v3460_v20  ;;  %3205 = vst.msk [vmem:[#allocation3 + $0x1f0] sm:$0xff] %vm1508_vm9, %v3140_v21  ;;  %v4233_v21 = vsel %vm14_vm0, %v4121_v45, 0.0 }
 0x5c2   :  { %v3808_v26 = vpop.f32.mrf.mxu2 }
 0x5c3   :  { %3916 = vst.msk [vmem:[%s7194_s2 + $0x150] sm:$0xff] %vm14_vm0, %v3808_v26  ;;  %v4021_v38 = vsel %vm14_vm0, %v3808_v26, 0.0  ;;  %v4114_v18 = vmul.f32 %v3808_v26, %v3808_v26  ;;  %v4123_v26 = vmul.f32 %v6956_v41, %v6956_v41  ;;  %v4043_v41 = vsel %vm14_vm0, %v7001_v1, 0.0 }
 0x5c4   :  { %v3332_v55 = vpop.permute.xlu0 %3331  ;;  %v4022_v16 = vadd.f32 %v4021_v38, %v4020_v2  ;;  %v4033_v2 = vsel %vm14_vm0, %v6887_v6, 0.0  ;;  %v4122_v6 = vmul.f32 %v6935_v10, %v6935_v10 }
 0x5c5   :  { %3397 = vst.msk [vmem:[#allocation3 + $0x1f0] sm:$0xff] %vm1701_vm10, %v3332_v55  ;;  %v4219_v61 = vsel %vm14_vm0, %v4114_v18, 0.0  ;;  %v2950_v59 = vpop.permute.xlu2 %2949  ;;  %v4037_v55 = vsel %vm14_vm0, %v6935_v10, 0.0  ;;  %v4041_v10 = vsel %vm14_vm0, %v6979_v44, 0.0 }
 0x5c6   :  { %v4220_v39 = vadd.f32 %v4219_v61, %v4218_v42 }
 0x5c7   :  { %v2758_v12 = vpop.permute.xlu1 %2757 }
 0x5c8   :  { %2822 = vst.msk [vmem:[#allocation3 + $0x1f8] sm:$0xff] %vm1121_vm7, %v2758_v12  ;;  %v7022_v8 = vpop.f32.mrf.mxu3  ;;  %v4235_v12 = vsel %vm14_vm0, %v4122_v6, 0.0 }
 0x5c9   :  { %3928 = vst.msk [vmem:[%s7194_s2 + $0x1b0] sm:$0xff] %vm14_vm0, %v7022_v8 }
 0x5ca   :  { %3014 = vst.msk [vmem:[#allocation3 + $0x1f8] sm:$0xff] %vm1315_vm8, %v2950_v59  ;;  %v4237_v59 = vsel %vm14_vm0, %v4123_v26, 0.0 }
 0x5cc   :  { %v3142_v27 = vpop.permute.xlu0 %3141  ;;  %v3461_v58 = vld [vmem:[#allocation3 + $0x1f0] sm:$0xff] }
 0x5cd   :  { %3206 = vst.msk [vmem:[#allocation3 + $0x1f8] sm:$0xff] %vm1508_vm9, %v3142_v27  ;;  %4376 = vmatmul.msk.f32.gmra.mxu3 %vm3472_vm11, %v3461_v58  ;;  %v4125_v27 = vmul.f32 %v7001_v1, %v7001_v1 }
 0x5cf   :  { %v3334_v5 = vpop.permute.xlu1 %3333 }
 0x5d0   :  { %3398 = vst.msk [vmem:[#allocation3 + $0x1f8] sm:$0xff] %vm1701_vm10, %v3334_v5 }
 0x5d7   :  { %v3462_v32 = vld [vmem:[#allocation3 + $0x1f8] sm:$0xff] }
 0x5d8   :  { %4377 = vmatmul.msk.f32.gmra.mxu3 %vm3472_vm11, %v3462_v32  ;;  %v3811_v17 = vpop.f32.mrf.mxu2 }
 0x5d9   :  { %3917 = vst.msk [vmem:[%s7194_s2 + $0x158] sm:$0xff] %vm14_vm0, %v3811_v17  ;;  %v4023_v14 = vsel %vm14_vm0, %v3811_v17, 0.0  ;;  %v4115_v33 = vmul.f32 %v3811_v17, %v3811_v17  ;;  %v4126_v17 = vmul.f32 %v7022_v8, %v7022_v8 }
 0x5da   :  { %v4024_v56 = vadd.f32 %v4023_v14, %v4022_v16  ;;  %v4124_v16 = vmul.f32 %v6979_v44, %v6979_v44  ;;  %v4241_v44 = vsel %vm14_vm0, %v4125_v27, 0.0 }
 0x5db   :  { %v4221_v4 = vsel %vm14_vm0, %v4115_v33, 0.0  ;;  %v7041_v37 = vpop.f32.mrf.mxu3 }
 0x5dc   :  { %v4222_v48 = vadd.f32 %v4221_v4, %v4220_v39  ;;  %3929 = vst.msk [vmem:[%s7194_s2 + $0x1b8] sm:$0xff] %vm14_vm0, %v7041_v37  ;;  %v4239_v32 = vsel %vm14_vm0, %v4124_v16, 0.0  ;;  %v4045_v4 = vsel %vm14_vm0, %v7022_v8, 0.0 }
 0x5e9   :  { %v3814_v47 = vpop.f32.mrf.mxu2 }
 0x5ea   :  { %3918 = vst.msk [vmem:[%s7194_s2 + $0x160] sm:$0xff] %vm14_vm0, %v3814_v47  ;;  %v4025_v62 = vsel %vm14_vm0, %v3814_v47, 0.0  ;;  %v4116_v43 = vmul.f32 %v3814_v47, %v3814_v47 }
 0x5eb   :  { %v4026_v34 = vadd.f32 %v4025_v62, %v4024_v56  ;;  %v4243_v62 = vsel %vm14_vm0, %v4126_v17, 0.0 }
 0x5ec   :  { %v4223_v36 = vsel %vm14_vm0, %v4116_v43, 0.0  ;;  %v4047_v43 = vsel %vm14_vm0, %v7041_v37, 0.0 }
 0x5ed   :  { %v4224_v31 = vadd.f32 %v4223_v36, %v4222_v48  ;;  %v4127_v48 = vmul.f32 %v7041_v37, %v7041_v37 }
 0x5f0   :  { %v7053_v3 = vpop.f32.mrf.mxu3 }
 0x5f1   :  { %3930 = vst.msk [vmem:[%s7194_s2 + $0x1c0] sm:$0xff] %vm14_vm0, %v7053_v3  ;;  %v4049_v8 = vsel %vm14_vm0, %v7053_v3, 0.0 }
 0x601   :  { %v7065_v11 = vpop.f32.mrf.mxu3 }
 0x602   :  { %3931 = vst.msk [vmem:[%s7194_s2 + $0x1c8] sm:$0xff] %vm14_vm0, %v7065_v11  ;;  %v4051_v37 = vsel %vm14_vm0, %v7065_v11, 0.0 }
 0x603   :  { %v3817_v49 = vpop.f32.mrf.mxu2 }
 0x604   :  { %3919 = vst.msk [vmem:[%s7194_s2 + $0x168] sm:$0xff] %vm14_vm0, %v3817_v49  ;;  %v4117_v50 = vmul.f32 %v3817_v49, %v3817_v49  ;;  %v4027_v52 = vsel %vm14_vm0, %v3817_v49, 0.0  ;;  %v4245_v49 = vsel %vm14_vm0, %v4127_v48, 0.0 }
 0x605   :  { %v4028_v19 = vadd.f32 %v4027_v52, %v4026_v34  ;;  %v4128_v34 = vmul.f32 %v7053_v3, %v7053_v3 }
 0x606   :  { %v4225_v54 = vsel %vm14_vm0, %v4117_v50, 0.0 }
 0x607   :  { %v4226_v25 = vadd.f32 %v4225_v54, %v4224_v31 }
 0x618   :  { %v3820_v22 = vpop.f32.mrf.mxu2 }
 0x619   :  { %3920 = vst.msk [vmem:[%s7194_s2 + $0x170] sm:$0xff] %vm14_vm0, %v3820_v22  ;;  %v4118_v60 = vmul.f32 %v3820_v22, %v3820_v22  ;;  %v4029_v46 = vsel %vm14_vm0, %v3820_v22, 0.0  ;;  %v4129_v22 = vmul.f32 %v7065_v11, %v7065_v11 }
 0x61a   :  { %v4030_v28 = vadd.f32 %v4029_v46, %v4028_v19 }
 0x61b   :  { %v7076_v53 = vpop.f32.mrf.mxu3  ;;  %v4227_v63 = vsel %vm14_vm0, %v4118_v60, 0.0  ;;  %v4247_v60 = vsel %vm14_vm0, %v4128_v34, 0.0  ;;  %v4249_v19 = vsel %vm14_vm0, %v4129_v22, 0.0 }
 0x61c   :  { %3932 = vst.msk [vmem:[%s7194_s2 + $0x1d0] sm:$0xff] %vm14_vm0, %v7076_v53  ;;  %v4228_v23 = vadd.f32 %v4227_v63, %v4226_v25  ;;  %v4130_v3 = vmul.f32 %v7076_v53, %v7076_v53 }
 0x61e   :  { %v4251_v11 = vsel %vm14_vm0, %v4130_v3, 0.0 }
 0x629   :  { %v3823_v57 = vpop.f32.mrf.mxu2 }
 0x62a   :  { %3921 = vst.msk [vmem:[%s7194_s2 + $0x178] sm:$0xff] %vm14_vm0, %v3823_v57  ;;  %v4031_v7 = vsel %vm14_vm0, %v3823_v57, 0.0  ;;  %v4119_v30 = vmul.f32 %v3823_v57, %v3823_v57 }
 0x62b   :  { %v4032_v9 = vadd.f32 %v4031_v7, %v4030_v28  ;;  %v4053_v28 = vsel %vm14_vm0, %v7076_v53, 0.0 }
 0x62c   :  { %v4229_v42 = vsel %vm14_vm0, %v4119_v30, 0.0 }
 0x62d   :  { %v4034_v24 = vadd.f32 %v4033_v2, %v4032_v9  ;;  %v4230_v15 = vadd.f32 %v4229_v42, %v4228_v23 }
 0x62f   :  { %v4036_v29 = vadd.f32 %v4035_v40, %v4034_v24  ;;  %v4232_v20 = vadd.f32 %v4231_v0, %v4230_v15 }
 0x630   :  { %v7094_v35 = vpop.f32.mrf.mxu3 }
 0x631   :  { %3933 = vst.msk [vmem:[%s7194_s2 + $0x1d8] sm:$0xff] %vm14_vm0, %v7094_v35  ;;  %v4038_v38 = vadd.f32 %v4037_v55, %v4036_v29  ;;  %v4234_v18 = vadd.f32 %v4233_v21, %v4232_v20  ;;  %v4131_v51 = vmul.f32 %v7094_v35, %v7094_v35  ;;  %v4055_v30 = vsel %vm14_vm0, %v7094_v35, 0.0 }
 0x633   :  { %v4040_v61 = vadd.f32 %v4039_v13, %v4038_v38  ;;  %v4236_v39 = vadd.f32 %v4235_v12, %v4234_v18  ;;  %v4253_v2 = vsel %vm14_vm0, %v4131_v51, 0.0 }
 0x635   :  { %v4042_v58 = vadd.f32 %v4041_v10, %v4040_v61  ;;  %v4238_v5 = vadd.f32 %v4237_v59, %v4236_v39 }
 0x637   :  { %v4044_v33 = vadd.f32 %v4043_v41, %v4042_v58  ;;  %v4240_v56 = vadd.f32 %v4239_v32, %v4238_v5 }
 0x639   :  { %v4242_v1 = vadd.f32 %v4241_v44, %v4240_v56  ;;  %v4046_v47 = vadd.f32 %v4045_v4, %v4044_v33 }
 0x63b   :  { %v3862_v14 = vpop.f32.mrf.mxu3  ;;  %v4048_v36 = vadd.f32 %v4047_v43, %v4046_v47  ;;  %v4244_v31 = vadd.f32 %v4243_v62, %v4242_v1 }
 0x63c   :  { %3934 = vst.msk [vmem:[%s7194_s2 + $0x1e0] sm:$0xff] %vm14_vm0, %v3862_v14  ;;  %v4132_v53 = vmul.f32 %v3862_v14, %v3862_v14  ;;  %v4057_v42 = vsel %vm14_vm0, %v3862_v14, 0.0 }
 0x63d   :  { %v4050_v50 = vadd.f32 %v4049_v8, %v4048_v36  ;;  %v4246_v52 = vadd.f32 %v4245_v49, %v4244_v31 }
 0x63e   :  { %v4255_v0 = vsel %vm14_vm0, %v4132_v53, 0.0 }
 0x63f   :  { %v4052_v54 = vadd.f32 %v4051_v37, %v4050_v50  ;;  %v4248_v46 = vadd.f32 %v4247_v60, %v4246_v52 }
 0x641   :  { %v4250_v63 = vadd.f32 %v4249_v19, %v4248_v46  ;;  %v4054_v57 = vadd.f32 %v4053_v28, %v4052_v54 }
 0x643   :  { %v4252_v7 = vadd.f32 %v4251_v11, %v4250_v63  ;;  %v4056_v9 = vadd.f32 %v4055_v30, %v4054_v57 }
 0x644   :  { %v3865_v25 = vpop.f32.mrf.mxu3 }
 0x645   :  { %3935 = vst.msk [vmem:[%s7194_s2 + $0x1e8] sm:$0xff] %vm14_vm0, %v3865_v25  ;;  %v4254_v45 = vadd.f32 %v4253_v2, %v4252_v7  ;;  %v4133_v24 = vmul.f32 %v3865_v25, %v3865_v25  ;;  %v4058_v15 = vadd.f32 %v4057_v42, %v4056_v9  ;;  %v4059_v40 = vsel %vm14_vm0, %v3865_v25, 0.0 }
 0x647   :  { %v4256_v6 = vadd.f32 %v4255_v0, %v4254_v45  ;;  %v4257_v29 = vsel %vm14_vm0, %v4133_v24, 0.0  ;;  %v4060_v21 = vadd.f32 %v4059_v40, %v4058_v15 }
 0x649   :  { %v4258_v26 = vadd.f32 %v4257_v29, %v4256_v6 }
 0x650   :  { %v3868_v23 = vpop.f32.mrf.mxu3 }
 0x651   :  { %3936 = vst.msk [vmem:[%s7194_s2 + $0x1f0] sm:$0xff] %vm14_vm0, %v3868_v23  ;;  %v4134_v35 = vmul.f32 %v3868_v23, %v3868_v23  ;;  %v4061_v20 = vsel %vm14_vm0, %v3868_v23, 0.0 }
 0x652   :  { %v4062_v38 = vadd.f32 %v4061_v20, %v4060_v21 }
 0x653   :  { %v4259_v55 = vsel %vm14_vm0, %v4134_v35, 0.0 }
 0x654   :  { %v4260_v16 = vadd.f32 %v4259_v55, %v4258_v26 }
 0x65b   :  { %v3871_v18 = vpop.f32.mrf.mxu3 }
 0x65c   :  { %3937 = vst.msk [vmem:[%s7194_s2 + $0x1f8] sm:$0xff] %vm14_vm0, %v3871_v18  ;;  %v4063_v12 = vsel %vm14_vm0, %v3871_v18, 0.0  ;;  %v4135_v13 = vmul.f32 %v3871_v18, %v3871_v18 }
 0x65d   :  { %v4064_v61 = vadd.f32 %v4063_v12, %v4062_v38 }
 0x65e   :  { %v4261_v39 = vsel %vm14_vm0, %v4135_v13, 0.0 }
 0x65f   :  { %v4065_v59 = vrot.slane %v4064_v61, 4  ;;  %v4262_v10 = vadd.f32 %v4261_v39, %v4260_v16 }
 0x661   :  { %v4066_v27 = vadd.f32 %v4065_v59, %v4064_v61  ;;  %v4263_v58 = vrot.slane %v4262_v10, 4 }
 0x663   :  { %v4067_v5 = vrot.slane %v4066_v27, 2  ;;  %v4264_v32 = vadd.f32 %v4263_v58, %v4262_v10 }
 0x665   :  { %v4068_v41 = vadd.f32 %v4067_v5, %v4066_v27  ;;  %v4265_v17 = vrot.slane %v4264_v32, 2 }
 0x667   :  { %v4069_v14 = vrot.slane %v4068_v41, 1  ;;  %v4266_v33 = vadd.f32 %v4265_v17, %v4264_v32 }
 0x669   :  { %v4070_v56 = vadd.f32 %v4069_v14, %v4068_v41  ;;  %v4267_v44 = vrot.slane %v4266_v33, 1 }
 0x66b   :  { %4071 = vst.msk [vmem:[%s7195_s3] sm:$0x1] %vm23_vm2, %v4070_v56  ;;  %v4268_v4 = vadd.f32 %v4267_v44, %v4266_v33 }
 0x66d   :  { %4269 = vst.msk [vmem:[%s7196_s4] sm:$0x1] %vm23_vm2, %v4268_v4 }

// kernel: basic_block_mtl_forward.4
= control target key start
LH: loop header
LB: loop body
LE: loop exit
PB: predicated region body
PF: predicated region fallthrough
CT: control target
= control target key end

     0   :  { %vm20_vm0 = vcmask 64512   ;;  %vm23_vm1 = vcmask 58368   ;;  %v4634_v0 = vmov 0.0   ;;  %s4635_s25 = smov 8   ;;  %vm29_vm2 = vcmask 57344   ;;  %s4636_s15 = smov 16   ;;  %s7547_s0 = inlined_call_operand.vmem [shape: f32[2,16,16,8], index: 0, kind: input, shape index: {}]   ;;  %s7548_s2 = inlined_call_operand.vmem [shape: f32[1,1,8], index: 2, kind: input, shape index: {}]   ;;  %s7549_s3 = inlined_call_operand.vmem [shape: f32[1,1,8], index: 3, kind: input, shape index: {}]   ;;  %s7550_s1 = inlined_call_operand.vmem [shape: f32[72,8], index: 1, kind: input, shape index: {}]   ;;  %s7551_s4 = inlined_call_operand.vmem [shape: f32[2,16,16,8], index: 4, kind: output, shape index: {0}]   ;;  %s7552_s5 = inlined_call_operand.vmem [shape: f32[1,1,8], index: 5, kind: output, shape index: {1}]   ;;  %s7553_s6 = inlined_call_operand.vmem [shape: f32[1,1,8], index: 6, kind: output, shape index: {2}]  }
   0x1   :  { %21 = vst.msk [vmem:[#allocation2] sm:$0xff] %vm20_vm0, %v4634_v0  ;;  %v66_v1 = vld [vmem:[%s7547_s0] sm:$0xff]  ;;  %v67_v7 = vld [vmem:[%s7547_s0 + $0x8] sm:$0xff]  ;;  %v73_v9 = vld [vmem:[%s7547_s0 + $0x38] sm:$0xff]  ;;  %vm459_vm3 = vcmask 130112   ;;  %s4637_s16 = smov 24  }
   0x2   :  { %v4686_v2 = vld [vmem:[%s7548_s2] ss:$0 sm:$0xff]  ;;  %22 = vst.msk [vmem:[#allocation2 + $0x8] sm:$0xff] %vm20_vm0, %v4634_v0  ;;  %v68_v13 = vld [vmem:[%s7547_s0 + $0x10] sm:$0xff]  ;;  %v71_v14 = vld [vmem:[%s7547_s0 + $0x28] sm:$0xff]  ;;  %vm652_vm4 = vcmask 195712  }
   0x3   :  { %v4693_v3 = vld [vmem:[%s7549_s3] ss:$0 sm:$0xff]  ;;  %26 = vst.msk [vmem:[#allocation2 + $0x198] sm:$0xff] %vm20_vm0, %v4634_v0  ;;  %v102_v5 = vmul.f32 %v4686_v2, %v66_v1  ;;  %v103_v8 = vmul.f32 %v4686_v2, %v67_v7  ;;  %v109_v12 = vmul.f32 %v4686_v2, %v73_v9  ;;  %v76_v15 = vld [vmem:[%s7547_s0 + $0x50] sm:$0xff]  ;;  %v104_v17 = vmul.f32 %v4686_v2, %v68_v13  ;;  %v69_v20 = vld [vmem:[%s7547_s0 + $0x18] sm:$0xff]  ;;  %s4638_s21 = smov 32  }
   0x4   :  { %v70_v4 = vld [vmem:[%s7547_s0 + $0x20] sm:$0xff]  ;;  %27 = vst.msk [vmem:[#allocation2 + $0x1a0] sm:$0xff] %vm20_vm0, %v4634_v0  ;;  %v107_v18 = vmul.f32 %v4686_v2, %v71_v14  ;;  %v112_v19 = vmul.f32 %v4686_v2, %v76_v15  ;;  %v79_v22 = vld [vmem:[%s7547_s0 + $0x68] sm:$0xff]  ;;  %v105_v26 = vmul.f32 %v4686_v2, %v69_v20  ;;  %v72_v27 = vld [vmem:[%s7547_s0 + $0x30] sm:$0xff]  ;;  %vm845_vm5 = vcmask 261312   ;;  %s4639_s7 = smov 40  }
   0x5   :  { %v106_v6 = vmul.f32 %v4686_v2, %v70_v4  ;;  %24 = vst.msk [vmem:[#allocation2 + $0x10] sm:$0x3] %vm23_vm1, %v4634_v0  ;;  %v138_v10 = vadd.f32 %v4693_v3, %v102_v5  ;;  %v139_v16 = vadd.f32 %v4693_v3, %v103_v8  ;;  %v74_v21 = vld [vmem:[%s7547_s0 + $0x40] sm:$0xff]  ;;  %v145_v25 = vadd.f32 %v4693_v3, %v109_v12  ;;  %v77_v32 = vld [vmem:[%s7547_s0 + $0x58] sm:$0xff]  ;;  %v75_v47 = vld [vmem:[%s7547_s0 + $0x48] sm:$0xff]  ;;  %s4640_s8 = smov 48  }
   0x6   :  { %28 = vst.msk [vmem:[#allocation2 + $0x1a8] sm:$0x3] %vm23_vm1, %v4634_v0  ;;  %v140_v29 = vadd.f32 %v4693_v3, %v104_v17  ;;  %v143_v30 = vadd.f32 %v4693_v3, %v107_v18  ;;  %v148_v31 = vadd.f32 %v4693_v3, %v112_v19  ;;  %v141_v35 = vadd.f32 %v4693_v3, %v105_v26  ;;  %v82_v46 = vld [vmem:[%s7547_s0 + $0x80] sm:$0xff]  ;;  %v80_v48 = vld [vmem:[%s7547_s0 + $0x70] sm:$0xff]  ;;  %v85_v5 = vld [vmem:[%s7547_s0 + $0x98] sm:$0xff]  ;;  %s4641_s9 = smov 56  }
   0x7   :  { %v142_v11 = vadd.f32 %v4693_v3, %v106_v6  ;;  %v170_v23 = vmax.f32 %v138_v10, 0.0  ;;  %v171_v28 = vmax.f32 %v139_v16, 0.0  ;;  %v177_v34 = vmax.f32 %v145_v25, 0.0  ;;  %v78_v6 = vld [vmem:[%s7547_s0 + $0x60] sm:$0xff]  ;;  %v83_v10 = vld [vmem:[%s7547_s0 + $0x88] sm:$0xff]  ;;  %s4642_s10 = smov 64  }
   0x8   :  { %v110_v36 = vmul.f32 %v4686_v2, %v74_v21  ;;  %v115_v37 = vmul.f32 %v4686_v2, %v79_v22  ;;  %v172_v38 = vmax.f32 %v140_v29, 0.0  ;;  %v175_v39 = vmax.f32 %v143_v30, 0.0  ;;  %v88_v21 = vld [vmem:[%s7547_s0 + $0xb0] sm:$0xff]  ;;  %v81_v22 = vld [vmem:[%s7547_s0 + $0x78] sm:$0xff]  ;;  %v86_v25 = vld [vmem:[%s7547_s0 + $0xa0] sm:$0xff] }
   0x9   :  { %v174_v24 = vmax.f32 %v142_v11, 0.0  ;;  %v299_v33 = vld [vmem:[#allocation2 + $0x1] sm:$0xff]  ;;  %203 = vst.msk [vmem:[#allocation2 + $0x19] sm:$0xff] %vm20_vm0, %v170_v23  ;;  %v180_v40 = vmax.f32 %v148_v31, 0.0  ;;  %v108_v41 = vmul.f32 %v4686_v2, %v72_v27  ;;  %v173_v42 = vmax.f32 %v141_v35, 0.0 }
   0xa   :  { %363 = vrot.lane.b32.xlu0 %v299_v33, %s4635_s25  ;;  %204 = vst.msk [vmem:[#allocation2 + $0x21] sm:$0xff] %vm20_vm0, %v171_v28  ;;  %v146_v43 = vadd.f32 %v4693_v3, %v110_v36  ;;  %v151_v44 = vadd.f32 %v4693_v3, %v115_v37  ;;  %v113_v45 = vmul.f32 %v4686_v2, %v77_v32  ;;  %v91_v36 = vld [vmem:[%s7547_s0 + $0xc8] sm:$0xff]  ;;  %v84_v37 = vld [vmem:[%s7547_s0 + $0x90] sm:$0xff]  ;;  %vm1038_vm6 = vcmask 326912  }
   0xb   :  { %207 = vst.msk [vmem:[#allocation2 + $0x49] sm:$0xff] %vm20_vm0, %v174_v24  ;;  %v144_v49 = vadd.f32 %v4693_v3, %v108_v41  ;;  %v118_v50 = vmul.f32 %v4686_v2, %v82_v46  ;;  %v111_v51 = vmul.f32 %v4686_v2, %v75_v47  ;;  %v116_v52 = vmul.f32 %v4686_v2, %v80_v48 }
   0xc   :  { %210 = vst.msk [vmem:[#allocation2 + $0x69] sm:$0xff] %vm20_vm0, %v177_v34  ;;  %v178_v53 = vmax.f32 %v146_v43, 0.0  ;;  %v149_v54 = vadd.f32 %v4693_v3, %v113_v45  ;;  %v183_v55 = vmax.f32 %v151_v44, 0.0  ;;  %v300_v58 = vld [vmem:[#allocation2 + $0x9] sm:$0xff]  ;;  %v121_v8 = vmul.f32 %v4686_v2, %v85_v5 }
   0xd   :  { %205 = vst.msk [vmem:[#allocation2 + $0x31] sm:$0xff] %vm20_vm0, %v172_v38  ;;  %v154_v56 = vadd.f32 %v4693_v3, %v118_v50  ;;  %v147_v57 = vadd.f32 %v4693_v3, %v111_v51  ;;  %v176_v59 = vmax.f32 %v144_v49, 0.0  ;;  %v152_v60 = vadd.f32 %v4693_v3, %v116_v52  ;;  %v94_v51 = vld [vmem:[%s7547_s0 + $0xe0] sm:$0xff]  ;;  %v87_v52 = vld [vmem:[%s7547_s0 + $0xa8] sm:$0xff] }
   0xe   :  { %208 = vst.msk [vmem:[#allocation2 + $0x51] sm:$0xff] %vm20_vm0, %v175_v39  ;;  %v181_v62 = vmax.f32 %v149_v54, 0.0  ;;  %v114_v9 = vmul.f32 %v4686_v2, %v78_v6  ;;  %v119_v11 = vmul.f32 %v4686_v2, %v83_v10  ;;  %v157_v13 = vadd.f32 %v4693_v3, %v121_v8 }
   0xf   :  { %213 = vst.msk [vmem:[#allocation2 + $0x91] sm:$0xff] %vm20_vm0, %v180_v40  ;;  %v186_v63 = vmax.f32 %v154_v56, 0.0  ;;  %v179_v1 = vmax.f32 %v147_v57, 0.0  ;;  %v184_v4 = vmax.f32 %v152_v60, 0.0  ;;  %v124_v23 = vmul.f32 %v4686_v2, %v88_v21  ;;  %v89_v40 = vld [vmem:[%s7547_s0 + $0xb8] sm:$0xff] }
  0x10   :  { %v301_v61 = vld [vmem:[#allocation2 + $0x19] sm:$0xff]  ;;  %206 = vst.msk [vmem:[#allocation2 + $0x39] sm:$0xff] %vm20_vm0, %v173_v42  ;;  %v150_v14 = vadd.f32 %v4693_v3, %v114_v9  ;;  %v155_v16 = vadd.f32 %v4693_v3, %v119_v11  ;;  %v189_v17 = vmax.f32 %v157_v13, 0.0  ;;  %v117_v24 = vmul.f32 %v4686_v2, %v81_v22 }
  0x11   :  { %367 = vrot.lane.b32.xlu1 %v301_v61, %s4635_s25  ;;  %211 = vst.msk [vmem:[#allocation2 + $0x79] sm:$0xff] %vm20_vm0, %v178_v53  ;;  %v302_v12 = vld [vmem:[#allocation2 + $0x21] sm:$0xff]  ;;  %v122_v26 = vmul.f32 %v4686_v2, %v86_v25  ;;  %v160_v28 = vadd.f32 %v4693_v3, %v124_v23  ;;  %v127_v38 = vmul.f32 %v4686_v2, %v91_v36  ;;  %vm1231_vm7 = vcmask 392512  }
  0x12   :  { %365 = vrot.lane.b32.xlu0 %v300_v58, %s4635_s25  ;;  %216 = vst.msk [vmem:[#allocation2 + $0xb1] sm:$0xff] %vm20_vm0, %v183_v55  ;;  %v305_v15 = vld [vmem:[#allocation2 + $0x49] sm:$0xff]  ;;  %v182_v18 = vmax.f32 %v150_v14, 0.0  ;;  %v187_v19 = vmax.f32 %v155_v16, 0.0  ;;  %v153_v29 = vadd.f32 %v4693_v3, %v117_v24  ;;  %v120_v39 = vmul.f32 %v4686_v2, %v84_v37  ;;  %v90_v16 = vld [vmem:[%s7547_s0 + $0xc0] sm:$0xff] }
  0x13   :  { %209 = vst.msk [vmem:[#allocation2 + $0x61] sm:$0xff] %vm20_vm0, %v176_v59  ;;  %v308_v30 = vld [vmem:[#allocation2 + $0x69] sm:$0xff]  ;;  %v158_v31 = vadd.f32 %v4693_v3, %v122_v26  ;;  %v192_v32 = vmax.f32 %v160_v28, 0.0  ;;  %v125_v41 = vmul.f32 %v4686_v2, %v89_v40  ;;  %v163_v43 = vadd.f32 %v4693_v3, %v127_v38 }
  0x14   :  { %v303_v7 = vld [vmem:[#allocation2 + $0x31] sm:$0xff]  ;;  %214 = vst.msk [vmem:[#allocation2 + $0x99] sm:$0xff] %vm20_vm0, %v181_v62  ;;  %v185_v33 = vmax.f32 %v153_v29, 0.0  ;;  %v156_v44 = vadd.f32 %v4693_v3, %v120_v39  ;;  %v130_v53 = vmul.f32 %v4686_v2, %v94_v51  ;;  %v123_v54 = vmul.f32 %v4686_v2, %v87_v52  ;;  %v236_v37 = vld [vmem:[#allocation2 + $0x8] sm:$0xff] }
  0x15   :  { %371 = vrot.lane.b32.xlu2 %v303_v7, %s4635_s25  ;;  %219 = vst.msk [vmem:[#allocation2 + $0xd9] sm:$0xff] %vm20_vm0, %v186_v63  ;;  %v306_v27 = vld [vmem:[#allocation2 + $0x51] sm:$0xff]  ;;  %v190_v34 = vmax.f32 %v158_v31, 0.0  ;;  %v161_v46 = vadd.f32 %v4693_v3, %v125_v41  ;;  %v195_v47 = vmax.f32 %v163_v43, 0.0  ;;  %v5040_v41 = vld [vmem:[#allocation2 + $0x1a] sm:$0xff]  ;;  %vm1425_vm8 = vcmask 458112  }
  0x16   :  { %212 = vst.msk [vmem:[#allocation2 + $0x81] sm:$0xff] %vm20_vm0, %v179_v1  ;;  %v311_v45 = vld [vmem:[#allocation2 + $0x91] sm:$0xff]  ;;  %v188_v48 = vmax.f32 %v156_v44, 0.0  ;;  %v166_v58 = vadd.f32 %v4693_v3, %v130_v53  ;;  %v159_v59 = vadd.f32 %v4693_v3, %v123_v54  ;;  %vm1618_vm9 = vcmask 523712  }
  0x17   :  { %217 = vst.msk [vmem:[#allocation2 + $0xc1] sm:$0xff] %vm20_vm0, %v184_v4  ;;  %v4811_v20 = vld [vmem:[#allocation2 + $0x39] sm:$0xff]  ;;  %v193_v49 = vmax.f32 %v161_v46, 0.0  ;;  %v92_v55 = vld [vmem:[%s7547_s0 + $0xd0] sm:$0xff]  ;;  %vm1811_vm10 = vcmask 589312   ;;  %vm3686_vm11 = vcmask 588800  }
  0x18   :  { %222 = vst.msk [vmem:[#allocation2 + $0xf9] sm:$0xff] %vm20_vm0, %v189_v17  ;;  %v309_v42 = vld [vmem:[#allocation2 + $0x79] sm:$0xff]  ;;  %v128_v56 = vmul.f32 %v4686_v2, %v92_v55  ;;  %v198_v62 = vmax.f32 %v166_v58, 0.0  ;;  %v191_v63 = vmax.f32 %v159_v59, 0.0  ;;  %v95_v17 = vld [vmem:[%s7547_s0 + $0xe8] sm:$0xff]  ;;  %v5075_v54 = vld [vmem:[#allocation2 + $0x50] sm:$0xff] }
  0x19   :  { %369 = vrot.lane.b32.xlu1 %v302_v12, %s4635_s25  ;;  %215 = vst.msk [vmem:[#allocation2 + $0xa9] sm:$0xff] %vm20_vm0, %v182_v18  ;;  %v314_v60 = vld [vmem:[#allocation2 + $0xb1] sm:$0xff]  ;;  %v131_v21 = vmul.f32 %v4686_v2, %v95_v17  ;;  %v5053_v46 = vld [vmem:[#allocation2 + $0x20] sm:$0xff] }
  0x1a   :  { %375 = vrot.lane.b32.xlu0 %v305_v15, %s4635_s25  ;;  %220 = vst.msk [vmem:[#allocation2 + $0xe1] sm:$0xff] %vm20_vm0, %v187_v19  ;;  %v4835_v35 = vld [vmem:[#allocation2 + $0x61] sm:$0xff]  ;;  %v164_v61 = vadd.f32 %v4693_v3, %v128_v56  ;;  %v93_v18 = vld [vmem:[%s7547_s0 + $0xd8] sm:$0xff]  ;;  %v126_v19 = vmul.f32 %v4686_v2, %v90_v16 }
  0x1b   :  { %225 = vst.msk [vmem:[#allocation2 + $0x121] sm:$0xff] %vm20_vm0, %v192_v32  ;;  %v312_v57 = vld [vmem:[#allocation2 + $0x99] sm:$0xff]  ;;  %v129_v22 = vmul.f32 %v4686_v2, %v93_v18  ;;  %v167_v26 = vadd.f32 %v4693_v3, %v131_v21  ;;  %v5070_v52 = vld [vmem:[#allocation2 + $0x68] sm:$0xff] }
  0x1c   :  { %218 = vst.msk [vmem:[#allocation2 + $0xc9] sm:$0xff] %vm20_vm0, %v185_v33  ;;  %v196_v1 = vmax.f32 %v164_v61, 0.0  ;;  %v317_v6 = vld [vmem:[#allocation2 + $0xd9] sm:$0xff]  ;;  %v162_v24 = vadd.f32 %v4693_v3, %v126_v19  ;;  %v5087_v56 = vld [vmem:[#allocation2 + $0x62] sm:$0xff] }
  0x1d   :  { %373 = vrot.lane.b32.xlu2 %v4811_v20, %s4635_s25  ;;  %223 = vst.msk [vmem:[#allocation2 + $0x109] sm:$0xff] %vm20_vm0, %v190_v34  ;;  %v4859_v50 = vld [vmem:[#allocation2 + $0x81] sm:$0xff]  ;;  %v199_v29 = vmax.f32 %v167_v26, 0.0  ;;  %v5025_v36 = vld [vmem:[#allocation2 + $0x32] sm:$0xff] }
  0x1e   :  { %228 = vst.msk [vmem:[#allocation2 + $0x141] sm:$0xff] %vm20_vm0, %v195_v47  ;;  %v315_v5 = vld [vmem:[#allocation2 + $0xc1] sm:$0xff]  ;;  %v194_v28 = vmax.f32 %v162_v24, 0.0  ;;  %v5027_v38 = vld [vmem:[#allocation2 + $0x38] sm:$0xff] }
  0x1f   :  { %221 = vst.msk [vmem:[#allocation2 + $0xf1] sm:$0xff] %vm20_vm0, %v188_v48  ;;  %v320_v9 = vld [vmem:[#allocation2 + $0xf9] sm:$0xff]  ;;  %v492_v47 = vld [vmem:[#allocation2 + $0x2] sm:$0xff] }
  0x20   :  { %226 = vst.msk [vmem:[#allocation2 + $0x129] sm:$0xff] %vm20_vm0, %v193_v49  ;;  %v4883_v4 = vld [vmem:[#allocation2 + $0xa9] sm:$0xff]  ;;  %v5068_v49 = vld [vmem:[#allocation2 + $0x7a] sm:$0xff] }
  0x21   :  { %377 = vrot.lane.b32.xlu1 %v306_v27, %s4635_s25  ;;  %231 = vst.msk [vmem:[#allocation2 + $0x169] sm:$0xff] %vm20_vm0, %v198_v62  ;;  %v318_v8 = vld [vmem:[#allocation2 + $0xe1] sm:$0xff]  ;;  %v165_v27 = vadd.f32 %v4693_v3, %v129_v22  ;;  %v5140_v18 = vld [vmem:[#allocation2 + $0xaa] sm:$0xff] }
  0x22   :  { %381 = vrot.lane.b32.xlu0 %v308_v30, %s4635_s25  ;;  %224 = vst.msk [vmem:[#allocation2 + $0x111] sm:$0xff] %vm20_vm0, %v191_v63  ;;  %v323_v12 = vld [vmem:[#allocation2 + $0x121] sm:$0xff]  ;;  %v5109_v63 = vld [vmem:[#allocation2 + $0x4a] sm:$0xff] }
  0x23   :  { %229 = vst.msk [vmem:[#allocation2 + $0x151] sm:$0xff] %vm20_vm0, %v196_v1  ;;  %v4892_v7 = vld [vmem:[#allocation2 + $0xc9] sm:$0xff]  ;;  %v197_v30 = vmax.f32 %v165_v27, 0.0  ;;  %v5072_v53 = vld [vmem:[#allocation2 + $0x80] sm:$0xff] }
  0x24   :  { %48 = vst.msk [vmem:[#allocation2 + $0x11] sm:$0x1] %vm29_vm2, %v4634_v0  ;;  %v321_v11 = vld [vmem:[#allocation2 + $0x109] sm:$0xff] }
  0x25   :  { %379 = vrot.lane.b32.xlu2 %v4835_v35, %s4635_s25  ;;  %30 = vst.msk [vmem:[#allocation2] sm:$0x1] %vm29_vm2, %v4634_v0  ;;  %v326_v15 = vld [vmem:[#allocation2 + $0x141] sm:$0xff] }
  0x26   :  { %31 = vst.msk [vmem:[#allocation2 + $0x18] sm:$0x1] %vm29_vm2, %v4634_v0  ;;  %v4914_v10 = vld [vmem:[#allocation2 + $0xf1] sm:$0xff] }
  0x27   :  { %32 = vst.msk [vmem:[#allocation2 + $0x30] sm:$0x1] %vm29_vm2, %v4634_v0  ;;  %v4948_v14 = vld [vmem:[#allocation2 + $0x129] sm:$0xff] }
  0x28   :  { %33 = vst.msk [vmem:[#allocation2 + $0x48] sm:$0x1] %vm29_vm2, %v4634_v0  ;;  %v4986_v25 = vld [vmem:[#allocation2 + $0x169] sm:$0xff] }
  0x29   :  { %383 = vrot.lane.b32.xlu1 %v309_v42, %s4635_s25  ;;  %34 = vst.msk [vmem:[#allocation2 + $0x60] sm:$0x1] %vm29_vm2, %v4634_v0  ;;  %v4936_v13 = vld [vmem:[#allocation2 + $0x111] sm:$0xff] }
  0x2a   :  { %387 = vrot.lane.b32.xlu0 %v311_v45, %s4635_s25  ;;  %35 = vst.msk [vmem:[#allocation2 + $0x78] sm:$0x1] %vm29_vm2, %v4634_v0  ;;  %v4981_v23 = vld [vmem:[#allocation2 + $0x151] sm:$0xff] }
  0x2b   :  { %36 = vst.msk [vmem:[#allocation2 + $0x90] sm:$0x1] %vm29_vm2, %v4634_v0  ;;  %v493_v31 = vld [vmem:[#allocation2 + $0xa] sm:$0xff] }
  0x2c   :  { %37 = vst.msk [vmem:[#allocation2 + $0xa8] sm:$0x1] %vm29_vm2, %v4634_v0  ;;  %v235_v32 = vld [vmem:[#allocation2] sm:$0xff] }
  0x2d   :  { %385 = vrot.lane.b32.xlu2 %v4859_v50, %s4635_s25  ;;  %38 = vst.msk [vmem:[#allocation2 + $0xc0] sm:$0x1] %vm29_vm2, %v4634_v0  ;;  %v5030_v39 = vld [vmem:[#allocation2 + $0x18] sm:$0xff] }
  0x2e   :  { %39 = vst.msk [vmem:[#allocation2 + $0xd8] sm:$0x1] %vm29_vm2, %v4634_v0  ;;  %v5010_v33 = vld [vmem:[#allocation2 + $0x30] sm:$0xff] }
  0x2f   :  { %40 = vst.msk [vmem:[#allocation2 + $0xf0] sm:$0x1] %vm29_vm2, %v4634_v0  ;;  %v5048_v44 = vld [vmem:[#allocation2 + $0x48] sm:$0xff] }
  0x30   :  { %41 = vst.msk [vmem:[#allocation2 + $0x108] sm:$0x1] %vm29_vm2, %v4634_v0  ;;  %v5050_v45 = vld [vmem:[#allocation2 + $0x60] sm:$0xff] }
  0x31   :  { %389 = vrot.lane.b32.xlu1 %v312_v57, %s4635_s25  ;;  %42 = vst.msk [vmem:[#allocation2 + $0x120] sm:$0x1] %vm29_vm2, %v4634_v0  ;;  %v5101_v62 = vld [vmem:[#allocation2 + $0x78] sm:$0xff] }
  0x32   :  { %393 = vrot.lane.b32.xlu0 %v314_v60, %s4635_s25  ;;  %43 = vst.msk [vmem:[#allocation2 + $0x138] sm:$0x1] %vm29_vm2, %v4634_v0  ;;  %v5096_v60 = vld [vmem:[#allocation2 + $0x90] sm:$0xff] }
  0x33   :  { %44 = vst.msk [vmem:[#allocation2 + $0x150] sm:$0x1] %vm29_vm2, %v4634_v0  ;;  %v5098_v61 = vld [vmem:[#allocation2 + $0xa8] sm:$0xff] }
  0x34   :  { %45 = vst.msk [vmem:[#allocation2 + $0x168] sm:$0x1] %vm29_vm2, %v4634_v0  ;;  %v5155_v27 = vld [vmem:[#allocation2 + $0xc0] sm:$0xff] }
  0x35   :  { %391 = vrot.lane.b32.xlu2 %v4883_v4, %s4635_s25  ;;  %46 = vst.msk [vmem:[#allocation2 + $0x180] sm:$0x1] %vm29_vm2, %v4634_v0  ;;  %v5150_v24 = vld [vmem:[#allocation2 + $0xd8] sm:$0xff] }
  0x36   :  { %47 = vst.msk [vmem:[#allocation2 + $0x198] sm:$0x1] %vm29_vm2, %v4634_v0  ;;  %v5152_v26 = vld [vmem:[#allocation2 + $0xf0] sm:$0xff] }
  0x37   :  { %49 = vst.msk [vmem:[#allocation2 + $0x29] sm:$0x1] %vm29_vm2, %v4634_v0 }
  0x38   :  { %50 = vst.msk [vmem:[#allocation2 + $0x41] sm:$0x1] %vm29_vm2, %v4634_v0 }
  0x39   :  { %395 = vrot.lane.b32.xlu1 %v315_v5, %s4635_s25  ;;  %51 = vst.msk [vmem:[#allocation2 + $0x59] sm:$0x1] %vm29_vm2, %v4634_v0 }
  0x3a   :  { %399 = vrot.lane.b32.xlu0 %v317_v6, %s4635_s25  ;;  %52 = vst.msk [vmem:[#allocation2 + $0x71] sm:$0x1] %vm29_vm2, %v4634_v0 }
  0x3b   :  { %53 = vst.msk [vmem:[#allocation2 + $0x89] sm:$0x1] %vm29_vm2, %v4634_v0 }
  0x3c   :  { %54 = vst.msk [vmem:[#allocation2 + $0xa1] sm:$0x1] %vm29_vm2, %v4634_v0 }
  0x3d   :  { %397 = vrot.lane.b32.xlu2 %v4892_v7, %s4635_s25  ;;  %55 = vst.msk [vmem:[#allocation2 + $0xb9] sm:$0x1] %vm29_vm2, %v4634_v0 }
  0x3e   :  { %56 = vst.msk [vmem:[#allocation2 + $0xd1] sm:$0x1] %vm29_vm2, %v4634_v0  ;;  %v5083_v55 = vld [vmem:[#allocation2 + $0x22] sm:$0xff] }
  0x3f   :  { %57 = vst.msk [vmem:[#allocation2 + $0xe9] sm:$0x1] %vm29_vm2, %v4634_v0  ;;  %v5063_v48 = vld [vmem:[#allocation2 + $0x3a] sm:$0xff] }
  0x40   :  { %58 = vst.msk [vmem:[#allocation2 + $0x101] sm:$0x1] %vm29_vm2, %v4634_v0  ;;  %v5046_v42 = vld [vmem:[#allocation2 + $0x52] sm:$0xff] }
  0x41   :  { %401 = vrot.lane.b32.xlu1 %v318_v8, %s4635_s25  ;;  %59 = vst.msk [vmem:[#allocation2 + $0x119] sm:$0x1] %vm29_vm2, %v4634_v0  ;;  %v5121_v8 = vld [vmem:[#allocation2 + $0xc2] sm:$0xff]  ;;  %v5136_v16 = vld [vmem:[#allocation2 + $0x6a] sm:$0xff] }
  0x42   :  { %405 = vrot.lane.b32.xlu0 %v320_v9, %s4635_s25  ;;  %60 = vst.msk [vmem:[#allocation2 + $0x131] sm:$0x1] %vm29_vm2, %v4634_v0  ;;  %v5113_v5 = vld [vmem:[#allocation2 + $0x82] sm:$0xff] }
  0x43   :  { %61 = vst.msk [vmem:[#allocation2 + $0x149] sm:$0x1] %vm29_vm2, %v4634_v0  ;;  %v5094_v58 = vld [vmem:[#allocation2 + $0x9a] sm:$0xff] }
  0x44   :  { %62 = vst.msk [vmem:[#allocation2 + $0x161] sm:$0x1] %vm29_vm2, %v4634_v0 }
  0x45   :  { %403 = vrot.lane.b32.xlu2 %v4914_v10, %s4635_s25  ;;  %63 = vst.msk [vmem:[#allocation2 + $0x179] sm:$0x1] %vm29_vm2, %v4634_v0 }
  0x46   :  { %64 = vst.msk [vmem:[#allocation2 + $0x191] sm:$0x1] %vm29_vm2, %v4634_v0  ;;  %v5148_v21 = vld [vmem:[#allocation2 + $0xe2] sm:$0xff] }
  0x47   :  { %65 = vst.msk [vmem:[#allocation2 + $0x1a9] sm:$0x1] %vm29_vm2, %v4634_v0 }
  0x48   :  { %227 = vst.msk [vmem:[#allocation2 + $0x139] sm:$0xff] %vm20_vm0, %v194_v28  ;;  %v5163_v28 = vld [vmem:[#allocation2 + $0x92] sm:$0xff] }
  0x49   :  { %407 = vrot.lane.b32.xlu1 %v321_v11, %s4635_s25  ;;  %232 = vst.msk [vmem:[#allocation2 + $0x171] sm:$0xff] %vm20_vm0, %v199_v29  ;;  %v5123_v11 = vld [vmem:[#allocation2 + $0xb0] sm:$0xff] }
  0x4a   :  { %411 = vrot.lane.b32.xlu0 %v323_v12, %s4635_s25  ;;  %230 = vst.msk [vmem:[#allocation2 + $0x159] sm:$0xff] %vm20_vm0, %v197_v30  ;;  %v5125_v12 = vld [vmem:[#allocation2 + $0xc8] sm:$0xff] }
  0x4b   :  { %267 = vst.msk [vmem:[#allocation3] sm:$0xff] %vm20_vm0, %v235_v32  ;;  %v5167_v30 = vld [vmem:[#allocation2 + $0xca] sm:$0xff] }
  0x4c   :  { %271 = vst.msk [vmem:[#allocation3 + $0x20] sm:$0xff] %vm20_vm0, %v5010_v33  ;;  %v5175_v32 = vld [vmem:[#allocation2 + $0x10a] sm:$0xff] }
  0x4d   :  { %409 = vrot.lane.b32.xlu2 %v4936_v13, %s4635_s25  ;;  %268 = vst.msk [vmem:[#allocation3 + $0x8] sm:$0xff] %vm20_vm0, %v236_v37 }
  0x4e   :  { %272 = vst.msk [vmem:[#allocation3 + $0x28] sm:$0xff] %vm20_vm0, %v5027_v38 }
  0x4f   :  { %v5017_v34 = vld [vmem:[#allocation2 + $0x139] sm:$0xff]  ;;  %269 = vst.msk [vmem:[#allocation3 + $0x10] sm:$0xff] %vm20_vm0, %v5030_v39 }
  0x50   :  { %v5021_v0 = vld [vmem:[#allocation2 + $0x171] sm:$0xff]  ;;  %273 = vst.msk [vmem:[#allocation3 + $0x30] sm:$0xff] %vm20_vm0, %v5048_v44 }
  0x51   :  { %413 = vrot.lane.b32.xlu1 %v4948_v14, %s4635_s25  ;;  %v5038_v40 = vld [vmem:[#allocation2 + $0x159] sm:$0xff]  ;;  %275 = vst.msk [vmem:[#allocation3 + $0x40] sm:$0xff] %vm20_vm0, %v5050_v45 }
  0x52   :  { %417 = vrot.lane.b32.xlu0 %v326_v15, %s4635_s25  ;;  %270 = vst.msk [vmem:[#allocation3 + $0x18] sm:$0xff] %vm20_vm0, %v5053_v46  ;;  %v5128_v15 = vld [vmem:[#allocation2 + $0x98] sm:$0xff] }
  0x53   :  { %276 = vst.msk [vmem:[#allocation3 + $0x48] sm:$0xff] %vm20_vm0, %v5070_v52 }
  0x54   :  { %278 = vst.msk [vmem:[#allocation3 + $0x58] sm:$0xff] %vm20_vm0, %v5072_v53 }
  0x55   :  { %415 = vrot.lane.b32.xlu2 %v5017_v34, %s4635_s25  ;;  %274 = vst.msk [vmem:[#allocation3 + $0x38] sm:$0xff] %vm20_vm0, %v5075_v54 }
  0x56   :  { %279 = vst.msk [vmem:[#allocation3 + $0x60] sm:$0xff] %vm20_vm0, %v5096_v60 }
  0x57   :  { %281 = vst.msk [vmem:[#allocation3 + $0x70] sm:$0xff] %vm20_vm0, %v5098_v61 }
  0x58   :  { %277 = vst.msk [vmem:[#allocation3 + $0x50] sm:$0xff] %vm20_vm0, %v5101_v62 }
  0x59   :  { %419 = vrot.lane.b32.xlu1 %v4981_v23, %s4635_s25  ;;  %7569 = vst [vmem:[#allocation4_spill] sm:$0xff] %v5113_v5 }
  0x5a   :  { %423 = vrot.lane.b32.xlu0 %v4986_v25, %s4635_s25  ;;  %7570 = vst [vmem:[#allocation5_spill] sm:$0xff] %v5121_v8 }
  0x5b   :  { %282 = vst.msk [vmem:[#allocation3 + $0x78] sm:$0xff] %vm20_vm0, %v5123_v11 }
  0x5c   :  { %284 = vst.msk [vmem:[#allocation3 + $0x88] sm:$0xff] %vm20_vm0, %v5125_v12 }
  0x5d   :  { %421 = vrot.lane.b32.xlu2 %v5038_v40, %s4635_s25  ;;  %280 = vst.msk [vmem:[#allocation3 + $0x68] sm:$0xff] %vm20_vm0, %v5128_v15 }
  0x5e   :  { %7571 = vst [vmem:[#allocation6_spill] sm:$0xff] %v5140_v18 }
  0x5f   :  { %7572 = vst [vmem:[#allocation7_spill] sm:$0xff] %v5148_v21 }
  0x60   :  { %285 = vst.msk [vmem:[#allocation3 + $0x90] sm:$0xff] %vm20_vm0, %v5150_v24 }
  0x61   :  { %425 = vrot.lane.b32.xlu1 %v5021_v0, %s4635_s25  ;;  %287 = vst.msk [vmem:[#allocation3 + $0xa0] sm:$0xff] %vm20_vm0, %v5152_v26 }
  0x62   :  { %558 = vrot.lane.b32.xlu0 %v493_v31, %s4636_s15  ;;  %283 = vst.msk [vmem:[#allocation3 + $0x80] sm:$0xff] %vm20_vm0, %v5155_v27 }
  0x63   :  { %7573 = vst [vmem:[#allocation8_spill] sm:$0xff] %v5167_v30 }
  0x64   :  { %7574 = vst [vmem:[#allocation9_spill] sm:$0xff] %v5175_v32 }
  0x65   :  { %556 = vrot.lane.b32.xlu2 %v492_v47, %s4636_s15  ;;  %v5179_v47 = vld [vmem:[#allocation2 + $0x110] sm:$0xff] }
  0x66   :  { %290 = vst.msk [vmem:[#allocation3 + $0xb8] sm:$0xff] %vm20_vm0, %v5179_v47 }
  0x69   :  { %560 = vrot.lane.b32.xlu1 %v5040_v41, %s4636_s15 }
  0x6a   :  { %564 = vrot.lane.b32.xlu0 %v5025_v36, %s4636_s15 }
  0x6d   :  { %562 = vrot.lane.b32.xlu2 %v5083_v55, %s4636_s15 }
  0x6f   :  { %v372_v43 = vpop.permute.xlu2 %371 }
  0x70   :  { %464 = vst.msk [vmem:[#allocation3 + $0x20] sm:$0xff] %vm459_vm3, %v372_v43  ;;  %v5177_v43 = vld [vmem:[#allocation2 + $0xf8] sm:$0xff] }
  0x71   :  { %566 = vrot.lane.b32.xlu1 %v5063_v48, %s4636_s15  ;;  %288 = vst.msk [vmem:[#allocation3 + $0xa8] sm:$0xff] %vm20_vm0, %v5177_v43 }
  0x72   :  { %570 = vrot.lane.b32.xlu0 %v5046_v42, %s4636_s15 }
  0x75   :  { %568 = vrot.lane.b32.xlu2 %v5109_v63, %s4636_s15 }
  0x77   :  { %v374_v51 = vpop.permute.xlu2 %373 }
  0x78   :  { %465 = vst.msk [vmem:[#allocation3 + $0x28] sm:$0xff] %vm459_vm3, %v374_v51  ;;  %v5182_v51 = vld [vmem:[#allocation2 + $0xe0] sm:$0xff] }
  0x79   :  { %572 = vrot.lane.b32.xlu1 %v5087_v56, %s4636_s15  ;;  %286 = vst.msk [vmem:[#allocation3 + $0x98] sm:$0xff] %vm20_vm0, %v5182_v51 }
  0x7a   :  { %576 = vrot.lane.b32.xlu0 %v5068_v49, %s4636_s15 }
  0x7c   :  { %v364_v57 = vpop.permute.xlu0 %363 }
  0x7d   :  { %460 = vst.msk [vmem:[#allocation3] sm:$0xff] %vm459_vm3, %v364_v57  ;;  %574 = vrot.lane.b32.xlu2 %v5136_v16, %s4636_s15  ;;  %v5190_v57 = vld [vmem:[#allocation2 + $0xb2] sm:$0xff] }
  0x7f   :  { %v380_v59 = vpop.permute.xlu2 %379 }
  0x80   :  { %468 = vst.msk [vmem:[#allocation3 + $0x40] sm:$0xff] %vm459_vm3, %v380_v59 }
  0x81   :  { %578 = vrot.lane.b32.xlu1 %v5113_v5, %s4636_s15 }
  0x82   :  { %582 = vrot.lane.b32.xlu0 %v5094_v58, %s4636_s15 }
  0x83   :  { %v368_v1 = vpop.permute.xlu1 %367 }
  0x84   :  { %v366_v6 = vpop.permute.xlu0 %365  ;;  %462 = vst.msk [vmem:[#allocation3 + $0x10] sm:$0xff] %vm459_vm3, %v368_v1  ;;  %v5194_v1 = vld [vmem:[#allocation2 + $0xf2] sm:$0xff] }
  0x85   :  { %461 = vst.msk [vmem:[#allocation3 + $0x8] sm:$0xff] %vm459_vm3, %v366_v6  ;;  %580 = vrot.lane.b32.xlu2 %v5163_v28, %s4636_s15 }
  0x86   :  { %7575 = vst [vmem:[#allocation10_spill] sm:$0xff] %v5194_v1 }
  0x87   :  { %v386_v9 = vpop.permute.xlu2 %385 }
  0x88   :  { %471 = vst.msk [vmem:[#allocation3 + $0x58] sm:$0xff] %vm459_vm3, %v386_v9  ;;  %v5202_v9 = vld [vmem:[#allocation2 + $0x12a] sm:$0xff] }
  0x89   :  { %584 = vrot.lane.b32.xlu1 %v5140_v18, %s4636_s15  ;;  %7576 = vst [vmem:[#allocation11_spill] sm:$0xff] %v5202_v9  ;;  %v5262_v18 = vld [vmem:[#allocation2 + $0x150] sm:$0xff] }
  0x8a   :  { %588 = vrot.lane.b32.xlu0 %v5121_v8, %s4636_s15  ;;  %295 = vst.msk [vmem:[#allocation3 + $0xe0] sm:$0xff] %vm20_vm0, %v5262_v18  ;;  %v5278_v8 = vld [vmem:[#allocation2 + $0x170] sm:$0xff] }
  0x8b   :  { %v370_v17 = vpop.permute.xlu1 %369  ;;  %298 = vst.msk [vmem:[#allocation3 + $0xf8] sm:$0xff] %vm20_vm0, %v5278_v8 }
  0x8c   :  { %v376_v19 = vpop.permute.xlu0 %375  ;;  %463 = vst.msk [vmem:[#allocation3 + $0x18] sm:$0xff] %vm459_vm3, %v370_v17 }
  0x8d   :  { %466 = vst.msk [vmem:[#allocation3 + $0x30] sm:$0xff] %vm459_vm3, %v376_v19  ;;  %586 = vrot.lane.b32.xlu2 %v5190_v57, %s4636_s15  ;;  %v5204_v19 = vld [vmem:[#allocation2 + $0x120] sm:$0xff] }
  0x8e   :  { %291 = vst.msk [vmem:[#allocation3 + $0xc0] sm:$0xff] %vm20_vm0, %v5204_v19 }
  0x8f   :  { %v392_v22 = vpop.permute.xlu2 %391 }
  0x90   :  { %474 = vst.msk [vmem:[#allocation3 + $0x70] sm:$0xff] %vm459_vm3, %v392_v22  ;;  %v5206_v22 = vld [vmem:[#allocation2 + $0x138] sm:$0xff] }
  0x91   :  { %590 = vrot.lane.b32.xlu1 %v5167_v30, %s4636_s15  ;;  %293 = vst.msk [vmem:[#allocation3 + $0xd0] sm:$0xff] %vm20_vm0, %v5206_v22  ;;  %v5236_v30 = vld [vmem:[#allocation2 + $0x128] sm:$0xff] }
  0x92   :  { %594 = vrot.lane.b32.xlu0 %v5148_v21, %s4636_s15  ;;  %292 = vst.msk [vmem:[#allocation3 + $0xc8] sm:$0xff] %vm20_vm0, %v5236_v30  ;;  %v5258_v21 = vld [vmem:[#allocation2 + $0x168] sm:$0xff] }
  0x93   :  { %v378_v29 = vpop.permute.xlu1 %377  ;;  %297 = vst.msk [vmem:[#allocation3 + $0xf0] sm:$0xff] %vm20_vm0, %v5258_v21 }
  0x94   :  { %v382_v31 = vpop.permute.xlu0 %381  ;;  %467 = vst.msk [vmem:[#allocation3 + $0x38] sm:$0xff] %vm459_vm3, %v378_v29  ;;  %v5209_v29 = vld [vmem:[#allocation2 + $0x108] sm:$0xff] }
  0x95   :  { %469 = vst.msk [vmem:[#allocation3 + $0x48] sm:$0xff] %vm459_vm3, %v382_v31  ;;  %v5217_v31 = vld [vmem:[#allocation2 + $0xda] sm:$0xff] }
  0x96   :  { %289 = vst.msk [vmem:[#allocation3 + $0xb0] sm:$0xff] %vm20_vm0, %v5209_v29  ;;  %592 = vrot.lane.b32.xlu2 %v5217_v31, %s4636_s15 }
  0x97   :  { %v398_v37 = vpop.permute.xlu2 %397 }
  0x98   :  { %477 = vst.msk [vmem:[#allocation3 + $0x88] sm:$0xff] %vm459_vm3, %v398_v37 }
  0x99   :  { %596 = vrot.lane.b32.xlu1 %v5194_v1, %s4636_s15  ;;  %v5231_v1 = vld [vmem:[#allocation2 + $0x140] sm:$0xff] }
  0x9a   :  { %600 = vrot.lane.b32.xlu0 %v5175_v32, %s4636_s15  ;;  %v5233_v32 = vld [vmem:[#allocation2 + $0x158] sm:$0xff]  ;;  %294 = vst.msk [vmem:[#allocation3 + $0xd8] sm:$0xff] %vm20_vm0, %v5231_v1 }
  0x9b   :  { %v384_v59 = vpop.permute.xlu1 %383  ;;  %296 = vst.msk [vmem:[#allocation3 + $0xe8] sm:$0xff] %vm20_vm0, %v5233_v32 }
  0x9c   :  { %v388_v6 = vpop.permute.xlu0 %387  ;;  %470 = vst.msk [vmem:[#allocation3 + $0x50] sm:$0xff] %vm459_vm3, %v384_v59  ;;  %v5221_v59 = vld [vmem:[#allocation2 + $0x112] sm:$0xff] }
  0x9d   :  { %472 = vst.msk [vmem:[#allocation3 + $0x60] sm:$0xff] %vm459_vm3, %v388_v6 }
  0x9e   :  { %7577 = vst [vmem:[#allocation12_spill] sm:$0xff] %v5221_v59 }
  0x9f   :  { %v404_v17 = vpop.permute.xlu2 %403 }
  0xa0   :  { %480 = vst.msk [vmem:[#allocation3 + $0xa0] sm:$0xff] %vm459_vm3, %v404_v17  ;;  %v5229_v17 = vld [vmem:[#allocation2 + $0x152] sm:$0xff] }
  0xa1   :  { %602 = vrot.lane.b32.xlu1 %v5221_v59, %s4636_s15  ;;  %7578 = vst [vmem:[#allocation13_spill] sm:$0xff] %v5229_v17  ;;  %v5248_v59 = vld [vmem:[#allocation2 + $0x13a] sm:$0xff] }
  0xa2   :  { %606 = vrot.lane.b32.xlu0 %v5202_v9, %s4636_s15  ;;  %7580 = vst [vmem:[#allocation15_spill] sm:$0xff] %v5248_v59 }
  0xa3   :  { %v390_v37 = vpop.permute.xlu1 %389 }
  0xa4   :  { %v394_v6 = vpop.permute.xlu0 %393  ;;  %473 = vst.msk [vmem:[#allocation3 + $0x68] sm:$0xff] %vm459_vm3, %v390_v37  ;;  %v5244_v37 = vld [vmem:[#allocation2 + $0xfa] sm:$0xff] }
  0xa5   :  { %475 = vst.msk [vmem:[#allocation3 + $0x78] sm:$0xff] %vm459_vm3, %v394_v6  ;;  %598 = vrot.lane.b32.xlu2 %v5244_v37, %s4636_s15 }
  0xa6   :  { %7579 = vst [vmem:[#allocation14_spill] sm:$0xff] %v5244_v37  ;;  %v5270_v37 = vld [vmem:[#allocation2 + $0x15a] sm:$0xff] }
  0xa7   :  { %v410_v9 = vpop.permute.xlu2 %409  ;;  %7583 = vst [vmem:[#allocation18_spill] sm:$0xff] %v5270_v37 }
  0xa8   :  { %483 = vst.msk [vmem:[#allocation3 + $0xb8] sm:$0xff] %vm459_vm3, %v410_v9 }
  0xa9   :  { %608 = vrot.lane.b32.xlu1 %v5248_v59, %s4636_s15 }
  0xaa   :  { %612 = vrot.lane.b32.xlu0 %v5229_v17, %s4636_s15  ;;  %v5256_v17 = vld [vmem:[#allocation2 + $0x172] sm:$0xff] }
  0xab   :  { %v396_v6 = vpop.permute.xlu1 %395  ;;  %7581 = vst [vmem:[#allocation16_spill] sm:$0xff] %v5256_v17 }
  0xac   :  { %v400_v9 = vpop.permute.xlu0 %399  ;;  %476 = vst.msk [vmem:[#allocation3 + $0x80] sm:$0xff] %vm459_vm3, %v396_v6  ;;  %v5268_v6 = vld [vmem:[#allocation2 + $0x122] sm:$0xff] }
  0xad   :  { %478 = vst.msk [vmem:[#allocation3 + $0x90] sm:$0xff] %vm459_vm3, %v400_v9  ;;  %604 = vrot.lane.b32.xlu2 %v5268_v6, %s4636_s15 }
  0xae   :  { %7582 = vst [vmem:[#allocation17_spill] sm:$0xff] %v5268_v6 }
  0xb1   :  { %614 = vrot.lane.b32.xlu1 %v5270_v37, %s4636_s15 }
  0xb2   :  { %618 = vrot.lane.b32.xlu0 %v5256_v17, %s4636_s15  ;;  %v5284_v17 = vld [vmem:[#allocation2 + $0x142] sm:$0xff] }
  0xb3   :  { %v402_v9 = vpop.permute.xlu1 %401 }
  0xb4   :  { %v406_v59 = vpop.permute.xlu0 %405  ;;  %479 = vst.msk [vmem:[#allocation3 + $0x98] sm:$0xff] %vm459_vm3, %v402_v9 }
  0xb5   :  { %481 = vst.msk [vmem:[#allocation3 + $0xa8] sm:$0xff] %vm459_vm3, %v406_v59  ;;  %610 = vrot.lane.b32.xlu2 %v5284_v17, %s4636_s15  ;;  %v416_v59 = vpop.permute.xlu2 %415 }
  0xb6   :  { %486 = vst.msk [vmem:[#allocation3 + $0xd0] sm:$0xff] %vm459_vm3, %v416_v59 }
  0xb9   :  { %749 = vrot.lane.b32.xlu1 %v5030_v39, %s4637_s16 }
  0xba   :  { %753 = vrot.lane.b32.xlu0 %v5010_v33, %s4637_s16  ;;  %v5295_v33 = vld [vmem:[#allocation2 + $0x16a] sm:$0xff] }
  0xbb   :  { %v408_v9 = vpop.permute.xlu1 %407 }
  0xbc   :  { %v412_v5 = vpop.permute.xlu0 %411  ;;  %482 = vst.msk [vmem:[#allocation3 + $0xb0] sm:$0xff] %vm459_vm3, %v408_v9 }
  0xbd   :  { %484 = vst.msk [vmem:[#allocation3 + $0xc0] sm:$0xff] %vm459_vm3, %v412_v5  ;;  %616 = vrot.lane.b32.xlu2 %v5295_v33, %s4636_s15  ;;  %v422_v39 = vpop.permute.xlu2 %421 }
  0xbe   :  { %489 = vst.msk [vmem:[#allocation3 + $0xe8] sm:$0xff] %vm459_vm3, %v422_v39 }
  0xc1   :  { %755 = vrot.lane.b32.xlu1 %v5027_v38, %s4637_s16 }
  0xc2   :  { %759 = vrot.lane.b32.xlu0 %v5075_v54, %s4637_s16 }
  0xc3   :  { %v414_v37 = vpop.permute.xlu1 %413 }
  0xc4   :  { %v418_v6 = vpop.permute.xlu0 %417  ;;  %485 = vst.msk [vmem:[#allocation3 + $0xc8] sm:$0xff] %vm459_vm3, %v414_v37 }
  0xc5   :  { %487 = vst.msk [vmem:[#allocation3 + $0xd8] sm:$0xff] %vm459_vm3, %v418_v6  ;;  %751 = vrot.lane.b32.xlu2 %v5053_v46, %s4637_s16  ;;  %v557_v38 = vpop.permute.xlu2 %556 }
  0xc6   :  { %653 = vst.msk [vmem:[#allocation3] sm:$0xff] %vm652_vm4, %v557_v38 }
  0xc9   :  { %761 = vrot.lane.b32.xlu1 %v5050_v45, %s4637_s16 }
  0xca   :  { %765 = vrot.lane.b32.xlu0 %v5101_v62, %s4637_s16 }
  0xcb   :  { %v420_v54 = vpop.permute.xlu1 %419 }
  0xcc   :  { %v424_v5 = vpop.permute.xlu0 %423  ;;  %488 = vst.msk [vmem:[#allocation3 + $0xe0] sm:$0xff] %vm459_vm3, %v420_v54 }
  0xcd   :  { %490 = vst.msk [vmem:[#allocation3 + $0xf0] sm:$0xff] %vm459_vm3, %v424_v5  ;;  %757 = vrot.lane.b32.xlu2 %v5048_v44, %s4637_s16  ;;  %v563_v46 = vpop.permute.xlu2 %562 }
  0xce   :  { %656 = vst.msk [vmem:[#allocation3 + $0x18] sm:$0xff] %vm652_vm4, %v563_v46 }
  0xd1   :  { %767 = vrot.lane.b32.xlu1 %v5072_v53, %s4637_s16  ;;  %v96_v53 = vld [vmem:[%s7547_s0 + $0xf0] sm:$0xff] }
  0xd2   :  { %771 = vrot.lane.b32.xlu0 %v5128_v15, %s4637_s16  ;;  %v132_v9 = vmul.f32 %v4686_v2, %v96_v53  ;;  %v878_v53 = vld [vmem:[#allocation2 + $0x19] sm:$0xff] }
  0xd3   :  { %v426_v37 = vpop.permute.xlu1 %425 }
  0xd4   :  { %v559_v62 = vpop.permute.xlu0 %558  ;;  %491 = vst.msk [vmem:[#allocation3 + $0xf8] sm:$0xff] %vm459_vm3, %v426_v37 }
  0xd5   :  { %654 = vst.msk [vmem:[#allocation3 + $0x8] sm:$0xff] %vm652_vm4, %v559_v62  ;;  %763 = vrot.lane.b32.xlu2 %v5070_v52, %s4637_s16  ;;  %v569_v44 = vpop.permute.xlu2 %568  ;;  %v168_v52 = vadd.f32 %v4693_v3, %v132_v9 }
  0xd6   :  { %659 = vst.msk [vmem:[#allocation3 + $0x30] sm:$0xff] %vm652_vm4, %v569_v44 }
  0xd9   :  { %773 = vrot.lane.b32.xlu1 %v5098_v61, %s4637_s16  ;;  %v200_v61 = vmax.f32 %v168_v52, 0.0 }
  0xda   :  { %777 = vrot.lane.b32.xlu0 %v5155_v27, %s4637_s16 }
  0xdb   :  { %v561_v6 = vpop.permute.xlu1 %560  ;;  %233 = vst.msk [vmem:[#allocation2 + $0x181] sm:$0xff] %vm20_vm0, %v200_v61  ;;  %v879_v61 = vld [vmem:[#allocation2 + $0x21] sm:$0xff] }
  0xdc   :  { %v565_v45 = vpop.permute.xlu0 %564  ;;  %655 = vst.msk [vmem:[#allocation3 + $0x10] sm:$0xff] %vm652_vm4, %v561_v6 }
  0xdd   :  { %657 = vst.msk [vmem:[#allocation3 + $0x20] sm:$0xff] %vm652_vm4, %v565_v45  ;;  %769 = vrot.lane.b32.xlu2 %v5096_v60, %s4637_s16  ;;  %v575_v39 = vpop.permute.xlu2 %574 }
  0xde   :  { %662 = vst.msk [vmem:[#allocation3 + $0x48] sm:$0xff] %vm652_vm4, %v575_v39 }
  0xe1   :  { %779 = vrot.lane.b32.xlu1 %v5125_v12, %s4637_s16  ;;  %v97_v12 = vld [vmem:[%s7547_s0 + $0xf8] sm:$0xff] }
  0xe2   :  { %783 = vrot.lane.b32.xlu0 %v5182_v51, %s4637_s16  ;;  %v133_v62 = vmul.f32 %v4686_v2, %v97_v12  ;;  %v5389_v9 = vld [vmem:[#allocation2 + $0x180] sm:$0xff] }
  0xe3   :  { %v567_v54 = vpop.permute.xlu1 %566 }
  0xe4   :  { %v571_v59 = vpop.permute.xlu0 %570  ;;  %658 = vst.msk [vmem:[#allocation3 + $0x28] sm:$0xff] %vm652_vm4, %v567_v54 }
  0xe5   :  { %660 = vst.msk [vmem:[#allocation3 + $0x38] sm:$0xff] %vm652_vm4, %v571_v59  ;;  %775 = vrot.lane.b32.xlu2 %v5123_v11, %s4637_s16  ;;  %v581_v60 = vpop.permute.xlu2 %580  ;;  %v169_v11 = vadd.f32 %v4693_v3, %v133_v62 }
  0xe6   :  { %665 = vst.msk [vmem:[#allocation3 + $0x60] sm:$0xff] %vm652_vm4, %v581_v60 }
  0xe9   :  { %785 = vrot.lane.b32.xlu1 %v5152_v26, %s4637_s16  ;;  %v201_v26 = vmax.f32 %v169_v11, 0.0  ;;  %v5423_v11 = vld [vmem:[#allocation2 + $0x69] sm:$0xff] }
  0xea   :  { %789 = vrot.lane.b32.xlu0 %v5209_v29, %s4637_s16 }
  0xeb   :  { %v573_v38 = vpop.permute.xlu1 %572  ;;  %234 = vst.msk [vmem:[#allocation2 + $0x189] sm:$0xff] %vm20_vm0, %v201_v26 }
  0xec   :  { %v577_v5 = vpop.permute.xlu0 %576  ;;  %661 = vst.msk [vmem:[#allocation3 + $0x40] sm:$0xff] %vm652_vm4, %v573_v38 }
  0xed   :  { %663 = vst.msk [vmem:[#allocation3 + $0x50] sm:$0xff] %vm652_vm4, %v577_v5  ;;  %781 = vrot.lane.b32.xlu2 %v5150_v24, %s4637_s16  ;;  %v587_v2 = vpop.permute.xlu2 %586 }
  0xee   :  { %668 = vst.msk [vmem:[#allocation3 + $0x78] sm:$0xff] %vm652_vm4, %v587_v2 }
  0xf1   :  { %791 = vrot.lane.b32.xlu1 %v5179_v47, %s4637_s16 }
  0xf2   :  { %795 = vrot.lane.b32.xlu0 %v5236_v30, %s4637_s16  ;;  %v5408_v60 = vld [vmem:[#allocation2 + $0x188] sm:$0xff] }
  0xf3   :  { %v579_v37 = vpop.permute.xlu1 %578 }
  0xf4   :  { %v583_v46 = vpop.permute.xlu0 %582  ;;  %664 = vst.msk [vmem:[#allocation3 + $0x58] sm:$0xff] %vm652_vm4, %v579_v37  ;;  %v5436_v37 = vld [vmem:[#allocation2 + $0x91] sm:$0xff] }
  0xf5   :  { %666 = vst.msk [vmem:[#allocation3 + $0x68] sm:$0xff] %vm652_vm4, %v583_v46  ;;  %787 = vrot.lane.b32.xlu2 %v5177_v43, %s4637_s16  ;;  %v593_v47 = vpop.permute.xlu2 %592 }
  0xf6   :  { %671 = vst.msk [vmem:[#allocation3 + $0x90] sm:$0xff] %vm652_vm4, %v593_v47 }
  0xf9   :  { %797 = vrot.lane.b32.xlu1 %v5206_v22, %s4637_s16 }
  0xfa   :  { %801 = vrot.lane.b32.xlu0 %v5262_v18, %s4637_s16 }
  0xfb   :  { %v585_v45 = vpop.permute.xlu1 %584 }
  0xfc   :  { %v589_v3 = vpop.permute.xlu0 %588  ;;  %667 = vst.msk [vmem:[#allocation3 + $0x70] sm:$0xff] %vm652_vm4, %v585_v45 }
  0xfd   :  { %669 = vst.msk [vmem:[#allocation3 + $0x80] sm:$0xff] %vm652_vm4, %v589_v3  ;;  %793 = vrot.lane.b32.xlu2 %v5204_v19, %s4637_s16 }
  0xff   :  { %v599_v22 = vpop.permute.xlu2 %598 }
 0x100   :  { %674 = vst.msk [vmem:[#allocation3 + $0xa8] sm:$0xff] %vm652_vm4, %v599_v22 }
 0x101   :  { %803 = vrot.lane.b32.xlu1 %v5233_v32, %s4637_s16 }
 0x102   :  { %807 = vrot.lane.b32.xlu0 %v5278_v8, %s4637_s16 }
 0x103   :  { %v591_v6 = vpop.permute.xlu1 %590 }
 0x104   :  { %v595_v44 = vpop.permute.xlu0 %594  ;;  %670 = vst.msk [vmem:[#allocation3 + $0x88] sm:$0xff] %vm652_vm4, %v591_v6 }
 0x105   :  { %672 = vst.msk [vmem:[#allocation3 + $0x98] sm:$0xff] %vm652_vm4, %v595_v44  ;;  %799 = vrot.lane.b32.xlu2 %v5231_v1, %s4637_s16  ;;  %v5449_v44 = vld [vmem:[#allocation2 + $0xb1] sm:$0xff] }
 0x107   :  { %v605_v32 = vpop.permute.xlu2 %604 }
 0x108   :  { %677 = vst.msk [vmem:[#allocation3 + $0xc0] sm:$0xff] %vm652_vm4, %v605_v32 }
 0x109   :  { %809 = vrot.lane.b32.xlu1 %v5389_v9, %s4637_s16 }
 0x10a   :  { %942 = vrot.lane.b32.xlu0 %v878_v53, %s4638_s21 }
 0x10b   :  { %v597_v59 = vpop.permute.xlu1 %596 }
 0x10c   :  { %v601_v52 = vpop.permute.xlu0 %600  ;;  %673 = vst.msk [vmem:[#allocation3 + $0xa0] sm:$0xff] %vm652_vm4, %v597_v59 }
 0x10d   :  { %675 = vst.msk [vmem:[#allocation3 + $0xb0] sm:$0xff] %vm652_vm4, %v601_v52  ;;  %805 = vrot.lane.b32.xlu2 %v5258_v21, %s4637_s16  ;;  %v5462_v52 = vld [vmem:[#allocation2 + $0xd9] sm:$0xff] }
 0x10f   :  { %v611_v54 = vpop.permute.xlu2 %610 }
 0x110   :  { %680 = vst.msk [vmem:[#allocation3 + $0xd8] sm:$0xff] %vm652_vm4, %v611_v54 }
 0x111   :  { %944 = vrot.lane.b32.xlu1 %v879_v61, %s4638_s21 }
 0x112   :  { %948 = vrot.lane.b32.xlu0 %v4811_v20, %s4638_s21  ;;  %v5410_v20 = vld [vmem:[#allocation2 + $0x49] sm:$0xff] }
 0x113   :  { %v603_v5 = vpop.permute.xlu1 %602 }
 0x114   :  { %v607_v39 = vpop.permute.xlu0 %606  ;;  %676 = vst.msk [vmem:[#allocation3 + $0xb8] sm:$0xff] %vm652_vm4, %v603_v5 }
 0x115   :  { %678 = vst.msk [vmem:[#allocation3 + $0xc8] sm:$0xff] %vm652_vm4, %v607_v39  ;;  %811 = vrot.lane.b32.xlu2 %v5408_v60, %s4637_s16  ;;  %v5475_v39 = vld [vmem:[#allocation2 + $0xf9] sm:$0xff] }
 0x117   :  { %v617_v38 = vpop.permute.xlu2 %616 }
 0x118   :  { %683 = vst.msk [vmem:[#allocation3 + $0xf0] sm:$0xff] %vm652_vm4, %v617_v38  ;;  %v5488_v38 = vld [vmem:[#allocation2 + $0x121] sm:$0xff] }
 0x119   :  { %950 = vrot.lane.b32.xlu1 %v5410_v20, %s4638_s21 }
 0x11a   :  { %954 = vrot.lane.b32.xlu0 %v4835_v35, %s4638_s21  ;;  %v5421_v35 = vld [vmem:[#allocation2 + $0x31] sm:$0xff] }
 0x11b   :  { %v609_v62 = vpop.permute.xlu1 %608 }
 0x11c   :  { %v613_v12 = vpop.permute.xlu0 %612  ;;  %679 = vst.msk [vmem:[#allocation3 + $0xd0] sm:$0xff] %vm652_vm4, %v609_v62 }
 0x11d   :  { %681 = vst.msk [vmem:[#allocation3 + $0xe0] sm:$0xff] %vm652_vm4, %v613_v12  ;;  %946 = vrot.lane.b32.xlu2 %v5421_v35, %s4638_s21 }
 0x11f   :  { %v752_v26 = vpop.permute.xlu2 %751 }
 0x120   :  { %847 = vst.msk [vmem:[#allocation3 + $0x8] sm:$0xff] %vm845_vm5, %v752_v26 }
 0x121   :  { %956 = vrot.lane.b32.xlu1 %v5423_v11, %s4638_s21 }
 0x122   :  { %960 = vrot.lane.b32.xlu0 %v4859_v50, %s4638_s21  ;;  %v5434_v50 = vld [vmem:[#allocation2 + $0x51] sm:$0xff] }
 0x123   :  { %v615_v2 = vpop.permute.xlu1 %614 }
 0x124   :  { %v619_v46 = vpop.permute.xlu0 %618  ;;  %682 = vst.msk [vmem:[#allocation3 + $0xe8] sm:$0xff] %vm652_vm4, %v615_v2 }
 0x125   :  { %684 = vst.msk [vmem:[#allocation3 + $0xf8] sm:$0xff] %vm652_vm4, %v619_v46  ;;  %952 = vrot.lane.b32.xlu2 %v5434_v50, %s4638_s21  ;;  %v5496_v46 = vld [vmem:[%s7548_s2] ss:$0 sm:$0xff] }
 0x127   :  { %v758_v47 = vpop.permute.xlu2 %757 }
 0x128   :  { %850 = vst.msk [vmem:[#allocation3 + $0x20] sm:$0xff] %vm845_vm5, %v758_v47  ;;  %v4497_v47 = vld [vmem:[%s7547_s0 + $0x108] sm:$0xff] }
 0x129   :  { %962 = vrot.lane.b32.xlu1 %v5436_v37, %s4638_s21 }
 0x12a   :  { %966 = vrot.lane.b32.xlu0 %v4883_v4, %s4638_s21  ;;  %v5447_v4 = vld [vmem:[#allocation2 + $0x79] sm:$0xff] }
 0x12b   :  { %v750_v45 = vpop.permute.xlu1 %749 }
 0x12c   :  { %v754_v3 = vpop.permute.xlu0 %753  ;;  %846 = vst.msk [vmem:[#allocation3] sm:$0xff] %vm845_vm5, %v750_v45  ;;  %v5515_v45 = vld [vmem:[#allocation2 + $0x109] sm:$0xff] }
 0x12d   :  { %848 = vst.msk [vmem:[#allocation3 + $0x10] sm:$0xff] %vm845_vm5, %v754_v3  ;;  %958 = vrot.lane.b32.xlu2 %v5447_v4, %s4638_s21  ;;  %v4496_v3 = vld [vmem:[%s7547_s0 + $0x100] sm:$0xff] }
 0x12f   :  { %v764_v22 = vpop.permute.xlu2 %763 }
 0x130   :  { %853 = vst.msk [vmem:[#allocation3 + $0x38] sm:$0xff] %vm845_vm5, %v764_v22  ;;  %v1882_v22 = vmul.f32 %v5496_v46, %v4497_v47  ;;  %v5545_v47 = vld [vmem:[#allocation2 + $0x189] sm:$0xff] }
 0x131   :  { %968 = vrot.lane.b32.xlu1 %v5449_v44, %s4638_s21 }
 0x132   :  { %972 = vrot.lane.b32.xlu0 %v4892_v7, %s4638_s21  ;;  %v5460_v7 = vld [vmem:[#allocation2 + $0x99] sm:$0xff] }
 0x133   :  { %v756_v6 = vpop.permute.xlu1 %755 }
 0x134   :  { %v760_v53 = vpop.permute.xlu0 %759  ;;  %849 = vst.msk [vmem:[#allocation3 + $0x18] sm:$0xff] %vm845_vm5, %v756_v6  ;;  %v5519_v6 = vld [vmem:[#allocation2 + $0x141] sm:$0xff] }
 0x135   :  { %851 = vst.msk [vmem:[#allocation3 + $0x28] sm:$0xff] %vm845_vm5, %v760_v53  ;;  %964 = vrot.lane.b32.xlu2 %v5460_v7, %s4638_s21  ;;  %v1881_v53 = vmul.f32 %v5496_v46, %v4496_v3 }
 0x137   :  { %v770_v59 = vpop.permute.xlu2 %769 }
 0x138   :  { %856 = vst.msk [vmem:[#allocation3 + $0x50] sm:$0xff] %vm845_vm5, %v770_v59 }
 0x139   :  { %974 = vrot.lane.b32.xlu1 %v5462_v52, %s4638_s21 }
 0x13a   :  { %978 = vrot.lane.b32.xlu0 %v4914_v10, %s4638_s21  ;;  %v5473_v10 = vld [vmem:[#allocation2 + $0xc1] sm:$0xff] }
 0x13b   :  { %v762_v61 = vpop.permute.xlu1 %761 }
 0x13c   :  { %v766_v32 = vpop.permute.xlu0 %765  ;;  %852 = vst.msk [vmem:[#allocation3 + $0x30] sm:$0xff] %vm845_vm5, %v762_v61  ;;  %v5528_v61 = vld [vmem:[#allocation2 + $0x181] sm:$0xff] }
 0x13d   :  { %854 = vst.msk [vmem:[#allocation3 + $0x40] sm:$0xff] %vm845_vm5, %v766_v32  ;;  %970 = vrot.lane.b32.xlu2 %v5473_v10, %s4638_s21 }
 0x13f   :  { %v776_v5 = vpop.permute.xlu2 %775 }
 0x140   :  { %859 = vst.msk [vmem:[#allocation3 + $0x68] sm:$0xff] %vm845_vm5, %v776_v5 }
 0x141   :  { %980 = vrot.lane.b32.xlu1 %v5475_v39, %s4638_s21 }
 0x142   :  { %984 = vrot.lane.b32.xlu0 %v4936_v13, %s4638_s21  ;;  %v5486_v13 = vld [vmem:[#allocation2 + $0xe1] sm:$0xff] }
 0x143   :  { %v768_v12 = vpop.permute.xlu1 %767 }
 0x144   :  { %v772_v54 = vpop.permute.xlu0 %771  ;;  %855 = vst.msk [vmem:[#allocation3 + $0x48] sm:$0xff] %vm845_vm5, %v768_v12 }
 0x145   :  { %857 = vst.msk [vmem:[#allocation3 + $0x58] sm:$0xff] %vm845_vm5, %v772_v54  ;;  %976 = vrot.lane.b32.xlu2 %v5486_v13, %s4638_s21 }
 0x147   :  { %v782_v26 = vpop.permute.xlu2 %781 }
 0x148   :  { %862 = vst.msk [vmem:[#allocation3 + $0x80] sm:$0xff] %vm845_vm5, %v782_v26 }
 0x149   :  { %986 = vrot.lane.b32.xlu1 %v5488_v38, %s4638_s21 }
 0x14a   :  { %990 = vrot.lane.b32.xlu0 %v5017_v34, %s4638_s21  ;;  %v5503_v34 = vld [vmem:[%s7549_s3] ss:$0 sm:$0xff] }
 0x14b   :  { %v774_v2 = vpop.permute.xlu1 %773  ;;  %v1918_v59 = vadd.f32 %v5503_v34, %v1882_v22 }
 0x14c   :  { %v778_v62 = vpop.permute.xlu0 %777  ;;  %858 = vst.msk [vmem:[#allocation3 + $0x60] sm:$0xff] %vm845_vm5, %v774_v2 }
 0x14d   :  { %860 = vst.msk [vmem:[#allocation3 + $0x70] sm:$0xff] %vm845_vm5, %v778_v62  ;;  %982 = vrot.lane.b32.xlu2 %v5515_v45, %s4638_s21  ;;  %v1950_v12 = vmax.f32 %v1918_v59, 0.0  ;;  %v7586_v59 = vld [vmem:[#allocation14_spill] sm:$0xff] }
 0x14f   :  { %v788_v5 = vpop.permute.xlu2 %787  ;;  %1982 = vst.msk [vmem:[#allocation2 + $0x21] sm:$0xff] %vm20_vm0, %v1950_v12 }
 0x150   :  { %865 = vst.msk [vmem:[#allocation3 + $0x98] sm:$0xff] %vm845_vm5, %v788_v5  ;;  %v7588_v5 = vld [vmem:[#allocation7_spill] sm:$0xff] }
 0x151   :  { %992 = vrot.lane.b32.xlu1 %v5519_v6, %s4638_s21 }
 0x152   :  { %996 = vrot.lane.b32.xlu0 %v5038_v40, %s4638_s21  ;;  %v1917_v40 = vadd.f32 %v5503_v34, %v1881_v53 }
 0x153   :  { %v780_v62 = vpop.permute.xlu1 %779 }
 0x154   :  { %v784_v32 = vpop.permute.xlu0 %783  ;;  %v1949_v54 = vmax.f32 %v1917_v40, 0.0  ;;  %861 = vst.msk [vmem:[#allocation3 + $0x78] sm:$0xff] %vm845_vm5, %v780_v62 }
 0x155   :  { %863 = vst.msk [vmem:[#allocation3 + $0x88] sm:$0xff] %vm845_vm5, %v784_v32  ;;  %988 = vrot.lane.b32.xlu2 %v4948_v14, %s4638_s21 }
 0x156   :  { %1981 = vst.msk [vmem:[#allocation2 + $0x19] sm:$0xff] %vm20_vm0, %v1949_v54 }
 0x157   :  { %v794_v2 = vpop.permute.xlu2 %793 }
 0x158   :  { %868 = vst.msk [vmem:[#allocation3 + $0xb0] sm:$0xff] %vm845_vm5, %v794_v2 }
 0x159   :  { %998 = vrot.lane.b32.xlu1 %v4986_v25, %s4638_s21 }
 0x15a   :  { %1002 = vrot.lane.b32.xlu0 %v5528_v61, %s4638_s21 }
 0x15b   :  { %v786_v3 = vpop.permute.xlu1 %785 }
 0x15c   :  { %v790_v26 = vpop.permute.xlu0 %789  ;;  %864 = vst.msk [vmem:[#allocation3 + $0x90] sm:$0xff] %vm845_vm5, %v786_v3  ;;  %v7590_v3 = vld [vmem:[#allocation8_spill] sm:$0xff] }
 0x15d   :  { %866 = vst.msk [vmem:[#allocation3 + $0xa0] sm:$0xff] %vm845_vm5, %v790_v26  ;;  %994 = vrot.lane.b32.xlu2 %v4981_v23, %s4638_s21  ;;  %v7589_v26 = vld [vmem:[#allocation17_spill] sm:$0xff] }
 0x15f   :  { %v800_v14 = vpop.permute.xlu2 %799 }
 0x160   :  { %871 = vst.msk [vmem:[#allocation3 + $0xc8] sm:$0xff] %vm845_vm5, %v800_v14 }
 0x161   :  { %1004 = vrot.lane.b32.xlu1 %v5545_v47, %s4638_s21 }
 0x162   :  { %1137 = vrot.lane.b32.xlu0 %v5083_v55, %s4639_s7 }
 0x163   :  { %v792_v25 = vpop.permute.xlu1 %791 }
 0x164   :  { %v796_v53 = vpop.permute.xlu0 %795  ;;  %867 = vst.msk [vmem:[#allocation3 + $0xa8] sm:$0xff] %vm845_vm5, %v792_v25 }
 0x165   :  { %869 = vst.msk [vmem:[#allocation3 + $0xb8] sm:$0xff] %vm845_vm5, %v796_v53  ;;  %1000 = vrot.lane.b32.xlu2 %v5021_v0, %s4638_s21  ;;  %v7591_v53 = vld [vmem:[#allocation9_spill] sm:$0xff] }
 0x167   :  { %v806_v23 = vpop.permute.xlu2 %805 }
 0x168   :  { %874 = vst.msk [vmem:[#allocation3 + $0xe0] sm:$0xff] %vm845_vm5, %v806_v23  ;;  %v7592_v23 = vld [vmem:[#allocation10_spill] sm:$0xff] }
 0x169   :  { %1139 = vrot.lane.b32.xlu1 %v5025_v36, %s4639_s7 }
 0x16a   :  { %1143 = vrot.lane.b32.xlu0 %v5109_v63, %s4639_s7 }
 0x16b   :  { %v798_v22 = vpop.permute.xlu1 %797 }
 0x16c   :  { %v802_v55 = vpop.permute.xlu0 %801  ;;  %870 = vst.msk [vmem:[#allocation3 + $0xc0] sm:$0xff] %vm845_vm5, %v798_v22  ;;  %v7593_v22 = vld [vmem:[#allocation11_spill] sm:$0xff] }
 0x16d   :  { %872 = vst.msk [vmem:[#allocation3 + $0xd0] sm:$0xff] %vm845_vm5, %v802_v55  ;;  %1135 = vrot.lane.b32.xlu2 %v5040_v41, %s4639_s7 }
 0x16f   :  { %v812_v0 = vpop.permute.xlu2 %811 }
 0x170   :  { %877 = vst.msk [vmem:[#allocation3 + $0xf8] sm:$0xff] %vm845_vm5, %v812_v0 }
 0x171   :  { %1145 = vrot.lane.b32.xlu1 %v5046_v42, %s4639_s7 }
 0x172   :  { %1149 = vrot.lane.b32.xlu0 %v5136_v16, %s4639_s7 }
 0x173   :  { %v804_v36 = vpop.permute.xlu1 %803 }
 0x174   :  { %v808_v32 = vpop.permute.xlu0 %807  ;;  %873 = vst.msk [vmem:[#allocation3 + $0xd8] sm:$0xff] %vm845_vm5, %v804_v36 }
 0x175   :  { %875 = vst.msk [vmem:[#allocation3 + $0xe8] sm:$0xff] %vm845_vm5, %v808_v32  ;;  %1141 = vrot.lane.b32.xlu2 %v5063_v48, %s4639_s7 }
 0x177   :  { %v947_v41 = vpop.permute.xlu2 %946 }
 0x178   :  { %1041 = vst.msk [vmem:[#allocation3 + $0x10] sm:$0xff] %vm1038_vm6, %v947_v41  ;;  %v5633_v41 = vld [vmem:[#allocation2 + $0x18a] sm:$0xff] }
 0x179   :  { %1151 = vrot.lane.b32.xlu1 %v5068_v49, %s4639_s7 }
 0x17a   :  { %1155 = vrot.lane.b32.xlu0 %v5163_v28, %s4639_s7 }
 0x17b   :  { %v810_v42 = vpop.permute.xlu1 %809 }
 0x17c   :  { %v943_v63 = vpop.permute.xlu0 %942  ;;  %876 = vst.msk [vmem:[#allocation3 + $0xf0] sm:$0xff] %vm845_vm5, %v810_v42 }
 0x17d   :  { %1039 = vst.msk [vmem:[#allocation3] sm:$0xff] %vm1038_vm6, %v943_v63  ;;  %1147 = vrot.lane.b32.xlu2 %v5087_v56, %s4639_s7  ;;  %v7585_v56 = vld [vmem:[#allocation5_spill] sm:$0xff] }
 0x17e   :  { %v7595_v63 = vld [vmem:[#allocation13_spill] sm:$0xff] }
 0x17f   :  { %v953_v48 = vpop.permute.xlu2 %952 }
 0x180   :  { %1044 = vst.msk [vmem:[#allocation3 + $0x28] sm:$0xff] %vm1038_vm6, %v953_v48  ;;  %v7596_v48 = vld [vmem:[#allocation15_spill] sm:$0xff] }
 0x181   :  { %1157 = vrot.lane.b32.xlu1 %v5094_v58, %s4639_s7 }
 0x182   :  { %1161 = vrot.lane.b32.xlu0 %v5190_v57, %s4639_s7  ;;  %v7584_v57 = vld [vmem:[#allocation4_spill] sm:$0xff] }
 0x183   :  { %v945_v49 = vpop.permute.xlu1 %944 }
 0x184   :  { %v949_v16 = vpop.permute.xlu0 %948  ;;  %1040 = vst.msk [vmem:[#allocation3 + $0x8] sm:$0xff] %vm1038_vm6, %v945_v49  ;;  %v7597_v49 = vld [vmem:[#allocation16_spill] sm:$0xff] }
 0x185   :  { %1042 = vst.msk [vmem:[#allocation3 + $0x18] sm:$0xff] %vm1038_vm6, %v949_v16  ;;  %1153 = vrot.lane.b32.xlu2 %v7584_v57, %s4639_s7 }
 0x187   :  { %v959_v40 = vpop.permute.xlu2 %958 }
 0x188   :  { %1047 = vst.msk [vmem:[#allocation3 + $0x40] sm:$0xff] %vm1038_vm6, %v959_v40  ;;  %v1265_v40 = vld [vmem:[#allocation2 + $0x30] sm:$0xff] }
 0x189   :  { %1163 = vrot.lane.b32.xlu1 %v7585_v56, %s4639_s7 }
 0x18a   :  { %1167 = vrot.lane.b32.xlu0 %v5217_v31, %s4639_s7  ;;  %v7587_v31 = vld [vmem:[#allocation6_spill] sm:$0xff] }
 0x18b   :  { %v951_v58 = vpop.permute.xlu1 %950 }
 0x18c   :  { %v955_v28 = vpop.permute.xlu0 %954  ;;  %1043 = vst.msk [vmem:[#allocation3 + $0x20] sm:$0xff] %vm1038_vm6, %v951_v58 }
 0x18d   :  { %1045 = vst.msk [vmem:[#allocation3 + $0x30] sm:$0xff] %vm1038_vm6, %v955_v28  ;;  %1159 = vrot.lane.b32.xlu2 %v7587_v31, %s4639_s7  ;;  %v1267_v28 = vld [vmem:[#allocation2 + $0x48] sm:$0xff] }
 0x18f   :  { %v965_v12 = vpop.permute.xlu2 %964 }
 0x190   :  { %1050 = vst.msk [vmem:[#allocation3 + $0x58] sm:$0xff] %vm1038_vm6, %v965_v12  ;;  %v5654_v12 = vld [vmem:[#allocation2 + $0x182] sm:$0xff] }
 0x191   :  { %1169 = vrot.lane.b32.xlu1 %v7588_v5, %s4639_s7 }
 0x192   :  { %1173 = vrot.lane.b32.xlu0 %v7586_v59, %s4639_s7  ;;  %v7598_v59 = vld [vmem:[#allocation18_spill] sm:$0xff] }
 0x193   :  { %v957_v62 = vpop.permute.xlu1 %956 }
 0x194   :  { %v961_v54 = vpop.permute.xlu0 %960  ;;  %1046 = vst.msk [vmem:[#allocation3 + $0x38] sm:$0xff] %vm1038_vm6, %v957_v62  ;;  %v1268_v62 = vld [vmem:[#allocation2 + $0x50] sm:$0xff] }
 0x195   :  { %1048 = vst.msk [vmem:[#allocation3 + $0x48] sm:$0xff] %vm1038_vm6, %v961_v54  ;;  %1165 = vrot.lane.b32.xlu2 %v7590_v3, %s4639_s7  ;;  %v1270_v54 = vld [vmem:[#allocation2 + $0x68] sm:$0xff] }
 0x197   :  { %v971_v14 = vpop.permute.xlu2 %970 }
 0x198   :  { %1053 = vst.msk [vmem:[#allocation3 + $0x70] sm:$0xff] %vm1038_vm6, %v971_v14  ;;  %v1266_v14 = vld [vmem:[#allocation2 + $0x38] sm:$0xff] }
 0x199   :  { %1175 = vrot.lane.b32.xlu1 %v7591_v53, %s4639_s7 }
 0x19a   :  { %1179 = vrot.lane.b32.xlu0 %v7589_v26, %s4639_s7 }
 0x19b   :  { %v963_v25 = vpop.permute.xlu1 %962 }
 0x19c   :  { %v967_v2 = vpop.permute.xlu0 %966  ;;  %1049 = vst.msk [vmem:[#allocation3 + $0x50] sm:$0xff] %vm1038_vm6, %v963_v25  ;;  %v1271_v25 = vld [vmem:[#allocation2 + $0x78] sm:$0xff] }
 0x19d   :  { %1051 = vst.msk [vmem:[#allocation3 + $0x60] sm:$0xff] %vm1038_vm6, %v967_v2  ;;  %1171 = vrot.lane.b32.xlu2 %v7592_v23, %s4639_s7  ;;  %v1273_v2 = vld [vmem:[#allocation2 + $0x90] sm:$0xff] }
 0x19e   :  { %v1276_v23 = vld [vmem:[#allocation2 + $0xb0] sm:$0xff] }
 0x19f   :  { %v977_v32 = vpop.permute.xlu2 %976 }
 0x1a0   :  { %1056 = vst.msk [vmem:[#allocation3 + $0x88] sm:$0xff] %vm1038_vm6, %v977_v32 }
 0x1a1   :  { %1181 = vrot.lane.b32.xlu1 %v7593_v22, %s4639_s7 }
 0x1a2   :  { %1185 = vrot.lane.b32.xlu0 %v5284_v17, %s4639_s7  ;;  %v7594_v17 = vld [vmem:[#allocation12_spill] sm:$0xff] }
 0x1a3   :  { %v969_v0 = vpop.permute.xlu1 %968 }
 0x1a4   :  { %v973_v55 = vpop.permute.xlu0 %972  ;;  %1052 = vst.msk [vmem:[#allocation3 + $0x68] sm:$0xff] %vm1038_vm6, %v969_v0  ;;  %v1269_v0 = vld [vmem:[#allocation2 + $0x60] sm:$0xff] }
 0x1a5   :  { %1054 = vst.msk [vmem:[#allocation3 + $0x78] sm:$0xff] %vm1038_vm6, %v973_v55  ;;  %1177 = vrot.lane.b32.xlu2 %v7594_v17, %s4639_s7 }
 0x1a7   :  { %v983_v42 = vpop.permute.xlu2 %982 }
 0x1a8   :  { %1059 = vst.msk [vmem:[#allocation3 + $0xa0] sm:$0xff] %vm1038_vm6, %v983_v42  ;;  %v1272_v42 = vld [vmem:[#allocation2 + $0x80] sm:$0xff] }
 0x1a9   :  { %1187 = vrot.lane.b32.xlu1 %v7595_v63, %s4639_s7 }
 0x1aa   :  { %1191 = vrot.lane.b32.xlu0 %v5295_v33, %s4639_s7 }
 0x1ab   :  { %v975_v16 = vpop.permute.xlu1 %974 }
 0x1ac   :  { %v979_v36 = vpop.permute.xlu0 %978  ;;  %1055 = vst.msk [vmem:[#allocation3 + $0x80] sm:$0xff] %vm1038_vm6, %v975_v16 }
 0x1ad   :  { %1057 = vst.msk [vmem:[#allocation3 + $0x90] sm:$0xff] %vm1038_vm6, %v979_v36  ;;  %1183 = vrot.lane.b32.xlu2 %v7596_v48, %s4639_s7  ;;  %v1275_v48 = vld [vmem:[#allocation2 + $0xa8] sm:$0xff] }
 0x1af   :  { %v989_v57 = vpop.permute.xlu2 %988 }
 0x1b0   :  { %1062 = vst.msk [vmem:[#allocation3 + $0xb8] sm:$0xff] %vm1038_vm6, %v989_v57 }
 0x1b1   :  { %1193 = vrot.lane.b32.xlu1 %v7597_v49, %s4639_s7 }
 0x1b2   :  { %1197 = vrot.lane.b32.xlu0 %v5633_v41, %s4639_s7 }
 0x1b3   :  { %v981_v56 = vpop.permute.xlu1 %980 }
 0x1b4   :  { %v985_v33 = vpop.permute.xlu0 %984  ;;  %1058 = vst.msk [vmem:[#allocation3 + $0x98] sm:$0xff] %vm1038_vm6, %v981_v56  ;;  %v1281_v56 = vld [vmem:[#allocation2 + $0xf0] sm:$0xff] }
 0x1b5   :  { %1060 = vst.msk [vmem:[#allocation3 + $0xa8] sm:$0xff] %vm1038_vm6, %v985_v33  ;;  %1189 = vrot.lane.b32.xlu2 %v7598_v59, %s4639_s7 }
 0x1b7   :  { %v995_v31 = vpop.permute.xlu2 %994 }
 0x1b8   :  { %1065 = vst.msk [vmem:[#allocation3 + $0xd0] sm:$0xff] %vm1038_vm6, %v995_v31 }
 0x1b9   :  { %1329 = vrot.lane.b32.xlu1 %v1265_v40, %s4640_s8 }
 0x1ba   :  { %1333 = vrot.lane.b32.xlu0 %v1267_v28, %s4640_s8  ;;  %v1278_v28 = vld [vmem:[#allocation2 + $0xc8] sm:$0xff] }
 0x1bb   :  { %v987_v5 = vpop.permute.xlu1 %986 }
 0x1bc   :  { %v991_v58 = vpop.permute.xlu0 %990  ;;  %1061 = vst.msk [vmem:[#allocation3 + $0xb0] sm:$0xff] %vm1038_vm6, %v987_v5  ;;  %v1295_v5 = vld [vmem:[#allocation2 + $0x198] sm:$0xff] }
 0x1bd   :  { %1063 = vst.msk [vmem:[#allocation3 + $0xc0] sm:$0xff] %vm1038_vm6, %v991_v58  ;;  %1195 = vrot.lane.b32.xlu2 %v5654_v12, %s4639_s7  ;;  %v1284_v58 = vld [vmem:[#allocation2 + $0x110] sm:$0xff] }
 0x1bf   :  { %v1001_v3 = vpop.permute.xlu2 %1000 }
 0x1c0   :  { %1068 = vst.msk [vmem:[#allocation3 + $0xe8] sm:$0xff] %vm1038_vm6, %v1001_v3 }
 0x1c1   :  { %1335 = vrot.lane.b32.xlu1 %v1268_v62, %s4640_s8 }
 0x1c2   :  { %1339 = vrot.lane.b32.xlu0 %v1270_v54, %s4640_s8  ;;  %v1287_v54 = vld [vmem:[#allocation2 + $0x138] sm:$0xff] }
 0x1c3   :  { %v993_v53 = vpop.permute.xlu1 %992 }
 0x1c4   :  { %v997_v26 = vpop.permute.xlu0 %996  ;;  %1064 = vst.msk [vmem:[#allocation3 + $0xc8] sm:$0xff] %vm1038_vm6, %v993_v53 }
 0x1c5   :  { %1066 = vst.msk [vmem:[#allocation3 + $0xd8] sm:$0xff] %vm1038_vm6, %v997_v26  ;;  %1331 = vrot.lane.b32.xlu2 %v1266_v14, %s4640_s8  ;;  %v1296_v14 = vld [vmem:[#allocation2 + $0x1a0] sm:$0xff] }
 0x1c7   :  { %v1136_v22 = vpop.permute.xlu2 %1135 }
 0x1c8   :  { %1232 = vst.msk [vmem:[#allocation3] sm:$0xff] %vm1231_vm7, %v1136_v22 }
 0x1c9   :  { %1341 = vrot.lane.b32.xlu1 %v1271_v25, %s4640_s8 }
 0x1ca   :  { %1345 = vrot.lane.b32.xlu0 %v1273_v2, %s4640_s8  ;;  %v1459_v2 = vld [vmem:[#allocation2 + $0x39] sm:$0xff] }
 0x1cb   :  { %v999_v32 = vpop.permute.xlu1 %998 }
 0x1cc   :  { %v1003_v55 = vpop.permute.xlu0 %1002  ;;  %1067 = vst.msk [vmem:[#allocation3 + $0xe0] sm:$0xff] %vm1038_vm6, %v999_v32 }
 0x1cd   :  { %1069 = vst.msk [vmem:[#allocation3 + $0xf0] sm:$0xff] %vm1038_vm6, %v1003_v55  ;;  %1337 = vrot.lane.b32.xlu2 %v1269_v0, %s4640_s8 }
 0x1cf   :  { %v1142_v17 = vpop.permute.xlu2 %1141 }
 0x1d0   :  { %1235 = vst.msk [vmem:[#allocation3 + $0x18] sm:$0xff] %vm1231_vm7, %v1142_v17  ;;  %v1471_v17 = vld [vmem:[#allocation2 + $0xc9] sm:$0xff] }
 0x1d1   :  { %1347 = vrot.lane.b32.xlu1 %v5128_v15, %s4640_s8 }
 0x1d2   :  { %1351 = vrot.lane.b32.xlu0 %v1276_v23, %s4640_s8  ;;  %v1465_v23 = vld [vmem:[#allocation2 + $0x81] sm:$0xff] }
 0x1d3   :  { %v1005_v63 = vpop.permute.xlu1 %1004 }
 0x1d4   :  { %v1138_v36 = vpop.permute.xlu0 %1137  ;;  %1070 = vst.msk [vmem:[#allocation3 + $0xf8] sm:$0xff] %vm1038_vm6, %v1005_v63 }
 0x1d5   :  { %1233 = vst.msk [vmem:[#allocation3 + $0x8] sm:$0xff] %vm1231_vm7, %v1138_v36  ;;  %1343 = vrot.lane.b32.xlu2 %v1272_v42, %s4640_s8  ;;  %v1474_v42 = vld [vmem:[#allocation2 + $0xf1] sm:$0xff] }
 0x1d7   :  { %v1148_v33 = vpop.permute.xlu2 %1147 }
 0x1d8   :  { %1238 = vst.msk [vmem:[#allocation3 + $0x30] sm:$0xff] %vm1231_vm7, %v1148_v33 }
 0x1d9   :  { %1353 = vrot.lane.b32.xlu1 %v5155_v27, %s4640_s8 }
 0x1da   :  { %1357 = vrot.lane.b32.xlu0 %v5150_v24, %s4640_s8 }
 0x1db   :  { %v1140_v15 = vpop.permute.xlu1 %1139 }
 0x1dc   :  { %v1144_v16 = vpop.permute.xlu0 %1143  ;;  %1234 = vst.msk [vmem:[#allocation3 + $0x10] sm:$0xff] %vm1231_vm7, %v1140_v15  ;;  %v1477_v15 = vld [vmem:[#allocation2 + $0x111] sm:$0xff] }
 0x1dd   :  { %1236 = vst.msk [vmem:[#allocation3 + $0x20] sm:$0xff] %vm1231_vm7, %v1144_v16  ;;  %1349 = vrot.lane.b32.xlu2 %v1275_v48, %s4640_s8 }
 0x1df   :  { %v1154_v49 = vpop.permute.xlu2 %1153 }
 0x1e0   :  { %1241 = vst.msk [vmem:[#allocation3 + $0x48] sm:$0xff] %vm1231_vm7, %v1154_v49  ;;  %v1480_v49 = vld [vmem:[#allocation2 + $0x139] sm:$0xff] }
 0x1e1   :  { %1359 = vrot.lane.b32.xlu1 %v5182_v51, %s4640_s8 }
 0x1e2   :  { %1363 = vrot.lane.b32.xlu0 %v5177_v43, %s4640_s8 }
 0x1e3   :  { %v1146_v27 = vpop.permute.xlu1 %1145 }
 0x1e4   :  { %v1150_v24 = vpop.permute.xlu0 %1149  ;;  %1237 = vst.msk [vmem:[#allocation3 + $0x28] sm:$0xff] %vm1231_vm7, %v1146_v27 }
 0x1e5   :  { %1239 = vst.msk [vmem:[#allocation3 + $0x38] sm:$0xff] %vm1231_vm7, %v1150_v24  ;;  %1355 = vrot.lane.b32.xlu2 %v1278_v28, %s4640_s8 }
 0x1e7   :  { %v1160_v57 = vpop.permute.xlu2 %1159 }
 0x1e8   :  { %1244 = vst.msk [vmem:[#allocation3 + $0x60] sm:$0xff] %vm1231_vm7, %v1160_v57  ;;  %v1483_v57 = vld [vmem:[#allocation2 + $0x159] sm:$0xff] }
 0x1e9   :  { %1365 = vrot.lane.b32.xlu1 %v5209_v29, %s4640_s8 }
 0x1ea   :  { %1369 = vrot.lane.b32.xlu0 %v5204_v19, %s4640_s8 }
 0x1eb   :  { %v1152_v51 = vpop.permute.xlu1 %1151 }
 0x1ec   :  { %v1156_v43 = vpop.permute.xlu0 %1155  ;;  %1240 = vst.msk [vmem:[#allocation3 + $0x40] sm:$0xff] %vm1231_vm7, %v1152_v51 }
 0x1ed   :  { %1242 = vst.msk [vmem:[#allocation3 + $0x50] sm:$0xff] %vm1231_vm7, %v1156_v43  ;;  %1361 = vrot.lane.b32.xlu2 %v1281_v56, %s4640_s8 }
 0x1ef   :  { %v1166_v40 = vpop.permute.xlu2 %1165 }
 0x1f0   :  { %1247 = vst.msk [vmem:[#allocation3 + $0x78] sm:$0xff] %vm1231_vm7, %v1166_v40 }
 0x1f1   :  { %1371 = vrot.lane.b32.xlu1 %v5236_v30, %s4640_s8 }
 0x1f2   :  { %1375 = vrot.lane.b32.xlu0 %v5231_v1, %s4640_s8 }
 0x1f3   :  { %v1158_v29 = vpop.permute.xlu1 %1157 }
 0x1f4   :  { %v1162_v19 = vpop.permute.xlu0 %1161  ;;  %1243 = vst.msk [vmem:[#allocation3 + $0x58] sm:$0xff] %vm1231_vm7, %v1158_v29 }
 0x1f5   :  { %1245 = vst.msk [vmem:[#allocation3 + $0x68] sm:$0xff] %vm1231_vm7, %v1162_v19  ;;  %1367 = vrot.lane.b32.xlu2 %v1284_v58, %s4640_s8 }
 0x1f7   :  { %v1172_v59 = vpop.permute.xlu2 %1171 }
 0x1f8   :  { %1250 = vst.msk [vmem:[#allocation3 + $0x90] sm:$0xff] %vm1231_vm7, %v1172_v59  ;;  %v1489_v59 = vld [vmem:[#allocation2 + $0x1a1] sm:$0xff] }
 0x1f9   :  { %1377 = vrot.lane.b32.xlu1 %v5262_v18, %s4640_s8 }
 0x1fa   :  { %1381 = vrot.lane.b32.xlu0 %v5258_v21, %s4640_s8 }
 0x1fb   :  { %v1164_v30 = vpop.permute.xlu1 %1163 }
 0x1fc   :  { %v1168_v1 = vpop.permute.xlu0 %1167  ;;  %1246 = vst.msk [vmem:[#allocation3 + $0x70] sm:$0xff] %vm1231_vm7, %v1164_v30 }
 0x1fd   :  { %1248 = vst.msk [vmem:[#allocation3 + $0x80] sm:$0xff] %vm1231_vm7, %v1168_v1  ;;  %1373 = vrot.lane.b32.xlu2 %v1287_v54, %s4640_s8  ;;  %v1484_v1 = vld [vmem:[#allocation2 + $0x169] sm:$0xff] }
 0x1ff   :  { %v1178_v31 = vpop.permute.xlu2 %1177 }
 0x200   :  { %1253 = vst.msk [vmem:[#allocation3 + $0xa8] sm:$0xff] %vm1231_vm7, %v1178_v31 }
 0x201   :  { %1383 = vrot.lane.b32.xlu1 %v5278_v8, %s4640_s8 }
 0x202   :  { %1387 = vrot.lane.b32.xlu0 %v5408_v60, %s4640_s8  ;;  %v1290_v60 = vld [vmem:[#allocation2 + $0x158] sm:$0xff] }
 0x203   :  { %v1170_v18 = vpop.permute.xlu1 %1169 }
 0x204   :  { %v1174_v21 = vpop.permute.xlu0 %1173  ;;  %1249 = vst.msk [vmem:[#allocation3 + $0x88] sm:$0xff] %vm1231_vm7, %v1170_v18  ;;  %v1658_v18 = vld [vmem:[#allocation2 + $0x82] sm:$0xff] }
 0x205   :  { %1251 = vst.msk [vmem:[#allocation3 + $0x98] sm:$0xff] %vm1231_vm7, %v1174_v21  ;;  %1379 = vrot.lane.b32.xlu2 %v1290_v60, %s4640_s8  ;;  %v1653_v21 = vld [vmem:[#allocation2 + $0x4a] sm:$0xff] }
 0x207   :  { %v1184_v8 = vpop.permute.xlu2 %1183 }
 0x208   :  { %1256 = vst.msk [vmem:[#allocation3 + $0xc0] sm:$0xff] %vm1231_vm7, %v1184_v8  ;;  %v1656_v8 = vld [vmem:[#allocation2 + $0x6a] sm:$0xff] }
 0x209   :  { %1389 = vrot.lane.b32.xlu1 %v1295_v5, %s4640_s8 }
 0x20a   :  { %1522 = vrot.lane.b32.xlu0 %v5421_v35, %s4641_s9 }
 0x20b   :  { %v1176_v26 = vpop.permute.xlu1 %1175 }
 0x20c   :  { %v1180_v62 = vpop.permute.xlu0 %1179  ;;  %1252 = vst.msk [vmem:[#allocation3 + $0xa0] sm:$0xff] %vm1231_vm7, %v1176_v26 }
 0x20d   :  { %1254 = vst.msk [vmem:[#allocation3 + $0xb0] sm:$0xff] %vm1231_vm7, %v1180_v62  ;;  %1385 = vrot.lane.b32.xlu2 %v5389_v9, %s4640_s8  ;;  %v1651_v62 = vld [vmem:[#allocation2 + $0x32] sm:$0xff] }
 0x20f   :  { %v1190_v3 = vpop.permute.xlu2 %1189 }
 0x210   :  { %1259 = vst.msk [vmem:[#allocation3 + $0xd8] sm:$0xff] %vm1231_vm7, %v1190_v3  ;;  %v1654_v3 = vld [vmem:[#allocation2 + $0x52] sm:$0xff] }
 0x211   :  { %1524 = vrot.lane.b32.xlu1 %v1459_v2, %s4641_s9 }
 0x212   :  { %1528 = vrot.lane.b32.xlu0 %v5434_v50, %s4641_s9  ;;  %v1462_v50 = vld [vmem:[#allocation2 + $0x61] sm:$0xff] }
 0x213   :  { %v1182_v53 = vpop.permute.xlu1 %1181 }
 0x214   :  { %v1186_v35 = vpop.permute.xlu0 %1185  ;;  %1255 = vst.msk [vmem:[#allocation3 + $0xb8] sm:$0xff] %vm1231_vm7, %v1182_v53  ;;  %v1659_v53 = vld [vmem:[#allocation2 + $0x92] sm:$0xff] }
 0x215   :  { %1257 = vst.msk [vmem:[#allocation3 + $0xc8] sm:$0xff] %vm1231_vm7, %v1186_v35  ;;  %1391 = vrot.lane.b32.xlu2 %v1296_v14, %s4640_s8 }
 0x217   :  { %v1196_v9 = vpop.permute.xlu2 %1195 }
 0x218   :  { %1262 = vst.msk [vmem:[#allocation3 + $0xf0] sm:$0xff] %vm1231_vm7, %v1196_v9 }
 0x219   :  { %1530 = vrot.lane.b32.xlu1 %v1462_v50, %s4641_s9  ;;  %v1664_v50 = vld [vmem:[#allocation2 + $0xca] sm:$0xff] }
 0x21a   :  { %1534 = vrot.lane.b32.xlu0 %v5447_v4, %s4641_s9 }
 0x21b   :  { %v1188_v55 = vpop.permute.xlu1 %1187 }
 0x21c   :  { %v1192_v25 = vpop.permute.xlu0 %1191  ;;  %1258 = vst.msk [vmem:[#allocation3 + $0xd0] sm:$0xff] %vm1231_vm7, %v1188_v55  ;;  %v1657_v55 = vld [vmem:[#allocation2 + $0x7a] sm:$0xff] }
 0x21d   :  { %1260 = vst.msk [vmem:[#allocation3 + $0xe0] sm:$0xff] %vm1231_vm7, %v1192_v25  ;;  %1526 = vrot.lane.b32.xlu2 %v5410_v20, %s4641_s9 }
 0x21f   :  { %v1332_v22 = vpop.permute.xlu2 %1331 }
 0x220   :  { %1427 = vst.msk [vmem:[#allocation3 + $0x8] sm:$0xff] %vm1425_vm8, %v1332_v22  ;;  %v1667_v22 = vld [vmem:[#allocation2 + $0xf2] sm:$0xff] }
 0x221   :  { %1536 = vrot.lane.b32.xlu1 %v1465_v23, %s4641_s9  ;;  %v1662_v23 = vld [vmem:[#allocation2 + $0xb2] sm:$0xff] }
 0x222   :  { %1540 = vrot.lane.b32.xlu0 %v5460_v7, %s4641_s9  ;;  %v1468_v7 = vld [vmem:[#allocation2 + $0xa9] sm:$0xff] }
 0x223   :  { %v1194_v32 = vpop.permute.xlu1 %1193 }
 0x224   :  { %v1198_v4 = vpop.permute.xlu0 %1197  ;;  %1261 = vst.msk [vmem:[#allocation3 + $0xe8] sm:$0xff] %vm1231_vm7, %v1194_v32 }
 0x225   :  { %1263 = vst.msk [vmem:[#allocation3 + $0xf8] sm:$0xff] %vm1231_vm7, %v1198_v4  ;;  %1532 = vrot.lane.b32.xlu2 %v5423_v11, %s4641_s9 }
 0x227   :  { %v1338_v20 = vpop.permute.xlu2 %1337 }
 0x228   :  { %1430 = vst.msk [vmem:[#allocation3 + $0x20] sm:$0xff] %vm1425_vm8, %v1338_v20  ;;  %v1665_v20 = vld [vmem:[#allocation2 + $0xda] sm:$0xff] }
 0x229   :  { %1542 = vrot.lane.b32.xlu1 %v1468_v7, %s4641_s9 }
 0x22a   :  { %1546 = vrot.lane.b32.xlu0 %v5473_v10, %s4641_s9 }
 0x22b   :  { %v1330_v36 = vpop.permute.xlu1 %1329 }
 0x22c   :  { %v1334_v0 = vpop.permute.xlu0 %1333  ;;  %1426 = vst.msk [vmem:[#allocation3] sm:$0xff] %vm1425_vm8, %v1330_v36 }
 0x22d   :  { %1428 = vst.msk [vmem:[#allocation3 + $0x10] sm:$0xff] %vm1425_vm8, %v1334_v0  ;;  %1538 = vrot.lane.b32.xlu2 %v5436_v37, %s4641_s9  ;;  %v1479_v37 = vld [vmem:[#allocation2 + $0x129] sm:$0xff]  ;;  %v1660_v0 = vld [vmem:[#allocation2 + $0x9a] sm:$0xff] }
 0x22f   :  { %v1344_v11 = vpop.permute.xlu2 %1343 }
 0x230   :  { %1433 = vst.msk [vmem:[#allocation3 + $0x38] sm:$0xff] %vm1425_vm8, %v1344_v11 }
 0x231   :  { %1548 = vrot.lane.b32.xlu1 %v1471_v17, %s4641_s9  ;;  %v1670_v17 = vld [vmem:[#allocation2 + $0x112] sm:$0xff] }
 0x232   :  { %1552 = vrot.lane.b32.xlu0 %v5486_v13, %s4641_s9 }
 0x233   :  { %v1336_v63 = vpop.permute.xlu1 %1335 }
 0x234   :  { %v1340_v10 = vpop.permute.xlu0 %1339  ;;  %1429 = vst.msk [vmem:[#allocation3 + $0x18] sm:$0xff] %vm1425_vm8, %v1336_v63 }
 0x235   :  { %1431 = vst.msk [vmem:[#allocation3 + $0x28] sm:$0xff] %vm1425_vm8, %v1340_v10  ;;  %1544 = vrot.lane.b32.xlu2 %v5449_v44, %s4641_s9  ;;  %v1482_v44 = vld [vmem:[#allocation2 + $0x151] sm:$0xff] }
 0x236   :  { %v4526_v10 = vld [vmem:[%s7547_s0 + $0x1f0] sm:$0xff] }
 0x237   :  { %v1350_v16 = vpop.permute.xlu2 %1349  ;;  %v1911_v63 = vmul.f32 %v5496_v46, %v4526_v10  ;;  %v4506_v10 = vld [vmem:[%s7547_s0 + $0x150] sm:$0xff] }
 0x238   :  { %1436 = vst.msk [vmem:[#allocation3 + $0x50] sm:$0xff] %vm1425_vm8, %v1350_v16  ;;  %v1663_v16 = vld [vmem:[#allocation2 + $0xc2] sm:$0xff] }
 0x239   :  { %1554 = vrot.lane.b32.xlu1 %v1474_v42, %s4641_s9 }
 0x23a   :  { %1558 = vrot.lane.b32.xlu0 %v5515_v45, %s4641_s9 }
 0x23b   :  { %v1342_v33 = vpop.permute.xlu1 %1341 }
 0x23c   :  { %v1346_v13 = vpop.permute.xlu0 %1345  ;;  %1432 = vst.msk [vmem:[#allocation3 + $0x30] sm:$0xff] %vm1425_vm8, %v1342_v33 }
 0x23d   :  { %1434 = vst.msk [vmem:[#allocation3 + $0x40] sm:$0xff] %vm1425_vm8, %v1346_v13  ;;  %1550 = vrot.lane.b32.xlu2 %v5462_v52, %s4641_s9  ;;  %v1485_v52 = vld [vmem:[#allocation2 + $0x171] sm:$0xff]  ;;  %v1947_v13 = vadd.f32 %v5503_v34, %v1911_v63 }
 0x23f   :  { %v1356_v48 = vpop.permute.xlu2 %1355 }
 0x240   :  { %1439 = vst.msk [vmem:[#allocation3 + $0x68] sm:$0xff] %vm1425_vm8, %v1356_v48 }
 0x241   :  { %1560 = vrot.lane.b32.xlu1 %v1477_v15, %s4641_s9  ;;  %v1668_v15 = vld [vmem:[#allocation2 + $0xfa] sm:$0xff] }
 0x242   :  { %1564 = vrot.lane.b32.xlu0 %v1479_v37, %s4641_s9  ;;  %v4527_v37 = vld [vmem:[%s7547_s0 + $0x1f8] sm:$0xff] }
 0x243   :  { %v1348_v24 = vpop.permute.xlu1 %1347  ;;  %v1912_v33 = vmul.f32 %v5496_v46, %v4527_v37  ;;  %v3679_v37 = vld [vmem:[%s7550_s1 + $0x10] sm:$0xff] }
 0x244   :  { %v1352_v45 = vpop.permute.xlu0 %1351  ;;  %1435 = vst.msk [vmem:[#allocation3 + $0x48] sm:$0xff] %vm1425_vm8, %v1348_v24  ;;  %v1673_v24 = vld [vmem:[#allocation2 + $0x13a] sm:$0xff] }
 0x245   :  { %1437 = vst.msk [vmem:[#allocation3 + $0x58] sm:$0xff] %vm1425_vm8, %v1352_v45  ;;  %1556 = vrot.lane.b32.xlu2 %v5475_v39, %s4641_s9  ;;  %v1488_v39 = vld [vmem:[#allocation2 + $0x199] sm:$0xff]  ;;  %v1948_v48 = vadd.f32 %v5503_v34, %v1912_v33 }
 0x246   :  { %v1675_v33 = vld [vmem:[#allocation2 + $0x152] sm:$0xff] }
 0x247   :  { %v1362_v28 = vpop.permute.xlu2 %1361 }
 0x248   :  { %1442 = vst.msk [vmem:[#allocation3 + $0x80] sm:$0xff] %vm1425_vm8, %v1362_v28  ;;  %v4499_v28 = vld [vmem:[%s7547_s0 + $0x118] sm:$0xff] }
 0x249   :  { %1566 = vrot.lane.b32.xlu1 %v1480_v49, %s4641_s9  ;;  %v1980_v49 = vmax.f32 %v1948_v48, 0.0  ;;  %v3678_v48 = vld [vmem:[%s7550_s1 + $0x8] sm:$0xff] }
 0x24a   :  { %1570 = vrot.lane.b32.xlu0 %v1482_v44, %s4641_s9  ;;  %v1979_v44 = vmax.f32 %v1947_v13, 0.0  ;;  %v3680_v13 = vld [vmem:[%s7550_s1 + $0x18] sm:$0xff] }
 0x24b   :  { %v1354_v43 = vpop.permute.xlu1 %1353  ;;  %2012 = vst.msk [vmem:[#allocation2 + $0x189] sm:$0xff] %vm20_vm0, %v1980_v49 }
 0x24c   :  { %v1358_v27 = vpop.permute.xlu0 %1357  ;;  %1438 = vst.msk [vmem:[#allocation3 + $0x60] sm:$0xff] %vm1425_vm8, %v1354_v43  ;;  %v1884_v43 = vmul.f32 %v5496_v46, %v4499_v28 }
 0x24d   :  { %1440 = vst.msk [vmem:[#allocation3 + $0x70] sm:$0xff] %vm1425_vm8, %v1358_v27  ;;  %1562 = vrot.lane.b32.xlu2 %v5488_v38, %s4641_s9  ;;  %v1652_v38 = vld [vmem:[#allocation2 + $0x3a] sm:$0xff] }
 0x24e   :  { %2011 = vst.msk [vmem:[#allocation2 + $0x181] sm:$0xff] %vm20_vm0, %v1979_v44 }
 0x24f   :  { %v1368_v56 = vpop.permute.xlu2 %1367 }
 0x250   :  { %1445 = vst.msk [vmem:[#allocation3 + $0x98] sm:$0xff] %vm1425_vm8, %v1368_v56  ;;  %v1920_v56 = vadd.f32 %v5503_v34, %v1884_v43  ;;  %v2079_v43 = vld [vmem:[#allocation2 + $0x19] sm:$0xff] }
 0x251   :  { %1572 = vrot.lane.b32.xlu1 %v1483_v57, %s4641_s9  ;;  %v1666_v57 = vld [vmem:[#allocation2 + $0xe2] sm:$0xff] }
 0x252   :  { %1576 = vrot.lane.b32.xlu0 %v1485_v52, %s4641_s9 }
 0x253   :  { %v1360_v19 = vpop.permute.xlu1 %1359 }
 0x254   :  { %v1364_v51 = vpop.permute.xlu0 %1363  ;;  %1441 = vst.msk [vmem:[#allocation3 + $0x78] sm:$0xff] %vm1425_vm8, %v1360_v19  ;;  %v1952_v19 = vmax.f32 %v1920_v56, 0.0  ;;  %v4509_v56 = vld [vmem:[%s7547_s0 + $0x168] sm:$0xff] }
 0x255   :  { %1443 = vst.msk [vmem:[#allocation3 + $0x88] sm:$0xff] %vm1425_vm8, %v1364_v51  ;;  %1568 = vrot.lane.b32.xlu2 %v5519_v6, %s4641_s9  ;;  %v1655_v6 = vld [vmem:[#allocation2 + $0x62] sm:$0xff] }
 0x256   :  { %v1671_v51 = vld [vmem:[#allocation2 + $0x122] sm:$0xff]  ;;  %1984 = vst.msk [vmem:[#allocation2 + $0x39] sm:$0xff] %vm20_vm0, %v1952_v19 }
 0x257   :  { %v1374_v29 = vpop.permute.xlu2 %1373 }
 0x258   :  { %1448 = vst.msk [vmem:[#allocation3 + $0xb0] sm:$0xff] %vm1425_vm8, %v1374_v29  ;;  %v4500_v29 = vld [vmem:[%s7547_s0 + $0x120] sm:$0xff] }
 0x259   :  { %1578 = vrot.lane.b32.xlu1 %v5528_v61, %s4641_s9 }
 0x25a   :  { %1582 = vrot.lane.b32.xlu0 %v1488_v39, %s4641_s9 }
 0x25b   :  { %v1366_v58 = vpop.permute.xlu1 %1365 }
 0x25c   :  { %v1370_v40 = vpop.permute.xlu0 %1369  ;;  %1444 = vst.msk [vmem:[#allocation3 + $0x90] sm:$0xff] %vm1425_vm8, %v1366_v58 }
 0x25d   :  { %1446 = vst.msk [vmem:[#allocation3 + $0xa0] sm:$0xff] %vm1425_vm8, %v1370_v40  ;;  %1574 = vrot.lane.b32.xlu2 %v1484_v1, %s4641_s9  ;;  %v1676_v40 = vld [vmem:[#allocation2 + $0x15a] sm:$0xff]  ;;  %v1885_v1 = vmul.f32 %v5496_v46, %v4500_v29 }
 0x25e   :  { %v4504_v29 = vld [vmem:[%s7547_s0 + $0x140] sm:$0xff] }
 0x25f   :  { %v1380_v61 = vpop.permute.xlu2 %1379 }
 0x260   :  { %1451 = vst.msk [vmem:[#allocation3 + $0xc8] sm:$0xff] %vm1425_vm8, %v1380_v61  ;;  %v1921_v61 = vadd.f32 %v5503_v34, %v1885_v1 }
 0x261   :  { %1584 = vrot.lane.b32.xlu1 %v1489_v59, %s4641_s9  ;;  %v4502_v59 = vld [vmem:[%s7547_s0 + $0x130] sm:$0xff] }
 0x262   :  { %1717 = vrot.lane.b32.xlu0 %v1652_v38, %s4642_s10 }
 0x263   :  { %v1372_v54 = vpop.permute.xlu1 %1371 }
 0x264   :  { %v1376_v30 = vpop.permute.xlu0 %1375  ;;  %1447 = vst.msk [vmem:[#allocation3 + $0xa8] sm:$0xff] %vm1425_vm8, %v1372_v54  ;;  %v1674_v54 = vld [vmem:[#allocation2 + $0x142] sm:$0xff] }
 0x265   :  { %1449 = vst.msk [vmem:[#allocation3 + $0xb8] sm:$0xff] %vm1425_vm8, %v1376_v30  ;;  %1580 = vrot.lane.b32.xlu2 %v5545_v47, %s4641_s9  ;;  %v1661_v47 = vld [vmem:[#allocation2 + $0xaa] sm:$0xff]  ;;  %v1887_v30 = vmul.f32 %v5496_v46, %v4502_v59 }
 0x267   :  { %v1386_v60 = vpop.permute.xlu2 %1385 }
 0x268   :  { %1454 = vst.msk [vmem:[#allocation3 + $0xe0] sm:$0xff] %vm1425_vm8, %v1386_v60 }
 0x269   :  { %1719 = vrot.lane.b32.xlu1 %v1653_v21, %s4642_s10 }
 0x26a   :  { %1723 = vrot.lane.b32.xlu0 %v1655_v6, %s4642_s10  ;;  %v1669_v6 = vld [vmem:[#allocation2 + $0x10a] sm:$0xff] }
 0x26b   :  { %v1378_v5 = vpop.permute.xlu1 %1377 }
 0x26c   :  { %v1382_v31 = vpop.permute.xlu0 %1381  ;;  %1450 = vst.msk [vmem:[#allocation3 + $0xc0] sm:$0xff] %vm1425_vm8, %v1378_v5  ;;  %v3685_v5 = vld [vmem:[%s7550_s1 + $0x40] sm:$0xff] }
 0x26d   :  { %1452 = vst.msk [vmem:[#allocation3 + $0xd0] sm:$0xff] %vm1425_vm8, %v1382_v31  ;;  %1715 = vrot.lane.b32.xlu2 %v1651_v62, %s4642_s10  ;;  %v1923_v31 = vadd.f32 %v5503_v34, %v1887_v30  ;;  %3886 = vmatpush.msra.mxu0 %v3685_v5  ;;  %v4503_v34 = vld [vmem:[%s7547_s0 + $0x138] sm:$0xff]  ;;  %v2077_v30 = vld [vmem:[#allocation2 + $0x1] sm:$0xff] }
 0x26e   :  { %4592 = vmatpush.msra.mxu1 %v3685_v5  ;;  %4593 = vmatpush.msra.mxu2 %v3685_v5 }
 0x26f   :  { %v1392_v2 = vpop.permute.xlu2 %1391  ;;  %v1955_v60 = vmax.f32 %v1923_v31, 0.0  ;;  %4594 = vmatpush.msra.mxu3 %v3685_v5 }
 0x270   :  { %1457 = vst.msk [vmem:[#allocation3 + $0xf8] sm:$0xff] %vm1425_vm8, %v1392_v2  ;;  %v3684_v2 = vld [vmem:[%s7550_s1 + $0x38] sm:$0xff] }
 0x271   :  { %1725 = vrot.lane.b32.xlu1 %v1656_v8, %s4642_s10  ;;  %1987 = vst.msk [vmem:[#allocation2 + $0x61] sm:$0xff] %vm20_vm0, %v1955_v60  ;;  %3887 = vmatpush.msra.mxu0 %v3684_v2 }
 0x272   :  { %1729 = vrot.lane.b32.xlu0 %v1658_v18, %s4642_s10  ;;  %v1953_v18 = vmax.f32 %v1921_v61, 0.0  ;;  %4595 = vmatpush.msra.mxu1 %v3684_v2 }
 0x273   :  { %v1384_v35 = vpop.permute.xlu1 %1383  ;;  %4596 = vmatpush.msra.mxu2 %v3684_v2  ;;  %4597 = vmatpush.msra.mxu3 %v3684_v2  ;;  %v4507_v2 = vld [vmem:[%s7547_s0 + $0x158] sm:$0xff] }
 0x274   :  { %v1388_v26 = vpop.permute.xlu0 %1387  ;;  %1453 = vst.msk [vmem:[#allocation3 + $0xd8] sm:$0xff] %vm1425_vm8, %v1384_v35  ;;  %v3683_v35 = vld [vmem:[%s7550_s1 + $0x30] sm:$0xff] }
 0x275   :  { %1455 = vst.msk [vmem:[#allocation3 + $0xe8] sm:$0xff] %vm1425_vm8, %v1388_v26  ;;  %1721 = vrot.lane.b32.xlu2 %v1654_v3, %s4642_s10  ;;  %v1888_v26 = vmul.f32 %v5496_v46, %v4503_v34  ;;  %v5912_v46 = vld [vmem:[%s7548_s2] ss:$0 sm:$0xff]  ;;  %3888 = vmatpush.msra.mxu0 %v3683_v35 }
 0x276   :  { %1985 = vst.msk [vmem:[#allocation2 + $0x49] sm:$0xff] %vm20_vm0, %v1953_v18  ;;  %4598 = vmatpush.msra.mxu1 %v3683_v35  ;;  %4599 = vmatpush.msra.mxu2 %v3683_v35  ;;  %v1891_v63 = vmul.f32 %v5912_v46, %v4506_v10  ;;  %v1894_v19 = vmul.f32 %v5912_v46, %v4509_v56  ;;  %v2082_v18 = vld [vmem:[#allocation2 + $0x39] sm:$0xff]  ;;  %v4510_v10 = vld [vmem:[%s7547_s0 + $0x170] sm:$0xff] }
 0x277   :  { %v1527_v25 = vpop.permute.xlu2 %1526  ;;  %4600 = vmatpush.msra.mxu3 %v3683_v35  ;;  %v1889_v59 = vmul.f32 %v5912_v46, %v4504_v29  ;;  %v1681_v35 = vld [vmem:[#allocation2 + $0x19a] sm:$0xff] }
 0x278   :  { %1621 = vst.msk [vmem:[#allocation3 + $0x10] sm:$0xff] %vm1618_vm9, %v1527_v25  ;;  %v1677_v25 = vld [vmem:[#allocation2 + $0x16a] sm:$0xff] }
 0x279   :  { %1731 = vrot.lane.b32.xlu1 %v1659_v53, %s4642_s10  ;;  %v1672_v53 = vld [vmem:[#allocation2 + $0x12a] sm:$0xff] }
 0x27a   :  { %1735 = vrot.lane.b32.xlu0 %v1661_v47, %s4642_s10  ;;  %v4505_v47 = vld [vmem:[%s7547_s0 + $0x148] sm:$0xff] }
 0x27b   :  { %v1390_v9 = vpop.permute.xlu1 %1389  ;;  %v1890_v3 = vmul.f32 %v5912_v46, %v4505_v47 }
 0x27c   :  { %v1523_v14 = vpop.permute.xlu0 %1522  ;;  %1456 = vst.msk [vmem:[#allocation3 + $0xf0] sm:$0xff] %vm1425_vm8, %v1390_v9 }
 0x27d   :  { %1619 = vst.msk [vmem:[#allocation3] sm:$0xff] %vm1618_vm9, %v1523_v14  ;;  %1727 = vrot.lane.b32.xlu2 %v1657_v55, %s4642_s10  ;;  %v3682_v55 = vld [vmem:[%s7550_s1 + $0x28] sm:$0xff] }
 0x27e   :  { %3889 = vmatpush.msra.mxu0 %v3682_v55  ;;  %4601 = vmatpush.msra.mxu1 %v3682_v55 }
 0x27f   :  { %v1533_v32 = vpop.permute.xlu2 %1532  ;;  %4602 = vmatpush.msra.mxu2 %v3682_v55  ;;  %4603 = vmatpush.msra.mxu3 %v3682_v55 }
 0x280   :  { %1624 = vst.msk [vmem:[#allocation3 + $0x28] sm:$0xff] %vm1618_vm9, %v1533_v32 }
 0x281   :  { %1737 = vrot.lane.b32.xlu1 %v1662_v23, %s4642_s10 }
 0x282   :  { %1741 = vrot.lane.b32.xlu0 %v1664_v50, %s4642_s10  ;;  %v4498_v50 = vld [vmem:[%s7547_s0 + $0x110] sm:$0xff] }
 0x283   :  { %v1525_v7 = vpop.permute.xlu1 %1524 }
 0x284   :  { %v1529_v4 = vpop.permute.xlu0 %1528  ;;  %1620 = vst.msk [vmem:[#allocation3 + $0x8] sm:$0xff] %vm1618_vm9, %v1525_v7 }
 0x285   :  { %1622 = vst.msk [vmem:[#allocation3 + $0x18] sm:$0xff] %vm1618_vm9, %v1529_v4  ;;  %1733 = vrot.lane.b32.xlu2 %v1660_v0, %s4642_s10  ;;  %v1883_v4 = vmul.f32 %v5912_v46, %v4498_v50  ;;  %v1682_v0 = vld [vmem:[#allocation2 + $0x1a2] sm:$0xff] }
 0x287   :  { %v1539_v11 = vpop.permute.xlu2 %1538 }
 0x288   :  { %1627 = vst.msk [vmem:[#allocation3 + $0x40] sm:$0xff] %vm1618_vm9, %v1539_v11 }
 0x289   :  { %1743 = vrot.lane.b32.xlu1 %v1665_v20, %s4642_s10  ;;  %v3681_v20 = vld [vmem:[%s7550_s1 + $0x20] sm:$0xff] }
 0x28a   :  { %1747 = vrot.lane.b32.xlu0 %v1667_v22, %s4642_s10  ;;  %3890 = vmatpush.msra.mxu0 %v3681_v20 }
 0x28b   :  { %v1531_v42 = vpop.permute.xlu1 %1530  ;;  %4604 = vmatpush.msra.mxu1 %v3681_v20  ;;  %4605 = vmatpush.msra.mxu2 %v3681_v20 }
 0x28c   :  { %v1535_v36 = vpop.permute.xlu0 %1534  ;;  %1623 = vst.msk [vmem:[#allocation3 + $0x20] sm:$0xff] %vm1618_vm9, %v1531_v42  ;;  %v4508_v42 = vld [vmem:[%s7547_s0 + $0x160] sm:$0xff]  ;;  %3891 = vmatpush.msra.mxu0 %v3680_v13  ;;  %4606 = vmatpush.msra.mxu3 %v3681_v20 }
 0x28d   :  { %1625 = vst.msk [vmem:[#allocation3 + $0x30] sm:$0xff] %vm1618_vm9, %v1535_v36  ;;  %1739 = vrot.lane.b32.xlu2 %v1663_v16, %s4642_s10  ;;  %v1893_v16 = vmul.f32 %v5912_v46, %v4508_v42  ;;  %4607 = vmatpush.msra.mxu1 %v3680_v13  ;;  %v1895_v42 = vmul.f32 %v5912_v46, %v4510_v10 }
 0x28e   :  { %3892 = vmatpush.msra.mxu0 %v3679_v37  ;;  %4608 = vmatpush.msra.mxu2 %v3680_v13 }
 0x28f   :  { %v1545_v27 = vpop.permute.xlu2 %1544  ;;  %4610 = vmatpush.msra.mxu1 %v3679_v37  ;;  %4609 = vmatpush.msra.mxu3 %v3680_v13  ;;  %v2083_v13 = vld [vmem:[#allocation2 + $0x49] sm:$0xff] }
 0x290   :  { %1630 = vst.msk [vmem:[#allocation3 + $0x58] sm:$0xff] %vm1618_vm9, %v1545_v27  ;;  %3893 = vmatpush.msra.mxu0 %v3678_v48  ;;  %4611 = vmatpush.msra.mxu2 %v3679_v37 }
 0x291   :  { %1749 = vrot.lane.b32.xlu1 %v1668_v15, %s4642_s10  ;;  %4613 = vmatpush.msra.mxu1 %v3678_v48 }
 0x292   :  { %1753 = vrot.lane.b32.xlu0 %v1670_v17, %s4642_s10  ;;  %4614 = vmatpush.msra.mxu2 %v3678_v48 }
 0x293   :  { %v1537_v52 = vpop.permute.xlu1 %1536  ;;  %4612 = vmatpush.msra.mxu3 %v3679_v37 }
 0x294   :  { %v1541_v45 = vpop.permute.xlu0 %1540  ;;  %1626 = vst.msk [vmem:[#allocation3 + $0x38] sm:$0xff] %vm1618_vm9, %v1537_v52 }
 0x295   :  { %1628 = vst.msk [vmem:[#allocation3 + $0x48] sm:$0xff] %vm1618_vm9, %v1541_v45  ;;  %1745 = vrot.lane.b32.xlu2 %v1666_v57, %s4642_s10  ;;  %v4501_v45 = vld [vmem:[%s7547_s0 + $0x128] sm:$0xff]  ;;  %v3677_v57 = vld [vmem:[%s7550_s1] sm:$0xff]  ;;  %4615 = vmatpush.msra.mxu3 %v3678_v48 }
 0x296   :  { %v1886_v49 = vmul.f32 %v5912_v46, %v4501_v45  ;;  %3894 = vmatpush.msra.mxu0 %v3677_v57  ;;  %4616 = vmatpush.msra.mxu1 %v3677_v57 }
 0x297   :  { %v1551_v38 = vpop.permute.xlu2 %1550  ;;  %4617 = vmatpush.msra.mxu2 %v3677_v57  ;;  %4618 = vmatpush.msra.mxu3 %v3677_v57  ;;  %v4513_v57 = vld [vmem:[%s7547_s0 + $0x188] sm:$0xff] }
 0x298   :  { %1633 = vst.msk [vmem:[#allocation3 + $0x70] sm:$0xff] %vm1618_vm9, %v1551_v38  ;;  %v1898_v56 = vmul.f32 %v5912_v46, %v4513_v57 }
 0x299   :  { %1755 = vrot.lane.b32.xlu1 %v1671_v51, %s4642_s10 }
 0x29a   :  { %1759 = vrot.lane.b32.xlu0 %v1673_v24, %s4642_s10 }
 0x29b   :  { %v1543_v58 = vpop.permute.xlu1 %1542 }
 0x29c   :  { %v1547_v39 = vpop.permute.xlu0 %1546  ;;  %1629 = vst.msk [vmem:[#allocation3 + $0x50] sm:$0xff] %vm1618_vm9, %v1543_v58  ;;  %v1678_v58 = vld [vmem:[#allocation2 + $0x172] sm:$0xff] }
 0x29d   :  { %1631 = vst.msk [vmem:[#allocation3 + $0x60] sm:$0xff] %vm1618_vm9, %v1547_v39  ;;  %1751 = vrot.lane.b32.xlu2 %v1669_v6, %s4642_s10 }
 0x29f   :  { %v1557_v62 = vpop.permute.xlu2 %1556 }
 0x2a0   :  { %1636 = vst.msk [vmem:[#allocation3 + $0x88] sm:$0xff] %vm1618_vm9, %v1557_v62  ;;  %v4512_v62 = vld [vmem:[%s7547_s0 + $0x180] sm:$0xff] }
 0x2a1   :  { %1761 = vrot.lane.b32.xlu1 %v1674_v54, %s4642_s10 }
 0x2a2   :  { %1765 = vrot.lane.b32.xlu0 %v1676_v40, %s4642_s10  ;;  %v4511_v40 = vld [vmem:[%s7547_s0 + $0x178] sm:$0xff] }
 0x2a3   :  { %v1549_v8 = vpop.permute.xlu1 %1548  ;;  %v1896_v38 = vmul.f32 %v5912_v46, %v4511_v40 }
 0x2a4   :  { %v1553_v21 = vpop.permute.xlu0 %1552  ;;  %1632 = vst.msk [vmem:[#allocation3 + $0x68] sm:$0xff] %vm1618_vm9, %v1549_v8  ;;  %v1897_v8 = vmul.f32 %v5912_v46, %v4512_v62 }
 0x2a5   :  { %1634 = vst.msk [vmem:[#allocation3 + $0x78] sm:$0xff] %vm1618_vm9, %v1553_v21  ;;  %1757 = vrot.lane.b32.xlu2 %v1672_v53, %s4642_s10  ;;  %v1892_v53 = vmul.f32 %v5912_v46, %v4507_v2 }
 0x2a7   :  { %v1563_v36 = vpop.permute.xlu2 %1562 }
 0x2a8   :  { %1639 = vst.msk [vmem:[#allocation3 + $0xa0] sm:$0xff] %vm1618_vm9, %v1563_v36  ;;  %v4517_v36 = vld [vmem:[%s7547_s0 + $0x1a8] sm:$0xff] }
 0x2a9   :  { %1767 = vrot.lane.b32.xlu1 %v1677_v25, %s4642_s10 }
 0x2aa   :  { %1771 = vrot.lane.b32.xlu0 %v5654_v12, %s4642_s10  ;;  %v5918_v12 = vld [vmem:[%s7549_s3] ss:$0 sm:$0xff] }
 0x2ab   :  { %v1924_v14 = vadd.f32 %v5918_v12, %v1888_v26  ;;  %v1926_v23 = vadd.f32 %v5918_v12, %v1890_v3  ;;  %v1919_v7 = vadd.f32 %v5918_v12, %v1883_v4  ;;  %v1555_v11 = vpop.permute.xlu1 %1554  ;;  %v1927_v15 = vadd.f32 %v5918_v12, %v1891_v63  ;;  %v4514_v26 = vld [vmem:[%s7547_s0 + $0x190] sm:$0xff]  ;;  %v2085_v4 = vld [vmem:[#allocation2 + $0x61] sm:$0xff] }
 0x2ac   :  { %v1559_v9 = vpop.permute.xlu0 %1558  ;;  %1635 = vst.msk [vmem:[#allocation3 + $0x80] sm:$0xff] %vm1618_vm9, %v1555_v11  ;;  %v1929_v24 = vadd.f32 %v5918_v12, %v1893_v16  ;;  %v1922_v28 = vadd.f32 %v5918_v12, %v1886_v49  ;;  %v1930_v1 = vadd.f32 %v5918_v12, %v1894_v19  ;;  %v1932_v61 = vadd.f32 %v5918_v12, %v1896_v38  ;;  %v2078_v11 = vld [vmem:[#allocation2 + $0x9] sm:$0xff] }
 0x2ad   :  { %1637 = vst.msk [vmem:[#allocation3 + $0x90] sm:$0xff] %vm1618_vm9, %v1559_v9  ;;  %v1956_v22 = vmax.f32 %v1924_v14, 0.0  ;;  %v1958_v32 = vmax.f32 %v1926_v23, 0.0  ;;  %v1951_v17 = vmax.f32 %v1919_v7, 0.0  ;;  %v1959_v27 = vmax.f32 %v1927_v15, 0.0  ;;  %1763 = vrot.lane.b32.xlu2 %v1675_v33, %s4642_s10  ;;  %v2080_v14 = vld [vmem:[#allocation2 + $0x21] sm:$0xff] }
 0x2ae   :  { %v1961_v52 = vmax.f32 %v1929_v24, 0.0  ;;  %v1954_v39 = vmax.f32 %v1922_v28, 0.0  ;;  %v1962_v54 = vmax.f32 %v1930_v1, 0.0  ;;  %v1925_v21 = vadd.f32 %v5918_v12, %v1889_v59  ;;  %v4515_v7 = vld [vmem:[%s7547_s0 + $0x198] sm:$0xff]  ;;  %v4518_v49 = vld [vmem:[%s7547_s0 + $0x1b0] sm:$0xff]  ;;  %v4520_v28 = vld [vmem:[%s7547_s0 + $0x1c0] sm:$0xff] }
 0x2af   :  { %1988 = vst.msk [vmem:[#allocation2 + $0x69] sm:$0xff] %vm20_vm0, %v1956_v22  ;;  %v1569_v51 = vpop.permute.xlu2 %1568  ;;  %v1964_v31 = vmax.f32 %v1932_v61, 0.0  ;;  %v1899_v47 = vmul.f32 %v5912_v46, %v4514_v26  ;;  %v1933_v3 = vadd.f32 %v5918_v12, %v1897_v8  ;;  %v1928_v55 = vadd.f32 %v5918_v12, %v1892_v53  ;;  %v4521_v61 = vld [vmem:[%s7547_s0 + $0x1c8] sm:$0xff] }
 0x2b0   :  { %1990 = vst.msk [vmem:[#allocation2 + $0x81] sm:$0xff] %vm20_vm0, %v1958_v32  ;;  %v1957_v60 = vmax.f32 %v1925_v21, 0.0  ;;  %v1900_v20 = vmul.f32 %v5912_v46, %v4515_v7  ;;  %v1931_v15 = vadd.f32 %v5918_v12, %v1895_v42  ;;  %v1934_v29 = vadd.f32 %v5918_v12, %v1898_v56 }
 0x2b1   :  { %1983 = vst.msk [vmem:[#allocation2 + $0x31] sm:$0xff] %vm20_vm0, %v1951_v17  ;;  %1773 = vrot.lane.b32.xlu1 %v5633_v41, %s4642_s10  ;;  %v1935_v25 = vadd.f32 %v5918_v12, %v1899_v47  ;;  %v1965_v9 = vmax.f32 %v1933_v3, 0.0  ;;  %v1960_v22 = vmax.f32 %v1928_v55, 0.0  ;;  %v1902_v17 = vmul.f32 %v5912_v46, %v4517_v36 }
 0x2b2   :  { %1777 = vrot.lane.b32.xlu0 %v1682_v0, %s4642_s10  ;;  %1991 = vst.msk [vmem:[#allocation2 + $0x91] sm:$0xff] %vm20_vm0, %v1959_v27  ;;  %v1936_v63 = vadd.f32 %v5918_v12, %v1900_v20  ;;  %v1963_v48 = vmax.f32 %v1931_v15, 0.0  ;;  %v1966_v59 = vmax.f32 %v1934_v29, 0.0  ;;  %v1906_v21 = vmul.f32 %v5912_v46, %v4521_v61 }
 0x2b3   :  { %1993 = vst.msk [vmem:[#allocation2 + $0xa9] sm:$0xff] %vm20_vm0, %v1961_v52  ;;  %v1561_v41 = vpop.permute.xlu1 %1560  ;;  %v1967_v23 = vmax.f32 %v1935_v25, 0.0  ;;  %v1938_v16 = vadd.f32 %v5918_v12, %v1902_v17  ;;  %v1903_v52 = vmul.f32 %v5912_v46, %v4518_v49 }
 0x2b4   :  { %v1565_v44 = vpop.permute.xlu0 %1564  ;;  %1642 = vst.msk [vmem:[#allocation3 + $0xb8] sm:$0xff] %vm1618_vm9, %v1569_v51  ;;  %v1968_v33 = vmax.f32 %v1936_v63, 0.0  ;;  %v1942_v62 = vadd.f32 %v5918_v12, %v1906_v21 }
 0x2b5   :  { %1640 = vst.msk [vmem:[#allocation3 + $0xa8] sm:$0xff] %vm1618_vm9, %v1565_v44  ;;  %1769 = vrot.lane.b32.xlu2 %v1678_v58, %s4642_s10  ;;  %v1970_v45 = vmax.f32 %v1938_v16, 0.0 }
 0x2b6   :  { %1638 = vst.msk [vmem:[#allocation3 + $0x98] sm:$0xff] %vm1618_vm9, %v1561_v41  ;;  %v2086_v41 = vld [vmem:[#allocation2 + $0x69] sm:$0xff]  ;;  %v1974_v2 = vmax.f32 %v1942_v62, 0.0 }
 0x2b7   :  { %1986 = vst.msk [vmem:[#allocation2 + $0x51] sm:$0xff] %vm20_vm0, %v1954_v39  ;;  %v1575_v5 = vpop.permute.xlu2 %1574  ;;  %v2088_v44 = vld [vmem:[#allocation2 + $0x81] sm:$0xff]  ;;  %v1939_v39 = vadd.f32 %v5918_v12, %v1903_v52 }
 0x2b8   :  { %1994 = vst.msk [vmem:[#allocation2 + $0xb1] sm:$0xff] %vm20_vm0, %v1962_v54  ;;  %v2081_v51 = vld [vmem:[#allocation2 + $0x31] sm:$0xff] }
 0x2b9   :  { %2141 = vrot.lane.b32.xlu1 %v2077_v30, %s4635_s25  ;;  %1996 = vst.msk [vmem:[#allocation2 + $0xc9] sm:$0xff] %vm20_vm0, %v1964_v31  ;;  %v1971_v38 = vmax.f32 %v1939_v39, 0.0  ;;  %v4523_v31 = vld [vmem:[%s7547_s0 + $0x1d8] sm:$0xff] }
 0x2ba   :  { %2145 = vrot.lane.b32.xlu0 %v2079_v43, %s4635_s25  ;;  %1645 = vst.msk [vmem:[#allocation3 + $0xd0] sm:$0xff] %vm1618_vm9, %v1575_v5  ;;  %v1905_v43 = vmul.f32 %v5912_v46, %v4520_v28  ;;  %v2091_v1 = vld [vmem:[#allocation2 + $0xa9] sm:$0xff]  ;;  %v2089_v8 = vld [vmem:[#allocation2 + $0x91] sm:$0xff] }
 0x2bb   :  { %v1567_v34 = vpop.permute.xlu1 %1566  ;;  %1989 = vst.msk [vmem:[#allocation2 + $0x79] sm:$0xff] %vm20_vm0, %v1957_v60  ;;  %v4516_v60 = vld [vmem:[%s7547_s0 + $0x1a0] sm:$0xff]  ;;  %v4525_v28 = vld [vmem:[%s7547_s0 + $0x1e8] sm:$0xff] }
 0x2bc   :  { %v1571_v6 = vpop.permute.xlu0 %1570  ;;  %1641 = vst.msk [vmem:[#allocation3 + $0xb0] sm:$0xff] %vm1618_vm9, %v1567_v34  ;;  %v1941_v40 = vadd.f32 %v5918_v12, %v1905_v43  ;;  %v1901_v34 = vmul.f32 %v5912_v46, %v4516_v60  ;;  %v1910_v57 = vmul.f32 %v5912_v46, %v4525_v28 }
 0x2bd   :  { %1643 = vst.msk [vmem:[#allocation3 + $0xc0] sm:$0xff] %vm1618_vm9, %v1571_v6  ;;  %1775 = vrot.lane.b32.xlu2 %v1681_v35, %s4642_s10 }
 0x2be   :  { %1997 = vst.msk [vmem:[#allocation2 + $0xd9] sm:$0xff] %vm20_vm0, %v1965_v9  ;;  %v1973_v58 = vmax.f32 %v1941_v40, 0.0  ;;  %v2084_v5 = vld [vmem:[#allocation2 + $0x51] sm:$0xff]  ;;  %v1937_v35 = vadd.f32 %v5918_v12, %v1901_v34  ;;  %v4524_v9 = vld [vmem:[%s7547_s0 + $0x1e0] sm:$0xff]  ;;  %v1946_v56 = vadd.f32 %v5918_v12, %v1910_v57  ;;  %v2014_v34 = vld [vmem:[#allocation2 + $0x8] sm:$0xff] }
 0x2bf   :  { %v1581_v32 = vpop.permute.xlu2 %1580  ;;  %1999 = vst.msk [vmem:[#allocation2 + $0xf1] sm:$0xff] %vm20_vm0, %v1967_v23  ;;  %v1909_v23 = vmul.f32 %v5912_v46, %v4524_v9  ;;  %v6172_v9 = vld [vmem:[#allocation2 + $0x30] sm:$0xff] }
 0x2c0   :  { %1648 = vst.msk [vmem:[#allocation3 + $0xe8] sm:$0xff] %vm1618_vm9, %v1581_v32 }
 0x2c1   :  { %2147 = vrot.lane.b32.xlu1 %v2080_v14, %s4635_s25  ;;  %1992 = vst.msk [vmem:[#allocation2 + $0x99] sm:$0xff] %vm20_vm0, %v1960_v22  ;;  %v2094_v14 = vld [vmem:[#allocation2 + $0xc9] sm:$0xff]  ;;  %v1945_v32 = vadd.f32 %v5918_v12, %v1909_v23 }
 0x2c2   :  { %2151 = vrot.lane.b32.xlu0 %v2082_v18, %s4635_s25  ;;  %2000 = vst.msk [vmem:[#allocation2 + $0xf9] sm:$0xff] %vm20_vm0, %v1968_v33  ;;  %v1908_v18 = vmul.f32 %v5912_v46, %v4523_v31  ;;  %v2087_v22 = vld [vmem:[#allocation2 + $0x79] sm:$0xff]  ;;  %v2270_v23 = vld [vmem:[#allocation2 + $0xa] sm:$0xff] }
 0x2c3   :  { %v1573_v0 = vpop.permute.xlu1 %1572  ;;  %2002 = vst.msk [vmem:[#allocation2 + $0x111] sm:$0xff] %vm20_vm0, %v1970_v45  ;;  %v1977_v36 = vmax.f32 %v1945_v32, 0.0  ;;  %v2275_v32 = vld [vmem:[#allocation2 + $0x4a] sm:$0xff] }
 0x2c4   :  { %v1577_v50 = vpop.permute.xlu0 %1576  ;;  %1644 = vst.msk [vmem:[#allocation3 + $0xc8] sm:$0xff] %vm1618_vm9, %v1573_v0  ;;  %v1944_v47 = vadd.f32 %v5918_v12, %v1908_v18  ;;  %v2092_v0 = vld [vmem:[#allocation2 + $0xb1] sm:$0xff]  ;;  %v2269_v18 = vld [vmem:[#allocation2 + $0x2] sm:$0xff] }
 0x2c5   :  { %1646 = vst.msk [vmem:[#allocation3 + $0xd8] sm:$0xff] %vm1618_vm9, %v1577_v50  ;;  %2143 = vrot.lane.b32.xlu2 %v2078_v11, %s4635_s25  ;;  %v1969_v50 = vmax.f32 %v1937_v35, 0.0  ;;  %v2095_v15 = vld [vmem:[#allocation2 + $0xd9] sm:$0xff] }
 0x2c6   :  { %1995 = vst.msk [vmem:[#allocation2 + $0xc1] sm:$0xff] %vm20_vm0, %v1963_v48  ;;  %v1976_v53 = vmax.f32 %v1944_v47, 0.0  ;;  %v2097_v10 = vld [vmem:[#allocation2 + $0xf1] sm:$0xff] }
 0x2c7   :  { %v1716_v24 = vpop.permute.xlu2 %1715  ;;  %2003 = vst.msk [vmem:[#allocation2 + $0x121] sm:$0xff] %vm20_vm0, %v1971_v38 }
 0x2c8   :  { %1812 = vst.msk [vmem:[#allocation3] sm:$0xff] %vm1811_vm10, %v1716_v24  ;;  %v2090_v16 = vld [vmem:[#allocation2 + $0x99] sm:$0xff] }
 0x2c9   :  { %2153 = vrot.lane.b32.xlu1 %v2083_v13, %s4635_s25  ;;  %2005 = vst.msk [vmem:[#allocation2 + $0x139] sm:$0xff] %vm20_vm0, %v1973_v58 }
 0x2ca   :  { %2157 = vrot.lane.b32.xlu0 %v2085_v4, %s4635_s25  ;;  %1998 = vst.msk [vmem:[#allocation2 + $0xe1] sm:$0xff] %vm20_vm0, %v1966_v59  ;;  %v4519_v4 = vld [vmem:[%s7547_s0 + $0x1b8] sm:$0xff] }
 0x2cb   :  { %v1579_v27 = vpop.permute.xlu1 %1578  ;;  %2006 = vst.msk [vmem:[#allocation2 + $0x141] sm:$0xff] %vm20_vm0, %v1974_v2  ;;  %v1904_v7 = vmul.f32 %v5912_v46, %v4519_v4  ;;  %v2100_v48 = vld [vmem:[#allocation2 + $0x111] sm:$0xff]  ;;  %v2013_v2 = vld [vmem:[#allocation2] sm:$0xff] }
 0x2cc   :  { %v1583_v37 = vpop.permute.xlu0 %1582  ;;  %1647 = vst.msk [vmem:[#allocation3 + $0xe0] sm:$0xff] %vm1618_vm9, %v1579_v27 }
 0x2cd   :  { %1649 = vst.msk [vmem:[#allocation3 + $0xf0] sm:$0xff] %vm1618_vm9, %v1583_v37  ;;  %2149 = vrot.lane.b32.xlu2 %v2081_v51, %s4635_s25  ;;  %v1940_v17 = vadd.f32 %v5918_v12, %v1904_v7  ;;  %v4522_v37 = vld [vmem:[%s7547_s0 + $0x1d0] sm:$0xff]  ;;  %v2093_v43 = vld [vmem:[#allocation2 + $0xc1] sm:$0xff]  ;;  %v2098_v51 = vld [vmem:[#allocation2 + $0xf9] sm:$0xff] }
 0x2ce   :  { %2008 = vst.msk [vmem:[#allocation2 + $0x159] sm:$0xff] %vm20_vm0, %v1976_v53  ;;  %v1907_v33 = vmul.f32 %v5912_v46, %v4522_v37  ;;  %v6182_v7 = vld [vmem:[#allocation2 + $0x20] sm:$0xff] }
 0x2cf   :  { %v3613_v30 = vld [vmem:[#allocation3] sm:$0xff]  ;;  %v1722_v6 = vpop.permute.xlu2 %1721  ;;  %2001 = vst.msk [vmem:[#allocation2 + $0x109] sm:$0xff] %vm20_vm0, %v1969_v50  ;;  %v1972_v11 = vmax.f32 %v1940_v17, 0.0  ;;  %v6188_v17 = vld [vmem:[#allocation2 + $0x38] sm:$0xff] }
 0x2d0   :  { %4528 = vmatmul.msk.f32.vlgmr.msra.gmra.mxu0 %vm3686_vm11, %v3613_v30  ;;  %1815 = vst.msk [vmem:[#allocation3 + $0x18] sm:$0xff] %vm1811_vm10, %v1722_v6 }
 0x2d1   :  { %2159 = vrot.lane.b32.xlu1 %v2086_v41, %s4635_s25  ;;  %2009 = vst.msk [vmem:[#allocation2 + $0x169] sm:$0xff] %vm20_vm0, %v1977_v36  ;;  %v2103_v41 = vld [vmem:[#allocation2 + $0x139] sm:$0xff]  ;;  %v2096_v46 = vld [vmem:[#allocation2 + $0xe1] sm:$0xff] }
 0x2d2   :  { %2163 = vrot.lane.b32.xlu0 %v2088_v44, %s4635_s25  ;;  %2004 = vst.msk [vmem:[#allocation2 + $0x129] sm:$0xff] %vm20_vm0, %v1972_v11  ;;  %v1943_v44 = vadd.f32 %v5918_v12, %v1907_v33  ;;  %v2101_v12 = vld [vmem:[#allocation2 + $0x121] sm:$0xff]  ;;  %v6193_v11 = vld [vmem:[#allocation2 + $0x50] sm:$0xff] }
 0x2d3   :  { %v1585_v54 = vpop.permute.xlu1 %1584  ;;  %2046 = vst.msk [vmem:[#allocation3 + $0x108] sm:$0xff] %vm20_vm0, %v2014_v34 }
 0x2d4   :  { %v1718_v19 = vpop.permute.xlu0 %1717  ;;  %1650 = vst.msk [vmem:[#allocation3 + $0xf8] sm:$0xff] %vm1618_vm9, %v1585_v54  ;;  %v1975_v24 = vmax.f32 %v1943_v44, 0.0  ;;  %v2104_v54 = vld [vmem:[#allocation2 + $0x141] sm:$0xff] }
 0x2d5   :  { %1813 = vst.msk [vmem:[#allocation3 + $0x8] sm:$0xff] %vm1811_vm10, %v1718_v19  ;;  %2155 = vrot.lane.b32.xlu2 %v2084_v5, %s4635_s25  ;;  %v1978_v19 = vmax.f32 %v1946_v56, 0.0  ;;  %v6210_v44 = vld [vmem:[#allocation2 + $0x60] sm:$0xff] }
 0x2d6   :  { %2007 = vst.msk [vmem:[#allocation2 + $0x151] sm:$0xff] %vm20_vm0, %v1975_v24  ;;  %v2099_v61 = vld [vmem:[#allocation2 + $0x109] sm:$0xff]  ;;  %v2271_v24 = vld [vmem:[#allocation2 + $0x1a] sm:$0xff] }
 0x2d7   :  { %v1728_v25 = vpop.permute.xlu2 %1727  ;;  %v3616_v52 = vld [vmem:[#allocation3 + $0x18] sm:$0xff]  ;;  %2010 = vst.msk [vmem:[#allocation2 + $0x171] sm:$0xff] %vm20_vm0, %v1978_v19  ;;  %v6230_v56 = vld [vmem:[#allocation2 + $0x80] sm:$0xff] }
 0x2d8   :  { %1818 = vst.msk [vmem:[#allocation3 + $0x30] sm:$0xff] %vm1811_vm10, %v1728_v25  ;;  %v6170_v25 = vld [vmem:[#allocation2 + $0x18] sm:$0xff] }
 0x2d9   :  { %2165 = vrot.lane.b32.xlu1 %v2089_v8, %s4635_s25  ;;  %v2102_v8 = vld [vmem:[#allocation2 + $0x129] sm:$0xff]  ;;  %2045 = vst.msk [vmem:[#allocation3 + $0x100] sm:$0xff] %vm20_vm0, %v2013_v2  ;;  %v2274_v19 = vld [vmem:[#allocation2 + $0x3a] sm:$0xff] }
 0x2da   :  { %2169 = vrot.lane.b32.xlu0 %v2091_v1, %s4635_s25  ;;  %v2106_v1 = vld [vmem:[#allocation2 + $0x159] sm:$0xff]  ;;  %2047 = vst.msk [vmem:[#allocation3 + $0x110] sm:$0xff] %vm20_vm0, %v6170_v25  ;;  %v2285_v2 = vld [vmem:[#allocation2 + $0xc2] sm:$0xff] }
 0x2db   :  { %v1720_v55 = vpop.permute.xlu1 %1719  ;;  %2049 = vst.msk [vmem:[#allocation3 + $0x120] sm:$0xff] %vm20_vm0, %v6172_v9 }
 0x2dc   :  { %v1724_v26 = vpop.permute.xlu0 %1723  ;;  %v3614_v3 = vld [vmem:[#allocation3 + $0x8] sm:$0xff]  ;;  %1814 = vst.msk [vmem:[#allocation3 + $0x10] sm:$0xff] %vm1811_vm10, %v1720_v55 }
 0x2dd   :  { %1816 = vst.msk [vmem:[#allocation3 + $0x20] sm:$0xff] %vm1811_vm10, %v1724_v26  ;;  %4529 = vmatmul.msk.f32.gmra.mxu0 %vm3686_vm11, %v3614_v3  ;;  %2161 = vrot.lane.b32.xlu2 %v2087_v22, %s4635_s25  ;;  %v2107_v26 = vld [vmem:[#allocation2 + $0x169] sm:$0xff]  ;;  %v2105_v55 = vld [vmem:[#allocation2 + $0x151] sm:$0xff] }
 0x2de   :  { %v2272_v3 = vld [vmem:[#allocation2 + $0x22] sm:$0xff]  ;;  %2048 = vst.msk [vmem:[#allocation3 + $0x118] sm:$0xff] %vm20_vm0, %v6182_v7 }
 0x2df   :  { %v1734_v63 = vpop.permute.xlu2 %1733  ;;  %v3619_v62 = vld [vmem:[#allocation3 + $0x30] sm:$0xff]  ;;  %2050 = vst.msk [vmem:[#allocation3 + $0x128] sm:$0xff] %vm20_vm0, %v6188_v17 }
 0x2e0   :  { %1821 = vst.msk [vmem:[#allocation3 + $0x48] sm:$0xff] %vm1811_vm10, %v1734_v63  ;;  %v2273_v63 = vld [vmem:[#allocation2 + $0x32] sm:$0xff] }
 0x2e1   :  { %2171 = vrot.lane.b32.xlu1 %v2092_v0, %s4635_s25  ;;  %2052 = vst.msk [vmem:[#allocation3 + $0x138] sm:$0xff] %vm20_vm0, %v6193_v11 }
 0x2e2   :  { %2175 = vrot.lane.b32.xlu0 %v2094_v14, %s4635_s25  ;;  %2053 = vst.msk [vmem:[#allocation3 + $0x140] sm:$0xff] %vm20_vm0, %v6210_v44 }
 0x2e3   :  { %v1726_v42 = vpop.permute.xlu1 %1725  ;;  %v3615_v13 = vld [vmem:[#allocation3 + $0x10] sm:$0xff]  ;;  %2056 = vst.msk [vmem:[#allocation3 + $0x158] sm:$0xff] %vm20_vm0, %v6230_v56 }
 0x2e4   :  { %v1730_v20 = vpop.permute.xlu0 %1729  ;;  %1817 = vst.msk [vmem:[#allocation3 + $0x28] sm:$0xff] %vm1811_vm10, %v1726_v42  ;;  %v3617_v29 = vld [vmem:[#allocation3 + $0x20] sm:$0xff] }
 0x2e5   :  { %1819 = vst.msk [vmem:[#allocation3 + $0x38] sm:$0xff] %vm1811_vm10, %v1730_v20  ;;  %4530 = vmatmul.msk.f32.gmra.mxu0 %vm3686_vm11, %v3615_v13  ;;  %2167 = vrot.lane.b32.xlu2 %v2090_v16, %s4635_s25  ;;  %v6202_v13 = vld [vmem:[#allocation2 + $0x48] sm:$0xff] }
 0x2e6   :  { %v2278_v16 = vld [vmem:[#allocation2 + $0x6a] sm:$0xff]  ;;  %2051 = vst.msk [vmem:[#allocation3 + $0x130] sm:$0xff] %vm20_vm0, %v6202_v13 }
 0x2e7   :  { %v1740_v49 = vpop.permute.xlu2 %1739 }
 0x2e8   :  { %1824 = vst.msk [vmem:[#allocation3 + $0x60] sm:$0xff] %vm1811_vm10, %v1740_v49  ;;  %v2276_v49 = vld [vmem:[#allocation2 + $0x52] sm:$0xff] }
 0x2e9   :  { %2177 = vrot.lane.b32.xlu1 %v2095_v15, %s4635_s25  ;;  %v3622_v15 = vld [vmem:[#allocation3 + $0x48] sm:$0xff] }
 0x2ea   :  { %2181 = vrot.lane.b32.xlu0 %v2097_v10, %s4635_s25  ;;  %v2108_v10 = vld [vmem:[#allocation2 + $0x171] sm:$0xff] }
 0x2eb   :  { %v1732_v27 = vpop.permute.xlu1 %1731  ;;  %v3618_v6 = vld [vmem:[#allocation3 + $0x28] sm:$0xff] }
 0x2ec   :  { %v1736_v45 = vpop.permute.xlu0 %1735  ;;  %1820 = vst.msk [vmem:[#allocation3 + $0x40] sm:$0xff] %vm1811_vm10, %v1732_v27  ;;  %v3620_v14 = vld [vmem:[#allocation3 + $0x38] sm:$0xff] }
 0x2ed   :  { %1822 = vst.msk [vmem:[#allocation3 + $0x50] sm:$0xff] %vm1811_vm10, %v1736_v45  ;;  %4531 = vmatmul.msk.f32.gmra.mxu0 %vm3686_vm11, %v3616_v52  ;;  %2173 = vrot.lane.b32.xlu2 %v2093_v43, %s4635_s25  ;;  %v6222_v52 = vld [vmem:[#allocation2 + $0x68] sm:$0xff]  ;;  %v2281_v43 = vld [vmem:[#allocation2 + $0x92] sm:$0xff] }
 0x2ee   :  { %2054 = vst.msk [vmem:[#allocation3 + $0x148] sm:$0xff] %vm20_vm0, %v6222_v52 }
 0x2ef   :  { %v1746_v40 = vpop.permute.xlu2 %1745  ;;  %v3625_v34 = vld [vmem:[#allocation3 + $0x60] sm:$0xff] }
 0x2f0   :  { %1827 = vst.msk [vmem:[#allocation3 + $0x78] sm:$0xff] %vm1811_vm10, %v1746_v40  ;;  %v2279_v40 = vld [vmem:[#allocation2 + $0x7a] sm:$0xff] }
 0x2f1   :  { %2183 = vrot.lane.b32.xlu1 %v2098_v51, %s4635_s25 }
 0x2f2   :  { %2187 = vrot.lane.b32.xlu0 %v2100_v48, %s4635_s25  ;;  %v6212_v48 = vld [vmem:[#allocation2 + $0x78] sm:$0xff] }
 0x2f3   :  { %v1738_v38 = vpop.permute.xlu1 %1737  ;;  %v3621_v20 = vld [vmem:[#allocation3 + $0x40] sm:$0xff]  ;;  %2055 = vst.msk [vmem:[#allocation3 + $0x150] sm:$0xff] %vm20_vm0, %v6212_v48 }
 0x2f4   :  { %v1742_v39 = vpop.permute.xlu0 %1741  ;;  %1823 = vst.msk [vmem:[#allocation3 + $0x58] sm:$0xff] %vm1811_vm10, %v1738_v38  ;;  %v3623_v51 = vld [vmem:[#allocation3 + $0x50] sm:$0xff] }
 0x2f5   :  { %1825 = vst.msk [vmem:[#allocation3 + $0x68] sm:$0xff] %vm1811_vm10, %v1742_v39  ;;  %4532 = vmatmul.msk.f32.gmra.mxu0 %vm3686_vm11, %v3617_v29  ;;  %2179 = vrot.lane.b32.xlu2 %v2096_v46, %s4635_s25  ;;  %v6242_v29 = vld [vmem:[#allocation2 + $0x90] sm:$0xff] }
 0x2f6   :  { %2057 = vst.msk [vmem:[#allocation3 + $0x160] sm:$0xff] %vm20_vm0, %v6242_v29 }
 0x2f7   :  { %v1752_v59 = vpop.permute.xlu2 %1751 }
 0x2f8   :  { %1830 = vst.msk [vmem:[#allocation3 + $0x90] sm:$0xff] %vm1811_vm10, %v1752_v59 }
 0x2f9   :  { %2189 = vrot.lane.b32.xlu1 %v2101_v12, %s4635_s25  ;;  %v2284_v12 = vld [vmem:[#allocation2 + $0xb2] sm:$0xff] }
 0x2fa   :  { %2193 = vrot.lane.b32.xlu0 %v2103_v41, %s4635_s25  ;;  %v6232_v41 = vld [vmem:[#allocation2 + $0x98] sm:$0xff] }
 0x2fb   :  { %v1744_v30 = vpop.permute.xlu1 %1743  ;;  %2058 = vst.msk [vmem:[#allocation3 + $0x168] sm:$0xff] %vm20_vm0, %v6232_v41  ;;  %v3624_v59 = vld [vmem:[#allocation3 + $0x58] sm:$0xff] }
 0x2fc   :  { %v1748_v58 = vpop.permute.xlu0 %1747  ;;  %1826 = vst.msk [vmem:[#allocation3 + $0x70] sm:$0xff] %vm1811_vm10, %v1744_v30  ;;  %v6250_v30 = vld [vmem:[#allocation2 + $0xa8] sm:$0xff] }
 0x2fd   :  { %1828 = vst.msk [vmem:[#allocation3 + $0x80] sm:$0xff] %vm1811_vm10, %v1748_v58  ;;  %4533 = vmatmul.msk.f32.gmra.mxu0 %vm3686_vm11, %v3618_v6  ;;  %2185 = vrot.lane.b32.xlu2 %v2099_v61, %s4635_s25  ;;  %v6252_v6 = vld [vmem:[#allocation2 + $0xc0] sm:$0xff] }
 0x2fe   :  { %v2277_v61 = vld [vmem:[#allocation2 + $0x62] sm:$0xff]  ;;  %2059 = vst.msk [vmem:[#allocation3 + $0x170] sm:$0xff] %vm20_vm0, %v6250_v30 }
 0x2ff   :  { %v1758_v60 = vpop.permute.xlu2 %1757  ;;  %v3631_v36 = vld [vmem:[#allocation3 + $0x90] sm:$0xff]  ;;  %2061 = vst.msk [vmem:[#allocation3 + $0x180] sm:$0xff] %vm20_vm0, %v6252_v6 }
 0x300   :  { %1833 = vst.msk [vmem:[#allocation3 + $0xa8] sm:$0xff] %vm1811_vm10, %v1758_v60  ;;  %v6262_v60 = vld [vmem:[#allocation2 + $0xb0] sm:$0xff] }
 0x301   :  { %2195 = vrot.lane.b32.xlu1 %v2104_v54, %s4635_s25  ;;  %v2282_v54 = vld [vmem:[#allocation2 + $0x9a] sm:$0xff]  ;;  %2060 = vst.msk [vmem:[#allocation3 + $0x178] sm:$0xff] %vm20_vm0, %v6262_v60 }
 0x302   :  { %2199 = vrot.lane.b32.xlu0 %v2106_v1, %s4635_s25 }
 0x303   :  { %v1750_v5 = vpop.permute.xlu1 %1749 }
 0x304   :  { %v1754_v21 = vpop.permute.xlu0 %1753  ;;  %v3629_v31 = vld [vmem:[#allocation3 + $0x80] sm:$0xff]  ;;  %1829 = vst.msk [vmem:[#allocation3 + $0x88] sm:$0xff] %vm1811_vm10, %v1750_v5 }
 0x305   :  { %1831 = vst.msk [vmem:[#allocation3 + $0x98] sm:$0xff] %vm1811_vm10, %v1754_v21  ;;  %4544 = vmatmul.msk.f32.vlgmr.msra.gmra.mxu1 %vm3686_vm11, %v3629_v31  ;;  %4534 = vmatmul.msk.f32.gmra.mxu0 %vm3686_vm11, %v3619_v62 }
 0x306   :  { %2191 = vrot.lane.b32.xlu2 %v2102_v8, %s4635_s25  ;;  %v6268_v8 = vld [vmem:[#allocation2 + $0xc8] sm:$0xff] }
 0x307   :  { %v1764_v35 = vpop.permute.xlu2 %1763  ;;  %v3634_v1 = vld [vmem:[#allocation3 + $0xa8] sm:$0xff]  ;;  %2062 = vst.msk [vmem:[#allocation3 + $0x188] sm:$0xff] %vm20_vm0, %v6268_v8 }
 0x308   :  { %1836 = vst.msk [vmem:[#allocation3 + $0xc0] sm:$0xff] %vm1811_vm10, %v1764_v35 }
 0x309   :  { %2201 = vrot.lane.b32.xlu1 %v2107_v26, %s4635_s25  ;;  %v2280_v26 = vld [vmem:[#allocation2 + $0x82] sm:$0xff] }
 0x30a   :  { %2333 = vrot.lane.b32.xlu0 %v2269_v18, %s4636_s15  ;;  %v2287_v18 = vld [vmem:[#allocation2 + $0xda] sm:$0xff] }
 0x30b   :  { %v1756_v53 = vpop.permute.xlu1 %1755  ;;  %v3630_v50 = vld [vmem:[#allocation3 + $0x88] sm:$0xff] }
 0x30c   :  { %v1760_v47 = vpop.permute.xlu0 %1759  ;;  %1832 = vst.msk [vmem:[#allocation3 + $0xa0] sm:$0xff] %vm1811_vm10, %v1756_v53  ;;  %v3632_v45 = vld [vmem:[#allocation3 + $0x98] sm:$0xff]  ;;  %v2290_v53 = vld [vmem:[#allocation2 + $0xfa] sm:$0xff] }
 0x30d   :  { %1834 = vst.msk [vmem:[#allocation3 + $0xb0] sm:$0xff] %vm1811_vm10, %v1760_v47  ;;  %4535 = vmatmul.msk.f32.gmra.mxu0 %vm3686_vm11, %v3620_v14  ;;  %4545 = vmatmul.msk.f32.gmra.mxu1 %vm3686_vm11, %v3630_v50  ;;  %v6273_v47 = vld [vmem:[#allocation2 + $0xe0] sm:$0xff]  ;;  %v6282_v14 = vld [vmem:[#allocation2 + $0xd8] sm:$0xff] }
 0x30e   :  { %2197 = vrot.lane.b32.xlu2 %v2105_v55, %s4635_s25  ;;  %2064 = vst.msk [vmem:[#allocation3 + $0x198] sm:$0xff] %vm20_vm0, %v6273_v47 }
 0x30f   :  { %v1770_v22 = vpop.permute.xlu2 %1769  ;;  %2063 = vst.msk [vmem:[#allocation3 + $0x190] sm:$0xff] %vm20_vm0, %v6282_v14 }
 0x310   :  { %1839 = vst.msk [vmem:[#allocation3 + $0xd8] sm:$0xff] %vm1811_vm10, %v1770_v22  ;;  %v2283_v22 = vld [vmem:[#allocation2 + $0xaa] sm:$0xff] }
 0x311   :  { %2335 = vrot.lane.b32.xlu1 %v2270_v23, %s4636_s15  ;;  %v3626_v23 = vld [vmem:[#allocation3 + $0x68] sm:$0xff] }
 0x312   :  { %2339 = vrot.lane.b32.xlu0 %v2272_v3, %s4636_s15 }
 0x313   :  { %v1762_v0 = vpop.permute.xlu1 %1761  ;;  %v3633_v39 = vld [vmem:[#allocation3 + $0xa0] sm:$0xff] }
 0x314   :  { %v1766_v4 = vpop.permute.xlu0 %1765  ;;  %1835 = vst.msk [vmem:[#allocation3 + $0xb8] sm:$0xff] %vm1811_vm10, %v1762_v0  ;;  %v3635_v62 = vld [vmem:[#allocation3 + $0xb0] sm:$0xff] }
 0x315   :  { %1837 = vst.msk [vmem:[#allocation3 + $0xc8] sm:$0xff] %vm1811_vm10, %v1766_v4  ;;  %4536 = vmatmul.msk.f32.gmra.mxu0 %vm3686_vm11, %v3621_v20  ;;  %4546 = vmatmul.msk.f32.gmra.mxu1 %vm3686_vm11, %v3631_v36  ;;  %v6288_v4 = vld [vmem:[#allocation2 + $0xf0] sm:$0xff]  ;;  %v2288_v0 = vld [vmem:[#allocation2 + $0xe2] sm:$0xff] }
 0x316   :  { %2203 = vrot.lane.b32.xlu2 %v2108_v10, %s4635_s25  ;;  %2065 = vst.msk [vmem:[#allocation3 + $0x1a0] sm:$0xff] %vm20_vm0, %v6288_v4  ;;  %v2293_v10 = vld [vmem:[#allocation2 + $0x122] sm:$0xff] }
 0x317   :  { %v1776_v37 = vpop.permute.xlu2 %1775 }
 0x318   :  { %1842 = vst.msk [vmem:[#allocation3 + $0xf0] sm:$0xff] %vm1811_vm10, %v1776_v37  ;;  %v3637_v37 = vld [vmem:[#allocation3 + $0xc0] sm:$0xff] }
 0x319   :  { %2341 = vrot.lane.b32.xlu1 %v2273_v63, %s4636_s15  ;;  %v6302_v63 = vld [vmem:[#allocation2 + $0xf8] sm:$0xff] }
 0x31a   :  { %2345 = vrot.lane.b32.xlu0 %v2275_v32, %s4636_s15  ;;  %v6293_v32 = vld [vmem:[#allocation2 + $0x108] sm:$0xff]  ;;  %2066 = vst.msk [vmem:[#allocation3 + $0x1a8] sm:$0xff] %vm20_vm0, %v6302_v63 }
 0x31b   :  { %v1768_v33 = vpop.permute.xlu1 %1767  ;;  %v3636_v55 = vld [vmem:[#allocation3 + $0xb8] sm:$0xff]  ;;  %2067 = vst.msk [vmem:[#allocation3 + $0x1b0] sm:$0xff] %vm20_vm0, %v6293_v32 }
 0x31c   :  { %v1772_v42 = vpop.permute.xlu0 %1771  ;;  %1838 = vst.msk [vmem:[#allocation3 + $0xd0] sm:$0xff] %vm1811_vm10, %v1768_v33  ;;  %v2286_v33 = vld [vmem:[#allocation2 + $0xca] sm:$0xff] }
 0x31d   :  { %1840 = vst.msk [vmem:[#allocation3 + $0xe0] sm:$0xff] %vm1811_vm10, %v1772_v42  ;;  %4537 = vmatmul.msk.f32.gmra.mxu0 %vm3686_vm11, %v3622_v15  ;;  %4547 = vmatmul.msk.f32.gmra.mxu1 %vm3686_vm11, %v3632_v45  ;;  %v6311_v15 = vld [vmem:[#allocation2 + $0x110] sm:$0xff]  ;;  %v6313_v45 = vld [vmem:[#allocation2 + $0x128] sm:$0xff] }
 0x31e   :  { %2337 = vrot.lane.b32.xlu2 %v2271_v24, %s4636_s15  ;;  %v2291_v24 = vld [vmem:[#allocation2 + $0x10a] sm:$0xff]  ;;  %2068 = vst.msk [vmem:[#allocation3 + $0x1b8] sm:$0xff] %vm20_vm0, %v6311_v15 }
 0x31f   :  { %v2144_v28 = vpop.permute.xlu2 %2143  ;;  %2070 = vst.msk [vmem:[#allocation3 + $0x1c8] sm:$0xff] %vm20_vm0, %v6313_v45 }
 0x320   :  { %2238 = vst.msk [vmem:[#allocation3 + $0x108] sm:$0xff] %vm459_vm3, %v2144_v28  ;;  %v2296_v28 = vld [vmem:[#allocation2 + $0x142] sm:$0xff] }
 0x321   :  { %2347 = vrot.lane.b32.xlu1 %v2276_v49, %s4636_s15 }
 0x322   :  { %2351 = vrot.lane.b32.xlu0 %v2278_v16, %s4636_s15  ;;  %v3627_v16 = vld [vmem:[#allocation3 + $0x70] sm:$0xff] }
 0x323   :  { %v1774_v57 = vpop.permute.xlu1 %1773 }
 0x324   :  { %v1778_v27 = vpop.permute.xlu0 %1777  ;;  %1841 = vst.msk [vmem:[#allocation3 + $0xe8] sm:$0xff] %vm1811_vm10, %v1774_v57 }
 0x325   :  { %1843 = vst.msk [vmem:[#allocation3 + $0xf8] sm:$0xff] %vm1811_vm10, %v1778_v27  ;;  %4538 = vmatmul.msk.f32.gmra.mxu0 %vm3686_vm11, %v3623_v51  ;;  %4548 = vmatmul.msk.f32.gmra.mxu1 %vm3686_vm11, %v3633_v39  ;;  %v3638_v51 = vld [vmem:[#allocation3 + $0xc8] sm:$0xff]  ;;  %v3628_v39 = vld [vmem:[#allocation3 + $0x78] sm:$0xff] }
 0x326   :  { %2343 = vrot.lane.b32.xlu2 %v2274_v19, %s4636_s15  ;;  %v2289_v19 = vld [vmem:[#allocation2 + $0xf2] sm:$0xff] }
 0x327   :  { %v2150_v46 = vpop.permute.xlu2 %2149 }
 0x328   :  { %2241 = vst.msk [vmem:[#allocation3 + $0x120] sm:$0xff] %vm459_vm3, %v2150_v46  ;;  %v2294_v46 = vld [vmem:[#allocation2 + $0x12a] sm:$0xff] }
 0x329   :  { %2353 = vrot.lane.b32.xlu1 %v2279_v40, %s4636_s15  ;;  %v6331_v40 = vld [vmem:[#allocation2 + $0x138] sm:$0xff] }
 0x32a   :  { %2357 = vrot.lane.b32.xlu0 %v2281_v43, %s4636_s15  ;;  %v6322_v43 = vld [vmem:[#allocation2 + $0x120] sm:$0xff]  ;;  %2071 = vst.msk [vmem:[#allocation3 + $0x1d0] sm:$0xff] %vm20_vm0, %v6331_v40 }
 0x32b   :  { %v2142_v58 = vpop.permute.xlu1 %2141  ;;  %2069 = vst.msk [vmem:[#allocation3 + $0x1c0] sm:$0xff] %vm20_vm0, %v6322_v43 }
 0x32c   :  { %v2146_v38 = vpop.permute.xlu0 %2145  ;;  %2237 = vst.msk [vmem:[#allocation3 + $0x100] sm:$0xff] %vm459_vm3, %v2142_v58 }
 0x32d   :  { %2239 = vst.msk [vmem:[#allocation3 + $0x110] sm:$0xff] %vm459_vm3, %v2146_v38  ;;  %4549 = vmatmul.msk.f32.gmra.mxu1 %vm3686_vm11, %v3634_v1  ;;  %4539 = vmatmul.msk.f32.gmra.mxu0 %vm3686_vm11, %v3624_v59  ;;  %v6333_v38 = vld [vmem:[#allocation2 + $0x150] sm:$0xff] }
 0x32e   :  { %2349 = vrot.lane.b32.xlu2 %v2277_v61, %s4636_s15  ;;  %2073 = vst.msk [vmem:[#allocation3 + $0x1e0] sm:$0xff] %vm20_vm0, %v6333_v38  ;;  %v2299_v59 = vld [vmem:[#allocation2 + $0x16a] sm:$0xff]  ;;  %v6346_v61 = vld [vmem:[#allocation2 + $0x140] sm:$0xff] }
 0x32f   :  { %v2156_v31 = vpop.permute.xlu2 %2155  ;;  %2072 = vst.msk [vmem:[#allocation3 + $0x1d8] sm:$0xff] %vm20_vm0, %v6346_v61 }
 0x330   :  { %2244 = vst.msk [vmem:[#allocation3 + $0x138] sm:$0xff] %vm459_vm3, %v2156_v31 }
 0x331   :  { %2359 = vrot.lane.b32.xlu1 %v2282_v54, %s4636_s15 }
 0x332   :  { %2363 = vrot.lane.b32.xlu0 %v2284_v12, %s4636_s15 }
 0x333   :  { %v2148_v5 = vpop.permute.xlu1 %2147 }
 0x334   :  { %v2152_v21 = vpop.permute.xlu0 %2151  ;;  %2240 = vst.msk [vmem:[#allocation3 + $0x118] sm:$0xff] %vm459_vm3, %v2148_v5  ;;  %v6354_v5 = vld [vmem:[#allocation2 + $0x158] sm:$0xff] }
 0x335   :  { %2242 = vst.msk [vmem:[#allocation3 + $0x128] sm:$0xff] %vm459_vm3, %v2152_v21  ;;  %4550 = vmatmul.msk.f32.gmra.mxu1 %vm3686_vm11, %v3635_v62  ;;  %4540 = vmatmul.msk.f32.gmra.mxu0 %vm3686_vm11, %v3625_v34  ;;  %v3639_v21 = vld [vmem:[#allocation3 + $0xd0] sm:$0xff]  ;;  %v6356_v62 = vld [vmem:[#allocation2 + $0x170] sm:$0xff] }
 0x336   :  { %2355 = vrot.lane.b32.xlu2 %v2280_v26, %s4636_s15  ;;  %v2297_v34 = vld [vmem:[#allocation2 + $0x152] sm:$0xff]  ;;  %2074 = vst.msk [vmem:[#allocation3 + $0x1e8] sm:$0xff] %vm20_vm0, %v6354_v5 }
 0x337   :  { %v2162_v3 = vpop.permute.xlu2 %2161  ;;  %2076 = vst.msk [vmem:[#allocation3 + $0x1f8] sm:$0xff] %vm20_vm0, %v6356_v62 }
 0x338   :  { %2247 = vst.msk [vmem:[#allocation3 + $0x150] sm:$0xff] %vm459_vm3, %v2162_v3 }
 0x339   :  { %2365 = vrot.lane.b32.xlu1 %v2285_v2, %s4636_s15 }
 0x33a   :  { %2369 = vrot.lane.b32.xlu0 %v2287_v18, %s4636_s15  ;;  %v2292_v18 = vld [vmem:[#allocation2 + $0x112] sm:$0xff] }
 0x33b   :  { %v2154_v50 = vpop.permute.xlu1 %2153 }
 0x33c   :  { %v2158_v35 = vpop.permute.xlu0 %2157  ;;  %2243 = vst.msk [vmem:[#allocation3 + $0x130] sm:$0xff] %vm459_vm3, %v2154_v50 }
 0x33d   :  { %2245 = vst.msk [vmem:[#allocation3 + $0x140] sm:$0xff] %vm459_vm3, %v2158_v35  ;;  %4551 = vmatmul.msk.f32.gmra.mxu1 %vm3686_vm11, %v3636_v55  ;;  %4541 = vmatmul.msk.f32.gmra.mxu0 %vm3686_vm11, %v3626_v23 }
 0x33e   :  { %2361 = vrot.lane.b32.xlu2 %v2283_v22, %s4636_s15  ;;  %v6372_v22 = vld [vmem:[#allocation2 + $0x168] sm:$0xff] }
 0x33f   :  { %v2168_v36 = vpop.permute.xlu2 %2167  ;;  %2075 = vst.msk [vmem:[#allocation3 + $0x1f0] sm:$0xff] %vm20_vm0, %v6372_v22 }
 0x340   :  { %2250 = vst.msk [vmem:[#allocation3 + $0x168] sm:$0xff] %vm459_vm3, %v2168_v36  ;;  %v3640_v36 = vld [vmem:[#allocation3 + $0xd8] sm:$0xff] }
 0x341   :  { %2371 = vrot.lane.b32.xlu1 %v2288_v0, %s4636_s15 }
 0x342   :  { %2375 = vrot.lane.b32.xlu0 %v2290_v53, %s4636_s15 }
 0x343   :  { %v2160_v42 = vpop.permute.xlu1 %2159 }
 0x344   :  { %v2164_v20 = vpop.permute.xlu0 %2163  ;;  %2246 = vst.msk [vmem:[#allocation3 + $0x148] sm:$0xff] %vm459_vm3, %v2160_v42  ;;  %v2295_v42 = vld [vmem:[#allocation2 + $0x13a] sm:$0xff] }
 0x345   :  { %2248 = vst.msk [vmem:[#allocation3 + $0x158] sm:$0xff] %vm459_vm3, %v2164_v20  ;;  %4552 = vmatmul.msk.f32.gmra.mxu1 %vm3686_vm11, %v3637_v37  ;;  %4542 = vmatmul.msk.f32.gmra.mxu0 %vm3686_vm11, %v3627_v16  ;;  %v2300_v37 = vld [vmem:[#allocation2 + $0x172] sm:$0xff] }
 0x346   :  { %2367 = vrot.lane.b32.xlu2 %v2286_v33, %s4636_s15 }
 0x347   :  { %v2174_v27 = vpop.permute.xlu2 %2173 }
 0x348   :  { %2253 = vst.msk [vmem:[#allocation3 + $0x180] sm:$0xff] %vm459_vm3, %v2174_v27 }
 0x349   :  { %2377 = vrot.lane.b32.xlu1 %v2291_v24, %s4636_s15 }
 0x34a   :  { %2381 = vrot.lane.b32.xlu0 %v2293_v10, %s4636_s15 }
 0x34b   :  { %v2166_v57 = vpop.permute.xlu1 %2165 }
 0x34c   :  { %v2170_v49 = vpop.permute.xlu0 %2169  ;;  %2249 = vst.msk [vmem:[#allocation3 + $0x160] sm:$0xff] %vm459_vm3, %v2166_v57  ;;  %v3641_v57 = vld [vmem:[#allocation3 + $0xe0] sm:$0xff] }
 0x34d   :  { %2251 = vst.msk [vmem:[#allocation3 + $0x170] sm:$0xff] %vm459_vm3, %v2170_v49  ;;  %4553 = vmatmul.msk.f32.gmra.mxu1 %vm3686_vm11, %v3638_v51  ;;  %4543 = vmatmul.msk.f32.gmra.mxu0 %vm3686_vm11, %v3628_v39  ;;  %v3896_v58 = vpop.f32.mrf.mxu0 }
 0x34e   :  { %2373 = vrot.lane.b32.xlu2 %v2289_v19, %s4636_s15  ;;  %4088 = vst.msk [vmem:[%s7551_s4] sm:$0xff] %vm20_vm0, %v3896_v58  ;;  %v4286_v31 = vmul.f32 %v3896_v58, %v3896_v58  ;;  %v4152_v2 = vsel %vm20_vm0, %v3896_v58, 0.0  ;;  %v2298_v19 = vld [vmem:[#allocation2 + $0x15a] sm:$0xff] }
 0x34f   :  { %v2180_v1 = vpop.permute.xlu2 %2179 }
 0x350   :  { %2256 = vst.msk [vmem:[#allocation3 + $0x198] sm:$0xff] %vm459_vm3, %v2180_v1  ;;  %v4350_v3 = vsel %vm20_vm0, %v4286_v31, 0.0 }
 0x351   :  { %2383 = vrot.lane.b32.xlu1 %v2294_v46, %s4636_s15 }
 0x352   :  { %2387 = vrot.lane.b32.xlu0 %v2296_v28, %s4636_s15 }
 0x353   :  { %v2172_v54 = vpop.permute.xlu1 %2171 }
 0x354   :  { %v2176_v12 = vpop.permute.xlu0 %2175  ;;  %2252 = vst.msk [vmem:[#allocation3 + $0x178] sm:$0xff] %vm459_vm3, %v2172_v54 }
 0x355   :  { %2254 = vst.msk [vmem:[#allocation3 + $0x188] sm:$0xff] %vm459_vm3, %v2176_v12  ;;  %4554 = vmatmul.msk.f32.gmra.mxu1 %vm3686_vm11, %v3639_v21  ;;  %v3642_v21 = vld [vmem:[#allocation3 + $0xe8] sm:$0xff] }
 0x356   :  { %2379 = vrot.lane.b32.xlu2 %v2292_v18, %s4636_s15 }
 0x357   :  { %v2186_v23 = vpop.permute.xlu2 %2185 }
 0x358   :  { %2259 = vst.msk [vmem:[#allocation3 + $0x1b0] sm:$0xff] %vm459_vm3, %v2186_v23 }
 0x359   :  { %2389 = vrot.lane.b32.xlu1 %v2297_v34, %s4636_s15 }
 0x35a   :  { %2393 = vrot.lane.b32.xlu0 %v2299_v59, %s4636_s15  ;;  %v3899_v35 = vpop.f32.mrf.mxu0 }
 0x35b   :  { %4089 = vst.msk [vmem:[%s7551_s4 + $0x8] sm:$0xff] %vm20_vm0, %v3899_v35  ;;  %v4153_v53 = vsel %vm20_vm0, %v3899_v35, 0.0  ;;  %v4287_v50 = vmul.f32 %v3899_v35, %v3899_v35  ;;  %v2178_v20 = vpop.permute.xlu1 %2177 }
 0x35c   :  { %v2182_v26 = vpop.permute.xlu0 %2181  ;;  %v4154_v55 = vadd.f32 %v4153_v53, %v4152_v2  ;;  %2255 = vst.msk [vmem:[#allocation3 + $0x190] sm:$0xff] %vm459_vm3, %v2178_v20  ;;  %v3643_v53 = vld [vmem:[#allocation3 + $0xf0] sm:$0xff] }
 0x35d   :  { %2257 = vst.msk [vmem:[#allocation3 + $0x1a0] sm:$0xff] %vm459_vm3, %v2182_v26  ;;  %v4351_v0 = vsel %vm20_vm0, %v4287_v50, 0.0  ;;  %4555 = vmatmul.msk.f32.gmra.mxu1 %vm3686_vm11, %v3640_v36 }
 0x35e   :  { %v4352_v10 = vadd.f32 %v4351_v0, %v4350_v3  ;;  %2385 = vrot.lane.b32.xlu2 %v2295_v42, %s4636_s15 }
 0x360   :  { %v2192_v49 = vpop.permute.xlu2 %2191 }
 0x361   :  { %2395 = vrot.lane.b32.xlu1 %v2300_v37, %s4636_s15  ;;  %2262 = vst.msk [vmem:[#allocation3 + $0x1c8] sm:$0xff] %vm459_vm3, %v2192_v49 }
 0x362   :  { %2527 = vrot.lane.b32.xlu0 %v6182_v7, %s4637_s16  ;;  %v3902_v33 = vpop.f32.mrf.mxu0 }
 0x363   :  { %4090 = vst.msk [vmem:[%s7551_s4 + $0x10] sm:$0xff] %vm20_vm0, %v3902_v33  ;;  %v4155_v7 = vsel %vm20_vm0, %v3902_v33, 0.0  ;;  %v4288_v24 = vmul.f32 %v3902_v33, %v3902_v33  ;;  %v2184_v28 = vpop.permute.xlu1 %2183 }
 0x364   :  { %v2188_v16 = vpop.permute.xlu0 %2187  ;;  %v4156_v27 = vadd.f32 %v4155_v7, %v4154_v55  ;;  %2258 = vst.msk [vmem:[#allocation3 + $0x1a8] sm:$0xff] %vm459_vm3, %v2184_v28 }
 0x365   :  { %2260 = vst.msk [vmem:[#allocation3 + $0x1b8] sm:$0xff] %vm459_vm3, %v2188_v16  ;;  %v4353_v51 = vsel %vm20_vm0, %v4288_v24, 0.0  ;;  %4556 = vmatmul.msk.f32.gmra.mxu1 %vm3686_vm11, %v3641_v57 }
 0x366   :  { %v4354_v39 = vadd.f32 %v4353_v51, %v4352_v10  ;;  %2391 = vrot.lane.b32.xlu2 %v2298_v19, %s4636_s15  ;;  %v3644_v10 = vld [vmem:[#allocation3 + $0xf8] sm:$0xff] }
 0x368   :  { %v2198_v59 = vpop.permute.xlu2 %2197 }
 0x369   :  { %2529 = vrot.lane.b32.xlu1 %v6172_v9, %s4637_s16  ;;  %2265 = vst.msk [vmem:[#allocation3 + $0x1e0] sm:$0xff] %vm459_vm3, %v2198_v59 }
 0x36a   :  { %2533 = vrot.lane.b32.xlu0 %v6202_v13, %s4637_s16  ;;  %v3905_v12 = vpop.f32.mrf.mxu0 }
 0x36b   :  { %4091 = vst.msk [vmem:[%s7551_s4 + $0x18] sm:$0xff] %vm20_vm0, %v3905_v12  ;;  %v4157_v58 = vsel %vm20_vm0, %v3905_v12, 0.0  ;;  %v4289_v1 = vmul.f32 %v3905_v12, %v3905_v12  ;;  %v2190_v54 = vpop.permute.xlu1 %2189 }
 0x36c   :  { %v2194_v46 = vpop.permute.xlu0 %2193  ;;  %v4158_v13 = vadd.f32 %v4157_v58, %v4156_v27  ;;  %2261 = vst.msk [vmem:[#allocation3 + $0x1c0] sm:$0xff] %vm459_vm3, %v2190_v54 }
 0x36d   :  { %2263 = vst.msk [vmem:[#allocation3 + $0x1d0] sm:$0xff] %vm459_vm3, %v2194_v46  ;;  %v4355_v31 = vsel %vm20_vm0, %v4289_v1, 0.0  ;;  %4557 = vmatmul.msk.f32.gmra.mxu1 %vm3686_vm11, %v3642_v21 }
 0x36e   :  { %v4356_v9 = vadd.f32 %v4355_v31, %v4354_v39  ;;  %2525 = vrot.lane.b32.xlu2 %v6170_v25, %s4637_s16 }
 0x370   :  { %v2204_v35 = vpop.permute.xlu2 %2203 }
 0x371   :  { %2535 = vrot.lane.b32.xlu1 %v6193_v11, %s4637_s16  ;;  %2268 = vst.msk [vmem:[#allocation3 + $0x1f8] sm:$0xff] %vm459_vm3, %v2204_v35 }
 0x372   :  { %2539 = vrot.lane.b32.xlu0 %v6222_v52, %s4637_s16  ;;  %v3908_v34 = vpop.f32.mrf.mxu0 }
 0x373   :  { %4092 = vst.msk [vmem:[%s7551_s4 + $0x20] sm:$0xff] %vm20_vm0, %v3908_v34  ;;  %v4159_v26 = vsel %vm20_vm0, %v3908_v34, 0.0  ;;  %v4290_v2 = vmul.f32 %v3908_v34, %v3908_v34  ;;  %v2196_v3 = vpop.permute.xlu1 %2195 }
 0x374   :  { %v2200_v18 = vpop.permute.xlu0 %2199  ;;  %v4160_v52 = vadd.f32 %v4159_v26, %v4158_v13  ;;  %2264 = vst.msk [vmem:[#allocation3 + $0x1d8] sm:$0xff] %vm459_vm3, %v2196_v3 }
 0x375   :  { %2266 = vst.msk [vmem:[#allocation3 + $0x1e8] sm:$0xff] %vm459_vm3, %v2200_v18  ;;  %v4357_v25 = vsel %vm20_vm0, %v4290_v2, 0.0  ;;  %4558 = vmatmul.msk.f32.gmra.mxu1 %vm3686_vm11, %v3643_v53 }
 0x376   :  { %v4358_v11 = vadd.f32 %v4357_v25, %v4356_v9  ;;  %2531 = vrot.lane.b32.xlu2 %v6188_v17, %s4637_s16 }
 0x378   :  { %v2338_v20 = vpop.permute.xlu2 %2337 }
 0x379   :  { %2541 = vrot.lane.b32.xlu1 %v6212_v48, %s4637_s16  ;;  %2431 = vst.msk [vmem:[#allocation3 + $0x110] sm:$0xff] %vm652_vm4, %v2338_v20 }
 0x37a   :  { %2545 = vrot.lane.b32.xlu0 %v6242_v29, %s4637_s16  ;;  %v3911_v55 = vpop.f32.mrf.mxu0 }
 0x37b   :  { %4093 = vst.msk [vmem:[%s7551_s4 + $0x28] sm:$0xff] %vm20_vm0, %v3911_v55  ;;  %v4161_v23 = vsel %vm20_vm0, %v3911_v55, 0.0  ;;  %v4291_v0 = vmul.f32 %v3911_v55, %v3911_v55  ;;  %v2202_v36 = vpop.permute.xlu1 %2201 }
 0x37c   :  { %v2334_v50 = vpop.permute.xlu0 %2333  ;;  %v4162_v29 = vadd.f32 %v4161_v23, %v4160_v52  ;;  %2267 = vst.msk [vmem:[#allocation3 + $0x1f0] sm:$0xff] %vm459_vm3, %v2202_v36 }
 0x37d   :  { %2429 = vst.msk [vmem:[#allocation3 + $0x100] sm:$0xff] %vm652_vm4, %v2334_v50  ;;  %v4359_v17 = vsel %vm20_vm0, %v4291_v0, 0.0  ;;  %4559 = vmatmul.msk.f32.gmra.mxu1 %vm3686_vm11, %v3644_v10  ;;  %v2492_v10 = vld [vmem:[#allocation2 + $0x188] sm:$0xff] }
 0x37e   :  { %v4360_v42 = vadd.f32 %v4359_v17, %v4358_v11  ;;  %2537 = vrot.lane.b32.xlu2 %v6210_v44, %s4637_s16 }
 0x380   :  { %v2344_v24 = vpop.permute.xlu2 %2343 }
 0x381   :  { %2547 = vrot.lane.b32.xlu1 %v6232_v41, %s4637_s16  ;;  %2434 = vst.msk [vmem:[#allocation3 + $0x128] sm:$0xff] %vm652_vm4, %v2344_v24 }
 0x382   :  { %v6441_v48 = vpop.f32.mrf.mxu1  ;;  %2551 = vrot.lane.b32.xlu0 %v6262_v60, %s4637_s16  ;;  %v3914_v16 = vpop.f32.mrf.mxu0 }
 0x383   :  { %4104 = vst.msk [vmem:[%s7551_s4 + $0x80] sm:$0xff] %vm20_vm0, %v6441_v48  ;;  %v4163_v33 = vsel %vm20_vm0, %v3914_v16, 0.0  ;;  %v4292_v7 = vmul.f32 %v3914_v16, %v3914_v16  ;;  %v2336_v49 = vpop.permute.xlu1 %2335 }
 0x384   :  { %v2340_v37 = vpop.permute.xlu0 %2339  ;;  %4094 = vst.msk [vmem:[%s7551_s4 + $0x30] sm:$0xff] %vm20_vm0, %v3914_v16  ;;  %v4164_v60 = vadd.f32 %v4163_v33, %v4162_v29 }
 0x385   :  { %2432 = vst.msk [vmem:[#allocation3 + $0x118] sm:$0xff] %vm652_vm4, %v2340_v37  ;;  %v4361_v44 = vsel %vm20_vm0, %v4292_v7, 0.0 }
 0x386   :  { %2430 = vst.msk [vmem:[#allocation3 + $0x108] sm:$0xff] %vm652_vm4, %v2336_v49  ;;  %v4362_v27 = vadd.f32 %v4361_v44, %v4360_v42  ;;  %2543 = vrot.lane.b32.xlu2 %v6230_v56, %s4637_s16  ;;  %v6587_v49 = vld [vmem:[#allocation2 + $0x31] sm:$0xff] }
 0x388   :  { %v2350_v39 = vpop.permute.xlu2 %2349 }
 0x389   :  { %2553 = vrot.lane.b32.xlu1 %v6252_v6, %s4637_s16  ;;  %2437 = vst.msk [vmem:[#allocation3 + $0x140] sm:$0xff] %vm652_vm4, %v2350_v39 }
 0x38a   :  { %2557 = vrot.lane.b32.xlu0 %v6282_v14, %s4637_s16  ;;  %v6468_v28 = vpop.f32.mrf.mxu1  ;;  %v3917_v57 = vpop.f32.mrf.mxu0 }
 0x38b   :  { %4105 = vst.msk [vmem:[%s7551_s4 + $0x88] sm:$0xff] %vm20_vm0, %v6468_v28  ;;  %v4165_v14 = vsel %vm20_vm0, %v3917_v57, 0.0  ;;  %v4293_v51 = vmul.f32 %v3917_v57, %v3917_v57  ;;  %v2342_v19 = vpop.permute.xlu1 %2341 }
 0x38c   :  { %v2346_v41 = vpop.permute.xlu0 %2345  ;;  %4095 = vst.msk [vmem:[%s7551_s4 + $0x38] sm:$0xff] %vm20_vm0, %v3917_v57  ;;  %v4166_v56 = vadd.f32 %v4165_v14, %v4164_v60 }
 0x38d   :  { %2435 = vst.msk [vmem:[#allocation3 + $0x130] sm:$0xff] %vm652_vm4, %v2346_v41  ;;  %v4363_v6 = vsel %vm20_vm0, %v4293_v51, 0.0  ;;  %v2653_v41 = vld [vmem:[#allocation2 + $0x19] sm:$0xff] }
 0x38e   :  { %2433 = vst.msk [vmem:[#allocation3 + $0x120] sm:$0xff] %vm652_vm4, %v2342_v19  ;;  %v4364_v46 = vadd.f32 %v4363_v6, %v4362_v27  ;;  %2549 = vrot.lane.b32.xlu2 %v6250_v30, %s4637_s16  ;;  %v6610_v6 = vld [vmem:[#allocation2 + $0x51] sm:$0xff] }
 0x390   :  { %v2356_v13 = vpop.permute.xlu2 %2355 }
 0x391   :  { %2559 = vrot.lane.b32.xlu1 %v6273_v47, %s4637_s16  ;;  %2440 = vst.msk [vmem:[#allocation3 + $0x158] sm:$0xff] %vm652_vm4, %v2356_v13 }
 0x392   :  { %2563 = vrot.lane.b32.xlu0 %v6302_v63, %s4637_s16  ;;  %v6490_v58 = vpop.f32.mrf.mxu1  ;;  %v3920_v1 = vpop.f32.mrf.mxu0 }
 0x393   :  { %4106 = vst.msk [vmem:[%s7551_s4 + $0x90] sm:$0xff] %vm20_vm0, %v6490_v58  ;;  %v4167_v63 = vsel %vm20_vm0, %v3920_v1, 0.0  ;;  %v4294_v59 = vmul.f32 %v3920_v1, %v3920_v1  ;;  %v2348_v54 = vpop.permute.xlu1 %2347 }
 0x394   :  { %v2352_v12 = vpop.permute.xlu0 %2351  ;;  %4096 = vst.msk [vmem:[%s7551_s4 + $0x40] sm:$0xff] %vm20_vm0, %v3920_v1  ;;  %v4168_v30 = vadd.f32 %v4167_v63, %v4166_v56  ;;  %v2491_v63 = vld [vmem:[#allocation2 + $0x180] sm:$0xff] }
 0x395   :  { %2438 = vst.msk [vmem:[#allocation3 + $0x148] sm:$0xff] %vm652_vm4, %v2352_v12  ;;  %v4365_v47 = vsel %vm20_vm0, %v4294_v59, 0.0  ;;  %v6621_v59 = vld [vmem:[#allocation2 + $0x39] sm:$0xff] }
 0x396   :  { %2436 = vst.msk [vmem:[#allocation3 + $0x138] sm:$0xff] %vm652_vm4, %v2348_v54  ;;  %v4366_v21 = vadd.f32 %v4365_v47, %v4364_v46  ;;  %2555 = vrot.lane.b32.xlu2 %v6268_v8, %s4637_s16 }
 0x398   :  { %v2362_v26 = vpop.permute.xlu2 %2361 }
 0x399   :  { %2565 = vrot.lane.b32.xlu1 %v6293_v32, %s4637_s16  ;;  %2443 = vst.msk [vmem:[#allocation3 + $0x170] sm:$0xff] %vm652_vm4, %v2362_v26 }
 0x39a   :  { %2569 = vrot.lane.b32.xlu0 %v6322_v43, %s4637_s16  ;;  %v6512_v9 = vpop.f32.mrf.mxu1  ;;  %v3923_v18 = vpop.f32.mrf.mxu0 }
 0x39b   :  { %4107 = vst.msk [vmem:[%s7551_s4 + $0x98] sm:$0xff] %vm20_vm0, %v6512_v9  ;;  %v4169_v43 = vsel %vm20_vm0, %v3923_v18, 0.0  ;;  %v4295_v34 = vmul.f32 %v3923_v18, %v3923_v18  ;;  %v2354_v2 = vpop.permute.xlu1 %2353 }
 0x39c   :  { %v2358_v31 = vpop.permute.xlu0 %2357  ;;  %4097 = vst.msk [vmem:[%s7551_s4 + $0x48] sm:$0xff] %vm20_vm0, %v3923_v18  ;;  %v4170_v8 = vadd.f32 %v4169_v43, %v4168_v30  ;;  %v6635_v18 = vld [vmem:[#allocation2 + $0x79] sm:$0xff] }
 0x39d   :  { %2441 = vst.msk [vmem:[#allocation3 + $0x160] sm:$0xff] %vm652_vm4, %v2358_v31  ;;  %v4367_v32 = vsel %vm20_vm0, %v4295_v34, 0.0 }
 0x39e   :  { %2439 = vst.msk [vmem:[#allocation3 + $0x150] sm:$0xff] %vm652_vm4, %v2354_v2  ;;  %v4368_v35 = vadd.f32 %v4367_v32, %v4366_v21  ;;  %2561 = vrot.lane.b32.xlu2 %v6288_v4, %s4637_s16  ;;  %v2654_v2 = vld [vmem:[#allocation2 + $0x21] sm:$0xff] }
 0x39f   :  { %v6646_v32 = vld [vmem:[#allocation2 + $0x61] sm:$0xff] }
 0x3a0   :  { %v2368_v11 = vpop.permute.xlu2 %2367 }
 0x3a1   :  { %2571 = vrot.lane.b32.xlu1 %v6313_v45, %s4637_s16  ;;  %2446 = vst.msk [vmem:[#allocation3 + $0x188] sm:$0xff] %vm652_vm4, %v2368_v11 }
 0x3a2   :  { %2575 = vrot.lane.b32.xlu0 %v6346_v61, %s4637_s16  ;;  %v6534_v3 = vpop.f32.mrf.mxu1  ;;  %v3926_v53 = vpop.f32.mrf.mxu0 }
 0x3a3   :  { %4108 = vst.msk [vmem:[%s7551_s4 + $0xa0] sm:$0xff] %vm20_vm0, %v6534_v3  ;;  %v4171_v61 = vsel %vm20_vm0, %v3926_v53, 0.0  ;;  %v4296_v25 = vmul.f32 %v3926_v53, %v3926_v53  ;;  %v2360_v50 = vpop.permute.xlu1 %2359 }
 0x3a4   :  { %v2364_v52 = vpop.permute.xlu0 %2363  ;;  %4098 = vst.msk [vmem:[%s7551_s4 + $0x50] sm:$0xff] %vm20_vm0, %v3926_v53  ;;  %v4172_v4 = vadd.f32 %v4171_v61, %v4170_v8  ;;  %v4302_v61 = vmul.f32 %v6441_v48, %v6441_v48 }
 0x3a5   :  { %2444 = vst.msk [vmem:[#allocation3 + $0x178] sm:$0xff] %vm652_vm4, %v2364_v52  ;;  %v4369_v45 = vsel %vm20_vm0, %v4296_v25, 0.0 }
 0x3a6   :  { %2442 = vst.msk [vmem:[#allocation3 + $0x168] sm:$0xff] %vm652_vm4, %v2360_v50  ;;  %v4370_v55 = vadd.f32 %v4369_v45, %v4368_v35  ;;  %2567 = vrot.lane.b32.xlu2 %v6311_v15, %s4637_s16  ;;  %v6662_v50 = vld [vmem:[#allocation2 + $0x99] sm:$0xff] }
 0x3a8   :  { %v2374_v36 = vpop.permute.xlu2 %2373 }
 0x3a9   :  { %2577 = vrot.lane.b32.xlu1 %v6333_v38, %s4637_s16  ;;  %2449 = vst.msk [vmem:[#allocation3 + $0x1a0] sm:$0xff] %vm652_vm4, %v2374_v36 }
 0x3aa   :  { %2581 = vrot.lane.b32.xlu0 %v6372_v22, %s4637_s16  ;;  %v6556_v0 = vpop.f32.mrf.mxu1  ;;  %v3929_v20 = vpop.f32.mrf.mxu0 }
 0x3ab   :  { %4109 = vst.msk [vmem:[%s7551_s4 + $0xa8] sm:$0xff] %vm20_vm0, %v6556_v0  ;;  %v4173_v22 = vsel %vm20_vm0, %v3929_v20, 0.0  ;;  %v4297_v29 = vmul.f32 %v3929_v20, %v3929_v20  ;;  %v2366_v17 = vpop.permute.xlu1 %2365 }
 0x3ac   :  { %v2370_v23 = vpop.permute.xlu0 %2369  ;;  %4099 = vst.msk [vmem:[%s7551_s4 + $0x58] sm:$0xff] %vm20_vm0, %v3929_v20  ;;  %v4174_v15 = vadd.f32 %v4173_v22, %v4172_v4  ;;  %v4303_v20 = vmul.f32 %v6468_v28, %v6468_v28 }
 0x3ad   :  { %2447 = vst.msk [vmem:[#allocation3 + $0x190] sm:$0xff] %vm652_vm4, %v2370_v23  ;;  %v4371_v38 = vsel %vm20_vm0, %v4297_v29, 0.0  ;;  %v4183_v23 = vsel %vm20_vm0, %v6441_v48, 0.0  ;;  %v4185_v48 = vsel %vm20_vm0, %v6468_v28, 0.0 }
 0x3ae   :  { %2445 = vst.msk [vmem:[#allocation3 + $0x180] sm:$0xff] %vm652_vm4, %v2366_v17  ;;  %v4372_v42 = vadd.f32 %v4371_v38, %v4370_v55  ;;  %2573 = vrot.lane.b32.xlu2 %v6331_v40, %s4637_s16  ;;  %v4304_v17 = vmul.f32 %v6490_v58, %v6490_v58  ;;  %v6684_v38 = vld [vmem:[#allocation2 + $0x81] sm:$0xff] }
 0x3b0   :  { %v2380_v60 = vpop.permute.xlu2 %2379 }
 0x3b1   :  { %2583 = vrot.lane.b32.xlu1 %v6356_v62, %s4637_s16  ;;  %2452 = vst.msk [vmem:[#allocation3 + $0x1b8] sm:$0xff] %vm652_vm4, %v2380_v60  ;;  %v4305_v60 = vmul.f32 %v6512_v9, %v6512_v9 }
 0x3b2   :  { %2587 = vrot.lane.b32.xlu0 %v2492_v10, %s4637_s16  ;;  %v6577_v16 = vpop.f32.mrf.mxu1  ;;  %v3932_v33 = vpop.f32.mrf.mxu0  ;;  %v6677_v10 = vld [vmem:[#allocation2 + $0x49] sm:$0xff] }
 0x3b3   :  { %4110 = vst.msk [vmem:[%s7551_s4 + $0xb0] sm:$0xff] %vm20_vm0, %v6577_v16  ;;  %v4175_v7 = vsel %vm20_vm0, %v3932_v33, 0.0  ;;  %v4298_v24 = vmul.f32 %v3932_v33, %v3932_v33  ;;  %v2372_v62 = vpop.permute.xlu1 %2371 }
 0x3b4   :  { %v2376_v37 = vpop.permute.xlu0 %2375  ;;  %4100 = vst.msk [vmem:[%s7551_s4 + $0x60] sm:$0xff] %vm20_vm0, %v3932_v33  ;;  %v4176_v40 = vadd.f32 %v4175_v7, %v4174_v15  ;;  %v4381_v15 = vsel %vm20_vm0, %v4302_v61, 0.0  ;;  %v4383_v7 = vsel %vm20_vm0, %v4303_v20, 0.0 }
 0x3b5   :  { %2450 = vst.msk [vmem:[#allocation3 + $0x1a8] sm:$0xff] %vm652_vm4, %v2376_v37  ;;  %v4373_v44 = vsel %vm20_vm0, %v4298_v24, 0.0  ;;  %v4187_v24 = vsel %vm20_vm0, %v6490_v58, 0.0  ;;  %v4306_v58 = vmul.f32 %v6534_v3, %v6534_v3 }
 0x3b6   :  { %2448 = vst.msk [vmem:[#allocation3 + $0x198] sm:$0xff] %vm652_vm4, %v2372_v62  ;;  %v4374_v27 = vadd.f32 %v4373_v44, %v4372_v42  ;;  %2579 = vrot.lane.b32.xlu2 %v6354_v5, %s4637_s16  ;;  %v4385_v44 = vsel %vm20_vm0, %v4304_v17, 0.0  ;;  %v2668_v17 = vld [vmem:[#allocation2 + $0xc9] sm:$0xff] }
 0x3b8   :  { %v2386_v19 = vpop.permute.xlu2 %2385 }
 0x3b9   :  { %2717 = vrot.lane.b32.xlu1 %v2653_v41, %s4638_s21  ;;  %2455 = vst.msk [vmem:[#allocation3 + $0x1d0] sm:$0xff] %vm652_vm4, %v2386_v19  ;;  %v4387_v19 = vsel %vm20_vm0, %v4305_v60, 0.0 }
 0x3ba   :  { %2721 = vrot.lane.b32.xlu0 %v6587_v49, %s4638_s21  ;;  %v6601_v14 = vpop.f32.mrf.mxu1  ;;  %v3935_v51 = vpop.f32.mrf.mxu0 }
 0x3bb   :  { %4111 = vst.msk [vmem:[%s7551_s4 + $0xb8] sm:$0xff] %vm20_vm0, %v6601_v14  ;;  %v4177_v39 = vsel %vm20_vm0, %v3935_v51, 0.0  ;;  %v4299_v56 = vmul.f32 %v3935_v51, %v3935_v51  ;;  %v2378_v46 = vpop.permute.xlu1 %2377 }
 0x3bc   :  { %v2382_v57 = vpop.permute.xlu0 %2381  ;;  %4101 = vst.msk [vmem:[%s7551_s4 + $0x68] sm:$0xff] %vm20_vm0, %v3935_v51  ;;  %v4178_v5 = vadd.f32 %v4177_v39, %v4176_v40 }
 0x3bd   :  { %2453 = vst.msk [vmem:[#allocation3 + $0x1c0] sm:$0xff] %vm652_vm4, %v2382_v57  ;;  %v4375_v12 = vsel %vm20_vm0, %v4299_v56, 0.0  ;;  %v6705_v57 = vld [vmem:[#allocation2 + $0xc1] sm:$0xff] }
 0x3be   :  { %2451 = vst.msk [vmem:[#allocation3 + $0x1b0] sm:$0xff] %vm652_vm4, %v2378_v46  ;;  %v4376_v1 = vadd.f32 %v4375_v12, %v4374_v27  ;;  %2585 = vrot.lane.b32.xlu2 %v2491_v63, %s4637_s16  ;;  %v4189_v27 = vsel %vm20_vm0, %v6512_v9, 0.0  ;;  %v4191_v9 = vsel %vm20_vm0, %v6534_v3, 0.0  ;;  %v4389_v63 = vsel %vm20_vm0, %v4306_v58, 0.0  ;;  %v6769_v58 = vld [vmem:[#allocation2 + $0x109] sm:$0xff] }
 0x3bf   :  { %v4308_v3 = vmul.f32 %v6577_v16, %v6577_v16 }
 0x3c0   :  { %v2392_v31 = vpop.permute.xlu2 %2391 }
 0x3c1   :  { %2723 = vrot.lane.b32.xlu1 %v6621_v59, %s4638_s21  ;;  %2458 = vst.msk [vmem:[#allocation3 + $0x1e8] sm:$0xff] %vm652_vm4, %v2392_v31 }
 0x3c2   :  { %2727 = vrot.lane.b32.xlu0 %v6610_v6, %s4638_s21  ;;  %v6625_v30 = vpop.f32.mrf.mxu1  ;;  %v3938_v54 = vpop.f32.mrf.mxu0 }
 0x3c3   :  { %4112 = vst.msk [vmem:[%s7551_s4 + $0xc0] sm:$0xff] %vm20_vm0, %v6625_v30  ;;  %v4179_v47 = vsel %vm20_vm0, %v3938_v54, 0.0  ;;  %v4300_v21 = vmul.f32 %v3938_v54, %v3938_v54  ;;  %v2384_v34 = vpop.permute.xlu1 %2383 }
 0x3c4   :  { %v2388_v13 = vpop.permute.xlu0 %2387  ;;  %4102 = vst.msk [vmem:[%s7551_s4 + $0x70] sm:$0xff] %vm20_vm0, %v3938_v54  ;;  %v4180_v43 = vadd.f32 %v4179_v47, %v4178_v5  ;;  %v4307_v5 = vmul.f32 %v6556_v0, %v6556_v0  ;;  %v6723_v54 = vld [vmem:[#allocation2 + $0xa9] sm:$0xff] }
 0x3c5   :  { %2456 = vst.msk [vmem:[#allocation3 + $0x1d8] sm:$0xff] %vm652_vm4, %v2388_v13  ;;  %v4377_v26 = vsel %vm20_vm0, %v4300_v21, 0.0  ;;  %v4193_v13 = vsel %vm20_vm0, %v6556_v0, 0.0 }
 0x3c6   :  { %2454 = vst.msk [vmem:[#allocation3 + $0x1c8] sm:$0xff] %vm652_vm4, %v2384_v34  ;;  %v4378_v8 = vadd.f32 %v4377_v26, %v4376_v1  ;;  %2719 = vrot.lane.b32.xlu2 %v2654_v2, %s4638_s21  ;;  %v6716_v1 = vld [vmem:[#allocation2 + $0x69] sm:$0xff]  ;;  %v4195_v34 = vsel %vm20_vm0, %v6577_v16, 0.0  ;;  %v4309_v26 = vmul.f32 %v6601_v14, %v6601_v14  ;;  %v4310_v16 = vmul.f32 %v6625_v30, %v6625_v30 }
 0x3c8   :  { %v2526_v4 = vpop.permute.xlu2 %2525 }
 0x3c9   :  { %2729 = vrot.lane.b32.xlu1 %v6646_v32, %s4638_s21  ;;  %2621 = vst.msk [vmem:[#allocation3 + $0x100] sm:$0xff] %vm845_vm5, %v2526_v4 }
 0x3ca   :  { %2733 = vrot.lane.b32.xlu0 %v6635_v18, %s4638_s21  ;;  %v6650_v52 = vpop.f32.mrf.mxu1  ;;  %v3941_v53 = vpop.f32.mrf.mxu0 }
 0x3cb   :  { %4113 = vst.msk [vmem:[%s7551_s4 + $0xc8] sm:$0xff] %vm20_vm0, %v6650_v52  ;;  %v4181_v25 = vsel %vm20_vm0, %v3941_v53, 0.0  ;;  %v4301_v11 = vmul.f32 %v3941_v53, %v3941_v53  ;;  %v2390_v55 = vpop.permute.xlu1 %2389 }
 0x3cc   :  { %v2394_v35 = vpop.permute.xlu0 %2393  ;;  %4103 = vst.msk [vmem:[%s7551_s4 + $0x78] sm:$0xff] %vm20_vm0, %v3941_v53  ;;  %v4182_v45 = vadd.f32 %v4181_v25, %v4180_v43  ;;  %v4391_v43 = vsel %vm20_vm0, %v4307_v5, 0.0  ;;  %v4197_v53 = vsel %vm20_vm0, %v6601_v14, 0.0  ;;  %v2670_v25 = vld [vmem:[#allocation2 + $0xe1] sm:$0xff]  ;;  %v4199_v14 = vsel %vm20_vm0, %v6625_v30, 0.0 }
 0x3cd   :  { %2459 = vst.msk [vmem:[#allocation3 + $0x1f0] sm:$0xff] %vm652_vm4, %v2394_v35  ;;  %v4379_v22 = vsel %vm20_vm0, %v4301_v11, 0.0  ;;  %v4393_v35 = vsel %vm20_vm0, %v4308_v3, 0.0 }
 0x3ce   :  { %2457 = vst.msk [vmem:[#allocation3 + $0x1e0] sm:$0xff] %vm652_vm4, %v2390_v55  ;;  %v4184_v29 = vadd.f32 %v4183_v23, %v4182_v45  ;;  %v4380_v36 = vadd.f32 %v4379_v22, %v4378_v8  ;;  %2725 = vrot.lane.b32.xlu2 %v6677_v10, %s4638_s21  ;;  %v4395_v55 = vsel %vm20_vm0, %v4309_v26, 0.0  ;;  %v4311_v23 = vmul.f32 %v6650_v52, %v6650_v52 }
 0x3d0   :  { %v4186_v42 = vadd.f32 %v4185_v48, %v4184_v29  ;;  %v4382_v37 = vadd.f32 %v4381_v15, %v4380_v36  ;;  %v2532_v41 = vpop.permute.xlu2 %2531  ;;  %v6752_v29 = vld [vmem:[#allocation2 + $0x91] sm:$0xff]  ;;  %v4397_v36 = vsel %vm20_vm0, %v4310_v16, 0.0  ;;  %v4201_v15 = vsel %vm20_vm0, %v6650_v52, 0.0 }
 0x3d1   :  { %2735 = vrot.lane.b32.xlu1 %v6684_v38, %s4638_s21  ;;  %2624 = vst.msk [vmem:[#allocation3 + $0x118] sm:$0xff] %vm845_vm5, %v2532_v41 }
 0x3d2   :  { %2739 = vrot.lane.b32.xlu0 %v6662_v50, %s4638_s21  ;;  %v4188_v28 = vadd.f32 %v4187_v24, %v4186_v42  ;;  %v4384_v40 = vadd.f32 %v4383_v7, %v4382_v37  ;;  %v3974_v62 = vpop.f32.mrf.mxu1 }
 0x3d3   :  { %4114 = vst.msk [vmem:[%s7551_s4 + $0xd0] sm:$0xff] %vm20_vm0, %v3974_v62  ;;  %v2396_v56 = vpop.permute.xlu1 %2395  ;;  %v4312_v48 = vmul.f32 %v3974_v62, %v3974_v62  ;;  %v4203_v7 = vsel %vm20_vm0, %v3974_v62, 0.0 }
 0x3d4   :  { %v2528_v33 = vpop.permute.xlu0 %2527  ;;  %v4190_v51 = vadd.f32 %v4189_v27, %v4188_v28  ;;  %v4386_v39 = vadd.f32 %v4385_v44, %v4384_v40  ;;  %2460 = vst.msk [vmem:[#allocation3 + $0x1f8] sm:$0xff] %vm652_vm4, %v2396_v56 }
 0x3d5   :  { %2622 = vst.msk [vmem:[#allocation3 + $0x108] sm:$0xff] %vm845_vm5, %v2528_v33  ;;  %v4399_v33 = vsel %vm20_vm0, %v4311_v23, 0.0  ;;  %v4401_v52 = vsel %vm20_vm0, %v4312_v48, 0.0 }
 0x3d6   :  { %v4192_v46 = vadd.f32 %v4191_v9, %v4190_v51  ;;  %v4388_v12 = vadd.f32 %v4387_v19, %v4386_v39  ;;  %2731 = vrot.lane.b32.xlu2 %v6716_v1, %s4638_s21 }
 0x3d8   :  { %v4390_v47 = vadd.f32 %v4389_v63, %v4388_v12  ;;  %v4194_v21 = vadd.f32 %v4193_v13, %v4192_v46  ;;  %v2538_v61 = vpop.permute.xlu2 %2537  ;;  %v6777_v46 = vld [vmem:[#allocation2 + $0xb1] sm:$0xff] }
 0x3d9   :  { %2741 = vrot.lane.b32.xlu1 %v6723_v54, %s4638_s21  ;;  %2627 = vst.msk [vmem:[#allocation3 + $0x130] sm:$0xff] %vm845_vm5, %v2538_v61  ;;  %v6780_v63 = vld [vmem:[#allocation2 + $0xf1] sm:$0xff] }
 0x3da   :  { %2745 = vrot.lane.b32.xlu0 %v6705_v57, %s4638_s21  ;;  %v4196_v0 = vadd.f32 %v4195_v34, %v4194_v21  ;;  %v4392_v8 = vadd.f32 %v4391_v43, %v4390_v47  ;;  %v3977_v2 = vpop.f32.mrf.mxu1  ;;  %v6792_v34 = vld [vmem:[#allocation2 + $0x129] sm:$0xff] }
 0x3db   :  { %4115 = vst.msk [vmem:[%s7551_s4 + $0xd8] sm:$0xff] %vm20_vm0, %v3977_v2  ;;  %v2530_v45 = vpop.permute.xlu1 %2529  ;;  %v4313_v24 = vmul.f32 %v3977_v2, %v3977_v2  ;;  %v4205_v44 = vsel %vm20_vm0, %v3977_v2, 0.0 }
 0x3dc   :  { %v2534_v31 = vpop.permute.xlu0 %2533  ;;  %v4198_v11 = vadd.f32 %v4197_v53, %v4196_v0  ;;  %v4394_v4 = vadd.f32 %v4393_v35, %v4392_v8  ;;  %2623 = vst.msk [vmem:[#allocation3 + $0x110] sm:$0xff] %vm845_vm5, %v2530_v45  ;;  %v6799_v35 = vld [vmem:[#allocation2 + $0xd9] sm:$0xff]  ;;  %v6801_v53 = vld [vmem:[#allocation2 + $0x111] sm:$0xff] }
 0x3dd   :  { %2625 = vst.msk [vmem:[#allocation3 + $0x120] sm:$0xff] %vm845_vm5, %v2534_v31  ;;  %v4403_v56 = vsel %vm20_vm0, %v4313_v24, 0.0  ;;  %v6813_v45 = vld [vmem:[#allocation2 + $0x151] sm:$0xff] }
 0x3de   :  { %v4200_v20 = vadd.f32 %v4199_v14, %v4198_v11  ;;  %v4396_v22 = vadd.f32 %v4395_v55, %v4394_v4  ;;  %2737 = vrot.lane.b32.xlu2 %v6752_v29, %s4638_s21 }
 0x3e0   :  { %v4202_v42 = vadd.f32 %v4201_v15, %v4200_v20  ;;  %v4398_v30 = vadd.f32 %v4397_v36, %v4396_v22  ;;  %v2544_v27 = vpop.permute.xlu2 %2543  ;;  %v6820_v22 = vld [vmem:[#allocation2 + $0xf9] sm:$0xff] }
 0x3e1   :  { %2747 = vrot.lane.b32.xlu1 %v2668_v17, %s4638_s21  ;;  %2630 = vst.msk [vmem:[#allocation3 + $0x148] sm:$0xff] %vm845_vm5, %v2544_v27  ;;  %v6822_v36 = vld [vmem:[#allocation2 + $0x139] sm:$0xff] }
 0x3e2   :  { %2751 = vrot.lane.b32.xlu0 %v2670_v25, %s4638_s21  ;;  %v4204_v60 = vadd.f32 %v4203_v7, %v4202_v42  ;;  %v4400_v28 = vadd.f32 %v4399_v33, %v4398_v30  ;;  %v3980_v40 = vpop.f32.mrf.mxu1 }
 0x3e3   :  { %4116 = vst.msk [vmem:[%s7551_s4 + $0xe0] sm:$0xff] %vm20_vm0, %v3980_v40  ;;  %v4314_v62 = vmul.f32 %v3980_v40, %v3980_v40  ;;  %v2536_v39 = vpop.permute.xlu1 %2535  ;;  %v4207_v19 = vsel %vm20_vm0, %v3980_v40, 0.0  ;;  %v6847_v40 = vld [vmem:[#allocation2 + $0x159] sm:$0xff] }
 0x3e4   :  { %v2540_v37 = vpop.permute.xlu0 %2539  ;;  %v4402_v41 = vadd.f32 %v4401_v52, %v4400_v28  ;;  %v4206_v51 = vadd.f32 %v4205_v44, %v4204_v60  ;;  %2626 = vst.msk [vmem:[#allocation3 + $0x128] sm:$0xff] %vm845_vm5, %v2536_v39  ;;  %v6845_v28 = vld [vmem:[#allocation2 + $0x121] sm:$0xff] }
 0x3e5   :  { %2628 = vst.msk [vmem:[#allocation3 + $0x138] sm:$0xff] %vm845_vm5, %v2540_v37  ;;  %v4405_v12 = vsel %vm20_vm0, %v4314_v62, 0.0  ;;  %v6834_v37 = vld [vmem:[#allocation2 + $0x171] sm:$0xff]  ;;  %v2845_v62 = vld [vmem:[#allocation2 + $0x1a] sm:$0xff] }
 0x3e6   :  { %v4404_v9 = vadd.f32 %v4403_v56, %v4402_v41  ;;  %v4208_v5 = vadd.f32 %v4207_v19, %v4206_v51  ;;  %2743 = vrot.lane.b32.xlu2 %v6777_v46, %s4638_s21  ;;  %v6857_v41 = vld [vmem:[#allocation2 + $0x141] sm:$0xff] }
 0x3e7   :  { %v2683_v51 = vld [vmem:[#allocation2 + $0x181] sm:$0xff] }
 0x3e8   :  { %v4406_v13 = vadd.f32 %v4405_v12, %v4404_v9  ;;  %v2550_v43 = vpop.permute.xlu2 %2549  ;;  %v6863_v19 = vld [vmem:[#allocation2 + $0x3a] sm:$0xff]  ;;  %v2846_v12 = vld [vmem:[#allocation2 + $0x22] sm:$0xff] }
 0x3e9   :  { %2753 = vrot.lane.b32.xlu1 %v6780_v63, %s4638_s21  ;;  %2633 = vst.msk [vmem:[#allocation3 + $0x160] sm:$0xff] %vm845_vm5, %v2550_v43  ;;  %v6881_v43 = vld [vmem:[#allocation2 + $0x4a] sm:$0xff] }
 0x3ea   :  { %2757 = vrot.lane.b32.xlu0 %v6769_v58, %s4638_s21  ;;  %v3983_v47 = vpop.f32.mrf.mxu1 }
 0x3eb   :  { %4117 = vst.msk [vmem:[%s7551_s4 + $0xe8] sm:$0xff] %vm20_vm0, %v3983_v47  ;;  %v4209_v21 = vsel %vm20_vm0, %v3983_v47, 0.0  ;;  %v4315_v31 = vmul.f32 %v3983_v47, %v3983_v47  ;;  %v2542_v0 = vpop.permute.xlu1 %2541  ;;  %v6875_v47 = vld [vmem:[#allocation2 + $0x62] sm:$0xff] }
 0x3ec   :  { %v2546_v3 = vpop.permute.xlu0 %2545  ;;  %v4210_v26 = vadd.f32 %v4209_v21, %v4208_v5  ;;  %2629 = vst.msk [vmem:[#allocation3 + $0x140] sm:$0xff] %vm845_vm5, %v2542_v0  ;;  %v6869_v5 = vld [vmem:[#allocation2 + $0x169] sm:$0xff] }
 0x3ed   :  { %2631 = vst.msk [vmem:[#allocation3 + $0x150] sm:$0xff] %vm845_vm5, %v2546_v3  ;;  %v4407_v8 = vsel %vm20_vm0, %v4315_v31, 0.0  ;;  %v2684_v31 = vld [vmem:[#allocation2 + $0x189] sm:$0xff] }
 0x3ee   :  { %v4408_v2 = vadd.f32 %v4407_v8, %v4406_v13  ;;  %2749 = vrot.lane.b32.xlu2 %v6799_v35, %s4638_s21  ;;  %v6887_v8 = vld [vmem:[#allocation2 + $0x82] sm:$0xff] }
 0x3f0   :  { %v2556_v4 = vpop.permute.xlu2 %2555 }
 0x3f1   :  { %2759 = vrot.lane.b32.xlu1 %v6801_v53, %s4638_s21  ;;  %2636 = vst.msk [vmem:[#allocation3 + $0x178] sm:$0xff] %vm845_vm5, %v2556_v4  ;;  %v3037_v4 = vld [vmem:[#allocation2 + $0x30] sm:$0xff] }
 0x3f2   :  { %2763 = vrot.lane.b32.xlu0 %v6792_v34, %s4638_s21  ;;  %v3986_v61 = vpop.f32.mrf.mxu1 }
 0x3f3   :  { %4118 = vst.msk [vmem:[%s7551_s4 + $0xf0] sm:$0xff] %vm20_vm0, %v3986_v61  ;;  %v4211_v25 = vsel %vm20_vm0, %v3986_v61, 0.0  ;;  %v4316_v11 = vmul.f32 %v3986_v61, %v3986_v61  ;;  %v2548_v14 = vpop.permute.xlu1 %2547  ;;  %v6893_v61 = vld [vmem:[#allocation2 + $0x6a] sm:$0xff] }
 0x3f4   :  { %v2552_v16 = vpop.permute.xlu0 %2551  ;;  %v4212_v55 = vadd.f32 %v4211_v25, %v4210_v26  ;;  %2632 = vst.msk [vmem:[#allocation3 + $0x158] sm:$0xff] %vm845_vm5, %v2548_v14  ;;  %v6902_v14 = vld [vmem:[#allocation2 + $0x52] sm:$0xff] }
 0x3f5   :  { %2634 = vst.msk [vmem:[#allocation3 + $0x168] sm:$0xff] %vm845_vm5, %v2552_v16  ;;  %v4409_v23 = vsel %vm20_vm0, %v4316_v11, 0.0  ;;  %v2847_v16 = vld [vmem:[#allocation2 + $0x32] sm:$0xff] }
 0x3f6   :  { %v4410_v20 = vadd.f32 %v4409_v23, %v4408_v2  ;;  %2755 = vrot.lane.b32.xlu2 %v6820_v22, %s4638_s21  ;;  %v6904_v23 = vld [vmem:[#allocation2 + $0x92] sm:$0xff] }
 0x3f8   :  { %v2562_v30 = vpop.permute.xlu2 %2561 }
 0x3f9   :  { %2765 = vrot.lane.b32.xlu1 %v6822_v36, %s4638_s21  ;;  %2639 = vst.msk [vmem:[#allocation3 + $0x190] sm:$0xff] %vm845_vm5, %v2562_v30 }
 0x3fa   :  { %2769 = vrot.lane.b32.xlu0 %v6813_v45, %s4638_s21  ;;  %v3989_v48 = vpop.f32.mrf.mxu1 }
 0x3fb   :  { %4119 = vst.msk [vmem:[%s7551_s4 + $0xf8] sm:$0xff] %vm20_vm0, %v3989_v48  ;;  %v4213_v17 = vsel %vm20_vm0, %v3989_v48, 0.0  ;;  %v4317_v42 = vmul.f32 %v3989_v48, %v3989_v48  ;;  %v2554_v7 = vpop.permute.xlu1 %2553  ;;  %v3038_v48 = vld [vmem:[#allocation2 + $0x38] sm:$0xff] }
 0x3fc   :  { %v2558_v15 = vpop.permute.xlu0 %2557  ;;  %v6836_v33 = vadd.f32 %v4213_v17, %v4212_v55  ;;  %2635 = vst.msk [vmem:[#allocation3 + $0x170] sm:$0xff] %vm845_vm5, %v2554_v7 }
 0x3fd   :  { %2637 = vst.msk [vmem:[#allocation3 + $0x180] sm:$0xff] %vm845_vm5, %v2558_v15  ;;  %v4411_v24 = vsel %vm20_vm0, %v4317_v42, 0.0  ;;  %v6914_v42 = vld [vmem:[#allocation2 + $0x7a] sm:$0xff] }
 0x3fe   :  { %v6841_v60 = vadd.f32 %v4411_v24, %v4410_v20  ;;  %2761 = vrot.lane.b32.xlu2 %v6845_v28, %s4638_s21  ;;  %v3039_v24 = vld [vmem:[#allocation2 + $0x48] sm:$0xff] }
 0x400   :  { %v2568_v44 = vpop.permute.xlu2 %2567 }
 0x401   :  { %2771 = vrot.lane.b32.xlu1 %v6847_v40, %s4638_s21  ;;  %2642 = vst.msk [vmem:[#allocation3 + $0x1a8] sm:$0xff] %vm845_vm5, %v2568_v44  ;;  %v6924_v44 = vld [vmem:[#allocation2 + $0x9a] sm:$0xff] }
 0x402   :  { %2775 = vrot.lane.b32.xlu0 %v6834_v37, %s4638_s21 }
 0x403   :  { %v2560_v27 = vpop.permute.xlu1 %2559 }
 0x404   :  { %v2564_v52 = vpop.permute.xlu0 %2563  ;;  %2638 = vst.msk [vmem:[#allocation3 + $0x188] sm:$0xff] %vm845_vm5, %v2560_v27  ;;  %v3040_v27 = vld [vmem:[#allocation2 + $0x50] sm:$0xff] }
 0x405   :  { %2640 = vst.msk [vmem:[#allocation3 + $0x198] sm:$0xff] %vm845_vm5, %v2564_v52 }
 0x406   :  { %2767 = vrot.lane.b32.xlu2 %v6857_v41, %s4638_s21 }
 0x408   :  { %v2574_v56 = vpop.permute.xlu2 %2573 }
 0x409   :  { %2777 = vrot.lane.b32.xlu1 %v2683_v51, %s4638_s21  ;;  %2645 = vst.msk [vmem:[#allocation3 + $0x1c0] sm:$0xff] %vm845_vm5, %v2574_v56 }
 0x40a   :  { %2909 = vrot.lane.b32.xlu0 %v2845_v62, %s4639_s7 }
 0x40b   :  { %v2566_v9 = vpop.permute.xlu1 %2565 }
 0x40c   :  { %v2570_v39 = vpop.permute.xlu0 %2569  ;;  %2641 = vst.msk [vmem:[#allocation3 + $0x1a0] sm:$0xff] %vm845_vm5, %v2566_v9  ;;  %v6938_v9 = vld [vmem:[#allocation2 + $0xda] sm:$0xff] }
 0x40d   :  { %2643 = vst.msk [vmem:[#allocation3 + $0x1b0] sm:$0xff] %vm845_vm5, %v2570_v39 }
 0x40e   :  { %2773 = vrot.lane.b32.xlu2 %v6869_v5, %s4638_s21 }
 0x410   :  { %v2580_v3 = vpop.permute.xlu2 %2579 }
 0x411   :  { %2911 = vrot.lane.b32.xlu1 %v2846_v12, %s4639_s7  ;;  %2648 = vst.msk [vmem:[#allocation3 + $0x1d8] sm:$0xff] %vm845_vm5, %v2580_v3  ;;  %v3041_v3 = vld [vmem:[#allocation2 + $0x60] sm:$0xff] }
 0x412   :  { %2915 = vrot.lane.b32.xlu0 %v6863_v19, %s4639_s7 }
 0x413   :  { %v2572_v21 = vpop.permute.xlu1 %2571 }
 0x414   :  { %v2576_v13 = vpop.permute.xlu0 %2575  ;;  %2644 = vst.msk [vmem:[#allocation3 + $0x1b8] sm:$0xff] %vm845_vm5, %v2572_v21 }
 0x415   :  { %2646 = vst.msk [vmem:[#allocation3 + $0x1c8] sm:$0xff] %vm845_vm5, %v2576_v13 }
 0x416   :  { %2779 = vrot.lane.b32.xlu2 %v2684_v31, %s4638_s21 }
 0x418   :  { %v2586_v0 = vpop.permute.xlu2 %2585 }
 0x419   :  { %2917 = vrot.lane.b32.xlu1 %v6881_v43, %s4639_s7  ;;  %2651 = vst.msk [vmem:[#allocation3 + $0x1f0] sm:$0xff] %vm845_vm5, %v2586_v0 }
 0x41a   :  { %2921 = vrot.lane.b32.xlu0 %v6875_v47, %s4639_s7 }
 0x41b   :  { %v2578_v2 = vpop.permute.xlu1 %2577 }
 0x41c   :  { %v2582_v26 = vpop.permute.xlu0 %2581  ;;  %2647 = vst.msk [vmem:[#allocation3 + $0x1d0] sm:$0xff] %vm845_vm5, %v2578_v2  ;;  %v3053_v2 = vld [vmem:[#allocation2 + $0xf0] sm:$0xff] }
 0x41d   :  { %2649 = vst.msk [vmem:[#allocation3 + $0x1e0] sm:$0xff] %vm845_vm5, %v2582_v26 }
 0x41e   :  { %2913 = vrot.lane.b32.xlu2 %v2847_v16, %s4639_s7 }
 0x420   :  { %v2720_v11 = vpop.permute.xlu2 %2719 }
 0x421   :  { %2923 = vrot.lane.b32.xlu1 %v6893_v61, %s4639_s7  ;;  %2814 = vst.msk [vmem:[#allocation3 + $0x108] sm:$0xff] %vm1038_vm6, %v2720_v11 }
 0x422   :  { %2927 = vrot.lane.b32.xlu0 %v6887_v8, %s4639_s7 }
 0x423   :  { %v2584_v55 = vpop.permute.xlu1 %2583 }
 0x424   :  { %v2588_v25 = vpop.permute.xlu0 %2587  ;;  %2650 = vst.msk [vmem:[#allocation3 + $0x1e8] sm:$0xff] %vm845_vm5, %v2584_v55 }
 0x425   :  { %2652 = vst.msk [vmem:[#allocation3 + $0x1f8] sm:$0xff] %vm845_vm5, %v2588_v25 }
 0x426   :  { %2919 = vrot.lane.b32.xlu2 %v6902_v14, %s4639_s7 }
 0x428   :  { %v2726_v15 = vpop.permute.xlu2 %2725 }
 0x429   :  { %2929 = vrot.lane.b32.xlu1 %v6904_v23, %s4639_s7  ;;  %2817 = vst.msk [vmem:[#allocation3 + $0x120] sm:$0xff] %vm1038_vm6, %v2726_v15  ;;  %v3042_v15 = vld [vmem:[#allocation2 + $0x68] sm:$0xff] }
 0x42a   :  { %3101 = vrot.lane.b32.xlu0 %v3037_v4, %s4640_s8 }
 0x42b   :  { %v2718_v17 = vpop.permute.xlu1 %2717 }
 0x42c   :  { %v2722_v20 = vpop.permute.xlu0 %2721  ;;  %2813 = vst.msk [vmem:[#allocation3 + $0x100] sm:$0xff] %vm1038_vm6, %v2718_v17  ;;  %v3055_v17 = vld [vmem:[#allocation2 + $0x108] sm:$0xff] }
 0x42d   :  { %2815 = vst.msk [vmem:[#allocation3 + $0x110] sm:$0xff] %vm1038_vm6, %v2722_v20 }
 0x42e   :  { %2925 = vrot.lane.b32.xlu2 %v6914_v42, %s4639_s7 }
 0x430   :  { %v2732_v7 = vpop.permute.xlu2 %2731 }
 0x431   :  { %3293 = vrot.lane.b32.xlu1 %v6587_v49, %s4641_s9  ;;  %2820 = vst.msk [vmem:[#allocation3 + $0x138] sm:$0xff] %vm1038_vm6, %v2732_v7 }
 0x432   :  { %3103 = vrot.lane.b32.xlu0 %v3038_v48, %s4640_s8 }
 0x433   :  { %v2724_v52 = vpop.permute.xlu1 %2723 }
 0x434   :  { %v2728_v30 = vpop.permute.xlu0 %2727  ;;  %2816 = vst.msk [vmem:[#allocation3 + $0x118] sm:$0xff] %vm1038_vm6, %v2724_v52 }
 0x435   :  { %2818 = vst.msk [vmem:[#allocation3 + $0x128] sm:$0xff] %vm1038_vm6, %v2728_v30 }
 0x436   :  { %2931 = vrot.lane.b32.xlu2 %v6924_v44, %s4639_s7 }
 0x438   :  { %v2738_v49 = vpop.permute.xlu2 %2737 }
 0x439   :  { %3295 = vrot.lane.b32.xlu1 %v6621_v59, %s4641_s9  ;;  %2823 = vst.msk [vmem:[#allocation3 + $0x150] sm:$0xff] %vm1038_vm6, %v2738_v49 }
 0x43a   :  { %3105 = vrot.lane.b32.xlu0 %v3039_v24, %s4640_s8 }
 0x43b   :  { %v2730_v51 = vpop.permute.xlu1 %2729 }
 0x43c   :  { %v2734_v62 = vpop.permute.xlu0 %2733  ;;  %2819 = vst.msk [vmem:[#allocation3 + $0x130] sm:$0xff] %vm1038_vm6, %v2730_v51 }
 0x43d   :  { %2821 = vst.msk [vmem:[#allocation3 + $0x140] sm:$0xff] %vm1038_vm6, %v2734_v62  ;;  %v3044_v62 = vld [vmem:[#allocation2 + $0x80] sm:$0xff] }
 0x43e   :  { %3485 = vrot.lane.b32.xlu2 %v2847_v16, %s4642_s10  ;;  %v6968_v16 = vld [vmem:[#allocation2 + $0xe2] sm:$0xff] }
 0x440   :  { %v2744_v56 = vpop.permute.xlu2 %2743 }
 0x441   :  { %3297 = vrot.lane.b32.xlu1 %v6677_v10, %s4641_s9  ;;  %2826 = vst.msk [vmem:[#allocation3 + $0x168] sm:$0xff] %vm1038_vm6, %v2744_v56  ;;  %v3057_v56 = vld [vmem:[#allocation2 + $0x120] sm:$0xff] }
 0x442   :  { %3107 = vrot.lane.b32.xlu0 %v3040_v27, %s4640_s8 }
 0x443   :  { %v2736_v59 = vpop.permute.xlu1 %2735 }
 0x444   :  { %v2740_v39 = vpop.permute.xlu0 %2739  ;;  %2822 = vst.msk [vmem:[#allocation3 + $0x148] sm:$0xff] %vm1038_vm6, %v2736_v59 }
 0x445   :  { %2824 = vst.msk [vmem:[#allocation3 + $0x158] sm:$0xff] %vm1038_vm6, %v2740_v39  ;;  %v3439_v39 = vld [vmem:[#allocation2 + $0x10a] sm:$0xff] }
 0x446   :  { %3487 = vrot.lane.b32.xlu2 %v6863_v19, %s4642_s10 }
 0x448   :  { %v2750_v10 = vpop.permute.xlu2 %2749 }
 0x449   :  { %3299 = vrot.lane.b32.xlu1 %v6610_v6, %s4641_s9  ;;  %2829 = vst.msk [vmem:[#allocation3 + $0x180] sm:$0xff] %vm1038_vm6, %v2750_v10  ;;  %v3437_v6 = vld [vmem:[#allocation2 + $0xf2] sm:$0xff] }
 0x44a   :  { %2941 = vrot.lane.b32.xlu0 %v6938_v9, %s4639_s7 }
 0x44b   :  { %v2742_v13 = vpop.permute.xlu1 %2741 }
 0x44c   :  { %v2746_v12 = vpop.permute.xlu0 %2745  ;;  %2825 = vst.msk [vmem:[#allocation3 + $0x160] sm:$0xff] %vm1038_vm6, %v2742_v13 }
 0x44d   :  { %2827 = vst.msk [vmem:[#allocation3 + $0x170] sm:$0xff] %vm1038_vm6, %v2746_v12  ;;  %v3056_v12 = vld [vmem:[#allocation2 + $0x110] sm:$0xff] }
 0x44e   :  { %3489 = vrot.lane.b32.xlu2 %v6881_v43, %s4642_s10  ;;  %v3054_v43 = vld [vmem:[#allocation2 + $0xf8] sm:$0xff] }
 0x450   :  { %v2756_v19 = vpop.permute.xlu2 %2755 }
 0x451   :  { %3109 = vrot.lane.b32.xlu1 %v3041_v3, %s4640_s8  ;;  %2832 = vst.msk [vmem:[#allocation3 + $0x198] sm:$0xff] %vm1038_vm6, %v2756_v19  ;;  %v3046_v19 = vld [vmem:[#allocation2 + $0x98] sm:$0xff] }
 0x452   :  { %3301 = vrot.lane.b32.xlu0 %v6646_v32, %s4641_s9 }
 0x453   :  { %v2748_v31 = vpop.permute.xlu1 %2747 }
 0x454   :  { %v2752_v21 = vpop.permute.xlu0 %2751  ;;  %2828 = vst.msk [vmem:[#allocation3 + $0x178] sm:$0xff] %vm1038_vm6, %v2748_v31  ;;  %v3045_v31 = vld [vmem:[#allocation2 + $0x90] sm:$0xff] }
 0x455   :  { %2830 = vst.msk [vmem:[#allocation3 + $0x188] sm:$0xff] %vm1038_vm6, %v2752_v21 }
 0x456   :  { %3491 = vrot.lane.b32.xlu2 %v6902_v14, %s4642_s10  ;;  %v3043_v14 = vld [vmem:[#allocation2 + $0x78] sm:$0xff] }
 0x458   :  { %v2762_v32 = vpop.permute.xlu2 %2761 }
 0x459   :  { %3325 = vrot.lane.b32.xlu1 %v6780_v63, %s4641_s9  ;;  %2835 = vst.msk [vmem:[#allocation3 + $0x1b0] sm:$0xff] %vm1038_vm6, %v2762_v32 }
 0x45a   :  { %3517 = vrot.lane.b32.xlu0 %v3437_v6, %s4642_s10 }
 0x45b   :  { %v2754_v0 = vpop.permute.xlu1 %2753 }
 0x45c   :  { %v2758_v26 = vpop.permute.xlu0 %2757  ;;  %2831 = vst.msk [vmem:[#allocation3 + $0x190] sm:$0xff] %vm1038_vm6, %v2754_v0 }
 0x45d   :  { %2833 = vst.msk [vmem:[#allocation3 + $0x1a0] sm:$0xff] %vm1038_vm6, %v2758_v26 }
 0x45e   :  { %3133 = vrot.lane.b32.xlu2 %v3053_v2, %s4640_s8 }
 0x460   :  { %v2768_v63 = vpop.permute.xlu2 %2767 }
 0x461   :  { %2943 = vrot.lane.b32.xlu1 %v6968_v16, %s4639_s7  ;;  %2838 = vst.msk [vmem:[#allocation3 + $0x1c8] sm:$0xff] %vm1038_vm6, %v2768_v63 }
 0x462   :  { %3135 = vrot.lane.b32.xlu0 %v3054_v43, %s4640_s8  ;;  %v3058_v43 = vld [vmem:[#allocation2 + $0x128] sm:$0xff] }
 0x463   :  { %v2760_v11 = vpop.permute.xlu1 %2759 }
 0x464   :  { %v2764_v25 = vpop.permute.xlu0 %2763  ;;  %2834 = vst.msk [vmem:[#allocation3 + $0x1a8] sm:$0xff] %vm1038_vm6, %v2760_v11 }
 0x465   :  { %2836 = vst.msk [vmem:[#allocation3 + $0x1b8] sm:$0xff] %vm1038_vm6, %v2764_v25 }
 0x466   :  { %3493 = vrot.lane.b32.xlu2 %v6875_v47, %s4642_s10 }
 0x468   :  { %v2774_v55 = vpop.permute.xlu2 %2773 }
 0x469   :  { %3303 = vrot.lane.b32.xlu1 %v6716_v1, %s4641_s9  ;;  %2841 = vst.msk [vmem:[#allocation3 + $0x1e0] sm:$0xff] %vm1038_vm6, %v2774_v55  ;;  %v3047_v55 = vld [vmem:[#allocation2 + $0xa8] sm:$0xff] }
 0x46a   :  { %3495 = vrot.lane.b32.xlu0 %v6893_v61, %s4642_s10  ;;  %v3438_v61 = vld [vmem:[#allocation2 + $0xfa] sm:$0xff] }
 0x46b   :  { %v2766_v20 = vpop.permute.xlu1 %2765 }
 0x46c   :  { %v2770_v4 = vpop.permute.xlu0 %2769  ;;  %2837 = vst.msk [vmem:[#allocation3 + $0x1c0] sm:$0xff] %vm1038_vm6, %v2766_v20  ;;  %v3443_v20 = vld [vmem:[#allocation2 + $0x13a] sm:$0xff] }
 0x46d   :  { %2839 = vst.msk [vmem:[#allocation3 + $0x1d0] sm:$0xff] %vm1038_vm6, %v2770_v4 }
 0x46e   :  { %3111 = vrot.lane.b32.xlu2 %v3042_v15, %s4640_s8 }
 0x470   :  { %v2780_v47 = vpop.permute.xlu2 %2779 }
 0x471   :  { %3519 = vrot.lane.b32.xlu1 %v3438_v61, %s4642_s10  ;;  %2844 = vst.msk [vmem:[#allocation3 + $0x1f8] sm:$0xff] %vm1038_vm6, %v2780_v47  ;;  %v3060_v47 = vld [vmem:[#allocation2 + $0x140] sm:$0xff] }
 0x472   :  { %3113 = vrot.lane.b32.xlu0 %v3043_v14, %s4640_s8 }
 0x473   :  { %v2772_v1 = vpop.permute.xlu1 %2771 }
 0x474   :  { %v2776_v48 = vpop.permute.xlu0 %2775  ;;  %2840 = vst.msk [vmem:[#allocation3 + $0x1d8] sm:$0xff] %vm1038_vm6, %v2772_v1 }
 0x475   :  { %2842 = vst.msk [vmem:[#allocation3 + $0x1e8] sm:$0xff] %vm1038_vm6, %v2776_v48 }
 0x476   :  { %3327 = vrot.lane.b32.xlu2 %v6820_v22, %s4641_s9 }
 0x478   :  { %v2914_v7 = vpop.permute.xlu2 %2913 }
 0x479   :  { %3137 = vrot.lane.b32.xlu1 %v3055_v17, %s4640_s8  ;;  %3007 = vst.msk [vmem:[#allocation3 + $0x110] sm:$0xff] %vm1231_vm7, %v2914_v7 }
 0x47a   :  { %3329 = vrot.lane.b32.xlu0 %v6769_v58, %s4641_s9 }
 0x47b   :  { %v2778_v24 = vpop.permute.xlu1 %2777 }
 0x47c   :  { %v2910_v30 = vpop.permute.xlu0 %2909  ;;  %2843 = vst.msk [vmem:[#allocation3 + $0x1f0] sm:$0xff] %vm1038_vm6, %v2778_v24  ;;  %v3432_v24 = vld [vmem:[#allocation2 + $0xb2] sm:$0xff] }
 0x47d   :  { %3005 = vst.msk [vmem:[#allocation3 + $0x100] sm:$0xff] %vm1231_vm7, %v2910_v30  ;;  %v3059_v30 = vld [vmem:[#allocation2 + $0x138] sm:$0xff] }
 0x47e   :  { %2945 = vrot.lane.b32.xlu2 %v3437_v6, %s4639_s7 }
 0x480   :  { %v2920_v58 = vpop.permute.xlu2 %2919 }
 0x481   :  { %3497 = vrot.lane.b32.xlu1 %v6914_v42, %s4642_s10  ;;  %3010 = vst.msk [vmem:[#allocation3 + $0x128] sm:$0xff] %vm1231_vm7, %v2920_v58  ;;  %v3440_v42 = vld [vmem:[#allocation2 + $0x112] sm:$0xff] }
 0x482   :  { %2947 = vrot.lane.b32.xlu0 %v3438_v61, %s4639_s7 }
 0x483   :  { %v2912_v22 = vpop.permute.xlu1 %2911 }
 0x484   :  { %v2916_v52 = vpop.permute.xlu0 %2915  ;;  %3006 = vst.msk [vmem:[#allocation3 + $0x108] sm:$0xff] %vm1231_vm7, %v2912_v22  ;;  %v3431_v22 = vld [vmem:[#allocation2 + $0xaa] sm:$0xff] }
 0x485   :  { %3008 = vst.msk [vmem:[#allocation3 + $0x118] sm:$0xff] %vm1231_vm7, %v2916_v52 }
 0x486   :  { %3305 = vrot.lane.b32.xlu2 %v6635_v18, %s4641_s9 }
 0x488   :  { %v2926_v27 = vpop.permute.xlu2 %2925 }
 0x489   :  { %3115 = vrot.lane.b32.xlu1 %v3044_v62, %s4640_s8  ;;  %3013 = vst.msk [vmem:[#allocation3 + $0x140] sm:$0xff] %vm1231_vm7, %v2926_v27 }
 0x48a   :  { %3307 = vrot.lane.b32.xlu0 %v6684_v38, %s4641_s9 }
 0x48b   :  { %v2918_v51 = vpop.permute.xlu1 %2917 }
 0x48c   :  { %v2922_v49 = vpop.permute.xlu0 %2921  ;;  %3009 = vst.msk [vmem:[#allocation3 + $0x120] sm:$0xff] %vm1231_vm7, %v2918_v51  ;;  %v7092_v51 = vld [vmem:[#allocation2 + $0x142] sm:$0xff] }
 0x48d   :  { %3011 = vst.msk [vmem:[#allocation3 + $0x130] sm:$0xff] %vm1231_vm7, %v2922_v49 }
 0x48e   :  { %3521 = vrot.lane.b32.xlu2 %v3439_v39, %s4642_s10 }
 0x490   :  { %v2932_v18 = vpop.permute.xlu2 %2931 }
 0x491   :  { %3331 = vrot.lane.b32.xlu1 %v6801_v53, %s4641_s9  ;;  %3016 = vst.msk [vmem:[#allocation3 + $0x158] sm:$0xff] %vm1231_vm7, %v2932_v18 }
 0x492   :  { %3523 = vrot.lane.b32.xlu0 %v3440_v42, %s4642_s10 }
 0x493   :  { %v2924_v59 = vpop.permute.xlu1 %2923 }
 0x494   :  { %v2928_v38 = vpop.permute.xlu0 %2927  ;;  %3012 = vst.msk [vmem:[#allocation3 + $0x138] sm:$0xff] %vm1231_vm7, %v2924_v59 }
 0x495   :  { %3014 = vst.msk [vmem:[#allocation3 + $0x148] sm:$0xff] %vm1231_vm7, %v2928_v38 }
 0x496   :  { %3139 = vrot.lane.b32.xlu2 %v3056_v12, %s4640_s8 }
 0x498   :  { %v3486_v13 = vpop.permute.xlu2 %3485 }
 0x499   :  { %2949 = vrot.lane.b32.xlu1 %v3439_v39, %s4639_s7 }
 0x49a   :  { %3141 = vrot.lane.b32.xlu0 %v3057_v56, %s4640_s8  ;;  %v3049_v56 = vld [vmem:[#allocation2 + $0xc0] sm:$0xff] }
 0x49b   :  { %v2930_v3 = vpop.permute.xlu1 %2929 }
 0x49c   :  { %v3102_v10 = vpop.permute.xlu0 %3101  ;;  %3015 = vst.msk [vmem:[#allocation3 + $0x150] sm:$0xff] %vm1231_vm7, %v2930_v3 }
 0x49d   :  { %3197 = vst.msk [vmem:[#allocation3 + $0x100] sm:$0xff] %vm1425_vm8, %v3102_v10  ;;  %v3445_v10 = vld [vmem:[#allocation2 + $0x152] sm:$0xff] }
 0x49e   :  { %3499 = vrot.lane.b32.xlu2 %v6887_v8, %s4642_s10 }
 0x4a0   :  { %v3488_v21 = vpop.permute.xlu2 %3487 }
 0x4a1   :  { %3309 = vrot.lane.b32.xlu1 %v6752_v29, %s4641_s9 }
 0x4a2   :  { %3501 = vrot.lane.b32.xlu0 %v6904_v23, %s4642_s10  ;;  %v3441_v23 = vld [vmem:[#allocation2 + $0x122] sm:$0xff] }
 0x4a3   :  { %v3294_v6 = vpop.permute.xlu1 %3293 }
 0x4a4   :  { %v3104_v53 = vpop.permute.xlu0 %3103  ;;  %3389 = vst.msk [vmem:[#allocation3 + $0x100] sm:$0xff] %vm1618_vm9, %v3294_v6 }
 0x4a5   :  { %3198 = vst.msk [vmem:[#allocation3 + $0x108] sm:$0xff] %vm1425_vm8, %v3104_v53  ;;  %v3050_v53 = vld [vmem:[#allocation2 + $0xc8] sm:$0xff] }
 0x4a6   :  { %3581 = vst.msk [vmem:[#allocation3 + $0x100] sm:$0xff] %vm1811_vm10, %v3486_v13  ;;  %3117 = vrot.lane.b32.xlu2 %v3045_v31, %s4640_s8 }
 0x4a8   :  { %v3490_v8 = vpop.permute.xlu2 %3489 }
 0x4a9   :  { %3525 = vrot.lane.b32.xlu1 %v3441_v23, %s4642_s10 }
 0x4aa   :  { %3119 = vrot.lane.b32.xlu0 %v3046_v19, %s4640_s8  ;;  %v3061_v19 = vld [vmem:[#allocation2 + $0x150] sm:$0xff] }
 0x4ab   :  { %v3296_v29 = vpop.permute.xlu1 %3295 }
 0x4ac   :  { %v3106_v26 = vpop.permute.xlu0 %3105  ;;  %3390 = vst.msk [vmem:[#allocation3 + $0x108] sm:$0xff] %vm1618_vm9, %v3296_v29  ;;  %v3062_v29 = vld [vmem:[#allocation2 + $0x158] sm:$0xff] }
 0x4ad   :  { %3199 = vst.msk [vmem:[#allocation3 + $0x110] sm:$0xff] %vm1425_vm8, %v3106_v26  ;;  %v3645_v32 = vld [vmem:[#allocation3 + $0x100] sm:$0xff] }
 0x4ae   :  { %3582 = vst.msk [vmem:[#allocation3 + $0x108] sm:$0xff] %vm1811_vm10, %v3488_v21  ;;  %4560 = vmatmul.msk.f32.vlgmr.msra.gmra.mxu2 %vm3686_vm11, %v3645_v32  ;;  %3333 = vrot.lane.b32.xlu2 %v6845_v28, %s4641_s9 }
 0x4b0   :  { %v3492_v2 = vpop.permute.xlu2 %3491 }
 0x4b1   :  { %3143 = vrot.lane.b32.xlu1 %v3058_v43, %s4640_s8 }
 0x4b2   :  { %3335 = vrot.lane.b32.xlu0 %v6792_v34, %s4641_s9 }
 0x4b3   :  { %v3298_v25 = vpop.permute.xlu1 %3297 }
 0x4b4   :  { %v3108_v0 = vpop.permute.xlu0 %3107  ;;  %3391 = vst.msk [vmem:[#allocation3 + $0x110] sm:$0xff] %vm1618_vm9, %v3298_v25 }
 0x4b5   :  { %3200 = vst.msk [vmem:[#allocation3 + $0x118] sm:$0xff] %vm1425_vm8, %v3108_v0  ;;  %v3646_v63 = vld [vmem:[#allocation3 + $0x108] sm:$0xff] }
 0x4b6   :  { %3583 = vst.msk [vmem:[#allocation3 + $0x110] sm:$0xff] %vm1811_vm10, %v3490_v8  ;;  %4561 = vmatmul.msk.f32.gmra.mxu2 %vm3686_vm11, %v3646_v63  ;;  %2951 = vrot.lane.b32.xlu2 %v3440_v42, %s4639_s7  ;;  %v3048_v42 = vld [vmem:[#allocation2 + $0xb0] sm:$0xff]  ;;  %v3433_v8 = vld [vmem:[#allocation2 + $0xc2] sm:$0xff] }
 0x4b8   :  { %v3134_v28 = vpop.permute.xlu2 %3133 }
 0x4b9   :  { %3503 = vrot.lane.b32.xlu1 %v6924_v44, %s4642_s10 }
 0x4ba   :  { %2953 = vrot.lane.b32.xlu0 %v3441_v23, %s4639_s7 }
 0x4bb   :  { %v3300_v11 = vpop.permute.xlu1 %3299 }
 0x4bc   :  { %v2942_v34 = vpop.permute.xlu0 %2941  ;;  %3392 = vst.msk [vmem:[#allocation3 + $0x118] sm:$0xff] %vm1618_vm9, %v3300_v11 }
 0x4bd   :  { %3021 = vst.msk [vmem:[#allocation3 + $0x180] sm:$0xff] %vm1231_vm7, %v2942_v34  ;;  %v3647_v4 = vld [vmem:[#allocation3 + $0x110] sm:$0xff]  ;;  %v3063_v34 = vld [vmem:[#allocation2 + $0x168] sm:$0xff] }
 0x4be   :  { %3213 = vst.msk [vmem:[#allocation3 + $0x180] sm:$0xff] %vm1425_vm8, %v3134_v28  ;;  %4562 = vmatmul.msk.f32.gmra.mxu2 %vm3686_vm11, %v3647_v4  ;;  %3311 = vrot.lane.b32.xlu2 %v6662_v50, %s4641_s9  ;;  %v3242_v4 = vld [vmem:[#allocation2 + $0xc9] sm:$0xff] }
 0x4bf   :  { %3584 = vst.msk [vmem:[#allocation3 + $0x118] sm:$0xff] %vm1811_vm10, %v3492_v2 }
 0x4c0   :  { %v3494_v44 = vpop.permute.xlu2 %3493 }
 0x4c1   :  { %3121 = vrot.lane.b32.xlu1 %v3047_v55, %s4640_s8 }
 0x4c2   :  { %3313 = vrot.lane.b32.xlu0 %v6723_v54, %s4641_s9  ;;  %v3442_v54 = vld [vmem:[#allocation2 + $0x12a] sm:$0xff] }
 0x4c3   :  { %v3110_v15 = vpop.permute.xlu1 %3109 }
 0x4c4   :  { %v3302_v14 = vpop.permute.xlu0 %3301  ;;  %3201 = vst.msk [vmem:[#allocation3 + $0x120] sm:$0xff] %vm1425_vm8, %v3110_v15 }
 0x4c5   :  { %3393 = vst.msk [vmem:[#allocation3 + $0x120] sm:$0xff] %vm1618_vm9, %v3302_v14 }
 0x4c6   :  { %v3648_v61 = vld [vmem:[#allocation3 + $0x118] sm:$0xff]  ;;  %3585 = vst.msk [vmem:[#allocation3 + $0x120] sm:$0xff] %vm1811_vm10, %v3494_v44  ;;  %3527 = vrot.lane.b32.xlu2 %v3442_v54, %s4642_s10 }
 0x4c7   :  { %4563 = vmatmul.msk.f32.gmra.mxu2 %vm3686_vm11, %v3648_v61 }
 0x4c8   :  { %v3112_v50 = vpop.permute.xlu2 %3111 }
 0x4c9   :  { %3337 = vrot.lane.b32.xlu1 %v6822_v36, %s4641_s9  ;;  %3202 = vst.msk [vmem:[#allocation3 + $0x128] sm:$0xff] %vm1425_vm8, %v3112_v50  ;;  %v3447_v50 = vld [vmem:[#allocation2 + $0x16a] sm:$0xff] }
 0x4ca   :  { %3529 = vrot.lane.b32.xlu0 %v3443_v20, %s4642_s10 }
 0x4cb   :  { %v3326_v1 = vpop.permute.xlu1 %3325 }
 0x4cc   :  { %v3518_v48 = vpop.permute.xlu0 %3517  ;;  %3405 = vst.msk [vmem:[#allocation3 + $0x180] sm:$0xff] %vm1618_vm9, %v3326_v1 }
 0x4cd   :  { %3597 = vst.msk [vmem:[#allocation3 + $0x180] sm:$0xff] %vm1811_vm10, %v3518_v48  ;;  %v3649_v17 = vld [vmem:[#allocation3 + $0x120] sm:$0xff] }
 0x4ce   :  { %3145 = vrot.lane.b32.xlu2 %v3059_v30, %s4640_s8 }
 0x4cf   :  { %4564 = vmatmul.msk.f32.gmra.mxu2 %vm3686_vm11, %v3649_v17 }
 0x4d0   :  { %v3328_v36 = vpop.permute.xlu2 %3327 }
 0x4d1   :  { %2955 = vrot.lane.b32.xlu1 %v3442_v54, %s4639_s7 }
 0x4d2   :  { %3147 = vrot.lane.b32.xlu0 %v3060_v47, %s4640_s8 }
 0x4d3   :  { %v2944_v52 = vpop.permute.xlu1 %2943 }
 0x4d4   :  { %v3136_v7 = vpop.permute.xlu0 %3135  ;;  %3022 = vst.msk [vmem:[#allocation3 + $0x188] sm:$0xff] %vm1231_vm7, %v2944_v52  ;;  %v3661_v58 = vld [vmem:[#allocation3 + $0x180] sm:$0xff] }
 0x4d5   :  { %3214 = vst.msk [vmem:[#allocation3 + $0x188] sm:$0xff] %vm1425_vm8, %v3136_v7  ;;  %4576 = vmatmul.msk.f32.vlgmr.msra.gmra.mxu3 %vm3686_vm11, %v3661_v58  ;;  %v3052_v7 = vld [vmem:[#allocation2 + $0xe0] sm:$0xff]  ;;  %v7171_v52 = vld [vmem:[#allocation2 + $0x172] sm:$0xff] }
 0x4d6   :  { %3406 = vst.msk [vmem:[#allocation3 + $0x188] sm:$0xff] %vm1618_vm9, %v3328_v36  ;;  %3505 = vrot.lane.b32.xlu2 %v3431_v22, %s4642_s10 }
 0x4d8   :  { %v2946_v49 = vpop.permute.xlu2 %2945 }
 0x4d9   :  { %3315 = vrot.lane.b32.xlu1 %v6777_v46, %s4641_s9  ;;  %3023 = vst.msk [vmem:[#allocation3 + $0x190] sm:$0xff] %vm1231_vm7, %v2946_v49 }
 0x4da   :  { %3507 = vrot.lane.b32.xlu0 %v3432_v24, %s4642_s10 }
 0x4db   :  { %v3304_v27 = vpop.permute.xlu1 %3303 }
 0x4dc   :  { %v3496_v62 = vpop.permute.xlu0 %3495  ;;  %3394 = vst.msk [vmem:[#allocation3 + $0x128] sm:$0xff] %vm1618_vm9, %v3304_v27 }
 0x4dd   :  { %3586 = vst.msk [vmem:[#allocation3 + $0x128] sm:$0xff] %vm1811_vm10, %v3496_v62 }
 0x4de   :  { %3123 = vrot.lane.b32.xlu2 %v3048_v42, %s4640_s8 }
 0x4e0   :  { %v3306_v46 = vpop.permute.xlu2 %3305 }
 0x4e1   :  { %3531 = vrot.lane.b32.xlu1 %v7092_v51, %s4642_s10 }
 0x4e2   :  { %2957 = vrot.lane.b32.xlu0 %v3443_v20, %s4639_s7  ;;  %v3446_v20 = vld [vmem:[#allocation2 + $0x15a] sm:$0xff] }
 0x4e3   :  { %v3520_v38 = vpop.permute.xlu1 %3519 }
 0x4e4   :  { %v3114_v39 = vpop.permute.xlu0 %3113  ;;  %3598 = vst.msk [vmem:[#allocation3 + $0x188] sm:$0xff] %vm1811_vm10, %v3520_v38  ;;  %v3650_v18 = vld [vmem:[#allocation3 + $0x128] sm:$0xff] }
 0x4e5   :  { %3203 = vst.msk [vmem:[#allocation3 + $0x130] sm:$0xff] %vm1425_vm8, %v3114_v39  ;;  %4565 = vmatmul.msk.f32.gmra.mxu2 %vm3686_vm11, %v3650_v18  ;;  %v3257_v39 = vld [vmem:[#allocation2 + $0x181] sm:$0xff] }
 0x4e6   :  { %3395 = vst.msk [vmem:[#allocation3 + $0x130] sm:$0xff] %vm1618_vm9, %v3306_v46  ;;  %3339 = vrot.lane.b32.xlu2 %v6857_v41, %s4641_s9 }
 0x4e8   :  { %v3522_v12 = vpop.permute.xlu2 %3521 }
 0x4e9   :  { %3125 = vrot.lane.b32.xlu1 %v3049_v56, %s4640_s8 }
 0x4ea   :  { %3317 = vrot.lane.b32.xlu0 %v6705_v57, %s4641_s9 }
 0x4eb   :  { %v3138_v13 = vpop.permute.xlu1 %3137  ;;  %v3662_v3 = vld [vmem:[#allocation3 + $0x188] sm:$0xff] }
 0x4ec   :  { %v3330_v59 = vpop.permute.xlu0 %3329  ;;  %3215 = vst.msk [vmem:[#allocation3 + $0x190] sm:$0xff] %vm1425_vm8, %v3138_v13  ;;  %4577 = vmatmul.msk.f32.gmra.mxu3 %vm3686_vm11, %v3662_v3  ;;  %v3066_v3 = vld [vmem:[#allocation2 + $0x188] sm:$0xff] }
 0x4ed   :  { %3407 = vst.msk [vmem:[#allocation3 + $0x190] sm:$0xff] %vm1618_vm9, %v3330_v59  ;;  %v3064_v59 = vld [vmem:[#allocation2 + $0x170] sm:$0xff] }
 0x4ee   :  { %3599 = vst.msk [vmem:[#allocation3 + $0x190] sm:$0xff] %vm1811_vm10, %v3522_v12  ;;  %2933 = vrot.lane.b32.xlu2 %v3431_v22, %s4639_s7 }
 0x4f0   :  { %v3140_v41 = vpop.permute.xlu2 %3139 }
 0x4f1   :  { %3341 = vrot.lane.b32.xlu1 %v6813_v45, %s4641_s9 }
 0x4f2   :  { %3533 = vrot.lane.b32.xlu0 %v3445_v10, %s4642_s10 }
 0x4f3   :  { %v3498_v21 = vpop.permute.xlu1 %3497 }
 0x4f4   :  { %v2948_v57 = vpop.permute.xlu0 %2947  ;;  %3587 = vst.msk [vmem:[#allocation3 + $0x130] sm:$0xff] %vm1811_vm10, %v3498_v21 }
 0x4f5   :  { %3024 = vst.msk [vmem:[#allocation3 + $0x198] sm:$0xff] %vm1231_vm7, %v2948_v57  ;;  %v3663_v6 = vld [vmem:[#allocation3 + $0x190] sm:$0xff] }
 0x4f6   :  { %3216 = vst.msk [vmem:[#allocation3 + $0x198] sm:$0xff] %vm1425_vm8, %v3140_v41  ;;  %4578 = vmatmul.msk.f32.gmra.mxu3 %vm3686_vm11, %v3663_v6  ;;  %3149 = vrot.lane.b32.xlu2 %v3061_v19, %s4640_s8  ;;  %v3449_v19 = vld [vmem:[#allocation2 + $0x182] sm:$0xff] }
 0x4f8   :  { %v3500_v23 = vpop.permute.xlu2 %3499 }
 0x4f9   :  { %2935 = vrot.lane.b32.xlu1 %v3432_v24, %s4639_s7 }
 0x4fa   :  { %3127 = vrot.lane.b32.xlu0 %v3050_v53, %s4640_s8 }
 0x4fb   :  { %v3116_v45 = vpop.permute.xlu1 %3115  ;;  %v3651_v26 = vld [vmem:[#allocation3 + $0x130] sm:$0xff] }
 0x4fc   :  { %v3308_v31 = vpop.permute.xlu0 %3307  ;;  %3204 = vst.msk [vmem:[#allocation3 + $0x138] sm:$0xff] %vm1425_vm8, %v3116_v45  ;;  %4566 = vmatmul.msk.f32.gmra.mxu2 %vm3686_vm11, %v3651_v26 }
 0x4fd   :  { %3396 = vst.msk [vmem:[#allocation3 + $0x138] sm:$0xff] %vm1618_vm9, %v3308_v31 }
 0x4fe   :  { %3588 = vst.msk [vmem:[#allocation3 + $0x138] sm:$0xff] %vm1811_vm10, %v3500_v23  ;;  %3509 = vrot.lane.b32.xlu2 %v3433_v8, %s4642_s10 }
 0x500   :  { %v3118_v43 = vpop.permute.xlu2 %3117 }
 0x501   :  { %3151 = vrot.lane.b32.xlu1 %v3062_v29, %s4640_s8  ;;  %3205 = vst.msk [vmem:[#allocation3 + $0x140] sm:$0xff] %vm1425_vm8, %v3118_v43 }
 0x502   :  { %3343 = vrot.lane.b32.xlu0 %v6847_v40, %s4641_s9  ;;  %v7134_v40 = vld [vmem:[#allocation2 + $0xca] sm:$0xff] }
 0x503   :  { %v3332_v0 = vpop.permute.xlu1 %3331 }
 0x504   :  { %v3524_v32 = vpop.permute.xlu0 %3523  ;;  %3408 = vst.msk [vmem:[#allocation3 + $0x198] sm:$0xff] %vm1618_vm9, %v3332_v0 }
 0x505   :  { %3600 = vst.msk [vmem:[#allocation3 + $0x198] sm:$0xff] %vm1811_vm10, %v3524_v32  ;;  %v3652_v2 = vld [vmem:[#allocation3 + $0x138] sm:$0xff] }
 0x506   :  { %4567 = vmatmul.msk.f32.gmra.mxu2 %vm3686_vm11, %v3652_v2  ;;  %2959 = vrot.lane.b32.xlu2 %v7092_v51, %s4639_s7  ;;  %v3258_v2 = vld [vmem:[#allocation2 + $0x189] sm:$0xff] }
 0x508   :  { %v3334_v63 = vpop.permute.xlu2 %3333 }
 0x509   :  { %3511 = vrot.lane.b32.xlu1 %v7134_v40, %s4642_s10 }
 0x50a   :  { %2937 = vrot.lane.b32.xlu0 %v3433_v8, %s4639_s7 }
 0x50b   :  { %v2950_v28 = vpop.permute.xlu1 %2949 }
 0x50c   :  { %v3142_v25 = vpop.permute.xlu0 %3141  ;;  %3025 = vst.msk [vmem:[#allocation3 + $0x1a0] sm:$0xff] %vm1231_vm7, %v2950_v28  ;;  %v3664_v11 = vld [vmem:[#allocation3 + $0x198] sm:$0xff] }
 0x50d   :  { %3217 = vst.msk [vmem:[#allocation3 + $0x1a0] sm:$0xff] %vm1425_vm8, %v3142_v25  ;;  %4579 = vmatmul.msk.f32.gmra.mxu3 %vm3686_vm11, %v3664_v11 }
 0x50e   :  { %3409 = vst.msk [vmem:[#allocation3 + $0x1a0] sm:$0xff] %vm1618_vm9, %v3334_v63  ;;  %3319 = vrot.lane.b32.xlu2 %v3242_v4, %s4641_s9  ;;  %v3451_v4 = vld [vmem:[#allocation2 + $0x19a] sm:$0xff] }
 0x510   :  { %v2952_v14 = vpop.permute.xlu2 %2951 }
 0x511   :  { %2961 = vrot.lane.b32.xlu1 %v3445_v10, %s4639_s7  ;;  %3026 = vst.msk [vmem:[#allocation3 + $0x1a8] sm:$0xff] %vm1231_vm7, %v2952_v14 }
 0x512   :  { %3153 = vrot.lane.b32.xlu0 %v3063_v34, %s4640_s8 }
 0x513   :  { %v3310_v44 = vpop.permute.xlu1 %3309 }
 0x514   :  { %v3502_v55 = vpop.permute.xlu0 %3501  ;;  %3397 = vst.msk [vmem:[#allocation3 + $0x140] sm:$0xff] %vm1618_vm9, %v3310_v44 }
 0x515   :  { %3589 = vst.msk [vmem:[#allocation3 + $0x140] sm:$0xff] %vm1811_vm10, %v3502_v55 }
 0x516   :  { %3535 = vrot.lane.b32.xlu2 %v3446_v20, %s4642_s10 }
 0x518   :  { %v3312_v61 = vpop.permute.xlu2 %3311 }
 0x519   :  { %3321 = vrot.lane.b32.xlu1 %v6799_v35, %s4641_s9  ;;  %v3244_v35 = vld [vmem:[#allocation2 + $0xe1] sm:$0xff] }
 0x51a   :  { %3513 = vrot.lane.b32.xlu0 %v6938_v9, %s4642_s10  ;;  %v3051_v9 = vld [vmem:[#allocation2 + $0xd8] sm:$0xff] }
 0x51b   :  { %v3526_v54 = vpop.permute.xlu1 %3525 }
 0x51c   :  { %v3120_v15 = vpop.permute.xlu0 %3119  ;;  %3601 = vst.msk [vmem:[#allocation3 + $0x1a0] sm:$0xff] %vm1811_vm10, %v3526_v54  ;;  %v3653_v48 = vld [vmem:[#allocation3 + $0x140] sm:$0xff] }
 0x51d   :  { %3206 = vst.msk [vmem:[#allocation3 + $0x148] sm:$0xff] %vm1425_vm8, %v3120_v15  ;;  %4568 = vmatmul.msk.f32.gmra.mxu2 %vm3686_vm11, %v3653_v48 }
 0x51e   :  { %3398 = vst.msk [vmem:[#allocation3 + $0x148] sm:$0xff] %vm1618_vm9, %v3312_v61  ;;  %3129 = vrot.lane.b32.xlu2 %v3051_v9, %s4640_s8 }
 0x520   :  { %v3528_v1 = vpop.permute.xlu2 %3527 }
 0x521   :  { %3537 = vrot.lane.b32.xlu1 %v3447_v50, %s4642_s10 }
 0x522   :  { %2963 = vrot.lane.b32.xlu0 %v3446_v20, %s4639_s7  ;;  %v3067_v20 = vld [vmem:[#allocation2 + $0x198] sm:$0xff] }
 0x523   :  { %v3144_v17 = vpop.permute.xlu1 %3143  ;;  %v3665_v30 = vld [vmem:[#allocation3 + $0x1a0] sm:$0xff] }
 0x524   :  { %v3336_v47 = vpop.permute.xlu0 %3335  ;;  %3218 = vst.msk [vmem:[#allocation3 + $0x1a8] sm:$0xff] %vm1425_vm8, %v3144_v17  ;;  %4580 = vmatmul.msk.f32.gmra.mxu3 %vm3686_vm11, %v3665_v30 }
 0x525   :  { %3410 = vst.msk [vmem:[#allocation3 + $0x1a8] sm:$0xff] %vm1618_vm9, %v3336_v47 }
 0x526   :  { %3602 = vst.msk [vmem:[#allocation3 + $0x1a8] sm:$0xff] %vm1811_vm10, %v3528_v1  ;;  %3345 = vrot.lane.b32.xlu2 %v6869_v5, %s4641_s9 }
 0x528   :  { %v3146_v24 = vpop.permute.xlu2 %3145 }
 0x529   :  { %3131 = vrot.lane.b32.xlu1 %v3052_v7, %s4640_s8  ;;  %v2876_v7 = vld [vmem:[#allocation2 + $0x18a] sm:$0xff] }
 0x52a   :  { %3323 = vrot.lane.b32.xlu0 %v3244_v35, %s4641_s9 }
 0x52b   :  { %v3504_v58 = vpop.permute.xlu1 %3503 }
 0x52c   :  { %v2954_v36 = vpop.permute.xlu0 %2953  ;;  %3590 = vst.msk [vmem:[#allocation3 + $0x148] sm:$0xff] %vm1811_vm10, %v3504_v58 }
 0x52d   :  { %3027 = vst.msk [vmem:[#allocation3 + $0x1b0] sm:$0xff] %vm1231_vm7, %v2954_v36  ;;  %v3666_v22 = vld [vmem:[#allocation3 + $0x1a8] sm:$0xff] }
 0x52e   :  { %3219 = vst.msk [vmem:[#allocation3 + $0x1b0] sm:$0xff] %vm1425_vm8, %v3146_v24  ;;  %4581 = vmatmul.msk.f32.gmra.mxu3 %vm3686_vm11, %v3666_v22  ;;  %2939 = vrot.lane.b32.xlu2 %v7134_v40, %s4639_s7 }
 0x530   :  { %v3506_v51 = vpop.permute.xlu2 %3505 }
 0x531   :  { %v3992_v5 = vpop.f32.mrf.mxu2  ;;  %3347 = vrot.lane.b32.xlu1 %v6834_v37, %s4641_s9 }
 0x532   :  { %3539 = vrot.lane.b32.xlu0 %v7171_v52, %s4642_s10  ;;  %4120 = vst.msk [vmem:[%s7551_s4 + $0x100] sm:$0xff] %vm20_vm0, %v3992_v5  ;;  %v4215_v49 = vsel %vm20_vm0, %v3992_v5, 0.0  ;;  %v4318_v27 = vmul.f32 %v3992_v5, %v3992_v5  ;;  %v3452_v5 = vld [vmem:[#allocation2 + $0x1a2] sm:$0xff] }
 0x533   :  { %v4216_v42 = vadd.f32 %v4215_v49, %v6836_v33  ;;  %v3122_v38 = vpop.permute.xlu1 %3121  ;;  %v3654_v18 = vld [vmem:[#allocation3 + $0x148] sm:$0xff] }
 0x534   :  { %v3314_v62 = vpop.permute.xlu0 %3313  ;;  %v4413_v46 = vsel %vm20_vm0, %v4318_v27, 0.0  ;;  %3207 = vst.msk [vmem:[#allocation3 + $0x150] sm:$0xff] %vm1425_vm8, %v3122_v38  ;;  %4569 = vmatmul.msk.f32.gmra.mxu2 %vm3686_vm11, %v3654_v18 }
 0x535   :  { %v4414_v56 = vadd.f32 %v4413_v46, %v6841_v60  ;;  %3399 = vst.msk [vmem:[#allocation3 + $0x150] sm:$0xff] %vm1618_vm9, %v3314_v62  ;;  %v3259_v62 = vld [vmem:[#allocation2 + $0x199] sm:$0xff] }
 0x536   :  { %3591 = vst.msk [vmem:[#allocation3 + $0x150] sm:$0xff] %vm1811_vm10, %v3506_v51  ;;  %3155 = vrot.lane.b32.xlu2 %v3064_v59, %s4640_s8 }
 0x538   :  { %v3124_v13 = vpop.permute.xlu2 %3123 }
 0x539   :  { %v3995_v33 = vpop.f32.mrf.mxu2  ;;  %2965 = vrot.lane.b32.xlu1 %v3447_v50, %s4639_s7  ;;  %3208 = vst.msk [vmem:[#allocation3 + $0x158] sm:$0xff] %vm1425_vm8, %v3124_v13  ;;  %v3260_v50 = vld [vmem:[#allocation2 + $0x1a1] sm:$0xff] }
 0x53a   :  { %3349 = vrot.lane.b32.xlu0 %v3257_v39, %s4641_s9  ;;  %4121 = vst.msk [vmem:[%s7551_s4 + $0x108] sm:$0xff] %vm20_vm0, %v3995_v33  ;;  %v4217_v60 = vsel %vm20_vm0, %v3995_v33, 0.0  ;;  %v4319_v12 = vmul.f32 %v3995_v33, %v3995_v33  ;;  %v3068_v39 = vld [vmem:[#allocation2 + $0x1a0] sm:$0xff] }
 0x53b   :  { %v4218_v10 = vadd.f32 %v4217_v60, %v4216_v42  ;;  %v3338_v41 = vpop.permute.xlu1 %3337 }
 0x53c   :  { %v3530_v37 = vpop.permute.xlu0 %3529  ;;  %v4415_v57 = vsel %vm20_vm0, %v4319_v12, 0.0  ;;  %3411 = vst.msk [vmem:[#allocation3 + $0x1b0] sm:$0xff] %vm1618_vm9, %v3338_v41 }
 0x53d   :  { %v4416_v53 = vadd.f32 %v4415_v57, %v4414_v56  ;;  %3603 = vst.msk [vmem:[#allocation3 + $0x1b0] sm:$0xff] %vm1811_vm10, %v3530_v37  ;;  %v3655_v21 = vld [vmem:[#allocation3 + $0x150] sm:$0xff] }
 0x53e   :  { %4570 = vmatmul.msk.f32.gmra.mxu2 %vm3686_vm11, %v3655_v21  ;;  %3515 = vrot.lane.b32.xlu2 %v6968_v16, %s4642_s10  ;;  %v3065_v16 = vld [vmem:[#allocation2 + $0x180] sm:$0xff] }
 0x540   :  { %v3340_v8 = vpop.permute.xlu2 %3339 }
 0x541   :  { %v3998_v31 = vpop.f32.mrf.mxu2  ;;  %3541 = vrot.lane.b32.xlu1 %v3449_v19, %s4642_s10 }
 0x542   :  { %3159 = vrot.lane.b32.xlu0 %v3066_v3, %s4640_s8  ;;  %4122 = vst.msk [vmem:[%s7551_s4 + $0x110] sm:$0xff] %vm20_vm0, %v3998_v31  ;;  %v4219_v23 = vsel %vm20_vm0, %v3998_v31, 0.0  ;;  %v4320_v45 = vmul.f32 %v3998_v31, %v3998_v31 }
 0x543   :  { %v4220_v26 = vadd.f32 %v4219_v23, %v4218_v10  ;;  %v2956_v32 = vpop.permute.xlu1 %2955 }
 0x544   :  { %v3148_v6 = vpop.permute.xlu0 %3147  ;;  %v4417_v29 = vsel %vm20_vm0, %v4320_v45, 0.0  ;;  %3028 = vst.msk [vmem:[#allocation3 + $0x1b8] sm:$0xff] %vm1231_vm7, %v2956_v32  ;;  %v3667_v0 = vld [vmem:[#allocation3 + $0x1b0] sm:$0xff] }
 0x545   :  { %v4418_v43 = vadd.f32 %v4417_v29, %v4416_v53  ;;  %3220 = vst.msk [vmem:[#allocation3 + $0x1b8] sm:$0xff] %vm1425_vm8, %v3148_v6  ;;  %4582 = vmatmul.msk.f32.gmra.mxu3 %vm3686_vm11, %v3667_v0 }
 0x546   :  { %3412 = vst.msk [vmem:[#allocation3 + $0x1b8] sm:$0xff] %vm1618_vm9, %v3340_v8  ;;  %3157 = vrot.lane.b32.xlu2 %v3065_v16, %s4640_s8 }
 0x548   :  { %v2934_v11 = vpop.permute.xlu2 %2933 }
 0x549   :  { %3351 = vrot.lane.b32.xlu1 %v3258_v2, %s4641_s9  ;;  %3017 = vst.msk [vmem:[#allocation3 + $0x160] sm:$0xff] %vm1231_vm7, %v2934_v11 }
 0x54a   :  { %2969 = vrot.lane.b32.xlu0 %v3449_v19, %s4639_s7  ;;  %v4001_v25 = vpop.f32.mrf.mxu2 }
 0x54b   :  { %4123 = vst.msk [vmem:[%s7551_s4 + $0x118] sm:$0xff] %vm20_vm0, %v4001_v25  ;;  %v4221_v63 = vsel %vm20_vm0, %v4001_v25, 0.0  ;;  %v4321_v34 = vmul.f32 %v4001_v25, %v4001_v25  ;;  %v3316_v14 = vpop.permute.xlu1 %3315 }
 0x54c   :  { %v3508_v40 = vpop.permute.xlu0 %3507  ;;  %v4222_v28 = vadd.f32 %v4221_v63, %v4220_v26  ;;  %3400 = vst.msk [vmem:[#allocation3 + $0x158] sm:$0xff] %vm1618_vm9, %v3316_v14 }
 0x54d   :  { %v4419_v55 = vsel %vm20_vm0, %v4321_v34, 0.0  ;;  %3592 = vst.msk [vmem:[#allocation3 + $0x158] sm:$0xff] %vm1811_vm10, %v3508_v40 }
 0x54e   :  { %v4420_v44 = vadd.f32 %v4419_v55, %v4418_v43  ;;  %2967 = vrot.lane.b32.xlu2 %v7171_v52, %s4639_s7 }
 0x550   :  { %v3150_v9 = vpop.permute.xlu2 %3149 }
 0x551   :  { %3161 = vrot.lane.b32.xlu1 %v3067_v20, %s4640_s8 }
 0x552   :  { %3545 = vrot.lane.b32.xlu0 %v3451_v4, %s4642_s10  ;;  %v4004_v61 = vpop.f32.mrf.mxu2 }
 0x553   :  { %4124 = vst.msk [vmem:[%s7551_s4 + $0x120] sm:$0xff] %vm20_vm0, %v4004_v61  ;;  %v4223_v54 = vsel %vm20_vm0, %v4004_v61, 0.0  ;;  %v4322_v48 = vmul.f32 %v4004_v61, %v4004_v61  ;;  %v3532_v1 = vpop.permute.xlu1 %3531 }
 0x554   :  { %v2958_v15 = vpop.permute.xlu0 %2957  ;;  %v4224_v47 = vadd.f32 %v4223_v54, %v4222_v28  ;;  %3604 = vst.msk [vmem:[#allocation3 + $0x1b8] sm:$0xff] %vm1811_vm10, %v3532_v1  ;;  %v3656_v17 = vld [vmem:[#allocation3 + $0x158] sm:$0xff] }
 0x555   :  { %3029 = vst.msk [vmem:[#allocation3 + $0x1c0] sm:$0xff] %vm1231_vm7, %v2958_v15  ;;  %v4421_v35 = vsel %vm20_vm0, %v4322_v48, 0.0  ;;  %4571 = vmatmul.msk.f32.gmra.mxu2 %vm3686_vm11, %v3656_v17 }
 0x556   :  { %3221 = vst.msk [vmem:[#allocation3 + $0x1c0] sm:$0xff] %vm1425_vm8, %v3150_v9  ;;  %v4422_v30 = vadd.f32 %v4421_v35, %v4420_v44  ;;  %3543 = vrot.lane.b32.xlu2 %v2876_v7, %s4642_s10 }
 0x558   :  { %v7248_v24 = vpop.f32.mrf.mxu3  ;;  %v3510_v52 = vpop.permute.xlu2 %3509 }
 0x559   :  { %2971 = vrot.lane.b32.xlu1 %v2876_v7, %s4639_s7  ;;  %4136 = vst.msk [vmem:[%s7551_s4 + $0x180] sm:$0xff] %vm20_vm0, %v7248_v24 }
 0x55a   :  { %3355 = vrot.lane.b32.xlu0 %v3260_v50, %s4641_s9 }
 0x55b   :  { %v3126_v58 = vpop.permute.xlu1 %3125  ;;  %v3668_v22 = vld [vmem:[#allocation3 + $0x1b8] sm:$0xff] }
 0x55c   :  { %v3318_v36 = vpop.permute.xlu0 %3317  ;;  %3209 = vst.msk [vmem:[#allocation3 + $0x160] sm:$0xff] %vm1425_vm8, %v3126_v58  ;;  %4583 = vmatmul.msk.f32.gmra.mxu3 %vm3686_vm11, %v3668_v22 }
 0x55d   :  { %3401 = vst.msk [vmem:[#allocation3 + $0x160] sm:$0xff] %vm1618_vm9, %v3318_v36 }
 0x55e   :  { %3593 = vst.msk [vmem:[#allocation3 + $0x160] sm:$0xff] %vm1811_vm10, %v3510_v52  ;;  %3353 = vrot.lane.b32.xlu2 %v3259_v62, %s4641_s9 }
 0x560   :  { %v2960_v27 = vpop.permute.xlu2 %2959 }
 0x561   :  { %3547 = vrot.lane.b32.xlu1 %v3452_v5, %s4642_s10  ;;  %3030 = vst.msk [vmem:[#allocation3 + $0x1c8] sm:$0xff] %vm1231_vm7, %v2960_v27 }
 0x563   :  { %v3342_v42 = vpop.permute.xlu1 %3341 }
 0x564   :  { %v3534_v49 = vpop.permute.xlu0 %3533  ;;  %3413 = vst.msk [vmem:[#allocation3 + $0x1c0] sm:$0xff] %vm1618_vm9, %v3342_v42 }
 0x565   :  { %3605 = vst.msk [vmem:[#allocation3 + $0x1c0] sm:$0xff] %vm1811_vm10, %v3534_v49  ;;  %v3657_v51 = vld [vmem:[#allocation3 + $0x160] sm:$0xff] }
 0x566   :  { %4572 = vmatmul.msk.f32.gmra.mxu2 %vm3686_vm11, %v3657_v51  ;;  %3163 = vrot.lane.b32.xlu2 %v3068_v39, %s4640_s8 }
 0x568   :  { %v4007_v38 = vpop.f32.mrf.mxu2  ;;  %v3320_v37 = vpop.permute.xlu2 %3319 }
 0x569   :  { %4125 = vst.msk [vmem:[%s7551_s4 + $0x128] sm:$0xff] %vm20_vm0, %v4007_v38  ;;  %v4225_v18 = vsel %vm20_vm0, %v4007_v38, 0.0  ;;  %v4323_v56 = vmul.f32 %v4007_v38, %v4007_v38 }
 0x56a   :  { %v4226_v59 = vadd.f32 %v4225_v18, %v4224_v47 }
 0x56b   :  { %v4423_v33 = vsel %vm20_vm0, %v4323_v56, 0.0  ;;  %v2936_v60 = vpop.permute.xlu1 %2935 }
 0x56c   :  { %v3128_v46 = vpop.permute.xlu0 %3127  ;;  %v4424_v12 = vadd.f32 %v4423_v33, %v4422_v30  ;;  %3018 = vst.msk [vmem:[#allocation3 + $0x168] sm:$0xff] %vm1231_vm7, %v2936_v60  ;;  %v3669_v10 = vld [vmem:[#allocation3 + $0x1c0] sm:$0xff] }
 0x56d   :  { %3210 = vst.msk [vmem:[#allocation3 + $0x168] sm:$0xff] %vm1425_vm8, %v3128_v46  ;;  %4584 = vmatmul.msk.f32.gmra.mxu3 %vm3686_vm11, %v3669_v10 }
 0x56e   :  { %3402 = vst.msk [vmem:[#allocation3 + $0x168] sm:$0xff] %vm1618_vm9, %v3320_v37 }
 0x56f   :  { %v7278_v13 = vpop.f32.mrf.mxu3 }
 0x570   :  { %4137 = vst.msk [vmem:[%s7551_s4 + $0x188] sm:$0xff] %vm20_vm0, %v7278_v13  ;;  %v3536_v57 = vpop.permute.xlu2 %3535 }
 0x573   :  { %v3152_v41 = vpop.permute.xlu1 %3151 }
 0x574   :  { %v3344_v3 = vpop.permute.xlu0 %3343  ;;  %3222 = vst.msk [vmem:[#allocation3 + $0x1c8] sm:$0xff] %vm1425_vm8, %v3152_v41 }
 0x575   :  { %3414 = vst.msk [vmem:[#allocation3 + $0x1c8] sm:$0xff] %vm1618_vm9, %v3344_v3 }
 0x576   :  { %3606 = vst.msk [vmem:[#allocation3 + $0x1c8] sm:$0xff] %vm1811_vm10, %v3536_v57 }
 0x578   :  { %v3130_v19 = vpop.permute.xlu2 %3129 }
 0x579   :  { %v7289_v21 = vpop.f32.mrf.mxu3 }
 0x57a   :  { %4138 = vst.msk [vmem:[%s7551_s4 + $0x190] sm:$0xff] %vm20_vm0, %v7289_v21 }
 0x57b   :  { %v3512_v6 = vpop.permute.xlu1 %3511 }
 0x57c   :  { %v2938_v53 = vpop.permute.xlu0 %2937  ;;  %3594 = vst.msk [vmem:[#allocation3 + $0x168] sm:$0xff] %vm1811_vm10, %v3512_v6 }
 0x57d   :  { %3019 = vst.msk [vmem:[#allocation3 + $0x170] sm:$0xff] %vm1231_vm7, %v2938_v53  ;;  %v3670_v31 = vld [vmem:[#allocation3 + $0x1c8] sm:$0xff] }
 0x57e   :  { %3211 = vst.msk [vmem:[#allocation3 + $0x170] sm:$0xff] %vm1425_vm8, %v3130_v19  ;;  %4585 = vmatmul.msk.f32.gmra.mxu3 %vm3686_vm11, %v3670_v31 }
 0x57f   :  { %v4010_v23 = vpop.f32.mrf.mxu2 }
 0x580   :  { %4126 = vst.msk [vmem:[%s7551_s4 + $0x130] sm:$0xff] %vm20_vm0, %v4010_v23  ;;  %v4227_v26 = vsel %vm20_vm0, %v4010_v23, 0.0  ;;  %v4324_v8 = vmul.f32 %v4010_v23, %v4010_v23  ;;  %v3346_v43 = vpop.permute.xlu2 %3345 }
 0x581   :  { %v4228_v29 = vadd.f32 %v4227_v26, %v4226_v59 }
 0x582   :  { %v4425_v32 = vsel %vm20_vm0, %v4324_v8, 0.0 }
 0x583   :  { %v4426_v0 = vadd.f32 %v4425_v32, %v4424_v12  ;;  %v2962_v16 = vpop.permute.xlu1 %2961  ;;  %v3658_v2 = vld [vmem:[#allocation3 + $0x168] sm:$0xff] }
 0x584   :  { %v3154_v45 = vpop.permute.xlu0 %3153  ;;  %3031 = vst.msk [vmem:[#allocation3 + $0x1d0] sm:$0xff] %vm1231_vm7, %v2962_v16  ;;  %4573 = vmatmul.msk.f32.gmra.mxu2 %vm3686_vm11, %v3658_v2 }
 0x585   :  { %3223 = vst.msk [vmem:[#allocation3 + $0x1d0] sm:$0xff] %vm1425_vm8, %v3154_v45 }
 0x586   :  { %3415 = vst.msk [vmem:[#allocation3 + $0x1d0] sm:$0xff] %vm1618_vm9, %v3346_v43 }
 0x588   :  { %v2940_v28 = vpop.permute.xlu2 %2939 }
 0x589   :  { %v4013_v25 = vpop.f32.mrf.mxu2  ;;  %3020 = vst.msk [vmem:[#allocation3 + $0x178] sm:$0xff] %vm1231_vm7, %v2940_v28 }
 0x58a   :  { %4127 = vst.msk [vmem:[%s7551_s4 + $0x138] sm:$0xff] %vm20_vm0, %v4013_v25  ;;  %v4229_v63 = vsel %vm20_vm0, %v4013_v25, 0.0  ;;  %v4325_v34 = vmul.f32 %v4013_v25, %v4013_v25 }
 0x58b   :  { %v4230_v11 = vadd.f32 %v4229_v63, %v4228_v29  ;;  %v3322_v4 = vpop.permute.xlu1 %3321 }
 0x58c   :  { %v3514_v40 = vpop.permute.xlu0 %3513  ;;  %v4427_v55 = vsel %vm20_vm0, %v4325_v34, 0.0  ;;  %3403 = vst.msk [vmem:[#allocation3 + $0x170] sm:$0xff] %vm1618_vm9, %v3322_v4 }
 0x58d   :  { %v4428_v14 = vadd.f32 %v4427_v55, %v4426_v0  ;;  %3595 = vst.msk [vmem:[#allocation3 + $0x170] sm:$0xff] %vm1811_vm10, %v3514_v40 }
 0x590   :  { %v7319_v20 = vpop.f32.mrf.mxu3  ;;  %v3156_v15 = vpop.permute.xlu2 %3155 }
 0x591   :  { %4139 = vst.msk [vmem:[%s7551_s4 + $0x198] sm:$0xff] %vm20_vm0, %v7319_v20 }
 0x593   :  { %v3538_v61 = vpop.permute.xlu1 %3537 }
 0x594   :  { %v2964_v44 = vpop.permute.xlu0 %2963  ;;  %3607 = vst.msk [vmem:[#allocation3 + $0x1d0] sm:$0xff] %vm1811_vm10, %v3538_v61  ;;  %v3659_v54 = vld [vmem:[#allocation3 + $0x170] sm:$0xff] }
 0x595   :  { %3032 = vst.msk [vmem:[#allocation3 + $0x1d8] sm:$0xff] %vm1231_vm7, %v2964_v44  ;;  %4574 = vmatmul.msk.f32.gmra.mxu2 %vm3686_vm11, %v3659_v54 }
 0x596   :  { %3224 = vst.msk [vmem:[#allocation3 + $0x1d8] sm:$0xff] %vm1425_vm8, %v3156_v15 }
 0x598   :  { %v3516_v9 = vpop.permute.xlu2 %3515 }
 0x59b   :  { %v3132_v50 = vpop.permute.xlu1 %3131  ;;  %v3671_v47 = vld [vmem:[#allocation3 + $0x1d0] sm:$0xff] }
 0x59c   :  { %v3324_v48 = vpop.permute.xlu0 %3323  ;;  %3212 = vst.msk [vmem:[#allocation3 + $0x178] sm:$0xff] %vm1425_vm8, %v3132_v50  ;;  %4586 = vmatmul.msk.f32.gmra.mxu3 %vm3686_vm11, %v3671_v47 }
 0x59d   :  { %3404 = vst.msk [vmem:[#allocation3 + $0x178] sm:$0xff] %vm1618_vm9, %v3324_v48 }
 0x59e   :  { %3596 = vst.msk [vmem:[#allocation3 + $0x178] sm:$0xff] %vm1811_vm10, %v3516_v9 }
 0x5a0   :  { %v4016_v35 = vpop.f32.mrf.mxu2  ;;  %v3158_v36 = vpop.permute.xlu2 %3157 }
 0x5a1   :  { %4128 = vst.msk [vmem:[%s7551_s4 + $0x140] sm:$0xff] %vm20_vm0, %v4016_v35  ;;  %v4231_v17 = vsel %vm20_vm0, %v4016_v35, 0.0  ;;  %v4326_v30 = vmul.f32 %v4016_v35, %v4016_v35 }
 0x5a2   :  { %v4232_v7 = vadd.f32 %v4231_v17, %v4230_v11 }
 0x5a3   :  { %v4429_v52 = vsel %vm20_vm0, %v4326_v30, 0.0  ;;  %v3348_v58 = vpop.permute.xlu1 %3347 }
 0x5a4   :  { %v3540_v1 = vpop.permute.xlu0 %3539  ;;  %v4430_v22 = vadd.f32 %v4429_v52, %v4428_v14  ;;  %3416 = vst.msk [vmem:[#allocation3 + $0x1d8] sm:$0xff] %vm1618_vm9, %v3348_v58 }
 0x5a5   :  { %3608 = vst.msk [vmem:[#allocation3 + $0x1d8] sm:$0xff] %vm1811_vm10, %v3540_v1  ;;  %v3660_v62 = vld [vmem:[#allocation3 + $0x178] sm:$0xff] }
 0x5a6   :  { %4575 = vmatmul.msk.f32.gmra.mxu2 %vm3686_vm11, %v3660_v62 }
 0x5a7   :  { %v7342_v5 = vpop.f32.mrf.mxu3 }
 0x5a8   :  { %4140 = vst.msk [vmem:[%s7551_s4 + $0x1a0] sm:$0xff] %vm20_vm0, %v7342_v5  ;;  %v2968_v27 = vpop.permute.xlu2 %2967 }
 0x5a9   :  { %3034 = vst.msk [vmem:[#allocation3 + $0x1e8] sm:$0xff] %vm1231_vm7, %v2968_v27 }
 0x5ab   :  { %v2966_v42 = vpop.permute.xlu1 %2965 }
 0x5ac   :  { %v3350_v49 = vpop.permute.xlu0 %3349  ;;  %3033 = vst.msk [vmem:[#allocation3 + $0x1e0] sm:$0xff] %vm1231_vm7, %v2966_v42  ;;  %v3672_v51 = vld [vmem:[#allocation3 + $0x1d8] sm:$0xff] }
 0x5ad   :  { %3225 = vst.msk [vmem:[#allocation3 + $0x1e0] sm:$0xff] %vm1425_vm8, %v3158_v36  ;;  %4587 = vmatmul.msk.f32.gmra.mxu3 %vm3686_vm11, %v3672_v51  ;;  %v4334_v51 = vmul.f32 %v7248_v24, %v7248_v24 }
 0x5ae   :  { %3417 = vst.msk [vmem:[#allocation3 + $0x1e0] sm:$0xff] %vm1618_vm9, %v3350_v49 }
 0x5b0   :  { %v3544_v37 = vpop.permute.xlu2 %3543 }
 0x5b1   :  { %v7355_v46 = vpop.f32.mrf.mxu3 }
 0x5b2   :  { %4141 = vst.msk [vmem:[%s7551_s4 + $0x1a8] sm:$0xff] %vm20_vm0, %v7355_v46 }
 0x5b3   :  { %v3542_v38 = vpop.permute.xlu1 %3541 }
 0x5b4   :  { %v3160_v39 = vpop.permute.xlu0 %3159  ;;  %3609 = vst.msk [vmem:[#allocation3 + $0x1e0] sm:$0xff] %vm1811_vm10, %v3542_v38 }
 0x5b5   :  { %3226 = vst.msk [vmem:[#allocation3 + $0x1e8] sm:$0xff] %vm1425_vm8, %v3160_v39 }
 0x5b7   :  { %v4019_v18 = vpop.f32.mrf.mxu2 }
 0x5b8   :  { %4129 = vst.msk [vmem:[%s7551_s4 + $0x148] sm:$0xff] %vm20_vm0, %v4019_v18  ;;  %v4233_v56 = vsel %vm20_vm0, %v4019_v18, 0.0  ;;  %v4327_v59 = vmul.f32 %v4019_v18, %v4019_v18  ;;  %v3354_v6 = vpop.permute.xlu2 %3353 }
 0x5b9   :  { %v4234_v60 = vadd.f32 %v4233_v56, %v4232_v7 }
 0x5ba   :  { %v4431_v12 = vsel %vm20_vm0, %v4327_v59, 0.0  ;;  %v4247_v59 = vsel %vm20_vm0, %v7248_v24, 0.0  ;;  %v4251_v24 = vsel %vm20_vm0, %v7289_v21, 0.0 }
 0x5bb   :  { %v4432_v10 = vadd.f32 %v4431_v12, %v4430_v22  ;;  %v3352_v3 = vpop.permute.xlu1 %3351  ;;  %v3673_v57 = vld [vmem:[#allocation3 + $0x1e0] sm:$0xff] }
 0x5bc   :  { %v2970_v33 = vpop.permute.xlu0 %2969  ;;  %3418 = vst.msk [vmem:[#allocation3 + $0x1e8] sm:$0xff] %vm1618_vm9, %v3352_v3  ;;  %4588 = vmatmul.msk.f32.gmra.mxu3 %vm3686_vm11, %v3673_v57  ;;  %v4249_v3 = vsel %vm20_vm0, %v7278_v13, 0.0  ;;  %v4336_v57 = vmul.f32 %v7289_v21, %v7289_v21 }
 0x5bd   :  { %3035 = vst.msk [vmem:[#allocation3 + $0x1f0] sm:$0xff] %vm1231_vm7, %v2970_v33 }
 0x5be   :  { %3610 = vst.msk [vmem:[#allocation3 + $0x1e8] sm:$0xff] %vm1811_vm10, %v3544_v37  ;;  %v4335_v37 = vmul.f32 %v7278_v13, %v7278_v13  ;;  %v4449_v13 = vsel %vm20_vm0, %v4336_v57, 0.0 }
 0x5c0   :  { %v3164_v43 = vpop.permute.xlu2 %3163 }
 0x5c1   :  { %v4022_v41 = vpop.f32.mrf.mxu2 }
 0x5c2   :  { %4130 = vst.msk [vmem:[%s7551_s4 + $0x150] sm:$0xff] %vm20_vm0, %v4022_v41  ;;  %v4235_v53 = vsel %vm20_vm0, %v4022_v41, 0.0  ;;  %v4328_v19 = vmul.f32 %v4022_v41, %v4022_v41 }
 0x5c3   :  { %v4236_v31 = vadd.f32 %v4235_v53, %v4234_v60  ;;  %v3162_v23 = vpop.permute.xlu1 %3161 }
 0x5c4   :  { %v3546_v45 = vpop.permute.xlu0 %3545  ;;  %v4433_v26 = vsel %vm20_vm0, %v4328_v19, 0.0  ;;  %3227 = vst.msk [vmem:[#allocation3 + $0x1f0] sm:$0xff] %vm1425_vm8, %v3162_v23  ;;  %v4447_v19 = vsel %vm20_vm0, %v4335_v37, 0.0 }
 0x5c5   :  { %v3674_v8 = vld [vmem:[#allocation3 + $0x1e8] sm:$0xff]  ;;  %v4434_v29 = vadd.f32 %v4433_v26, %v4432_v10  ;;  %3419 = vst.msk [vmem:[#allocation3 + $0x1f0] sm:$0xff] %vm1618_vm9, %v3354_v6  ;;  %v4445_v10 = vsel %vm20_vm0, %v4334_v51, 0.0  ;;  %v4337_v6 = vmul.f32 %v7319_v20, %v7319_v20  ;;  %v4253_v26 = vsel %vm20_vm0, %v7319_v20, 0.0 }
 0x5c6   :  { %4589 = vmatmul.msk.f32.gmra.mxu3 %vm3686_vm11, %v3674_v8  ;;  %3611 = vst.msk [vmem:[#allocation3 + $0x1f0] sm:$0xff] %vm1811_vm10, %v3546_v45  ;;  %v4338_v8 = vmul.f32 %v7342_v5, %v7342_v5  ;;  %v4257_v20 = vsel %vm20_vm0, %v7355_v46, 0.0 }
 0x5c8   :  { %v7383_v32 = vpop.f32.mrf.mxu3 }
 0x5c9   :  { %4142 = vst.msk [vmem:[%s7551_s4 + $0x1b0] sm:$0xff] %vm20_vm0, %v7383_v32 }
 0x5cb   :  { %v2972_v0 = vpop.permute.xlu1 %2971 }
 0x5cc   :  { %v3356_v16 = vpop.permute.xlu0 %3355  ;;  %3036 = vst.msk [vmem:[#allocation3 + $0x1f8] sm:$0xff] %vm1231_vm7, %v2972_v0  ;;  %v4255_v0 = vsel %vm20_vm0, %v7342_v5, 0.0  ;;  %v4259_v5 = vsel %vm20_vm0, %v7383_v32, 0.0 }
 0x5cd   :  { %v3675_v2 = vld [vmem:[#allocation3 + $0x1f0] sm:$0xff]  ;;  %3228 = vst.msk [vmem:[#allocation3 + $0x1f8] sm:$0xff] %vm1425_vm8, %v3164_v43  ;;  %v4451_v43 = vsel %vm20_vm0, %v4337_v6, 0.0 }
 0x5ce   :  { %4590 = vmatmul.msk.f32.gmra.mxu3 %vm3686_vm11, %v3675_v2  ;;  %3420 = vst.msk [vmem:[#allocation3 + $0x1f8] sm:$0xff] %vm1618_vm9, %v3356_v16  ;;  %v4339_v16 = vmul.f32 %v7355_v46, %v7355_v46 }
 0x5d3   :  { %v3548_v40 = vpop.permute.xlu1 %3547 }
 0x5d4   :  { %3612 = vst.msk [vmem:[#allocation3 + $0x1f8] sm:$0xff] %vm1811_vm10, %v3548_v40 }
 0x5d8   :  { %v4025_v25 = vpop.f32.mrf.mxu2 }
 0x5d9   :  { %4131 = vst.msk [vmem:[%s7551_s4 + $0x158] sm:$0xff] %vm20_vm0, %v4025_v25  ;;  %v4237_v63 = vsel %vm20_vm0, %v4025_v25, 0.0  ;;  %v4329_v34 = vmul.f32 %v4025_v25, %v4025_v25  ;;  %v4453_v25 = vsel %vm20_vm0, %v4338_v8, 0.0 }
 0x5da   :  { %v4238_v28 = vadd.f32 %v4237_v63, %v4236_v31  ;;  %v4340_v63 = vmul.f32 %v7383_v32, %v7383_v32 }
 0x5db   :  { %v4435_v11 = vsel %vm20_vm0, %v4329_v34, 0.0  ;;  %v3676_v4 = vld [vmem:[#allocation3 + $0x1f8] sm:$0xff] }
 0x5dc   :  { %v4436_v55 = vadd.f32 %v4435_v11, %v4434_v29  ;;  %4591 = vmatmul.msk.f32.gmra.mxu3 %vm3686_vm11, %v3676_v4  ;;  %v4455_v11 = vsel %vm20_vm0, %v4339_v16, 0.0 }
 0x5df   :  { %v7402_v14 = vpop.f32.mrf.mxu3 }
 0x5e0   :  { %4143 = vst.msk [vmem:[%s7551_s4 + $0x1b8] sm:$0xff] %vm20_vm0, %v7402_v14  ;;  %v4341_v4 = vmul.f32 %v7402_v14, %v7402_v14  ;;  %v4261_v46 = vsel %vm20_vm0, %v7402_v14, 0.0 }
 0x5e9   :  { %v4028_v44 = vpop.f32.mrf.mxu2 }
 0x5ea   :  { %4132 = vst.msk [vmem:[%s7551_s4 + $0x160] sm:$0xff] %vm20_vm0, %v4028_v44  ;;  %v4239_v15 = vsel %vm20_vm0, %v4028_v44, 0.0  ;;  %v4330_v61 = vmul.f32 %v4028_v44, %v4028_v44 }
 0x5eb   :  { %v4240_v54 = vadd.f32 %v4239_v15, %v4238_v28  ;;  %v4457_v15 = vsel %vm20_vm0, %v4340_v63, 0.0 }
 0x5ec   :  { %v4437_v48 = vsel %vm20_vm0, %v4330_v61, 0.0 }
 0x5ed   :  { %v4438_v9 = vadd.f32 %v4437_v48, %v4436_v55 }
 0x5f0   :  { %v7415_v50 = vpop.f32.mrf.mxu3 }
 0x5f1   :  { %4144 = vst.msk [vmem:[%s7551_s4 + $0x1c0] sm:$0xff] %vm20_vm0, %v7415_v50  ;;  %v4342_v61 = vmul.f32 %v7415_v50, %v7415_v50  ;;  %v4263_v32 = vsel %vm20_vm0, %v7415_v50, 0.0 }
 0x601   :  { %v7422_v47 = vpop.f32.mrf.mxu3 }
 0x602   :  { %4145 = vst.msk [vmem:[%s7551_s4 + $0x1c8] sm:$0xff] %vm20_vm0, %v7422_v47  ;;  %v4265_v14 = vsel %vm20_vm0, %v7422_v47, 0.0 }
 0x607   :  { %v4031_v1 = vpop.f32.mrf.mxu2 }
 0x608   :  { %4133 = vst.msk [vmem:[%s7551_s4 + $0x168] sm:$0xff] %vm20_vm0, %v4031_v1  ;;  %v4331_v30 = vmul.f32 %v4031_v1, %v4031_v1  ;;  %v4241_v7 = vsel %vm20_vm0, %v4031_v1, 0.0  ;;  %v4343_v1 = vmul.f32 %v7422_v47, %v7422_v47 }
 0x609   :  { %v4242_v22 = vadd.f32 %v4241_v7, %v4240_v54  ;;  %v4461_v7 = vsel %vm20_vm0, %v4342_v61, 0.0 }
 0x60a   :  { %v4439_v52 = vsel %vm20_vm0, %v4331_v30, 0.0 }
 0x60b   :  { %v4440_v49 = vadd.f32 %v4439_v52, %v4438_v9  ;;  %v4459_v9 = vsel %vm20_vm0, %v4341_v4, 0.0 }
 0x618   :  { %v4034_v35 = vpop.f32.mrf.mxu2 }
 0x619   :  { %4134 = vst.msk [vmem:[%s7551_s4 + $0x170] sm:$0xff] %vm20_vm0, %v4034_v35  ;;  %v4332_v36 = vmul.f32 %v4034_v35, %v4034_v35  ;;  %v4243_v58 = vsel %vm20_vm0, %v4034_v35, 0.0 }
 0x61a   :  { %v4244_v27 = vadd.f32 %v4243_v58, %v4242_v22  ;;  %v4463_v22 = vsel %vm20_vm0, %v4343_v1, 0.0 }
 0x61b   :  { %v4441_v62 = vsel %vm20_vm0, %v4332_v36, 0.0 }
 0x61c   :  { %v4442_v18 = vadd.f32 %v4441_v62, %v4440_v49 }
 0x61f   :  { %v7437_v17 = vpop.f32.mrf.mxu3 }
 0x620   :  { %4146 = vst.msk [vmem:[%s7551_s4 + $0x1d0] sm:$0xff] %vm20_vm0, %v7437_v17  ;;  %v4344_v47 = vmul.f32 %v7437_v17, %v7437_v17 }
 0x622   :  { %v4465_v51 = vsel %vm20_vm0, %v4344_v47, 0.0 }
 0x629   :  { %v4037_v42 = vpop.f32.mrf.mxu2 }
 0x62a   :  { %4135 = vst.msk [vmem:[%s7551_s4 + $0x178] sm:$0xff] %vm20_vm0, %v4037_v42  ;;  %v4245_v39 = vsel %vm20_vm0, %v4037_v42, 0.0  ;;  %v4333_v38 = vmul.f32 %v4037_v42, %v4037_v42 }
 0x62b   :  { %v4246_v56 = vadd.f32 %v4245_v39, %v4244_v27  ;;  %v4267_v27 = vsel %vm20_vm0, %v7437_v17, 0.0 }
 0x62c   :  { %v4443_v33 = vsel %vm20_vm0, %v4333_v38, 0.0 }
 0x62d   :  { %v4248_v60 = vadd.f32 %v4247_v59, %v4246_v56  ;;  %v4444_v12 = vadd.f32 %v4443_v33, %v4442_v18 }
 0x62f   :  { %v4250_v41 = vadd.f32 %v4249_v3, %v4248_v60  ;;  %v4446_v53 = vadd.f32 %v4445_v10, %v4444_v12 }
 0x630   :  { %v4073_v31 = vpop.f32.mrf.mxu3 }
 0x631   :  { %v4252_v23 = vadd.f32 %v4251_v24, %v4250_v41  ;;  %v4448_v45 = vadd.f32 %v4447_v19, %v4446_v53  ;;  %4147 = vst.msk [vmem:[%s7551_s4 + $0x1d8] sm:$0xff] %vm20_vm0, %v4073_v31  ;;  %v4345_v39 = vmul.f32 %v4073_v31, %v4073_v31  ;;  %v4269_v18 = vsel %vm20_vm0, %v4073_v31, 0.0 }
 0x633   :  { %v4254_v21 = vadd.f32 %v4253_v26, %v4252_v23  ;;  %v4450_v29 = vadd.f32 %v4449_v13, %v4448_v45  ;;  %v4467_v59 = vsel %vm20_vm0, %v4345_v39, 0.0 }
 0x635   :  { %v4256_v2 = vadd.f32 %v4255_v0, %v4254_v21  ;;  %v4452_v40 = vadd.f32 %v4451_v43, %v4450_v29 }
 0x637   :  { %v4258_v34 = vadd.f32 %v4257_v20, %v4256_v2  ;;  %v4454_v28 = vadd.f32 %v4453_v25, %v4452_v40 }
 0x639   :  { %v4456_v55 = vadd.f32 %v4455_v11, %v4454_v28  ;;  %v4260_v44 = vadd.f32 %v4259_v5, %v4258_v34 }
 0x63b   :  { %v4262_v54 = vadd.f32 %v4261_v46, %v4260_v44  ;;  %v4458_v48 = vadd.f32 %v4457_v15, %v4456_v55 }
 0x63d   :  { %v4264_v35 = vadd.f32 %v4263_v32, %v4262_v54  ;;  %v4460_v30 = vadd.f32 %v4459_v9, %v4458_v48 }
 0x63f   :  { %v4266_v36 = vadd.f32 %v4265_v14, %v4264_v35  ;;  %v4462_v52 = vadd.f32 %v4461_v7, %v4460_v30  ;;  %v4076_v58 = vpop.f32.mrf.mxu3 }
 0x640   :  { %4148 = vst.msk [vmem:[%s7551_s4 + $0x1e0] sm:$0xff] %vm20_vm0, %v4076_v58  ;;  %v4346_v37 = vmul.f32 %v4076_v58, %v4076_v58  ;;  %v4271_v17 = vsel %vm20_vm0, %v4076_v58, 0.0 }
 0x641   :  { %v4464_v50 = vadd.f32 %v4463_v22, %v4462_v52  ;;  %v4268_v42 = vadd.f32 %v4267_v27, %v4266_v36 }
 0x642   :  { %v4469_v57 = vsel %vm20_vm0, %v4346_v37, 0.0 }
 0x643   :  { %v4466_v38 = vadd.f32 %v4465_v51, %v4464_v50  ;;  %v4270_v56 = vadd.f32 %v4269_v18, %v4268_v42 }
 0x645   :  { %v4468_v60 = vadd.f32 %v4467_v59, %v4466_v38  ;;  %v4272_v3 = vadd.f32 %v4271_v17, %v4270_v56 }
 0x647   :  { %v4470_v19 = vadd.f32 %v4469_v57, %v4468_v60 }
 0x649   :  { %v4079_v62 = vpop.f32.mrf.mxu3 }
 0x64a   :  { %4149 = vst.msk [vmem:[%s7551_s4 + $0x1e8] sm:$0xff] %vm20_vm0, %v4079_v62  ;;  %v4347_v33 = vmul.f32 %v4079_v62, %v4079_v62  ;;  %v4273_v12 = vsel %vm20_vm0, %v4079_v62, 0.0 }
 0x64b   :  { %v4274_v24 = vadd.f32 %v4273_v12, %v4272_v3 }
 0x64c   :  { %v4471_v41 = vsel %vm20_vm0, %v4347_v33, 0.0 }
 0x64d   :  { %v4472_v31 = vadd.f32 %v4471_v41, %v4470_v19 }
 0x651   :  { %v4082_v49 = vpop.f32.mrf.mxu3 }
 0x652   :  { %4150 = vst.msk [vmem:[%s7551_s4 + $0x1f0] sm:$0xff] %vm20_vm0, %v4082_v49  ;;  %v4348_v10 = vmul.f32 %v4082_v49, %v4082_v49  ;;  %v4275_v53 = vsel %vm20_vm0, %v4082_v49, 0.0 }
 0x653   :  { %v4276_v23 = vadd.f32 %v4275_v53, %v4274_v24 }
 0x654   :  { %v4473_v6 = vsel %vm20_vm0, %v4348_v10, 0.0 }
 0x655   :  { %v4474_v8 = vadd.f32 %v4473_v6, %v4472_v31 }
 0x65f   :  { %v4085_v45 = vpop.f32.mrf.mxu3 }
 0x660   :  { %4151 = vst.msk [vmem:[%s7551_s4 + $0x1f8] sm:$0xff] %vm20_vm0, %v4085_v45  ;;  %v4277_v13 = vsel %vm20_vm0, %v4085_v45, 0.0  ;;  %v4349_v26 = vmul.f32 %v4085_v45, %v4085_v45 }
 0x661   :  { %v4278_v21 = vadd.f32 %v4277_v13, %v4276_v23 }
 0x662   :  { %v4475_v29 = vsel %vm20_vm0, %v4349_v26, 0.0 }
 0x663   :  { %v4279_v43 = vrot.slane %v4278_v21, 4  ;;  %v4476_v0 = vadd.f32 %v4475_v29, %v4474_v8 }
 0x665   :  { %v4280_v16 = vadd.f32 %v4279_v43, %v4278_v21  ;;  %v4477_v2 = vrot.slane %v4476_v0, 4 }
 0x667   :  { %v4281_v40 = vrot.slane %v4280_v16, 2  ;;  %v4478_v25 = vadd.f32 %v4477_v2, %v4476_v0 }
 0x669   :  { %v4282_v20 = vadd.f32 %v4281_v40, %v4280_v16  ;;  %v4479_v63 = vrot.slane %v4478_v25, 2 }
 0x66b   :  { %v4283_v34 = vrot.slane %v4282_v20, 1  ;;  %v4480_v28 = vadd.f32 %v4479_v63, %v4478_v25 }
 0x66d   :  { %v4284_v11 = vadd.f32 %v4283_v34, %v4282_v20  ;;  %v4481_v5 = vrot.slane %v4480_v28, 1 }
 0x66f   :  { %4285 = vst.msk [vmem:[%s7552_s5] sm:$0x1] %vm29_vm2, %v4284_v11  ;;  %v4482_v4 = vadd.f32 %v4481_v5, %v4480_v28 }
 0x671   :  { %4483 = vst.msk [vmem:[%s7553_s6] sm:$0x1] %vm29_vm2, %v4482_v4 }

</bundles_post_ra>
